<compile_context>
chip_gen: v6e
topology: v6e:2x2x1
jax: 0.10.0
libtpu: 0.0.40
codegen_flags: <defaults>
</compile_context>

<pallas_src>
import functools
import math

import jax
import jax.numpy as jnp
from jax.experimental import pallas as pl
from jax.experimental.pallas import tpu as pltpu


def _sigmoid(u):
    # EUP tanh, no divide on the GRU's serial critical path.
    return 0.5 * (jnp.tanh(0.5 * u) + 1.0)


def self_attention_classifier_kernel(
    x_ref,
    w_qkv_ref, b_qkv_ref, w_out_ref, b_out_ref,
    w_ih_ref, b_ih_ref, w_hh_ref, b_hh_ref,
    ln0_w_ref, ln0_b_ref,
    wc1_ref, bc1_ref, ln1_w_ref, ln1_b_ref,
    wc2_ref, bc2_ref, ln2_w_ref, ln2_b_ref,
    wc3_ref, bc3_ref,
    out_ref,
    *, num_heads: int, mxu_dtype,
):
    TB, T, D = x_ref.shape
    H = num_heads
    Dh = D // H
    D3 = 3 * D
    eps = 1e-5

    def mx(v):  # cast an MXU operand (weights are pre-cast in the wrapper)
        return v.astype(mxu_dtype)

    x = x_ref[...].astype(jnp.float32)          # (TB, T, D)
    x2 = x.reshape(TB * T, D)                   # fold batch+time for the MXU

    # ---------------- MultiheadAttention(x, x, x), batch_first ----------------
    # Single fused (TB*T, D) @ (D, 3D) projection produces q, k, v for all heads.
    qkv = (jnp.dot(mx(x2), w_qkv_ref[...], preferred_element_type=jnp.float32)
           + b_qkv_ref[...])
    qkv3 = qkv.reshape(TB, T, 3 * D)
    scale = 1.0 / math.sqrt(Dh)

    ctx_heads = []
    for h in range(H):                           # static unroll over 4 heads
        qh = qkv3[:, :, h * Dh:(h + 1) * Dh] * scale                 # (TB, T, Dh)
        kh = qkv3[:, :, D + h * Dh:D + (h + 1) * Dh]
        vh = qkv3[:, :, 2 * D + h * Dh:2 * D + (h + 1) * Dh]
        s = jnp.einsum('bqd,bkd->bqk', mx(qh), mx(kh),
                       preferred_element_type=jnp.float32)           # (TB, T, T)
        m = jnp.max(s, axis=-1, keepdims=True)
        e = jnp.exp(s - m)
        denom = jnp.sum(e, axis=-1, keepdims=True)
        p = e * pl.reciprocal(denom, approx=True)                    # EUP recip
        ctx_heads.append(jnp.einsum('bqk,bkd->bqd', mx(p), mx(vh),
                                    preferred_element_type=jnp.float32))
    ctx = jnp.concatenate(ctx_heads, axis=-1).reshape(TB * T, D)
    attn = (jnp.dot(mx(ctx), w_out_ref[...], preferred_element_type=jnp.float32)
            + b_out_ref[...])                                        # (TB*T, D)

    # ---------------- Bidirectional GRU + mean over time ----------------------
    # Single fused input-side projection for BOTH directions:
    #   columns = [r,z,n]_fwd (3D) | [r,z,n]_bwd (3D)
    gi = (jnp.dot(mx(attn), w_ih_ref[...], preferred_element_type=jnp.float32)
          + b_ih_ref[...])
    gi3 = gi.reshape(TB, T, 6 * D)

    w_hh = w_hh_ref[...]          # (2D, 6D) block-diagonal [fwd | bwd], MXU dtype
    b_hh = b_hh_ref[...]          # (1, 6D) f32

    # Only the time-mean of the GRU outputs is needed downstream, so keep a
    # running sum instead of materializing (TB, T, 2D).  Forward and backward
    # recurrences share one loop so their work interleaves (MXU vs VPU/EUP).
    # TODO(synk): for T >> 16 switch to lax.fori_loop and tile the (TB,T,T)
    # attention scores instead of this static unroll.
    hcat = jnp.zeros((TB, 2 * D), jnp.float32)      # [h_fwd | h_bwd]
    hsum = jnp.zeros((TB, 2 * D), jnp.float32)
    for t in range(T):                               # static unroll (T small)
        gif = gi3[:, t, :D3]                         # fwd gates at time t
        gib = gi3[:, T - 1 - t, D3:]                 # bwd gates at time T-1-t
        gh = (jnp.dot(mx(hcat), w_hh, preferred_element_type=jnp.float32)
              + b_hh)                                # one MXU push, both dirs
        ghf, ghb = gh[:, :D3], gh[:, D3:]
        h_f, h_b = hcat[:, :D], hcat[:, D:]

        r_f = _sigmoid(gif[:, :D] + ghf[:, :D])
        z_f = _sigmoid(gif[:, D:2 * D] + ghf[:, D:2 * D])
        n_f = jnp.tanh(gif[:, 2 * D:] + r_f * ghf[:, 2 * D:])
        h_f = (1.0 - z_f) * n_f + z_f * h_f

        r_b = _sigmoid(gib[:, :D] + ghb[:, :D])
        z_b = _sigmoid(gib[:, D:2 * D] + ghb[:, D:2 * D])
        n_b = jnp.tanh(gib[:, 2 * D:] + r_b * ghb[:, 2 * D:])
        h_b = (1.0 - z_b) * n_b + z_b * h_b

        hcat = jnp.concatenate([h_f, h_b], axis=-1)
        hsum = hsum + hcat
    pooled = hsum * (1.0 / T)                        # (TB, 2D) mean over time

    # ---------------- LayerNorm + classifier head (Dropout == identity) -------
    def layernorm(v, w_ref, b_ref):
        mu = jnp.mean(v, axis=-1, keepdims=True)
        var = jnp.mean((v - mu) ** 2, axis=-1, keepdims=True)
        return (v - mu) * jax.lax.rsqrt(var + eps) * w_ref[...] + b_ref[...]

    normed = layernorm(pooled, ln0_w_ref, ln0_b_ref)
    h1 = jnp.maximum(
        jnp.dot(mx(normed), wc1_ref[...], preferred_element_type=jnp.float32)
        + bc1_ref[...], 0.0)
    h1 = layernorm(h1, ln1_w_ref, ln1_b_ref)
    h2 = jnp.maximum(
        jnp.dot(mx(h1), wc2_ref[...], preferred_element_type=jnp.float32)
        + bc2_ref[...], 0.0)
    h2 = layernorm(h2, ln2_w_ref, ln2_b_ref)
    logits = (jnp.dot(mx(h2), wc3_ref[...], preferred_element_type=jnp.float32)
              + bc3_ref[...])                        # (TB, E_pad) lane-dense

    out_ref[...] = logits.astype(out_ref.dtype)


def _pick_batch_block(b_pad: int, max_tb: int = 128) -> int:
    """Largest multiple-of-8 divisor of b_pad that is <= max_tb."""
    best = 8
    tb = 8
    while tb <= min(b_pad, max_tb):
        if b_pad % tb == 0:
            best = tb
        tb += 8
    return best


def self_attention_classifier(x, params, *, num_heads: int = 4,
                              mxu_dtype=jnp.float32, batch_block=None):
    B, T, D = x.shape
    E = params["bc3"].shape[-1]
    D3 = 3 * D

    # Pad batch to a multiple of 8 so every block satisfies the sublane rule.
    B_pad = max(8, ((B + 7) // 8) * 8)
    if B_pad != B:
        x = jnp.pad(x, ((0, B_pad - B), (0, 0), (0, 0)))
    TB = _pick_batch_block(B_pad) if batch_block is None else batch_block
    assert B_pad % TB == 0 and TB % 8 == 0

    # Pad the final classifier columns to 128 lanes for a lane-dense store.
    E_pad = ((E + 127) // 128) * 128
    wc3 = jnp.pad(params["wc3"], ((0, 0), (0, E_pad - E)))
    bc3 = jnp.pad(params["bc3"], ((0, 0), (0, E_pad - E)))

    # Fuse GRU weights (wrapper-side, plain XLA):
    #  * input side: one (D, 6D) matrix [fwd_rzn | bwd_rzn]
    #  * hidden side: block-diagonal (2D, 6D) so both directions share one push
    w_ih_cat = jnp.concatenate([params["w_ih_f"], params["w_ih_b"]], axis=1)
    b_ih_cat = jnp.concatenate([params["b_ih_f"], params["b_ih_b"]], axis=1)
    w_hh_cat = jnp.zeros((2 * D, 6 * D), jnp.float32)
    w_hh_cat = w_hh_cat.at[:D, :D3].set(params["w_hh_f"])
    w_hh_cat = w_hh_cat.at[D:, D3:].set(params["w_hh_b"])
    b_hh_cat = jnp.concatenate([params["b_hh_f"], params["b_hh_b"]], axis=1)

    def cw(w):  # weight matrices feed the MXU; biases / LN params stay f32
        return w.astype(mxu_dtype)

    weights = [
        cw(params["w_qkv"]), params["b_qkv"], cw(params["w_out"]), params["b_out"],
        cw(w_ih_cat), b_ih_cat, cw(w_hh_cat), b_hh_cat,
        params["ln0_w"], params["ln0_b"],
        cw(params["wc1"]), params["bc1"], params["ln1_w"], params["ln1_b"],
        cw(params["wc2"]), params["bc2"], params["ln2_w"], params["ln2_b"],
        cw(wc3), bc3,
    ]

    in_specs = [pl.BlockSpec((TB, T, D), lambda b: (b, 0, 0))]
    in_specs += [pl.BlockSpec(w.shape, lambda b: (0, 0)) for w in weights]

    kernel = functools.partial(self_attention_classifier_kernel,
                               num_heads=num_heads, mxu_dtype=mxu_dtype)

    out = pl.pallas_call(
        kernel,
        out_shape=jax.ShapeDtypeStruct((B_pad, E_pad), jnp.float32),
        grid_spec=pltpu.PrefetchScalarGridSpec(
            num_scalar_prefetch=0,
            grid=(B_pad // TB,),
            in_specs=in_specs,
            out_specs=pl.BlockSpec((TB, E_pad), lambda b: (b, 0)),
        ),
        compiler_params=pltpu.CompilerParams(
            dimension_semantics=("parallel",),
        ),
    )(x, *weights)
    return out[:B, :E].astype(x.dtype)


# ------------------------------ pure-JAX reference -----------------------------
def _sigmoid_ref(u):
    return 1.0 / (1.0 + jnp.exp(-u))


def self_attention_classifier_ref(x, params, *, num_heads: int = 4):
    B, T, D = x.shape
    H = num_heads
    Dh = D // H
    scale = 1.0 / math.sqrt(Dh)

    qkv = x @ params["w_qkv"] + params["b_qkv"]                    # (B, T, 3D)
    q, k, v = qkv[..., :D], qkv[..., D:2 * D], qkv[..., 2 * D:]
    q = q.reshape(B, T, H, Dh).transpose(0, 2, 1, 3) * scale
    k = k.reshape(B, T, H, Dh).transpose(0, 2, 1, 3)
    v = v.reshape(B, T, H, Dh).transpose(0, 2, 1, 3)
    s = jnp.einsum('bhqd,bhkd->bhqk', q, k)
    p = jax.nn.softmax(s, axis=-1)
    ctx = jnp.einsum('bhqk,bhkd->bhqd', p, v).transpose(0, 2, 1, 3).reshape(B, T, D)
    attn = ctx @ params["w_out"] + params["b_out"]

    def gru_dir(inp, w_ih, w_hh, b_ih, b_hh):
        def step(h, x_t):
            gi = x_t @ w_ih + b_ih
            gh = h @ w_hh + b_hh
            r = _sigmoid_ref(gi[:, :D] + gh[:, :D])
            z = _sigmoid_ref(gi[:, D:2 * D] + gh[:, D:2 * D])
            n = jnp.tanh(gi[:, 2 * D:] + r * gh[:, 2 * D:])
            h_new = (1.0 - z) * n + z * h
            return h_new, h_new
        h0 = jnp.zeros((inp.shape[0], D), jnp.float32)
        _, hs = jax.lax.scan(step, h0, jnp.swapaxes(inp, 0, 1))
        return jnp.swapaxes(hs, 0, 1)                              # (B, T, D)

    hf = gru_dir(attn, params["w_ih_f"], params["w_hh_f"], params["b_ih_f"], params["b_hh_f"])
    hb = gru_dir(attn[:, ::-1], params["w_ih_b"], params["w_hh_b"],
                 params["b_ih_b"], params["b_hh_b"])[:, ::-1]
    pooled = jnp.concatenate([hf, hb], axis=-1).mean(axis=1)       # (B, 2D)

    def ln(v_, w, b, eps=1e-5):
        mu = v_.mean(-1, keepdims=True)
        var = ((v_ - mu) ** 2).mean(-1, keepdims=True)
        return (v_ - mu) / jnp.sqrt(var + eps) * w + b

    normed = ln(pooled, params["ln0_w"], params["ln0_b"])
    h1 = ln(jax.nn.relu(normed @ params["wc1"] + params["bc1"]), params["ln1_w"], params["ln1_b"])
    h2 = ln(jax.nn.relu(h1 @ params["wc2"] + params["bc2"]), params["ln2_w"], params["ln2_b"])
    return h2 @ params["wc3"] + params["bc3"]


def init_params(key, D, E):
    specs = [
        ("w_qkv", (D, 3 * D), D), ("b_qkv", (1, 3 * D), None),
        ("w_out", (D, D), D), ("b_out", (1, D), None),
        ("w_ih_f", (D, 3 * D), D), ("w_hh_f", (D, 3 * D), D),
        ("b_ih_f", (1, 3 * D), None), ("b_hh_f", (1, 3 * D), None),
        ("w_ih_b", (D, 3 * D), D), ("w_hh_b", (D, 3 * D), D),
        ("b_ih_b", (1, 3 * D), None), ("b_hh_b", (1, 3 * D), None),
        ("ln0_w", (1, 2 * D), "ln"), ("ln0_b", (1, 2 * D), None),
        ("wc1", (2 * D, 512), 2 * D), ("bc1", (1, 512), None),
        ("ln1_w", (1, 512), "ln"), ("ln1_b", (1, 512), None),
        ("wc2", (512, 256), 512), ("bc2", (1, 256), None),
        ("ln2_w", (1, 256), "ln"), ("ln2_b", (1, 256), None),
        ("wc3", (256, E), 256), ("bc3", (1, E), None),
    ]
    keys = jax.random.split(key, len(specs))
    p = {}
    for (name, shape, kind), k in zip(specs, keys):
        if kind == "ln":
            p[name] = 1.0 + 0.1 * jax.random.normal(k, shape, dtype=jnp.float32)
        elif kind is None:
            p[name] = 0.1 * jax.random.normal(k, shape, dtype=jnp.float32)
        else:
            p[name] = jax.random.normal(k, shape, dtype=jnp.float32) * (1.0 / math.sqrt(kind))
    return p


if __name__ == "__main__":
    B, T, D, E, H = 2, 8, 32, 8, 4          # batch, seq, input_dim, num_emotions, heads
    key = jax.random.PRNGKey(0)
    kx, kp = jax.random.split(key)
    x = jax.random.normal(kx, (B, T, D), dtype=jnp.float32)
    params = init_params(kp, D, E)

    ref = self_attention_classifier_ref(x, params, num_heads=H)

    # f32 MXU path (default) — tight check against the pure-JAX reference.
    out = jax.block_until_ready(self_attention_classifier(x, params, num_heads=H))
    assert out.shape == (B, E)
    err = jnp.max(jnp.abs(out - ref))
    assert jnp.allclose(out, ref, atol=5e-3, rtol=5e-3), f"f32 mismatch: max abs err = {err}"

    # bf16 MXU-operand path (perf option for v6e/v7x) — looser tolerance.
    out_bf = jax.block_until_ready(
        self_attention_classifier(x, params, num_heads=H, mxu_dtype=jnp.bfloat16))
    assert out_bf.shape == (B, E)
    assert bool(jnp.all(jnp.isfinite(out_bf)))
    err_bf = jnp.max(jnp.abs(out_bf - ref))
    assert jnp.allclose(out_bf, ref, atol=0.15, rtol=0.1), f"bf16 mismatch: max abs err = {err_bf}"

    print("KERNEL_OK")
</pallas_src>

<mosaic_0001>
module attributes {stable_mosaic.version = 11 : i64} {
  func.func @self_attention_classifier_kernel(%arg0: i32, %arg1: memref<8x8x32xf32, #tpu.memory_space<vmem>>, %arg2: memref<32x96xf32, #tpu.memory_space<vmem>>, %arg3: memref<1x96xf32, #tpu.memory_space<vmem>>, %arg4: memref<32x32xf32, #tpu.memory_space<vmem>>, %arg5: memref<1x32xf32, #tpu.memory_space<vmem>>, %arg6: memref<32x192xf32, #tpu.memory_space<vmem>>, %arg7: memref<1x192xf32, #tpu.memory_space<vmem>>, %arg8: memref<64x192xf32, #tpu.memory_space<vmem>>, %arg9: memref<1x192xf32, #tpu.memory_space<vmem>>, %arg10: memref<1x64xf32, #tpu.memory_space<vmem>>, %arg11: memref<1x64xf32, #tpu.memory_space<vmem>>, %arg12: memref<64x512xf32, #tpu.memory_space<vmem>>, %arg13: memref<1x512xf32, #tpu.memory_space<vmem>>, %arg14: memref<1x512xf32, #tpu.memory_space<vmem>>, %arg15: memref<1x512xf32, #tpu.memory_space<vmem>>, %arg16: memref<512x256xf32, #tpu.memory_space<vmem>>, %arg17: memref<1x256xf32, #tpu.memory_space<vmem>>, %arg18: memref<1x256xf32, #tpu.memory_space<vmem>>, %arg19: memref<1x256xf32, #tpu.memory_space<vmem>>, %arg20: memref<256x128xf32, #tpu.memory_space<vmem>>, %arg21: memref<1x128xf32, #tpu.memory_space<vmem>>, %arg22: memref<8x128xf32, #tpu.memory_space<vmem>>) attributes {dimension_semantics = [#tpu.dimension_semantics<parallel>], iteration_bounds = array<i64: 1>, scalar_prefetch = 0 : i64, scratch_operands = 0 : i64, tpu.core_type = #tpu.core_type<tc>, window_params = [{transform_indices = @transform_0, window_bounds = array<i64: 8, 8, 32>}, {pipeline_mode = #tpu.pipeline_mode<synchronous>, transform_indices = @transform_1, window_bounds = array<i64: 32, 96>}, {pipeline_mode = #tpu.pipeline_mode<synchronous>, transform_indices = @transform_2, window_bounds = array<i64: 1, 96>}, {pipeline_mode = #tpu.pipeline_mode<synchronous>, transform_indices = @transform_3, window_bounds = array<i64: 32, 32>}, {pipeline_mode = #tpu.pipeline_mode<synchronous>, transform_indices = @transform_4, window_bounds = array<i64: 1, 32>}, {pipeline_mode = #tpu.pipeline_mode<synchronous>, transform_indices = @transform_5, window_bounds = array<i64: 32, 192>}, {pipeline_mode = #tpu.pipeline_mode<synchronous>, transform_indices = @transform_6, window_bounds = array<i64: 1, 192>}, {pipeline_mode = #tpu.pipeline_mode<synchronous>, transform_indices = @transform_7, window_bounds = array<i64: 64, 192>}, {pipeline_mode = #tpu.pipeline_mode<synchronous>, transform_indices = @transform_8, window_bounds = array<i64: 1, 192>}, {pipeline_mode = #tpu.pipeline_mode<synchronous>, transform_indices = @transform_9, window_bounds = array<i64: 1, 64>}, {pipeline_mode = #tpu.pipeline_mode<synchronous>, transform_indices = @transform_10, window_bounds = array<i64: 1, 64>}, {pipeline_mode = #tpu.pipeline_mode<synchronous>, transform_indices = @transform_11, window_bounds = array<i64: 64, 512>}, {pipeline_mode = #tpu.pipeline_mode<synchronous>, transform_indices = @transform_12, window_bounds = array<i64: 1, 512>}, {pipeline_mode = #tpu.pipeline_mode<synchronous>, transform_indices = @transform_13, window_bounds = array<i64: 1, 512>}, {pipeline_mode = #tpu.pipeline_mode<synchronous>, transform_indices = @transform_14, window_bounds = array<i64: 1, 512>}, {pipeline_mode = #tpu.pipeline_mode<synchronous>, transform_indices = @transform_15, window_bounds = array<i64: 512, 256>}, {pipeline_mode = #tpu.pipeline_mode<synchronous>, transform_indices = @transform_16, window_bounds = array<i64: 1, 256>}, {pipeline_mode = #tpu.pipeline_mode<synchronous>, transform_indices = @transform_17, window_bounds = array<i64: 1, 256>}, {pipeline_mode = #tpu.pipeline_mode<synchronous>, transform_indices = @transform_18, window_bounds = array<i64: 1, 256>}, {pipeline_mode = #tpu.pipeline_mode<synchronous>, transform_indices = @transform_19, window_bounds = array<i64: 256, 128>}, {pipeline_mode = #tpu.pipeline_mode<synchronous>, transform_indices = @transform_20, window_bounds = array<i64: 1, 128>}, {transform_indices = @transform_21, window_bounds = array<i64: 8, 128>}]} {
    %c0 = arith.constant 0 : index
    %c0_0 = arith.constant 0 : index
    %c0_1 = arith.constant 0 : index
    %0 = vector.load %arg1[%c0, %c0_0, %c0_1] : memref<8x8x32xf32, #tpu.memory_space<vmem>>, vector<8x8x32xf32>
    %1 = vector.shape_cast %0 : vector<8x8x32xf32> to vector<64x32xf32>
    %c0_2 = arith.constant 0 : index
    %c0_3 = arith.constant 0 : index
    %2 = vector.load %arg2[%c0_2, %c0_3] : memref<32x96xf32, #tpu.memory_space<vmem>>, vector<32x96xf32>
    %cst = arith.constant dense<0.000000e+00> : vector<64x96xf32>
    %3 = tpu.matmul %1, %2, %cst {dimension_numbers = #tpu.dot_dimension_numbers<[1], [0], [0], [1], [0, 0, 1, 1], [], []>} : vector<64x32xf32>, vector<32x96xf32>, vector<64x96xf32> -> vector<64x96xf32>
    %c0_4 = arith.constant 0 : index
    %c0_5 = arith.constant 0 : index
    %4 = vector.load %arg3[%c0_4, %c0_5] : memref<1x96xf32, #tpu.memory_space<vmem>>, vector<1x96xf32>
    %5 = vector.broadcast %4 : vector<1x96xf32> to vector<64x96xf32>
    %6 = arith.addf %3, %5 : vector<64x96xf32>
    %7 = vector.shape_cast %6 : vector<64x96xf32> to vector<8x8x96xf32>
    %8 = vector.extract_strided_slice %7 {offsets = [0, 0, 0], sizes = [8, 8, 8], strides = [1, 1, 1]} : vector<8x8x96xf32> to vector<8x8x8xf32>
    %cst_6 = arith.constant 0.353553385 : f32
    %9 = vector.broadcast %cst_6 : f32 to vector<8x8x8xf32>
    %10 = arith.mulf %8, %9 : vector<8x8x8xf32>
    %11 = vector.extract_strided_slice %7 {offsets = [0, 0, 32], sizes = [8, 8, 8], strides = [1, 1, 1]} : vector<8x8x96xf32> to vector<8x8x8xf32>
    %12 = vector.extract_strided_slice %7 {offsets = [0, 0, 64], sizes = [8, 8, 8], strides = [1, 1, 1]} : vector<8x8x96xf32> to vector<8x8x8xf32>
    "tpu.trace_start"() <{level = 10 : i32, message = "bqd,bkd->bqk"}> : () -> ()
    %cst_7 = arith.constant dense<0.000000e+00> : vector<8x8x8xf32>
    %13 = tpu.matmul %10, %11, %cst_7 {dimension_numbers = #tpu.dot_dimension_numbers<[2], [2], [1], [1], [0, 0, 0, 1, 1, 1], [0], [0]>} : vector<8x8x8xf32>, vector<8x8x8xf32>, vector<8x8x8xf32> -> vector<8x8x8xf32>
    "tpu.trace_stop"() : () -> ()
    %cst_8 = arith.constant dense<0xFF800000> : vector<8x8xf32>
    %14 = vector.multi_reduction <maximumf>, %13, %cst_8 [2] : vector<8x8x8xf32> to vector<8x8xf32>
    %15 = vector.shape_cast %14 : vector<8x8xf32> to vector<8x8x1xf32>
    %16 = vector.broadcast %15 : vector<8x8x1xf32> to vector<8x8x8xf32>
    %17 = arith.subf %13, %16 : vector<8x8x8xf32>
    %18 = math.exp %17 : vector<8x8x8xf32>
    %cst_9 = arith.constant dense<0.000000e+00> : vector<8x8xf32>
    %19 = vector.multi_reduction <add>, %18, %cst_9 [2] : vector<8x8x8xf32> to vector<8x8xf32>
    %20 = vector.shape_cast %19 : vector<8x8xf32> to vector<8x8x1xf32>
    %21 = tpu.reciprocal %20 {approx = true} : vector<8x8x1xf32> -> vector<8x8x1xf32>
    %22 = vector.broadcast %21 : vector<8x8x1xf32> to vector<8x8x8xf32>
    %23 = arith.mulf %18, %22 : vector<8x8x8xf32>
    "tpu.trace_start"() <{level = 10 : i32, message = "bqk,bkd->bqd"}> : () -> ()
    %cst_10 = arith.constant dense<0.000000e+00> : vector<8x8x8xf32>
    %24 = tpu.matmul %23, %12, %cst_10 {dimension_numbers = #tpu.dot_dimension_numbers<[2], [1], [1], [2], [0, 0, 0, 1, 1, 2], [0], [0]>} : vector<8x8x8xf32>, vector<8x8x8xf32>, vector<8x8x8xf32> -> vector<8x8x8xf32>
    "tpu.trace_stop"() : () -> ()
    %25 = vector.extract_strided_slice %7 {offsets = [0, 0, 8], sizes = [8, 8, 8], strides = [1, 1, 1]} : vector<8x8x96xf32> to vector<8x8x8xf32>
    %cst_11 = arith.constant 0.353553385 : f32
    %26 = vector.broadcast %cst_11 : f32 to vector<8x8x8xf32>
    %27 = arith.mulf %25, %26 : vector<8x8x8xf32>
    %28 = vector.extract_strided_slice %7 {offsets = [0, 0, 40], sizes = [8, 8, 8], strides = [1, 1, 1]} : vector<8x8x96xf32> to vector<8x8x8xf32>
    %29 = vector.extract_strided_slice %7 {offsets = [0, 0, 72], sizes = [8, 8, 8], strides = [1, 1, 1]} : vector<8x8x96xf32> to vector<8x8x8xf32>
    "tpu.trace_start"() <{level = 10 : i32, message = "bqd,bkd->bqk"}> : () -> ()
    %cst_12 = arith.constant dense<0.000000e+00> : vector<8x8x8xf32>
    %30 = tpu.matmul %27, %28, %cst_12 {dimension_numbers = #tpu.dot_dimension_numbers<[2], [2], [1], [1], [0, 0, 0, 1, 1, 1], [0], [0]>} : vector<8x8x8xf32>, vector<8x8x8xf32>, vector<8x8x8xf32> -> vector<8x8x8xf32>
    "tpu.trace_stop"() : () -> ()
    %cst_13 = arith.constant dense<0xFF800000> : vector<8x8xf32>
    %31 = vector.multi_reduction <maximumf>, %30, %cst_13 [2] : vector<8x8x8xf32> to vector<8x8xf32>
    %32 = vector.shape_cast %31 : vector<8x8xf32> to vector<8x8x1xf32>
    %33 = vector.broadcast %32 : vector<8x8x1xf32> to vector<8x8x8xf32>
    %34 = arith.subf %30, %33 : vector<8x8x8xf32>
    %35 = math.exp %34 : vector<8x8x8xf32>
    %cst_14 = arith.constant dense<0.000000e+00> : vector<8x8xf32>
    %36 = vector.multi_reduction <add>, %35, %cst_14 [2] : vector<8x8x8xf32> to vector<8x8xf32>
    %37 = vector.shape_cast %36 : vector<8x8xf32> to vector<8x8x1xf32>
    %38 = tpu.reciprocal %37 {approx = true} : vector<8x8x1xf32> -> vector<8x8x1xf32>
    %39 = vector.broadcast %38 : vector<8x8x1xf32> to vector<8x8x8xf32>
    %40 = arith.mulf %35, %39 : vector<8x8x8xf32>
    "tpu.trace_start"() <{level = 10 : i32, message = "bqk,bkd->bqd"}> : () -> ()
    %cst_15 = arith.constant dense<0.000000e+00> : vector<8x8x8xf32>
    %41 = tpu.matmul %40, %29, %cst_15 {dimension_numbers = #tpu.dot_dimension_numbers<[2], [1], [1], [2], [0, 0, 0, 1, 1, 2], [0], [0]>} : vector<8x8x8xf32>, vector<8x8x8xf32>, vector<8x8x8xf32> -> vector<8x8x8xf32>
    "tpu.trace_stop"() : () -> ()
    %42 = vector.extract_strided_slice %7 {offsets = [0, 0, 16], sizes = [8, 8, 8], strides = [1, 1, 1]} : vector<8x8x96xf32> to vector<8x8x8xf32>
    %cst_16 = arith.constant 0.353553385 : f32
    %43 = vector.broadcast %cst_16 : f32 to vector<8x8x8xf32>
    %44 = arith.mulf %42, %43 : vector<8x8x8xf32>
    %45 = vector.extract_strided_slice %7 {offsets = [0, 0, 48], sizes = [8, 8, 8], strides = [1, 1, 1]} : vector<8x8x96xf32> to vector<8x8x8xf32>
    %46 = vector.extract_strided_slice %7 {offsets = [0, 0, 80], sizes = [8, 8, 8], strides = [1, 1, 1]} : vector<8x8x96xf32> to vector<8x8x8xf32>
    "tpu.trace_start"() <{level = 10 : i32, message = "bqd,bkd->bqk"}> : () -> ()
    %cst_17 = arith.constant dense<0.000000e+00> : vector<8x8x8xf32>
    %47 = tpu.matmul %44, %45, %cst_17 {dimension_numbers = #tpu.dot_dimension_numbers<[2], [2], [1], [1], [0, 0, 0, 1, 1, 1], [0], [0]>} : vector<8x8x8xf32>, vector<8x8x8xf32>, vector<8x8x8xf32> -> vector<8x8x8xf32>
    "tpu.trace_stop"() : () -> ()
    %cst_18 = arith.constant dense<0xFF800000> : vector<8x8xf32>
    %48 = vector.multi_reduction <maximumf>, %47, %cst_18 [2] : vector<8x8x8xf32> to vector<8x8xf32>
    %49 = vector.shape_cast %48 : vector<8x8xf32> to vector<8x8x1xf32>
    %50 = vector.broadcast %49 : vector<8x8x1xf32> to vector<8x8x8xf32>
    %51 = arith.subf %47, %50 : vector<8x8x8xf32>
    %52 = math.exp %51 : vector<8x8x8xf32>
    %cst_19 = arith.constant dense<0.000000e+00> : vector<8x8xf32>
    %53 = vector.multi_reduction <add>, %52, %cst_19 [2] : vector<8x8x8xf32> to vector<8x8xf32>
    %54 = vector.shape_cast %53 : vector<8x8xf32> to vector<8x8x1xf32>
    %55 = tpu.reciprocal %54 {approx = true} : vector<8x8x1xf32> -> vector<8x8x1xf32>
    %56 = vector.broadcast %55 : vector<8x8x1xf32> to vector<8x8x8xf32>
    %57 = arith.mulf %52, %56 : vector<8x8x8xf32>
    "tpu.trace_start"() <{level = 10 : i32, message = "bqk,bkd->bqd"}> : () -> ()
    %cst_20 = arith.constant dense<0.000000e+00> : vector<8x8x8xf32>
    %58 = tpu.matmul %57, %46, %cst_20 {dimension_numbers = #tpu.dot_dimension_numbers<[2], [1], [1], [2], [0, 0, 0, 1, 1, 2], [0], [0]>} : vector<8x8x8xf32>, vector<8x8x8xf32>, vector<8x8x8xf32> -> vector<8x8x8xf32>
    "tpu.trace_stop"() : () -> ()
    %59 = vector.extract_strided_slice %7 {offsets = [0, 0, 24], sizes = [8, 8, 8], strides = [1, 1, 1]} : vector<8x8x96xf32> to vector<8x8x8xf32>
    %cst_21 = arith.constant 0.353553385 : f32
    %60 = vector.broadcast %cst_21 : f32 to vector<8x8x8xf32>
    %61 = arith.mulf %59, %60 : vector<8x8x8xf32>
    %62 = vector.extract_strided_slice %7 {offsets = [0, 0, 56], sizes = [8, 8, 8], strides = [1, 1, 1]} : vector<8x8x96xf32> to vector<8x8x8xf32>
    %63 = vector.extract_strided_slice %7 {offsets = [0, 0, 88], sizes = [8, 8, 8], strides = [1, 1, 1]} : vector<8x8x96xf32> to vector<8x8x8xf32>
    "tpu.trace_start"() <{level = 10 : i32, message = "bqd,bkd->bqk"}> : () -> ()
    %cst_22 = arith.constant dense<0.000000e+00> : vector<8x8x8xf32>
    %64 = tpu.matmul %61, %62, %cst_22 {dimension_numbers = #tpu.dot_dimension_numbers<[2], [2], [1], [1], [0, 0, 0, 1, 1, 1], [0], [0]>} : vector<8x8x8xf32>, vector<8x8x8xf32>, vector<8x8x8xf32> -> vector<8x8x8xf32>
    "tpu.trace_stop"() : () -> ()
    %cst_23 = arith.constant dense<0xFF800000> : vector<8x8xf32>
    %65 = vector.multi_reduction <maximumf>, %64, %cst_23 [2] : vector<8x8x8xf32> to vector<8x8xf32>
    %66 = vector.shape_cast %65 : vector<8x8xf32> to vector<8x8x1xf32>
    %67 = vector.broadcast %66 : vector<8x8x1xf32> to vector<8x8x8xf32>
    %68 = arith.subf %64, %67 : vector<8x8x8xf32>
    %69 = math.exp %68 : vector<8x8x8xf32>
    %cst_24 = arith.constant dense<0.000000e+00> : vector<8x8xf32>
    %70 = vector.multi_reduction <add>, %69, %cst_24 [2] : vector<8x8x8xf32> to vector<8x8xf32>
    %71 = vector.shape_cast %70 : vector<8x8xf32> to vector<8x8x1xf32>
    %72 = tpu.reciprocal %71 {approx = true} : vector<8x8x1xf32> -> vector<8x8x1xf32>
    %73 = vector.broadcast %72 : vector<8x8x1xf32> to vector<8x8x8xf32>
    %74 = arith.mulf %69, %73 : vector<8x8x8xf32>
    "tpu.trace_start"() <{level = 10 : i32, message = "bqk,bkd->bqd"}> : () -> ()
    %cst_25 = arith.constant dense<0.000000e+00> : vector<8x8x8xf32>
    %75 = tpu.matmul %74, %63, %cst_25 {dimension_numbers = #tpu.dot_dimension_numbers<[2], [1], [1], [2], [0, 0, 0, 1, 1, 2], [0], [0]>} : vector<8x8x8xf32>, vector<8x8x8xf32>, vector<8x8x8xf32> -> vector<8x8x8xf32>
    "tpu.trace_stop"() : () -> ()
    %76 = tpu.concatenate %24, %41, %58, %75 in 2 : vector<8x8x8xf32>, vector<8x8x8xf32>, vector<8x8x8xf32>, vector<8x8x8xf32> -> vector<8x8x32xf32>
    %77 = vector.shape_cast %76 : vector<8x8x32xf32> to vector<64x32xf32>
    %c0_26 = arith.constant 0 : index
    %c0_27 = arith.constant 0 : index
    %78 = vector.load %arg4[%c0_26, %c0_27] : memref<32x32xf32, #tpu.memory_space<vmem>>, vector<32x32xf32>
    %cst_28 = arith.constant dense<0.000000e+00> : vector<64x32xf32>
    %79 = tpu.matmul %77, %78, %cst_28 {dimension_numbers = #tpu.dot_dimension_numbers<[1], [0], [0], [1], [0, 0, 1, 1], [], []>} : vector<64x32xf32>, vector<32x32xf32>, vector<64x32xf32> -> vector<64x32xf32>
    %c0_29 = arith.constant 0 : index
    %c0_30 = arith.constant 0 : index
    %80 = vector.load %arg5[%c0_29, %c0_30] : memref<1x32xf32, #tpu.memory_space<vmem>>, vector<1x32xf32>
    %81 = vector.broadcast %80 : vector<1x32xf32> to vector<64x32xf32>
    %82 = arith.addf %79, %81 : vector<64x32xf32>
    %c0_31 = arith.constant 0 : index
    %c0_32 = arith.constant 0 : index
    %83 = vector.load %arg6[%c0_31, %c0_32] : memref<32x192xf32, #tpu.memory_space<vmem>>, vector<32x192xf32>
    %cst_33 = arith.constant dense<0.000000e+00> : vector<64x192xf32>
    %84 = tpu.matmul %82, %83, %cst_33 {dimension_numbers = #tpu.dot_dimension_numbers<[1], [0], [0], [1], [0, 0, 1, 1], [], []>} : vector<64x32xf32>, vector<32x192xf32>, vector<64x192xf32> -> vector<64x192xf32>
    %c0_34 = arith.constant 0 : index
    %c0_35 = arith.constant 0 : index
    %85 = vector.load %arg7[%c0_34, %c0_35] : memref<1x192xf32, #tpu.memory_space<vmem>>, vector<1x192xf32>
    %86 = vector.broadcast %85 : vector<1x192xf32> to vector<64x192xf32>
    %87 = arith.addf %84, %86 : vector<64x192xf32>
    %88 = vector.shape_cast %87 : vector<64x192xf32> to vector<8x8x192xf32>
    %c0_36 = arith.constant 0 : index
    %c0_37 = arith.constant 0 : index
    %89 = vector.load %arg8[%c0_36, %c0_37] : memref<64x192xf32, #tpu.memory_space<vmem>>, vector<64x192xf32>
    %c0_38 = arith.constant 0 : index
    %c0_39 = arith.constant 0 : index
    %90 = vector.load %arg9[%c0_38, %c0_39] : memref<1x192xf32, #tpu.memory_space<vmem>>, vector<1x192xf32>
    %cst_40 = arith.constant 0.000000e+00 : f32
    %91 = vector.broadcast %cst_40 : f32 to vector<8x64xf32>
    %cst_41 = arith.constant 0.000000e+00 : f32
    %92 = vector.broadcast %cst_41 : f32 to vector<8x64xf32>
    %93 = vector.extract_strided_slice %88 {offsets = [0, 0, 0], sizes = [8, 1, 96], strides = [1, 1, 1]} : vector<8x8x192xf32> to vector<8x1x96xf32>
    %94 = vector.shape_cast %93 : vector<8x1x96xf32> to vector<8x96xf32>
    %95 = vector.extract_strided_slice %88 {offsets = [0, 7, 96], sizes = [8, 1, 96], strides = [1, 1, 1]} : vector<8x8x192xf32> to vector<8x1x96xf32>
    %96 = vector.shape_cast %95 : vector<8x1x96xf32> to vector<8x96xf32>
    %cst_42 = arith.constant dense<0.000000e+00> : vector<8x192xf32>
    %97 = tpu.matmul %91, %89, %cst_42 {dimension_numbers = #tpu.dot_dimension_numbers<[1], [0], [0], [1], [0, 0, 1, 1], [], []>} : vector<8x64xf32>, vector<64x192xf32>, vector<8x192xf32> -> vector<8x192xf32>
    %98 = vector.broadcast %90 : vector<1x192xf32> to vector<8x192xf32>
    %99 = arith.addf %97, %98 : vector<8x192xf32>
    %100 = vector.extract_strided_slice %99 {offsets = [0, 0], sizes = [8, 96], strides = [1, 1]} : vector<8x192xf32> to vector<8x96xf32>
    %101 = vector.extract_strided_slice %99 {offsets = [0, 96], sizes = [8, 96], strides = [1, 1]} : vector<8x192xf32> to vector<8x96xf32>
    %102 = vector.extract_strided_slice %91 {offsets = [0, 0], sizes = [8, 32], strides = [1, 1]} : vector<8x64xf32> to vector<8x32xf32>
    %103 = vector.extract_strided_slice %91 {offsets = [0, 32], sizes = [8, 32], strides = [1, 1]} : vector<8x64xf32> to vector<8x32xf32>
    %104 = vector.extract_strided_slice %94 {offsets = [0, 0], sizes = [8, 32], strides = [1, 1]} : vector<8x96xf32> to vector<8x32xf32>
    %105 = vector.extract_strided_slice %100 {offsets = [0, 0], sizes = [8, 32], strides = [1, 1]} : vector<8x96xf32> to vector<8x32xf32>
    %106 = arith.addf %104, %105 : vector<8x32xf32>
    %cst_43 = arith.constant 5.000000e-01 : f32
    %107 = vector.broadcast %cst_43 : f32 to vector<8x32xf32>
    %108 = arith.mulf %107, %106 : vector<8x32xf32>
    %109 = math.tanh %108 : vector<8x32xf32>
    %cst_44 = arith.constant 1.000000e+00 : f32
    %110 = vector.broadcast %cst_44 : f32 to vector<8x32xf32>
    %111 = arith.addf %109, %110 : vector<8x32xf32>
    %cst_45 = arith.constant 5.000000e-01 : f32
    %112 = vector.broadcast %cst_45 : f32 to vector<8x32xf32>
    %113 = arith.mulf %112, %111 : vector<8x32xf32>
    %114 = vector.extract_strided_slice %94 {offsets = [0, 32], sizes = [8, 32], strides = [1, 1]} : vector<8x96xf32> to vector<8x32xf32>
    %115 = vector.extract_strided_slice %100 {offsets = [0, 32], sizes = [8, 32], strides = [1, 1]} : vector<8x96xf32> to vector<8x32xf32>
    %116 = arith.addf %114, %115 : vector<8x32xf32>
    %cst_46 = arith.constant 5.000000e-01 : f32
    %117 = vector.broadcast %cst_46 : f32 to vector<8x32xf32>
    %118 = arith.mulf %117, %116 : vector<8x32xf32>
    %119 = math.tanh %118 : vector<8x32xf32>
    %cst_47 = arith.constant 1.000000e+00 : f32
    %120 = vector.broadcast %cst_47 : f32 to vector<8x32xf32>
    %121 = arith.addf %119, %120 : vector<8x32xf32>
    %cst_48 = arith.constant 5.000000e-01 : f32
    %122 = vector.broadcast %cst_48 : f32 to vector<8x32xf32>
    %123 = arith.mulf %122, %121 : vector<8x32xf32>
    %124 = vector.extract_strided_slice %94 {offsets = [0, 64], sizes = [8, 32], strides = [1, 1]} : vector<8x96xf32> to vector<8x32xf32>
    %125 = vector.extract_strided_slice %100 {offsets = [0, 64], sizes = [8, 32], strides = [1, 1]} : vector<8x96xf32> to vector<8x32xf32>
    %126 = arith.mulf %113, %125 : vector<8x32xf32>
    %127 = arith.addf %124, %126 : vector<8x32xf32>
    %128 = math.tanh %127 : vector<8x32xf32>
    %cst_49 = arith.constant 1.000000e+00 : f32
    %129 = vector.broadcast %cst_49 : f32 to vector<8x32xf32>
    %130 = arith.subf %129, %123 : vector<8x32xf32>
    %131 = arith.mulf %130, %128 : vector<8x32xf32>
    %132 = arith.mulf %123, %102 : vector<8x32xf32>
    %133 = arith.addf %131, %132 : vector<8x32xf32>
    %134 = vector.extract_strided_slice %96 {offsets = [0, 0], sizes = [8, 32], strides = [1, 1]} : vector<8x96xf32> to vector<8x32xf32>
    %135 = vector.extract_strided_slice %101 {offsets = [0, 0], sizes = [8, 32], strides = [1, 1]} : vector<8x96xf32> to vector<8x32xf32>
    %136 = arith.addf %134, %135 : vector<8x32xf32>
    %cst_50 = arith.constant 5.000000e-01 : f32
    %137 = vector.broadcast %cst_50 : f32 to vector<8x32xf32>
    %138 = arith.mulf %137, %136 : vector<8x32xf32>
    %139 = math.tanh %138 : vector<8x32xf32>
    %cst_51 = arith.constant 1.000000e+00 : f32
    %140 = vector.broadcast %cst_51 : f32 to vector<8x32xf32>
    %141 = arith.addf %139, %140 : vector<8x32xf32>
    %cst_52 = arith.constant 5.000000e-01 : f32
    %142 = vector.broadcast %cst_52 : f32 to vector<8x32xf32>
    %143 = arith.mulf %142, %141 : vector<8x32xf32>
    %144 = vector.extract_strided_slice %96 {offsets = [0, 32], sizes = [8, 32], strides = [1, 1]} : vector<8x96xf32> to vector<8x32xf32>
    %145 = vector.extract_strided_slice %101 {offsets = [0, 32], sizes = [8, 32], strides = [1, 1]} : vector<8x96xf32> to vector<8x32xf32>
    %146 = arith.addf %144, %145 : vector<8x32xf32>
    %cst_53 = arith.constant 5.000000e-01 : f32
    %147 = vector.broadcast %cst_53 : f32 to vector<8x32xf32>
    %148 = arith.mulf %147, %146 : vector<8x32xf32>
    %149 = math.tanh %148 : vector<8x32xf32>
    %cst_54 = arith.constant 1.000000e+00 : f32
    %150 = vector.broadcast %cst_54 : f32 to vector<8x32xf32>
    %151 = arith.addf %149, %150 : vector<8x32xf32>
    %cst_55 = arith.constant 5.000000e-01 : f32
    %152 = vector.broadcast %cst_55 : f32 to vector<8x32xf32>
    %153 = arith.mulf %152, %151 : vector<8x32xf32>
    %154 = vector.extract_strided_slice %96 {offsets = [0, 64], sizes = [8, 32], strides = [1, 1]} : vector<8x96xf32> to vector<8x32xf32>
    %155 = vector.extract_strided_slice %101 {offsets = [0, 64], sizes = [8, 32], strides = [1, 1]} : vector<8x96xf32> to vector<8x32xf32>
    %156 = arith.mulf %143, %155 : vector<8x32xf32>
    %157 = arith.addf %154, %156 : vector<8x32xf32>
    %158 = math.tanh %157 : vector<8x32xf32>
    %cst_56 = arith.constant 1.000000e+00 : f32
    %159 = vector.broadcast %cst_56 : f32 to vector<8x32xf32>
    %160 = arith.subf %159, %153 : vector<8x32xf32>
    %161 = arith.mulf %160, %158 : vector<8x32xf32>
    %162 = arith.mulf %153, %103 : vector<8x32xf32>
    %163 = arith.addf %161, %162 : vector<8x32xf32>
    %164 = tpu.concatenate %133, %163 in 1 : vector<8x32xf32>, vector<8x32xf32> -> vector<8x64xf32>
    %165 = arith.addf %92, %164 : vector<8x64xf32>
    %166 = vector.extract_strided_slice %88 {offsets = [0, 1, 0], sizes = [8, 1, 96], strides = [1, 1, 1]} : vector<8x8x192xf32> to vector<8x1x96xf32>
    %167 = vector.shape_cast %166 : vector<8x1x96xf32> to vector<8x96xf32>
    %168 = vector.extract_strided_slice %88 {offsets = [0, 6, 96], sizes = [8, 1, 96], strides = [1, 1, 1]} : vector<8x8x192xf32> to vector<8x1x96xf32>
    %169 = vector.shape_cast %168 : vector<8x1x96xf32> to vector<8x96xf32>
    %cst_57 = arith.constant dense<0.000000e+00> : vector<8x192xf32>
    %170 = tpu.matmul %164, %89, %cst_57 {dimension_numbers = #tpu.dot_dimension_numbers<[1], [0], [0], [1], [0, 0, 1, 1], [], []>} : vector<8x64xf32>, vector<64x192xf32>, vector<8x192xf32> -> vector<8x192xf32>
    %171 = vector.broadcast %90 : vector<1x192xf32> to vector<8x192xf32>
    %172 = arith.addf %170, %171 : vector<8x192xf32>
    %173 = vector.extract_strided_slice %172 {offsets = [0, 0], sizes = [8, 96], strides = [1, 1]} : vector<8x192xf32> to vector<8x96xf32>
    %174 = vector.extract_strided_slice %172 {offsets = [0, 96], sizes = [8, 96], strides = [1, 1]} : vector<8x192xf32> to vector<8x96xf32>
    %175 = vector.extract_strided_slice %164 {offsets = [0, 0], sizes = [8, 32], strides = [1, 1]} : vector<8x64xf32> to vector<8x32xf32>
    %176 = vector.extract_strided_slice %164 {offsets = [0, 32], sizes = [8, 32], strides = [1, 1]} : vector<8x64xf32> to vector<8x32xf32>
    %177 = vector.extract_strided_slice %167 {offsets = [0, 0], sizes = [8, 32], strides = [1, 1]} : vector<8x96xf32> to vector<8x32xf32>
    %178 = vector.extract_strided_slice %173 {offsets = [0, 0], sizes = [8, 32], strides = [1, 1]} : vector<8x96xf32> to vector<8x32xf32>
    %179 = arith.addf %177, %178 : vector<8x32xf32>
    %cst_58 = arith.constant 5.000000e-01 : f32
    %180 = vector.broadcast %cst_58 : f32 to vector<8x32xf32>
    %181 = arith.mulf %180, %179 : vector<8x32xf32>
    %182 = math.tanh %181 : vector<8x32xf32>
    %cst_59 = arith.constant 1.000000e+00 : f32
    %183 = vector.broadcast %cst_59 : f32 to vector<8x32xf32>
    %184 = arith.addf %182, %183 : vector<8x32xf32>
    %cst_60 = arith.constant 5.000000e-01 : f32
    %185 = vector.broadcast %cst_60 : f32 to vector<8x32xf32>
    %186 = arith.mulf %185, %184 : vector<8x32xf32>
    %187 = vector.extract_strided_slice %167 {offsets = [0, 32], sizes = [8, 32], strides = [1, 1]} : vector<8x96xf32> to vector<8x32xf32>
    %188 = vector.extract_strided_slice %173 {offsets = [0, 32], sizes = [8, 32], strides = [1, 1]} : vector<8x96xf32> to vector<8x32xf32>
    %189 = arith.addf %187, %188 : vector<8x32xf32>
    %cst_61 = arith.constant 5.000000e-01 : f32
    %190 = vector.broadcast %cst_61 : f32 to vector<8x32xf32>
    %191 = arith.mulf %190, %189 : vector<8x32xf32>
    %192 = math.tanh %191 : vector<8x32xf32>
    %cst_62 = arith.constant 1.000000e+00 : f32
    %193 = vector.broadcast %cst_62 : f32 to vector<8x32xf32>
    %194 = arith.addf %192, %193 : vector<8x32xf32>
    %cst_63 = arith.constant 5.000000e-01 : f32
    %195 = vector.broadcast %cst_63 : f32 to vector<8x32xf32>
    %196 = arith.mulf %195, %194 : vector<8x32xf32>
    %197 = vector.extract_strided_slice %167 {offsets = [0, 64], sizes = [8, 32], strides = [1, 1]} : vector<8x96xf32> to vector<8x32xf32>
    %198 = vector.extract_strided_slice %173 {offsets = [0, 64], sizes = [8, 32], strides = [1, 1]} : vector<8x96xf32> to vector<8x32xf32>
    %199 = arith.mulf %186, %198 : vector<8x32xf32>
    %200 = arith.addf %197, %199 : vector<8x32xf32>
    %201 = math.tanh %200 : vector<8x32xf32>
    %cst_64 = arith.constant 1.000000e+00 : f32
    %202 = vector.broadcast %cst_64 : f32 to vector<8x32xf32>
    %203 = arith.subf %202, %196 : vector<8x32xf32>
    %204 = arith.mulf %203, %201 : vector<8x32xf32>
    %205 = arith.mulf %196, %175 : vector<8x32xf32>
    %206 = arith.addf %204, %205 : vector<8x32xf32>
    %207 = vector.extract_strided_slice %169 {offsets = [0, 0], sizes = [8, 32], strides = [1, 1]} : vector<8x96xf32> to vector<8x32xf32>
    %208 = vector.extract_strided_slice %174 {offsets = [0, 0], sizes = [8, 32], strides = [1, 1]} : vector<8x96xf32> to vector<8x32xf32>
    %209 = arith.addf %207, %208 : vector<8x32xf32>
    %cst_65 = arith.constant 5.000000e-01 : f32
    %210 = vector.broadcast %cst_65 : f32 to vector<8x32xf32>
    %211 = arith.mulf %210, %209 : vector<8x32xf32>
    %212 = math.tanh %211 : vector<8x32xf32>
    %cst_66 = arith.constant 1.000000e+00 : f32
    %213 = vector.broadcast %cst_66 : f32 to vector<8x32xf32>
    %214 = arith.addf %212, %213 : vector<8x32xf32>
    %cst_67 = arith.constant 5.000000e-01 : f32
    %215 = vector.broadcast %cst_67 : f32 to vector<8x32xf32>
    %216 = arith.mulf %215, %214 : vector<8x32xf32>
    %217 = vector.extract_strided_slice %169 {offsets = [0, 32], sizes = [8, 32], strides = [1, 1]} : vector<8x96xf32> to vector<8x32xf32>
    %218 = vector.extract_strided_slice %174 {offsets = [0, 32], sizes = [8, 32], strides = [1, 1]} : vector<8x96xf32> to vector<8x32xf32>
    %219 = arith.addf %217, %218 : vector<8x32xf32>
    %cst_68 = arith.constant 5.000000e-01 : f32
    %220 = vector.broadcast %cst_68 : f32 to vector<8x32xf32>
    %221 = arith.mulf %220, %219 : vector<8x32xf32>
    %222 = math.tanh %221 : vector<8x32xf32>
    %cst_69 = arith.constant 1.000000e+00 : f32
    %223 = vector.broadcast %cst_69 : f32 to vector<8x32xf32>
    %224 = arith.addf %222, %223 : vector<8x32xf32>
    %cst_70 = arith.constant 5.000000e-01 : f32
    %225 = vector.broadcast %cst_70 : f32 to vector<8x32xf32>
    %226 = arith.mulf %225, %224 : vector<8x32xf32>
    %227 = vector.extract_strided_slice %169 {offsets = [0, 64], sizes = [8, 32], strides = [1, 1]} : vector<8x96xf32> to vector<8x32xf32>
    %228 = vector.extract_strided_slice %174 {offsets = [0, 64], sizes = [8, 32], strides = [1, 1]} : vector<8x96xf32> to vector<8x32xf32>
    %229 = arith.mulf %216, %228 : vector<8x32xf32>
    %230 = arith.addf %227, %229 : vector<8x32xf32>
    %231 = math.tanh %230 : vector<8x32xf32>
    %cst_71 = arith.constant 1.000000e+00 : f32
    %232 = vector.broadcast %cst_71 : f32 to vector<8x32xf32>
    %233 = arith.subf %232, %226 : vector<8x32xf32>
    %234 = arith.mulf %233, %231 : vector<8x32xf32>
    %235 = arith.mulf %226, %176 : vector<8x32xf32>
    %236 = arith.addf %234, %235 : vector<8x32xf32>
    %237 = tpu.concatenate %206, %236 in 1 : vector<8x32xf32>, vector<8x32xf32> -> vector<8x64xf32>
    %238 = arith.addf %165, %237 : vector<8x64xf32>
    %239 = vector.extract_strided_slice %88 {offsets = [0, 2, 0], sizes = [8, 1, 96], strides = [1, 1, 1]} : vector<8x8x192xf32> to vector<8x1x96xf32>
    %240 = vector.shape_cast %239 : vector<8x1x96xf32> to vector<8x96xf32>
    %241 = vector.extract_strided_slice %88 {offsets = [0, 5, 96], sizes = [8, 1, 96], strides = [1, 1, 1]} : vector<8x8x192xf32> to vector<8x1x96xf32>
    %242 = vector.shape_cast %241 : vector<8x1x96xf32> to vector<8x96xf32>
    %cst_72 = arith.constant dense<0.000000e+00> : vector<8x192xf32>
    %243 = tpu.matmul %237, %89, %cst_72 {dimension_numbers = #tpu.dot_dimension_numbers<[1], [0], [0], [1], [0, 0, 1, 1], [], []>} : vector<8x64xf32>, vector<64x192xf32>, vector<8x192xf32> -> vector<8x192xf32>
    %244 = vector.broadcast %90 : vector<1x192xf32> to vector<8x192xf32>
    %245 = arith.addf %243, %244 : vector<8x192xf32>
    %246 = vector.extract_strided_slice %245 {offsets = [0, 0], sizes = [8, 96], strides = [1, 1]} : vector<8x192xf32> to vector<8x96xf32>
    %247 = vector.extract_strided_slice %245 {offsets = [0, 96], sizes = [8, 96], strides = [1, 1]} : vector<8x192xf32> to vector<8x96xf32>
    %248 = vector.extract_strided_slice %237 {offsets = [0, 0], sizes = [8, 32], strides = [1, 1]} : vector<8x64xf32> to vector<8x32xf32>
    %249 = vector.extract_strided_slice %237 {offsets = [0, 32], sizes = [8, 32], strides = [1, 1]} : vector<8x64xf32> to vector<8x32xf32>
    %250 = vector.extract_strided_slice %240 {offsets = [0, 0], sizes = [8, 32], strides = [1, 1]} : vector<8x96xf32> to vector<8x32xf32>
    %251 = vector.extract_strided_slice %246 {offsets = [0, 0], sizes = [8, 32], strides = [1, 1]} : vector<8x96xf32> to vector<8x32xf32>
    %252 = arith.addf %250, %251 : vector<8x32xf32>
    %cst_73 = arith.constant 5.000000e-01 : f32
    %253 = vector.broadcast %cst_73 : f32 to vector<8x32xf32>
    %254 = arith.mulf %253, %252 : vector<8x32xf32>
    %255 = math.tanh %254 : vector<8x32xf32>
    %cst_74 = arith.constant 1.000000e+00 : f32
    %256 = vector.broadcast %cst_74 : f32 to vector<8x32xf32>
    %257 = arith.addf %255, %256 : vector<8x32xf32>
    %cst_75 = arith.constant 5.000000e-01 : f32
    %258 = vector.broadcast %cst_75 : f32 to vector<8x32xf32>
    %259 = arith.mulf %258, %257 : vector<8x32xf32>
    %260 = vector.extract_strided_slice %240 {offsets = [0, 32], sizes = [8, 32], strides = [1, 1]} : vector<8x96xf32> to vector<8x32xf32>
    %261 = vector.extract_strided_slice %246 {offsets = [0, 32], sizes = [8, 32], strides = [1, 1]} : vector<8x96xf32> to vector<8x32xf32>
    %262 = arith.addf %260, %261 : vector<8x32xf32>
    %cst_76 = arith.constant 5.000000e-01 : f32
    %263 = vector.broadcast %cst_76 : f32 to vector<8x32xf32>
    %264 = arith.mulf %263, %262 : vector<8x32xf32>
    %265 = math.tanh %264 : vector<8x32xf32>
    %cst_77 = arith.constant 1.000000e+00 : f32
    %266 = vector.broadcast %cst_77 : f32 to vector<8x32xf32>
    %267 = arith.addf %265, %266 : vector<8x32xf32>
    %cst_78 = arith.constant 5.000000e-01 : f32
    %268 = vector.broadcast %cst_78 : f32 to vector<8x32xf32>
    %269 = arith.mulf %268, %267 : vector<8x32xf32>
    %270 = vector.extract_strided_slice %240 {offsets = [0, 64], sizes = [8, 32], strides = [1, 1]} : vector<8x96xf32> to vector<8x32xf32>
    %271 = vector.extract_strided_slice %246 {offsets = [0, 64], sizes = [8, 32], strides = [1, 1]} : vector<8x96xf32> to vector<8x32xf32>
    %272 = arith.mulf %259, %271 : vector<8x32xf32>
    %273 = arith.addf %270, %272 : vector<8x32xf32>
    %274 = math.tanh %273 : vector<8x32xf32>
    %cst_79 = arith.constant 1.000000e+00 : f32
    %275 = vector.broadcast %cst_79 : f32 to vector<8x32xf32>
    %276 = arith.subf %275, %269 : vector<8x32xf32>
    %277 = arith.mulf %276, %274 : vector<8x32xf32>
    %278 = arith.mulf %269, %248 : vector<8x32xf32>
    %279 = arith.addf %277, %278 : vector<8x32xf32>
    %280 = vector.extract_strided_slice %242 {offsets = [0, 0], sizes = [8, 32], strides = [1, 1]} : vector<8x96xf32> to vector<8x32xf32>
    %281 = vector.extract_strided_slice %247 {offsets = [0, 0], sizes = [8, 32], strides = [1, 1]} : vector<8x96xf32> to vector<8x32xf32>
    %282 = arith.addf %280, %281 : vector<8x32xf32>
    %cst_80 = arith.constant 5.000000e-01 : f32
    %283 = vector.broadcast %cst_80 : f32 to vector<8x32xf32>
    %284 = arith.mulf %283, %282 : vector<8x32xf32>
    %285 = math.tanh %284 : vector<8x32xf32>
    %cst_81 = arith.constant 1.000000e+00 : f32
    %286 = vector.broadcast %cst_81 : f32 to vector<8x32xf32>
    %287 = arith.addf %285, %286 : vector<8x32xf32>
    %cst_82 = arith.constant 5.000000e-01 : f32
    %288 = vector.broadcast %cst_82 : f32 to vector<8x32xf32>
    %289 = arith.mulf %288, %287 : vector<8x32xf32>
    %290 = vector.extract_strided_slice %242 {offsets = [0, 32], sizes = [8, 32], strides = [1, 1]} : vector<8x96xf32> to vector<8x32xf32>
    %291 = vector.extract_strided_slice %247 {offsets = [0, 32], sizes = [8, 32], strides = [1, 1]} : vector<8x96xf32> to vector<8x32xf32>
    %292 = arith.addf %290, %291 : vector<8x32xf32>
    %cst_83 = arith.constant 5.000000e-01 : f32
    %293 = vector.broadcast %cst_83 : f32 to vector<8x32xf32>
    %294 = arith.mulf %293, %292 : vector<8x32xf32>
    %295 = math.tanh %294 : vector<8x32xf32>
    %cst_84 = arith.constant 1.000000e+00 : f32
    %296 = vector.broadcast %cst_84 : f32 to vector<8x32xf32>
    %297 = arith.addf %295, %296 : vector<8x32xf32>
    %cst_85 = arith.constant 5.000000e-01 : f32
    %298 = vector.broadcast %cst_85 : f32 to vector<8x32xf32>
    %299 = arith.mulf %298, %297 : vector<8x32xf32>
    %300 = vector.extract_strided_slice %242 {offsets = [0, 64], sizes = [8, 32], strides = [1, 1]} : vector<8x96xf32> to vector<8x32xf32>
    %301 = vector.extract_strided_slice %247 {offsets = [0, 64], sizes = [8, 32], strides = [1, 1]} : vector<8x96xf32> to vector<8x32xf32>
    %302 = arith.mulf %289, %301 : vector<8x32xf32>
    %303 = arith.addf %300, %302 : vector<8x32xf32>
    %304 = math.tanh %303 : vector<8x32xf32>
    %cst_86 = arith.constant 1.000000e+00 : f32
    %305 = vector.broadcast %cst_86 : f32 to vector<8x32xf32>
    %306 = arith.subf %305, %299 : vector<8x32xf32>
    %307 = arith.mulf %306, %304 : vector<8x32xf32>
    %308 = arith.mulf %299, %249 : vector<8x32xf32>
    %309 = arith.addf %307, %308 : vector<8x32xf32>
    %310 = tpu.concatenate %279, %309 in 1 : vector<8x32xf32>, vector<8x32xf32> -> vector<8x64xf32>
    %311 = arith.addf %238, %310 : vector<8x64xf32>
    %312 = vector.extract_strided_slice %88 {offsets = [0, 3, 0], sizes = [8, 1, 96], strides = [1, 1, 1]} : vector<8x8x192xf32> to vector<8x1x96xf32>
    %313 = vector.shape_cast %312 : vector<8x1x96xf32> to vector<8x96xf32>
    %314 = vector.extract_strided_slice %88 {offsets = [0, 4, 96], sizes = [8, 1, 96], strides = [1, 1, 1]} : vector<8x8x192xf32> to vector<8x1x96xf32>
    %315 = vector.shape_cast %314 : vector<8x1x96xf32> to vector<8x96xf32>
    %cst_87 = arith.constant dense<0.000000e+00> : vector<8x192xf32>
    %316 = tpu.matmul %310, %89, %cst_87 {dimension_numbers = #tpu.dot_dimension_numbers<[1], [0], [0], [1], [0, 0, 1, 1], [], []>} : vector<8x64xf32>, vector<64x192xf32>, vector<8x192xf32> -> vector<8x192xf32>
    %317 = vector.broadcast %90 : vector<1x192xf32> to vector<8x192xf32>
    %318 = arith.addf %316, %317 : vector<8x192xf32>
    %319 = vector.extract_strided_slice %318 {offsets = [0, 0], sizes = [8, 96], strides = [1, 1]} : vector<8x192xf32> to vector<8x96xf32>
    %320 = vector.extract_strided_slice %318 {offsets = [0, 96], sizes = [8, 96], strides = [1, 1]} : vector<8x192xf32> to vector<8x96xf32>
    %321 = vector.extract_strided_slice %310 {offsets = [0, 0], sizes = [8, 32], strides = [1, 1]} : vector<8x64xf32> to vector<8x32xf32>
    %322 = vector.extract_strided_slice %310 {offsets = [0, 32], sizes = [8, 32], strides = [1, 1]} : vector<8x64xf32> to vector<8x32xf32>
    %323 = vector.extract_strided_slice %313 {offsets = [0, 0], sizes = [8, 32], strides = [1, 1]} : vector<8x96xf32> to vector<8x32xf32>
    %324 = vector.extract_strided_slice %319 {offsets = [0, 0], sizes = [8, 32], strides = [1, 1]} : vector<8x96xf32> to vector<8x32xf32>
    %325 = arith.addf %323, %324 : vector<8x32xf32>
    %cst_88 = arith.constant 5.000000e-01 : f32
    %326 = vector.broadcast %cst_88 : f32 to vector<8x32xf32>
    %327 = arith.mulf %326, %325 : vector<8x32xf32>
    %328 = math.tanh %327 : vector<8x32xf32>
    %cst_89 = arith.constant 1.000000e+00 : f32
    %329 = vector.broadcast %cst_89 : f32 to vector<8x32xf32>
    %330 = arith.addf %328, %329 : vector<8x32xf32>
    %cst_90 = arith.constant 5.000000e-01 : f32
    %331 = vector.broadcast %cst_90 : f32 to vector<8x32xf32>
    %332 = arith.mulf %331, %330 : vector<8x32xf32>
    %333 = vector.extract_strided_slice %313 {offsets = [0, 32], sizes = [8, 32], strides = [1, 1]} : vector<8x96xf32> to vector<8x32xf32>
    %334 = vector.extract_strided_slice %319 {offsets = [0, 32], sizes = [8, 32], strides = [1, 1]} : vector<8x96xf32> to vector<8x32xf32>
    %335 = arith.addf %333, %334 : vector<8x32xf32>
    %cst_91 = arith.constant 5.000000e-01 : f32
    %336 = vector.broadcast %cst_91 : f32 to vector<8x32xf32>
    %337 = arith.mulf %336, %335 : vector<8x32xf32>
    %338 = math.tanh %337 : vector<8x32xf32>
    %cst_92 = arith.constant 1.000000e+00 : f32
    %339 = vector.broadcast %cst_92 : f32 to vector<8x32xf32>
    %340 = arith.addf %338, %339 : vector<8x32xf32>
    %cst_93 = arith.constant 5.000000e-01 : f32
    %341 = vector.broadcast %cst_93 : f32 to vector<8x32xf32>
    %342 = arith.mulf %341, %340 : vector<8x32xf32>
    %343 = vector.extract_strided_slice %313 {offsets = [0, 64], sizes = [8, 32], strides = [1, 1]} : vector<8x96xf32> to vector<8x32xf32>
    %344 = vector.extract_strided_slice %319 {offsets = [0, 64], sizes = [8, 32], strides = [1, 1]} : vector<8x96xf32> to vector<8x32xf32>
    %345 = arith.mulf %332, %344 : vector<8x32xf32>
    %346 = arith.addf %343, %345 : vector<8x32xf32>
    %347 = math.tanh %346 : vector<8x32xf32>
    %cst_94 = arith.constant 1.000000e+00 : f32
    %348 = vector.broadcast %cst_94 : f32 to vector<8x32xf32>
    %349 = arith.subf %348, %342 : vector<8x32xf32>
    %350 = arith.mulf %349, %347 : vector<8x32xf32>
    %351 = arith.mulf %342, %321 : vector<8x32xf32>
    %352 = arith.addf %350, %351 : vector<8x32xf32>
    %353 = vector.extract_strided_slice %315 {offsets = [0, 0], sizes = [8, 32], strides = [1, 1]} : vector<8x96xf32> to vector<8x32xf32>
    %354 = vector.extract_strided_slice %320 {offsets = [0, 0], sizes = [8, 32], strides = [1, 1]} : vector<8x96xf32> to vector<8x32xf32>
    %355 = arith.addf %353, %354 : vector<8x32xf32>
    %cst_95 = arith.constant 5.000000e-01 : f32
    %356 = vector.broadcast %cst_95 : f32 to vector<8x32xf32>
    %357 = arith.mulf %356, %355 : vector<8x32xf32>
    %358 = math.tanh %357 : vector<8x32xf32>
    %cst_96 = arith.constant 1.000000e+00 : f32
    %359 = vector.broadcast %cst_96 : f32 to vector<8x32xf32>
    %360 = arith.addf %358, %359 : vector<8x32xf32>
    %cst_97 = arith.constant 5.000000e-01 : f32
    %361 = vector.broadcast %cst_97 : f32 to vector<8x32xf32>
    %362 = arith.mulf %361, %360 : vector<8x32xf32>
    %363 = vector.extract_strided_slice %315 {offsets = [0, 32], sizes = [8, 32], strides = [1, 1]} : vector<8x96xf32> to vector<8x32xf32>
    %364 = vector.extract_strided_slice %320 {offsets = [0, 32], sizes = [8, 32], strides = [1, 1]} : vector<8x96xf32> to vector<8x32xf32>
    %365 = arith.addf %363, %364 : vector<8x32xf32>
    %cst_98 = arith.constant 5.000000e-01 : f32
    %366 = vector.broadcast %cst_98 : f32 to vector<8x32xf32>
    %367 = arith.mulf %366, %365 : vector<8x32xf32>
    %368 = math.tanh %367 : vector<8x32xf32>
    %cst_99 = arith.constant 1.000000e+00 : f32
    %369 = vector.broadcast %cst_99 : f32 to vector<8x32xf32>
    %370 = arith.addf %368, %369 : vector<8x32xf32>
    %cst_100 = arith.constant 5.000000e-01 : f32
    %371 = vector.broadcast %cst_100 : f32 to vector<8x32xf32>
    %372 = arith.mulf %371, %370 : vector<8x32xf32>
    %373 = vector.extract_strided_slice %315 {offsets = [0, 64], sizes = [8, 32], strides = [1, 1]} : vector<8x96xf32> to vector<8x32xf32>
    %374 = vector.extract_strided_slice %320 {offsets = [0, 64], sizes = [8, 32], strides = [1, 1]} : vector<8x96xf32> to vector<8x32xf32>
    %375 = arith.mulf %362, %374 : vector<8x32xf32>
    %376 = arith.addf %373, %375 : vector<8x32xf32>
    %377 = math.tanh %376 : vector<8x32xf32>
    %cst_101 = arith.constant 1.000000e+00 : f32
    %378 = vector.broadcast %cst_101 : f32 to vector<8x32xf32>
    %379 = arith.subf %378, %372 : vector<8x32xf32>
    %380 = arith.mulf %379, %377 : vector<8x32xf32>
    %381 = arith.mulf %372, %322 : vector<8x32xf32>
    %382 = arith.addf %380, %381 : vector<8x32xf32>
    %383 = tpu.concatenate %352, %382 in 1 : vector<8x32xf32>, vector<8x32xf32> -> vector<8x64xf32>
    %384 = arith.addf %311, %383 : vector<8x64xf32>
    %385 = vector.extract_strided_slice %88 {offsets = [0, 4, 0], sizes = [8, 1, 96], strides = [1, 1, 1]} : vector<8x8x192xf32> to vector<8x1x96xf32>
    %386 = vector.shape_cast %385 : vector<8x1x96xf32> to vector<8x96xf32>
    %387 = vector.extract_strided_slice %88 {offsets = [0, 3, 96], sizes = [8, 1, 96], strides = [1, 1, 1]} : vector<8x8x192xf32> to vector<8x1x96xf32>
    %388 = vector.shape_cast %387 : vector<8x1x96xf32> to vector<8x96xf32>
    %cst_102 = arith.constant dense<0.000000e+00> : vector<8x192xf32>
    %389 = tpu.matmul %383, %89, %cst_102 {dimension_numbers = #tpu.dot_dimension_numbers<[1], [0], [0], [1], [0, 0, 1, 1], [], []>} : vector<8x64xf32>, vector<64x192xf32>, vector<8x192xf32> -> vector<8x192xf32>
    %390 = vector.broadcast %90 : vector<1x192xf32> to vector<8x192xf32>
    %391 = arith.addf %389, %390 : vector<8x192xf32>
    %392 = vector.extract_strided_slice %391 {offsets = [0, 0], sizes = [8, 96], strides = [1, 1]} : vector<8x192xf32> to vector<8x96xf32>
    %393 = vector.extract_strided_slice %391 {offsets = [0, 96], sizes = [8, 96], strides = [1, 1]} : vector<8x192xf32> to vector<8x96xf32>
    %394 = vector.extract_strided_slice %383 {offsets = [0, 0], sizes = [8, 32], strides = [1, 1]} : vector<8x64xf32> to vector<8x32xf32>
    %395 = vector.extract_strided_slice %383 {offsets = [0, 32], sizes = [8, 32], strides = [1, 1]} : vector<8x64xf32> to vector<8x32xf32>
    %396 = vector.extract_strided_slice %386 {offsets = [0, 0], sizes = [8, 32], strides = [1, 1]} : vector<8x96xf32> to vector<8x32xf32>
    %397 = vector.extract_strided_slice %392 {offsets = [0, 0], sizes = [8, 32], strides = [1, 1]} : vector<8x96xf32> to vector<8x32xf32>
    %398 = arith.addf %396, %397 : vector<8x32xf32>
    %cst_103 = arith.constant 5.000000e-01 : f32
    %399 = vector.broadcast %cst_103 : f32 to vector<8x32xf32>
    %400 = arith.mulf %399, %398 : vector<8x32xf32>
    %401 = math.tanh %400 : vector<8x32xf32>
    %cst_104 = arith.constant 1.000000e+00 : f32
    %402 = vector.broadcast %cst_104 : f32 to vector<8x32xf32>
    %403 = arith.addf %401, %402 : vector<8x32xf32>
    %cst_105 = arith.constant 5.000000e-01 : f32
    %404 = vector.broadcast %cst_105 : f32 to vector<8x32xf32>
    %405 = arith.mulf %404, %403 : vector<8x32xf32>
    %406 = vector.extract_strided_slice %386 {offsets = [0, 32], sizes = [8, 32], strides = [1, 1]} : vector<8x96xf32> to vector<8x32xf32>
    %407 = vector.extract_strided_slice %392 {offsets = [0, 32], sizes = [8, 32], strides = [1, 1]} : vector<8x96xf32> to vector<8x32xf32>
    %408 = arith.addf %406, %407 : vector<8x32xf32>
    %cst_106 = arith.constant 5.000000e-01 : f32
    %409 = vector.broadcast %cst_106 : f32 to vector<8x32xf32>
    %410 = arith.mulf %409, %408 : vector<8x32xf32>
    %411 = math.tanh %410 : vector<8x32xf32>
    %cst_107 = arith.constant 1.000000e+00 : f32
    %412 = vector.broadcast %cst_107 : f32 to vector<8x32xf32>
    %413 = arith.addf %411, %412 : vector<8x32xf32>
    %cst_108 = arith.constant 5.000000e-01 : f32
    %414 = vector.broadcast %cst_108 : f32 to vector<8x32xf32>
    %415 = arith.mulf %414, %413 : vector<8x32xf32>
    %416 = vector.extract_strided_slice %386 {offsets = [0, 64], sizes = [8, 32], strides = [1, 1]} : vector<8x96xf32> to vector<8x32xf32>
    %417 = vector.extract_strided_slice %392 {offsets = [0, 64], sizes = [8, 32], strides = [1, 1]} : vector<8x96xf32> to vector<8x32xf32>
    %418 = arith.mulf %405, %417 : vector<8x32xf32>
    %419 = arith.addf %416, %418 : vector<8x32xf32>
    %420 = math.tanh %419 : vector<8x32xf32>
    %cst_109 = arith.constant 1.000000e+00 : f32
    %421 = vector.broadcast %cst_109 : f32 to vector<8x32xf32>
    %422 = arith.subf %421, %415 : vector<8x32xf32>
    %423 = arith.mulf %422, %420 : vector<8x32xf32>
    %424 = arith.mulf %415, %394 : vector<8x32xf32>
    %425 = arith.addf %423, %424 : vector<8x32xf32>
    %426 = vector.extract_strided_slice %388 {offsets = [0, 0], sizes = [8, 32], strides = [1, 1]} : vector<8x96xf32> to vector<8x32xf32>
    %427 = vector.extract_strided_slice %393 {offsets = [0, 0], sizes = [8, 32], strides = [1, 1]} : vector<8x96xf32> to vector<8x32xf32>
    %428 = arith.addf %426, %427 : vector<8x32xf32>
    %cst_110 = arith.constant 5.000000e-01 : f32
    %429 = vector.broadcast %cst_110 : f32 to vector<8x32xf32>
    %430 = arith.mulf %429, %428 : vector<8x32xf32>
    %431 = math.tanh %430 : vector<8x32xf32>
    %cst_111 = arith.constant 1.000000e+00 : f32
    %432 = vector.broadcast %cst_111 : f32 to vector<8x32xf32>
    %433 = arith.addf %431, %432 : vector<8x32xf32>
    %cst_112 = arith.constant 5.000000e-01 : f32
    %434 = vector.broadcast %cst_112 : f32 to vector<8x32xf32>
    %435 = arith.mulf %434, %433 : vector<8x32xf32>
    %436 = vector.extract_strided_slice %388 {offsets = [0, 32], sizes = [8, 32], strides = [1, 1]} : vector<8x96xf32> to vector<8x32xf32>
    %437 = vector.extract_strided_slice %393 {offsets = [0, 32], sizes = [8, 32], strides = [1, 1]} : vector<8x96xf32> to vector<8x32xf32>
    %438 = arith.addf %436, %437 : vector<8x32xf32>
    %cst_113 = arith.constant 5.000000e-01 : f32
    %439 = vector.broadcast %cst_113 : f32 to vector<8x32xf32>
    %440 = arith.mulf %439, %438 : vector<8x32xf32>
    %441 = math.tanh %440 : vector<8x32xf32>
    %cst_114 = arith.constant 1.000000e+00 : f32
    %442 = vector.broadcast %cst_114 : f32 to vector<8x32xf32>
    %443 = arith.addf %441, %442 : vector<8x32xf32>
    %cst_115 = arith.constant 5.000000e-01 : f32
    %444 = vector.broadcast %cst_115 : f32 to vector<8x32xf32>
    %445 = arith.mulf %444, %443 : vector<8x32xf32>
    %446 = vector.extract_strided_slice %388 {offsets = [0, 64], sizes = [8, 32], strides = [1, 1]} : vector<8x96xf32> to vector<8x32xf32>
    %447 = vector.extract_strided_slice %393 {offsets = [0, 64], sizes = [8, 32], strides = [1, 1]} : vector<8x96xf32> to vector<8x32xf32>
    %448 = arith.mulf %435, %447 : vector<8x32xf32>
    %449 = arith.addf %446, %448 : vector<8x32xf32>
    %450 = math.tanh %449 : vector<8x32xf32>
    %cst_116 = arith.constant 1.000000e+00 : f32
    %451 = vector.broadcast %cst_116 : f32 to vector<8x32xf32>
    %452 = arith.subf %451, %445 : vector<8x32xf32>
    %453 = arith.mulf %452, %450 : vector<8x32xf32>
    %454 = arith.mulf %445, %395 : vector<8x32xf32>
    %455 = arith.addf %453, %454 : vector<8x32xf32>
    %456 = tpu.concatenate %425, %455 in 1 : vector<8x32xf32>, vector<8x32xf32> -> vector<8x64xf32>
    %457 = arith.addf %384, %456 : vector<8x64xf32>
    %458 = vector.extract_strided_slice %88 {offsets = [0, 5, 0], sizes = [8, 1, 96], strides = [1, 1, 1]} : vector<8x8x192xf32> to vector<8x1x96xf32>
    %459 = vector.shape_cast %458 : vector<8x1x96xf32> to vector<8x96xf32>
    %460 = vector.extract_strided_slice %88 {offsets = [0, 2, 96], sizes = [8, 1, 96], strides = [1, 1, 1]} : vector<8x8x192xf32> to vector<8x1x96xf32>
    %461 = vector.shape_cast %460 : vector<8x1x96xf32> to vector<8x96xf32>
    %cst_117 = arith.constant dense<0.000000e+00> : vector<8x192xf32>
    %462 = tpu.matmul %456, %89, %cst_117 {dimension_numbers = #tpu.dot_dimension_numbers<[1], [0], [0], [1], [0, 0, 1, 1], [], []>} : vector<8x64xf32>, vector<64x192xf32>, vector<8x192xf32> -> vector<8x192xf32>
    %463 = vector.broadcast %90 : vector<1x192xf32> to vector<8x192xf32>
    %464 = arith.addf %462, %463 : vector<8x192xf32>
    %465 = vector.extract_strided_slice %464 {offsets = [0, 0], sizes = [8, 96], strides = [1, 1]} : vector<8x192xf32> to vector<8x96xf32>
    %466 = vector.extract_strided_slice %464 {offsets = [0, 96], sizes = [8, 96], strides = [1, 1]} : vector<8x192xf32> to vector<8x96xf32>
    %467 = vector.extract_strided_slice %456 {offsets = [0, 0], sizes = [8, 32], strides = [1, 1]} : vector<8x64xf32> to vector<8x32xf32>
    %468 = vector.extract_strided_slice %456 {offsets = [0, 32], sizes = [8, 32], strides = [1, 1]} : vector<8x64xf32> to vector<8x32xf32>
    %469 = vector.extract_strided_slice %459 {offsets = [0, 0], sizes = [8, 32], strides = [1, 1]} : vector<8x96xf32> to vector<8x32xf32>
    %470 = vector.extract_strided_slice %465 {offsets = [0, 0], sizes = [8, 32], strides = [1, 1]} : vector<8x96xf32> to vector<8x32xf32>
    %471 = arith.addf %469, %470 : vector<8x32xf32>
    %cst_118 = arith.constant 5.000000e-01 : f32
    %472 = vector.broadcast %cst_118 : f32 to vector<8x32xf32>
    %473 = arith.mulf %472, %471 : vector<8x32xf32>
    %474 = math.tanh %473 : vector<8x32xf32>
    %cst_119 = arith.constant 1.000000e+00 : f32
    %475 = vector.broadcast %cst_119 : f32 to vector<8x32xf32>
    %476 = arith.addf %474, %475 : vector<8x32xf32>
    %cst_120 = arith.constant 5.000000e-01 : f32
    %477 = vector.broadcast %cst_120 : f32 to vector<8x32xf32>
    %478 = arith.mulf %477, %476 : vector<8x32xf32>
    %479 = vector.extract_strided_slice %459 {offsets = [0, 32], sizes = [8, 32], strides = [1, 1]} : vector<8x96xf32> to vector<8x32xf32>
    %480 = vector.extract_strided_slice %465 {offsets = [0, 32], sizes = [8, 32], strides = [1, 1]} : vector<8x96xf32> to vector<8x32xf32>
    %481 = arith.addf %479, %480 : vector<8x32xf32>
    %cst_121 = arith.constant 5.000000e-01 : f32
    %482 = vector.broadcast %cst_121 : f32 to vector<8x32xf32>
    %483 = arith.mulf %482, %481 : vector<8x32xf32>
    %484 = math.tanh %483 : vector<8x32xf32>
    %cst_122 = arith.constant 1.000000e+00 : f32
    %485 = vector.broadcast %cst_122 : f32 to vector<8x32xf32>
    %486 = arith.addf %484, %485 : vector<8x32xf32>
    %cst_123 = arith.constant 5.000000e-01 : f32
    %487 = vector.broadcast %cst_123 : f32 to vector<8x32xf32>
    %488 = arith.mulf %487, %486 : vector<8x32xf32>
    %489 = vector.extract_strided_slice %459 {offsets = [0, 64], sizes = [8, 32], strides = [1, 1]} : vector<8x96xf32> to vector<8x32xf32>
    %490 = vector.extract_strided_slice %465 {offsets = [0, 64], sizes = [8, 32], strides = [1, 1]} : vector<8x96xf32> to vector<8x32xf32>
    %491 = arith.mulf %478, %490 : vector<8x32xf32>
    %492 = arith.addf %489, %491 : vector<8x32xf32>
    %493 = math.tanh %492 : vector<8x32xf32>
    %cst_124 = arith.constant 1.000000e+00 : f32
    %494 = vector.broadcast %cst_124 : f32 to vector<8x32xf32>
    %495 = arith.subf %494, %488 : vector<8x32xf32>
    %496 = arith.mulf %495, %493 : vector<8x32xf32>
    %497 = arith.mulf %488, %467 : vector<8x32xf32>
    %498 = arith.addf %496, %497 : vector<8x32xf32>
    %499 = vector.extract_strided_slice %461 {offsets = [0, 0], sizes = [8, 32], strides = [1, 1]} : vector<8x96xf32> to vector<8x32xf32>
    %500 = vector.extract_strided_slice %466 {offsets = [0, 0], sizes = [8, 32], strides = [1, 1]} : vector<8x96xf32> to vector<8x32xf32>
    %501 = arith.addf %499, %500 : vector<8x32xf32>
    %cst_125 = arith.constant 5.000000e-01 : f32
    %502 = vector.broadcast %cst_125 : f32 to vector<8x32xf32>
    %503 = arith.mulf %502, %501 : vector<8x32xf32>
    %504 = math.tanh %503 : vector<8x32xf32>
    %cst_126 = arith.constant 1.000000e+00 : f32
    %505 = vector.broadcast %cst_126 : f32 to vector<8x32xf32>
    %506 = arith.addf %504, %505 : vector<8x32xf32>
    %cst_127 = arith.constant 5.000000e-01 : f32
    %507 = vector.broadcast %cst_127 : f32 to vector<8x32xf32>
    %508 = arith.mulf %507, %506 : vector<8x32xf32>
    %509 = vector.extract_strided_slice %461 {offsets = [0, 32], sizes = [8, 32], strides = [1, 1]} : vector<8x96xf32> to vector<8x32xf32>
    %510 = vector.extract_strided_slice %466 {offsets = [0, 32], sizes = [8, 32], strides = [1, 1]} : vector<8x96xf32> to vector<8x32xf32>
    %511 = arith.addf %509, %510 : vector<8x32xf32>
    %cst_128 = arith.constant 5.000000e-01 : f32
    %512 = vector.broadcast %cst_128 : f32 to vector<8x32xf32>
    %513 = arith.mulf %512, %511 : vector<8x32xf32>
    %514 = math.tanh %513 : vector<8x32xf32>
    %cst_129 = arith.constant 1.000000e+00 : f32
    %515 = vector.broadcast %cst_129 : f32 to vector<8x32xf32>
    %516 = arith.addf %514, %515 : vector<8x32xf32>
    %cst_130 = arith.constant 5.000000e-01 : f32
    %517 = vector.broadcast %cst_130 : f32 to vector<8x32xf32>
    %518 = arith.mulf %517, %516 : vector<8x32xf32>
    %519 = vector.extract_strided_slice %461 {offsets = [0, 64], sizes = [8, 32], strides = [1, 1]} : vector<8x96xf32> to vector<8x32xf32>
    %520 = vector.extract_strided_slice %466 {offsets = [0, 64], sizes = [8, 32], strides = [1, 1]} : vector<8x96xf32> to vector<8x32xf32>
    %521 = arith.mulf %508, %520 : vector<8x32xf32>
    %522 = arith.addf %519, %521 : vector<8x32xf32>
    %523 = math.tanh %522 : vector<8x32xf32>
    %cst_131 = arith.constant 1.000000e+00 : f32
    %524 = vector.broadcast %cst_131 : f32 to vector<8x32xf32>
    %525 = arith.subf %524, %518 : vector<8x32xf32>
    %526 = arith.mulf %525, %523 : vector<8x32xf32>
    %527 = arith.mulf %518, %468 : vector<8x32xf32>
    %528 = arith.addf %526, %527 : vector<8x32xf32>
    %529 = tpu.concatenate %498, %528 in 1 : vector<8x32xf32>, vector<8x32xf32> -> vector<8x64xf32>
    %530 = arith.addf %457, %529 : vector<8x64xf32>
    %531 = vector.extract_strided_slice %88 {offsets = [0, 6, 0], sizes = [8, 1, 96], strides = [1, 1, 1]} : vector<8x8x192xf32> to vector<8x1x96xf32>
    %532 = vector.shape_cast %531 : vector<8x1x96xf32> to vector<8x96xf32>
    %533 = vector.extract_strided_slice %88 {offsets = [0, 1, 96], sizes = [8, 1, 96], strides = [1, 1, 1]} : vector<8x8x192xf32> to vector<8x1x96xf32>
    %534 = vector.shape_cast %533 : vector<8x1x96xf32> to vector<8x96xf32>
    %cst_132 = arith.constant dense<0.000000e+00> : vector<8x192xf32>
    %535 = tpu.matmul %529, %89, %cst_132 {dimension_numbers = #tpu.dot_dimension_numbers<[1], [0], [0], [1], [0, 0, 1, 1], [], []>} : vector<8x64xf32>, vector<64x192xf32>, vector<8x192xf32> -> vector<8x192xf32>
    %536 = vector.broadcast %90 : vector<1x192xf32> to vector<8x192xf32>
    %537 = arith.addf %535, %536 : vector<8x192xf32>
    %538 = vector.extract_strided_slice %537 {offsets = [0, 0], sizes = [8, 96], strides = [1, 1]} : vector<8x192xf32> to vector<8x96xf32>
    %539 = vector.extract_strided_slice %537 {offsets = [0, 96], sizes = [8, 96], strides = [1, 1]} : vector<8x192xf32> to vector<8x96xf32>
    %540 = vector.extract_strided_slice %529 {offsets = [0, 0], sizes = [8, 32], strides = [1, 1]} : vector<8x64xf32> to vector<8x32xf32>
    %541 = vector.extract_strided_slice %529 {offsets = [0, 32], sizes = [8, 32], strides = [1, 1]} : vector<8x64xf32> to vector<8x32xf32>
    %542 = vector.extract_strided_slice %532 {offsets = [0, 0], sizes = [8, 32], strides = [1, 1]} : vector<8x96xf32> to vector<8x32xf32>
    %543 = vector.extract_strided_slice %538 {offsets = [0, 0], sizes = [8, 32], strides = [1, 1]} : vector<8x96xf32> to vector<8x32xf32>
    %544 = arith.addf %542, %543 : vector<8x32xf32>
    %cst_133 = arith.constant 5.000000e-01 : f32
    %545 = vector.broadcast %cst_133 : f32 to vector<8x32xf32>
    %546 = arith.mulf %545, %544 : vector<8x32xf32>
    %547 = math.tanh %546 : vector<8x32xf32>
    %cst_134 = arith.constant 1.000000e+00 : f32
    %548 = vector.broadcast %cst_134 : f32 to vector<8x32xf32>
    %549 = arith.addf %547, %548 : vector<8x32xf32>
    %cst_135 = arith.constant 5.000000e-01 : f32
    %550 = vector.broadcast %cst_135 : f32 to vector<8x32xf32>
    %551 = arith.mulf %550, %549 : vector<8x32xf32>
    %552 = vector.extract_strided_slice %532 {offsets = [0, 32], sizes = [8, 32], strides = [1, 1]} : vector<8x96xf32> to vector<8x32xf32>
    %553 = vector.extract_strided_slice %538 {offsets = [0, 32], sizes = [8, 32], strides = [1, 1]} : vector<8x96xf32> to vector<8x32xf32>
    %554 = arith.addf %552, %553 : vector<8x32xf32>
    %cst_136 = arith.constant 5.000000e-01 : f32
    %555 = vector.broadcast %cst_136 : f32 to vector<8x32xf32>
    %556 = arith.mulf %555, %554 : vector<8x32xf32>
    %557 = math.tanh %556 : vector<8x32xf32>
    %cst_137 = arith.constant 1.000000e+00 : f32
    %558 = vector.broadcast %cst_137 : f32 to vector<8x32xf32>
    %559 = arith.addf %557, %558 : vector<8x32xf32>
    %cst_138 = arith.constant 5.000000e-01 : f32
    %560 = vector.broadcast %cst_138 : f32 to vector<8x32xf32>
    %561 = arith.mulf %560, %559 : vector<8x32xf32>
    %562 = vector.extract_strided_slice %532 {offsets = [0, 64], sizes = [8, 32], strides = [1, 1]} : vector<8x96xf32> to vector<8x32xf32>
    %563 = vector.extract_strided_slice %538 {offsets = [0, 64], sizes = [8, 32], strides = [1, 1]} : vector<8x96xf32> to vector<8x32xf32>
    %564 = arith.mulf %551, %563 : vector<8x32xf32>
    %565 = arith.addf %562, %564 : vector<8x32xf32>
    %566 = math.tanh %565 : vector<8x32xf32>
    %cst_139 = arith.constant 1.000000e+00 : f32
    %567 = vector.broadcast %cst_139 : f32 to vector<8x32xf32>
    %568 = arith.subf %567, %561 : vector<8x32xf32>
    %569 = arith.mulf %568, %566 : vector<8x32xf32>
    %570 = arith.mulf %561, %540 : vector<8x32xf32>
    %571 = arith.addf %569, %570 : vector<8x32xf32>
    %572 = vector.extract_strided_slice %534 {offsets = [0, 0], sizes = [8, 32], strides = [1, 1]} : vector<8x96xf32> to vector<8x32xf32>
    %573 = vector.extract_strided_slice %539 {offsets = [0, 0], sizes = [8, 32], strides = [1, 1]} : vector<8x96xf32> to vector<8x32xf32>
    %574 = arith.addf %572, %573 : vector<8x32xf32>
    %cst_140 = arith.constant 5.000000e-01 : f32
    %575 = vector.broadcast %cst_140 : f32 to vector<8x32xf32>
    %576 = arith.mulf %575, %574 : vector<8x32xf32>
    %577 = math.tanh %576 : vector<8x32xf32>
    %cst_141 = arith.constant 1.000000e+00 : f32
    %578 = vector.broadcast %cst_141 : f32 to vector<8x32xf32>
    %579 = arith.addf %577, %578 : vector<8x32xf32>
    %cst_142 = arith.constant 5.000000e-01 : f32
    %580 = vector.broadcast %cst_142 : f32 to vector<8x32xf32>
    %581 = arith.mulf %580, %579 : vector<8x32xf32>
    %582 = vector.extract_strided_slice %534 {offsets = [0, 32], sizes = [8, 32], strides = [1, 1]} : vector<8x96xf32> to vector<8x32xf32>
    %583 = vector.extract_strided_slice %539 {offsets = [0, 32], sizes = [8, 32], strides = [1, 1]} : vector<8x96xf32> to vector<8x32xf32>
    %584 = arith.addf %582, %583 : vector<8x32xf32>
    %cst_143 = arith.constant 5.000000e-01 : f32
    %585 = vector.broadcast %cst_143 : f32 to vector<8x32xf32>
    %586 = arith.mulf %585, %584 : vector<8x32xf32>
    %587 = math.tanh %586 : vector<8x32xf32>
    %cst_144 = arith.constant 1.000000e+00 : f32
    %588 = vector.broadcast %cst_144 : f32 to vector<8x32xf32>
    %589 = arith.addf %587, %588 : vector<8x32xf32>
    %cst_145 = arith.constant 5.000000e-01 : f32
    %590 = vector.broadcast %cst_145 : f32 to vector<8x32xf32>
    %591 = arith.mulf %590, %589 : vector<8x32xf32>
    %592 = vector.extract_strided_slice %534 {offsets = [0, 64], sizes = [8, 32], strides = [1, 1]} : vector<8x96xf32> to vector<8x32xf32>
    %593 = vector.extract_strided_slice %539 {offsets = [0, 64], sizes = [8, 32], strides = [1, 1]} : vector<8x96xf32> to vector<8x32xf32>
    %594 = arith.mulf %581, %593 : vector<8x32xf32>
    %595 = arith.addf %592, %594 : vector<8x32xf32>
    %596 = math.tanh %595 : vector<8x32xf32>
    %cst_146 = arith.constant 1.000000e+00 : f32
    %597 = vector.broadcast %cst_146 : f32 to vector<8x32xf32>
    %598 = arith.subf %597, %591 : vector<8x32xf32>
    %599 = arith.mulf %598, %596 : vector<8x32xf32>
    %600 = arith.mulf %591, %541 : vector<8x32xf32>
    %601 = arith.addf %599, %600 : vector<8x32xf32>
    %602 = tpu.concatenate %571, %601 in 1 : vector<8x32xf32>, vector<8x32xf32> -> vector<8x64xf32>
    %603 = arith.addf %530, %602 : vector<8x64xf32>
    %604 = vector.extract_strided_slice %88 {offsets = [0, 7, 0], sizes = [8, 1, 96], strides = [1, 1, 1]} : vector<8x8x192xf32> to vector<8x1x96xf32>
    %605 = vector.shape_cast %604 : vector<8x1x96xf32> to vector<8x96xf32>
    %606 = vector.extract_strided_slice %88 {offsets = [0, 0, 96], sizes = [8, 1, 96], strides = [1, 1, 1]} : vector<8x8x192xf32> to vector<8x1x96xf32>
    %607 = vector.shape_cast %606 : vector<8x1x96xf32> to vector<8x96xf32>
    %cst_147 = arith.constant dense<0.000000e+00> : vector<8x192xf32>
    %608 = tpu.matmul %602, %89, %cst_147 {dimension_numbers = #tpu.dot_dimension_numbers<[1], [0], [0], [1], [0, 0, 1, 1], [], []>} : vector<8x64xf32>, vector<64x192xf32>, vector<8x192xf32> -> vector<8x192xf32>
    %609 = vector.broadcast %90 : vector<1x192xf32> to vector<8x192xf32>
    %610 = arith.addf %608, %609 : vector<8x192xf32>
    %611 = vector.extract_strided_slice %610 {offsets = [0, 0], sizes = [8, 96], strides = [1, 1]} : vector<8x192xf32> to vector<8x96xf32>
    %612 = vector.extract_strided_slice %610 {offsets = [0, 96], sizes = [8, 96], strides = [1, 1]} : vector<8x192xf32> to vector<8x96xf32>
    %613 = vector.extract_strided_slice %602 {offsets = [0, 0], sizes = [8, 32], strides = [1, 1]} : vector<8x64xf32> to vector<8x32xf32>
    %614 = vector.extract_strided_slice %602 {offsets = [0, 32], sizes = [8, 32], strides = [1, 1]} : vector<8x64xf32> to vector<8x32xf32>
    %615 = vector.extract_strided_slice %605 {offsets = [0, 0], sizes = [8, 32], strides = [1, 1]} : vector<8x96xf32> to vector<8x32xf32>
    %616 = vector.extract_strided_slice %611 {offsets = [0, 0], sizes = [8, 32], strides = [1, 1]} : vector<8x96xf32> to vector<8x32xf32>
    %617 = arith.addf %615, %616 : vector<8x32xf32>
    %cst_148 = arith.constant 5.000000e-01 : f32
    %618 = vector.broadcast %cst_148 : f32 to vector<8x32xf32>
    %619 = arith.mulf %618, %617 : vector<8x32xf32>
    %620 = math.tanh %619 : vector<8x32xf32>
    %cst_149 = arith.constant 1.000000e+00 : f32
    %621 = vector.broadcast %cst_149 : f32 to vector<8x32xf32>
    %622 = arith.addf %620, %621 : vector<8x32xf32>
    %cst_150 = arith.constant 5.000000e-01 : f32
    %623 = vector.broadcast %cst_150 : f32 to vector<8x32xf32>
    %624 = arith.mulf %623, %622 : vector<8x32xf32>
    %625 = vector.extract_strided_slice %605 {offsets = [0, 32], sizes = [8, 32], strides = [1, 1]} : vector<8x96xf32> to vector<8x32xf32>
    %626 = vector.extract_strided_slice %611 {offsets = [0, 32], sizes = [8, 32], strides = [1, 1]} : vector<8x96xf32> to vector<8x32xf32>
    %627 = arith.addf %625, %626 : vector<8x32xf32>
    %cst_151 = arith.constant 5.000000e-01 : f32
    %628 = vector.broadcast %cst_151 : f32 to vector<8x32xf32>
    %629 = arith.mulf %628, %627 : vector<8x32xf32>
    %630 = math.tanh %629 : vector<8x32xf32>
    %cst_152 = arith.constant 1.000000e+00 : f32
    %631 = vector.broadcast %cst_152 : f32 to vector<8x32xf32>
    %632 = arith.addf %630, %631 : vector<8x32xf32>
    %cst_153 = arith.constant 5.000000e-01 : f32
    %633 = vector.broadcast %cst_153 : f32 to vector<8x32xf32>
    %634 = arith.mulf %633, %632 : vector<8x32xf32>
    %635 = vector.extract_strided_slice %605 {offsets = [0, 64], sizes = [8, 32], strides = [1, 1]} : vector<8x96xf32> to vector<8x32xf32>
    %636 = vector.extract_strided_slice %611 {offsets = [0, 64], sizes = [8, 32], strides = [1, 1]} : vector<8x96xf32> to vector<8x32xf32>
    %637 = arith.mulf %624, %636 : vector<8x32xf32>
    %638 = arith.addf %635, %637 : vector<8x32xf32>
    %639 = math.tanh %638 : vector<8x32xf32>
    %cst_154 = arith.constant 1.000000e+00 : f32
    %640 = vector.broadcast %cst_154 : f32 to vector<8x32xf32>
    %641 = arith.subf %640, %634 : vector<8x32xf32>
    %642 = arith.mulf %641, %639 : vector<8x32xf32>
    %643 = arith.mulf %634, %613 : vector<8x32xf32>
    %644 = arith.addf %642, %643 : vector<8x32xf32>
    %645 = vector.extract_strided_slice %607 {offsets = [0, 0], sizes = [8, 32], strides = [1, 1]} : vector<8x96xf32> to vector<8x32xf32>
    %646 = vector.extract_strided_slice %612 {offsets = [0, 0], sizes = [8, 32], strides = [1, 1]} : vector<8x96xf32> to vector<8x32xf32>
    %647 = arith.addf %645, %646 : vector<8x32xf32>
    %cst_155 = arith.constant 5.000000e-01 : f32
    %648 = vector.broadcast %cst_155 : f32 to vector<8x32xf32>
    %649 = arith.mulf %648, %647 : vector<8x32xf32>
    %650 = math.tanh %649 : vector<8x32xf32>
    %cst_156 = arith.constant 1.000000e+00 : f32
    %651 = vector.broadcast %cst_156 : f32 to vector<8x32xf32>
    %652 = arith.addf %650, %651 : vector<8x32xf32>
    %cst_157 = arith.constant 5.000000e-01 : f32
    %653 = vector.broadcast %cst_157 : f32 to vector<8x32xf32>
    %654 = arith.mulf %653, %652 : vector<8x32xf32>
    %655 = vector.extract_strided_slice %607 {offsets = [0, 32], sizes = [8, 32], strides = [1, 1]} : vector<8x96xf32> to vector<8x32xf32>
    %656 = vector.extract_strided_slice %612 {offsets = [0, 32], sizes = [8, 32], strides = [1, 1]} : vector<8x96xf32> to vector<8x32xf32>
    %657 = arith.addf %655, %656 : vector<8x32xf32>
    %cst_158 = arith.constant 5.000000e-01 : f32
    %658 = vector.broadcast %cst_158 : f32 to vector<8x32xf32>
    %659 = arith.mulf %658, %657 : vector<8x32xf32>
    %660 = math.tanh %659 : vector<8x32xf32>
    %cst_159 = arith.constant 1.000000e+00 : f32
    %661 = vector.broadcast %cst_159 : f32 to vector<8x32xf32>
    %662 = arith.addf %660, %661 : vector<8x32xf32>
    %cst_160 = arith.constant 5.000000e-01 : f32
    %663 = vector.broadcast %cst_160 : f32 to vector<8x32xf32>
    %664 = arith.mulf %663, %662 : vector<8x32xf32>
    %665 = vector.extract_strided_slice %607 {offsets = [0, 64], sizes = [8, 32], strides = [1, 1]} : vector<8x96xf32> to vector<8x32xf32>
    %666 = vector.extract_strided_slice %612 {offsets = [0, 64], sizes = [8, 32], strides = [1, 1]} : vector<8x96xf32> to vector<8x32xf32>
    %667 = arith.mulf %654, %666 : vector<8x32xf32>
    %668 = arith.addf %665, %667 : vector<8x32xf32>
    %669 = math.tanh %668 : vector<8x32xf32>
    %cst_161 = arith.constant 1.000000e+00 : f32
    %670 = vector.broadcast %cst_161 : f32 to vector<8x32xf32>
    %671 = arith.subf %670, %664 : vector<8x32xf32>
    %672 = arith.mulf %671, %669 : vector<8x32xf32>
    %673 = arith.mulf %664, %614 : vector<8x32xf32>
    %674 = arith.addf %672, %673 : vector<8x32xf32>
    %675 = tpu.concatenate %644, %674 in 1 : vector<8x32xf32>, vector<8x32xf32> -> vector<8x64xf32>
    %676 = arith.addf %603, %675 : vector<8x64xf32>
    %cst_162 = arith.constant 1.250000e-01 : f32
    %677 = vector.broadcast %cst_162 : f32 to vector<8x64xf32>
    %678 = arith.mulf %676, %677 : vector<8x64xf32>
    %cst_163 = arith.constant dense<0.000000e+00> : vector<8xf32>
    %679 = vector.multi_reduction <add>, %678, %cst_163 [1] : vector<8x64xf32> to vector<8xf32>
    %680 = vector.shape_cast %679 : vector<8xf32> to vector<8x1xf32>
    %cst_164 = arith.constant 6.400000e+01 : f32
    %681 = vector.broadcast %cst_164 : f32 to vector<8x1xf32>
    %682 = arith.divf %680, %681 : vector<8x1xf32>
    %683 = vector.broadcast %682 : vector<8x1xf32> to vector<8x64xf32>
    %684 = arith.subf %678, %683 : vector<8x64xf32>
    %685 = arith.mulf %684, %684 : vector<8x64xf32>
    %cst_165 = arith.constant dense<0.000000e+00> : vector<8xf32>
    %686 = vector.multi_reduction <add>, %685, %cst_165 [1] : vector<8x64xf32> to vector<8xf32>
    %687 = vector.shape_cast %686 : vector<8xf32> to vector<8x1xf32>
    %cst_166 = arith.constant 6.400000e+01 : f32
    %688 = vector.broadcast %cst_166 : f32 to vector<8x1xf32>
    %689 = arith.divf %687, %688 : vector<8x1xf32>
    %690 = vector.broadcast %682 : vector<8x1xf32> to vector<8x64xf32>
    %691 = arith.subf %678, %690 : vector<8x64xf32>
    %cst_167 = arith.constant 9.99999974E-6 : f32
    %692 = vector.broadcast %cst_167 : f32 to vector<8x1xf32>
    %693 = arith.addf %689, %692 : vector<8x1xf32>
    %694 = math.rsqrt %693 : vector<8x1xf32>
    %695 = vector.broadcast %694 : vector<8x1xf32> to vector<8x64xf32>
    %696 = arith.mulf %691, %695 : vector<8x64xf32>
    %c0_168 = arith.constant 0 : index
    %c0_169 = arith.constant 0 : index
    %697 = vector.load %arg10[%c0_168, %c0_169] : memref<1x64xf32, #tpu.memory_space<vmem>>, vector<1x64xf32>
    %698 = vector.broadcast %697 : vector<1x64xf32> to vector<8x64xf32>
    %699 = arith.mulf %696, %698 : vector<8x64xf32>
    %c0_170 = arith.constant 0 : index
    %c0_171 = arith.constant 0 : index
    %700 = vector.load %arg11[%c0_170, %c0_171] : memref<1x64xf32, #tpu.memory_space<vmem>>, vector<1x64xf32>
    %701 = vector.broadcast %700 : vector<1x64xf32> to vector<8x64xf32>
    %702 = arith.addf %699, %701 : vector<8x64xf32>
    %c0_172 = arith.constant 0 : index
    %c0_173 = arith.constant 0 : index
    %703 = vector.load %arg12[%c0_172, %c0_173] : memref<64x512xf32, #tpu.memory_space<vmem>>, vector<64x512xf32>
    %cst_174 = arith.constant dense<0.000000e+00> : vector<8x512xf32>
    %704 = tpu.matmul %702, %703, %cst_174 {dimension_numbers = #tpu.dot_dimension_numbers<[1], [0], [0], [1], [0, 0, 1, 1], [], []>} : vector<8x64xf32>, vector<64x512xf32>, vector<8x512xf32> -> vector<8x512xf32>
    %c0_175 = arith.constant 0 : index
    %c0_176 = arith.constant 0 : index
    %705 = vector.load %arg13[%c0_175, %c0_176] : memref<1x512xf32, #tpu.memory_space<vmem>>, vector<1x512xf32>
    %706 = vector.broadcast %705 : vector<1x512xf32> to vector<8x512xf32>
    %707 = arith.addf %704, %706 : vector<8x512xf32>
    %cst_177 = arith.constant 0.000000e+00 : f32
    %708 = vector.broadcast %cst_177 : f32 to vector<8x512xf32>
    %709 = arith.maximumf %707, %708 : vector<8x512xf32>
    %cst_178 = arith.constant dense<0.000000e+00> : vector<8xf32>
    %710 = vector.multi_reduction <add>, %709, %cst_178 [1] : vector<8x512xf32> to vector<8xf32>
    %711 = vector.shape_cast %710 : vector<8xf32> to vector<8x1xf32>
    %cst_179 = arith.constant 5.120000e+02 : f32
    %712 = vector.broadcast %cst_179 : f32 to vector<8x1xf32>
    %713 = arith.divf %711, %712 : vector<8x1xf32>
    %714 = vector.broadcast %713 : vector<8x1xf32> to vector<8x512xf32>
    %715 = arith.subf %709, %714 : vector<8x512xf32>
    %716 = arith.mulf %715, %715 : vector<8x512xf32>
    %cst_180 = arith.constant dense<0.000000e+00> : vector<8xf32>
    %717 = vector.multi_reduction <add>, %716, %cst_180 [1] : vector<8x512xf32> to vector<8xf32>
    %718 = vector.shape_cast %717 : vector<8xf32> to vector<8x1xf32>
    %cst_181 = arith.constant 5.120000e+02 : f32
    %719 = vector.broadcast %cst_181 : f32 to vector<8x1xf32>
    %720 = arith.divf %718, %719 : vector<8x1xf32>
    %721 = vector.broadcast %713 : vector<8x1xf32> to vector<8x512xf32>
    %722 = arith.subf %709, %721 : vector<8x512xf32>
    %cst_182 = arith.constant 9.99999974E-6 : f32
    %723 = vector.broadcast %cst_182 : f32 to vector<8x1xf32>
    %724 = arith.addf %720, %723 : vector<8x1xf32>
    %725 = math.rsqrt %724 : vector<8x1xf32>
    %726 = vector.broadcast %725 : vector<8x1xf32> to vector<8x512xf32>
    %727 = arith.mulf %722, %726 : vector<8x512xf32>
    %c0_183 = arith.constant 0 : index
    %c0_184 = arith.constant 0 : index
    %728 = vector.load %arg14[%c0_183, %c0_184] : memref<1x512xf32, #tpu.memory_space<vmem>>, vector<1x512xf32>
    %729 = vector.broadcast %728 : vector<1x512xf32> to vector<8x512xf32>
    %730 = arith.mulf %727, %729 : vector<8x512xf32>
    %c0_185 = arith.constant 0 : index
    %c0_186 = arith.constant 0 : index
    %731 = vector.load %arg15[%c0_185, %c0_186] : memref<1x512xf32, #tpu.memory_space<vmem>>, vector<1x512xf32>
    %732 = vector.broadcast %731 : vector<1x512xf32> to vector<8x512xf32>
    %733 = arith.addf %730, %732 : vector<8x512xf32>
    %c0_187 = arith.constant 0 : index
    %c0_188 = arith.constant 0 : index
    %734 = vector.load %arg16[%c0_187, %c0_188] : memref<512x256xf32, #tpu.memory_space<vmem>>, vector<512x256xf32>
    %cst_189 = arith.constant dense<0.000000e+00> : vector<8x256xf32>
    %735 = tpu.matmul %733, %734, %cst_189 {dimension_numbers = #tpu.dot_dimension_numbers<[1], [0], [0], [1], [0, 0, 1, 1], [], []>} : vector<8x512xf32>, vector<512x256xf32>, vector<8x256xf32> -> vector<8x256xf32>
    %c0_190 = arith.constant 0 : index
    %c0_191 = arith.constant 0 : index
    %736 = vector.load %arg17[%c0_190, %c0_191] : memref<1x256xf32, #tpu.memory_space<vmem>>, vector<1x256xf32>
    %737 = vector.broadcast %736 : vector<1x256xf32> to vector<8x256xf32>
    %738 = arith.addf %735, %737 : vector<8x256xf32>
    %cst_192 = arith.constant 0.000000e+00 : f32
    %739 = vector.broadcast %cst_192 : f32 to vector<8x256xf32>
    %740 = arith.maximumf %738, %739 : vector<8x256xf32>
    %cst_193 = arith.constant dense<0.000000e+00> : vector<8xf32>
    %741 = vector.multi_reduction <add>, %740, %cst_193 [1] : vector<8x256xf32> to vector<8xf32>
    %742 = vector.shape_cast %741 : vector<8xf32> to vector<8x1xf32>
    %cst_194 = arith.constant 2.560000e+02 : f32
    %743 = vector.broadcast %cst_194 : f32 to vector<8x1xf32>
    %744 = arith.divf %742, %743 : vector<8x1xf32>
    %745 = vector.broadcast %744 : vector<8x1xf32> to vector<8x256xf32>
    %746 = arith.subf %740, %745 : vector<8x256xf32>
    %747 = arith.mulf %746, %746 : vector<8x256xf32>
    %cst_195 = arith.constant dense<0.000000e+00> : vector<8xf32>
    %748 = vector.multi_reduction <add>, %747, %cst_195 [1] : vector<8x256xf32> to vector<8xf32>
    %749 = vector.shape_cast %748 : vector<8xf32> to vector<8x1xf32>
    %cst_196 = arith.constant 2.560000e+02 : f32
    %750 = vector.broadcast %cst_196 : f32 to vector<8x1xf32>
    %751 = arith.divf %749, %750 : vector<8x1xf32>
    %752 = vector.broadcast %744 : vector<8x1xf32> to vector<8x256xf32>
    %753 = arith.subf %740, %752 : vector<8x256xf32>
    %cst_197 = arith.constant 9.99999974E-6 : f32
    %754 = vector.broadcast %cst_197 : f32 to vector<8x1xf32>
    %755 = arith.addf %751, %754 : vector<8x1xf32>
    %756 = math.rsqrt %755 : vector<8x1xf32>
    %757 = vector.broadcast %756 : vector<8x1xf32> to vector<8x256xf32>
    %758 = arith.mulf %753, %757 : vector<8x256xf32>
    %c0_198 = arith.constant 0 : index
    %c0_199 = arith.constant 0 : index
    %759 = vector.load %arg18[%c0_198, %c0_199] : memref<1x256xf32, #tpu.memory_space<vmem>>, vector<1x256xf32>
    %760 = vector.broadcast %759 : vector<1x256xf32> to vector<8x256xf32>
    %761 = arith.mulf %758, %760 : vector<8x256xf32>
    %c0_200 = arith.constant 0 : index
    %c0_201 = arith.constant 0 : index
    %762 = vector.load %arg19[%c0_200, %c0_201] : memref<1x256xf32, #tpu.memory_space<vmem>>, vector<1x256xf32>
    %763 = vector.broadcast %762 : vector<1x256xf32> to vector<8x256xf32>
    %764 = arith.addf %761, %763 : vector<8x256xf32>
    %c0_202 = arith.constant 0 : index
    %c0_203 = arith.constant 0 : index
    %765 = vector.load %arg20[%c0_202, %c0_203] : memref<256x128xf32, #tpu.memory_space<vmem>>, vector<256x128xf32>
    %cst_204 = arith.constant dense<0.000000e+00> : vector<8x128xf32>
    %766 = tpu.matmul %764, %765, %cst_204 {dimension_numbers = #tpu.dot_dimension_numbers<[1], [0], [0], [1], [0, 0, 1, 1], [], []>} : vector<8x256xf32>, vector<256x128xf32>, vector<8x128xf32> -> vector<8x128xf32>
    %c0_205 = arith.constant 0 : index
    %c0_206 = arith.constant 0 : index
    %767 = vector.load %arg21[%c0_205, %c0_206] : memref<1x128xf32, #tpu.memory_space<vmem>>, vector<1x128xf32>
    %768 = vector.broadcast %767 : vector<1x128xf32> to vector<8x128xf32>
    %769 = arith.addf %766, %768 : vector<8x128xf32>
    %c0_207 = arith.constant 0 : index
    %c0_208 = arith.constant 0 : index
    %770 = vector.load %arg22[%c0_207, %c0_208] : memref<8x128xf32, #tpu.memory_space<vmem>>, vector<8x128xf32>
    tpu.vector_store %arg22[%c0_207, %c0_208], %769 {strides = array<i32>} : memref<8x128xf32, #tpu.memory_space<vmem>>, vector<8x128xf32>,
    return
  }
  func.func @transform_0(%arg0: i32) -> (i32, i32, i32) {
    %c0_i32 = arith.constant 0 : i32
    %c0_i32_0 = arith.constant 0 : i32
    %c0_i32_1 = arith.constant 0 : i32
    return %arg0, %c0_i32, %c0_i32_0 : i32, i32, i32
  }
  func.func @transform_1(%arg0: i32) -> (i32, i32) {
    %c0_i32 = arith.constant 0 : i32
    %c0_i32_0 = arith.constant 0 : i32
    %c0_i32_1 = arith.constant 0 : i32
    return %c0_i32, %c0_i32_0 : i32, i32
  }
  func.func @transform_2(%arg0: i32) -> (i32, i32) {
    %c0_i32 = arith.constant 0 : i32
    %c0_i32_0 = arith.constant 0 : i32
    %c0_i32_1 = arith.constant 0 : i32
    return %c0_i32, %c0_i32_0 : i32, i32
  }
  func.func @transform_3(%arg0: i32) -> (i32, i32) {
    %c0_i32 = arith.constant 0 : i32
    %c0_i32_0 = arith.constant 0 : i32
    %c0_i32_1 = arith.constant 0 : i32
    return %c0_i32, %c0_i32_0 : i32, i32
  }
  func.func @transform_4(%arg0: i32) -> (i32, i32) {
    %c0_i32 = arith.constant 0 : i32
    %c0_i32_0 = arith.constant 0 : i32
    %c0_i32_1 = arith.constant 0 : i32
    return %c0_i32, %c0_i32_0 : i32, i32
  }
  func.func @transform_5(%arg0: i32) -> (i32, i32) {
    %c0_i32 = arith.constant 0 : i32
    %c0_i32_0 = arith.constant 0 : i32
    %c0_i32_1 = arith.constant 0 : i32
    return %c0_i32, %c0_i32_0 : i32, i32
  }
  func.func @transform_6(%arg0: i32) -> (i32, i32) {
    %c0_i32 = arith.constant 0 : i32
    %c0_i32_0 = arith.constant 0 : i32
    %c0_i32_1 = arith.constant 0 : i32
    return %c0_i32, %c0_i32_0 : i32, i32
  }
  func.func @transform_7(%arg0: i32) -> (i32, i32) {
    %c0_i32 = arith.constant 0 : i32
    %c0_i32_0 = arith.constant 0 : i32
    %c0_i32_1 = arith.constant 0 : i32
    return %c0_i32, %c0_i32_0 : i32, i32
  }
  func.func @transform_8(%arg0: i32) -> (i32, i32) {
    %c0_i32 = arith.constant 0 : i32
    %c0_i32_0 = arith.constant 0 : i32
    %c0_i32_1 = arith.constant 0 : i32
    return %c0_i32, %c0_i32_0 : i32, i32
  }
  func.func @transform_9(%arg0: i32) -> (i32, i32) {
    %c0_i32 = arith.constant 0 : i32
    %c0_i32_0 = arith.constant 0 : i32
    %c0_i32_1 = arith.constant 0 : i32
    return %c0_i32, %c0_i32_0 : i32, i32
  }
  func.func @transform_10(%arg0: i32) -> (i32, i32) {
    %c0_i32 = arith.constant 0 : i32
    %c0_i32_0 = arith.constant 0 : i32
    %c0_i32_1 = arith.constant 0 : i32
    return %c0_i32, %c0_i32_0 : i32, i32
  }
  func.func @transform_11(%arg0: i32) -> (i32, i32) {
    %c0_i32 = arith.constant 0 : i32
    %c0_i32_0 = arith.constant 0 : i32
    %c0_i32_1 = arith.constant 0 : i32
    return %c0_i32, %c0_i32_0 : i32, i32
  }
  func.func @transform_12(%arg0: i32) -> (i32, i32) {
    %c0_i32 = arith.constant 0 : i32
    %c0_i32_0 = arith.constant 0 : i32
    %c0_i32_1 = arith.constant 0 : i32
    return %c0_i32, %c0_i32_0 : i32, i32
  }
  func.func @transform_13(%arg0: i32) -> (i32, i32) {
    %c0_i32 = arith.constant 0 : i32
    %c0_i32_0 = arith.constant 0 : i32
    %c0_i32_1 = arith.constant 0 : i32
    return %c0_i32, %c0_i32_0 : i32, i32
  }
  func.func @transform_14(%arg0: i32) -> (i32, i32) {
    %c0_i32 = arith.constant 0 : i32
    %c0_i32_0 = arith.constant 0 : i32
    %c0_i32_1 = arith.constant 0 : i32
    return %c0_i32, %c0_i32_0 : i32, i32
  }
  func.func @transform_15(%arg0: i32) -> (i32, i32) {
    %c0_i32 = arith.constant 0 : i32
    %c0_i32_0 = arith.constant 0 : i32
    %c0_i32_1 = arith.constant 0 : i32
    return %c0_i32, %c0_i32_0 : i32, i32
  }
  func.func @transform_16(%arg0: i32) -> (i32, i32) {
    %c0_i32 = arith.constant 0 : i32
    %c0_i32_0 = arith.constant 0 : i32
    %c0_i32_1 = arith.constant 0 : i32
    return %c0_i32, %c0_i32_0 : i32, i32
  }
  func.func @transform_17(%arg0: i32) -> (i32, i32) {
    %c0_i32 = arith.constant 0 : i32
    %c0_i32_0 = arith.constant 0 : i32
    %c0_i32_1 = arith.constant 0 : i32
    return %c0_i32, %c0_i32_0 : i32, i32
  }
  func.func @transform_18(%arg0: i32) -> (i32, i32) {
    %c0_i32 = arith.constant 0 : i32
    %c0_i32_0 = arith.constant 0 : i32
    %c0_i32_1 = arith.constant 0 : i32
    return %c0_i32, %c0_i32_0 : i32, i32
  }
  func.func @transform_19(%arg0: i32) -> (i32, i32) {
    %c0_i32 = arith.constant 0 : i32
    %c0_i32_0 = arith.constant 0 : i32
    %c0_i32_1 = arith.constant 0 : i32
    return %c0_i32, %c0_i32_0 : i32, i32
  }
  func.func @transform_20(%arg0: i32) -> (i32, i32) {
    %c0_i32 = arith.constant 0 : i32
    %c0_i32_0 = arith.constant 0 : i32
    %c0_i32_1 = arith.constant 0 : i32
    return %c0_i32, %c0_i32_0 : i32, i32
  }
  func.func @transform_21(%arg0: i32) -> (i32, i32) {
    %c0_i32 = arith.constant 0 : i32
    %c0_i32_0 = arith.constant 0 : i32
    return %arg0, %c0_i32 : i32, i32
  }
}

</mosaic_0001>

<bundles_post_ra>
// kernel: tpu_custom_call.1
= control target key start
LH: loop header
LB: loop body
LE: loop exit
PB: predicated region body
PF: predicated region fallthrough
CT: control target
= control target key end

     0   :  { %s17434_s0 = inlined_call_operand.hbm [shape: f32[8,8,32], index: 0, kind: input, shape index: {}]   ;;  %s17435_s1 = inlined_call_operand.hbm [shape: f32[32,96], index: 1, kind: input, shape index: {}]   ;;  %s17436_s2 = inlined_call_operand.hbm [shape: f32[1,96], index: 2, kind: input, shape index: {}]   ;;  %s17437_s3 = inlined_call_operand.hbm [shape: f32[32,32], index: 3, kind: input, shape index: {}]   ;;  %s17438_s4 = inlined_call_operand.hbm [shape: f32[1,32], index: 4, kind: input, shape index: {}]   ;;  %s17439_s5 = inlined_call_operand.hbm [shape: f32[32,192], index: 5, kind: input, shape index: {}]   ;;  %s17440_s6 = inlined_call_operand.hbm [shape: f32[1,192], index: 6, kind: input, shape index: {}]   ;;  %s17441_s7 = inlined_call_operand.hbm [shape: f32[64,192], index: 7, kind: input, shape index: {}]   ;;  %s17442_s8 = inlined_call_operand.vmem [shape: f32[1,192], index: 8, kind: input, shape index: {}]   ;;  %s17443_s9 = inlined_call_operand.hbm [shape: f32[1,64], index: 9, kind: input, shape index: {}]   ;;  %s17444_s10 = inlined_call_operand.hbm [shape: f32[1,64], index: 10, kind: input, shape index: {}]   ;;  %s17445_s11 = inlined_call_operand.hbm [shape: f32[64,512], index: 11, kind: input, shape index: {}]   ;;  %s17446_s12 = inlined_call_operand.vmem [shape: f32[1,512], index: 12, kind: input, shape index: {}]   ;;  %s17447_s13 = inlined_call_operand.vmem [shape: f32[1,512], index: 13, kind: input, shape index: {}]   ;;  %s17448_s14 = inlined_call_operand.vmem [shape: f32[1,512], index: 14, kind: input, shape index: {}]   ;;  %s17449_s15 = inlined_call_operand.hbm [shape: f32[512,256], index: 15, kind: input, shape index: {}]   ;;  %s17450_s16 = inlined_call_operand.vmem [shape: f32[1,256], index: 16, kind: input, shape index: {}]   ;;  %s17451_s17 = inlined_call_operand.vmem [shape: f32[1,256], index: 17, kind: input, shape index: {}]   ;;  %s17452_s18 = inlined_call_operand.vmem [shape: f32[1,256], index: 18, kind: input, shape index: {}]   ;;  %s17453_s19 = inlined_call_operand.hbm [shape: f32[256,128], index: 19, kind: input, shape index: {}]   ;;  %s17454_s20 = inlined_call_operand.vmem [shape: f32[1,128], index: 20, kind: input, shape index: {}]   ;;  %s17455_s21 = inlined_call_operand.hbm [shape: f32[8,128], index: 21, kind: output, shape index: {}]  }
   0x1   :  { %17539 = sst [smem:[#allocation57_spill]] %s17434_s0 }
   0x2   :  { %17540 = sst [smem:[#allocation58_spill]] %s17435_s1 }
   0x3   :  { %17541 = sst [smem:[#allocation59_spill]] %s17436_s2 }
   0x4   :  { %17542 = sst [smem:[#allocation60_spill]] %s17437_s3 }
   0x5   :  { %17543 = sst [smem:[#allocation61_spill]] %s17438_s4 }
   0x6   :  { %17544 = sst [smem:[#allocation62_spill]] %s17439_s5 }
   0x7   :  { %26 = vsyncpa [#allocation3], 0 }
   0x8   :  { %27 = vsyncpa [#allocation6], 0 }
   0x9   :  { %28 = vsyncpa [#allocation9], 0 }
   0xa   :  { %29 = vsyncpa [#allocation12], 0 }
   0xb   :  { %30 = vsyncpa [#allocation15], 0 }
   0xc   :  { %31 = vsyncpa [#allocation18], 0 }
   0xd   :  { %32 = vsyncpa [#allocation21], 0 }
   0xe   :  { %33 = vsyncpa [#allocation4], 0  ;;  %s13740_s2 = smov [#allocation5]   ;;  %s13741_s26 = smov [#allocation8]  }
   0xf   :  { %s51_s25 = sshll.u32 %s13740_s2, 4  ;;  %s73_s27 = sshll.u32 %s13741_s26, 4  ;;  %s52_s25 = int_to_ptr.vmem [resolvable:$true] %s51_s25  ;;  %s74_s27 = int_to_ptr.vmem [resolvable:$true] %s73_s27 }
  0x10   :  { %s13452_s3 = scalar_lea.vmem %s52_s25, 512  ;;  %p13457_p1 = scmp.lt.s32.totalorder %s52_s25, %s52_s25 }
  0x11   :  { %p13453_p0 = scmp.ne.s32.totalorder %s52_s25, %s13452_s3  ;;  %p13458_p2 = scmp.lt.s32.totalorder %s13452_s3, %s13452_s3 }
  0x13   :  { %p13459_p3 = por %p13458_p2, %p13457_p1 }
  0x15   :  { %p13460_p4 = pnand %p13459_p3, %p13453_p0 }
  0x17   :  { %13463 = shalt.err (!%p13460_p4)
}
  0x18   :  { %s17456_s28 = smov 128   ;;  %s13743_s29 = smov 8  }
  0x19   :  { %s17545_s30 = sld [smem:[#allocation58_spill]]  ;;  %s13472_s5 = scalar_lea.vmem %s74_s27, 512 }
  0x1a   :  { %p13473_p5 = scmp.ne.s32.totalorder %s74_s27, %s13472_s5  ;;  %p13477_p6 = scmp.lt.s32.totalorder %s74_s27, %s74_s27 }
  0x1b   :  { %p13478_p7 = scmp.lt.s32.totalorder %s13472_s5, %s13472_s5 }
  0x1d   :  { %p13479_p8 = por %p13478_p7, %p13477_p6 }
  0x1f   :  { %57 = dma.hbm_to_vmem [thread:$0]  %s17545_s30, 512, %s52_s25, [#allocation6], %s17456_s28, %s17456_s28, %s13743_s29  }
  0x20   :  { %p13480_p9 = pnand %p13479_p8, %p13473_p5 }
  0x22   :  { %13483 = shalt.err (!%p13480_p9)
}
  0x23   :  { %s17546_s1 = sld [smem:[#allocation60_spill]]  ;;  %s13744_s24 = smov [#allocation11]  }
  0x24   :  { %s95_s2 = sshll.u32 %s13744_s24, 4  ;;  %s96_s2 = int_to_ptr.vmem [resolvable:$true] %s95_s2 }
  0x25   :  { %s13492_s26 = scalar_lea.vmem %s96_s2, 1024  ;;  %p13497_p11 = scmp.lt.s32.totalorder %s96_s2, %s96_s2 }
  0x26   :  { %p13493_p10 = scmp.ne.s32.totalorder %s96_s2, %s13492_s26  ;;  %p13498_p12 = scmp.lt.s32.totalorder %s13492_s26, %s13492_s26 }
  0x28   :  { %p13499_p13 = por %p13498_p12, %p13497_p11 }
  0x29   :  { %79 = dma.hbm_to_vmem [thread:$0]  %s17546_s1, 512, %s74_s27, [#allocation9], %s17456_s28, %s17456_s28, %s13743_s29  }
  0x2a   :  { %p13500_p0 = pnand %p13499_p13, %p13493_p10 }
  0x2c   :  { %13503 = shalt.err (!%p13500_p0)
}
  0x2d   :  { %s13745_s25 = smov 256   ;;  %s13746_s3 = smov 16  }
  0x2e   :  { %s17547_s30 = sld [smem:[#allocation62_spill]]  ;;  %s13747_s27 = smov [#allocation14]  }
  0x2f   :  { %s117_s5 = sshll.u32 %s13747_s27, 4  ;;  %s13748_s22 = smov [#allocation17]   ;;  %s118_s5 = int_to_ptr.vmem [resolvable:$true] %s117_s5 }
  0x30   :  { %s142_s23 = sshll.u32 %s13748_s22, 4  ;;  %s13512_s1 = scalar_lea.vmem %s118_s5, 2048  ;;  %s143_s23 = int_to_ptr.vmem [resolvable:$true] %s142_s23 }
  0x31   :  { %p13513_p1 = scmp.ne.s32.totalorder %s118_s5, %s13512_s1  ;;  %p13517_p2 = scmp.lt.s32.totalorder %s118_s5, %s118_s5 }
  0x32   :  { %p13518_p3 = scmp.lt.s32.totalorder %s13512_s1, %s13512_s1 }
  0x34   :  { %101 = dma.hbm_to_vmem [thread:$0]  %s17547_s30, 1024, %s96_s2, [#allocation12], %s13745_s25, %s13745_s25, %s13746_s3  }
  0x35   :  { %p13519_p4 = por %p13518_p3, %p13517_p2 }
  0x37   :  { %p13520_p5 = pnand %p13519_p4, %p13513_p1 }
  0x39   :  { %13523 = shalt.err (!%p13520_p5)
}
  0x3a   :  { %123 = dma.hbm_to_vmem [thread:$0]  %s17441_s7, 2048, %s118_s5, [#allocation15], %s13745_s25, %s13745_s25, %s13746_s3  }
  0x3b   :  { %s13532_s2 = scalar_lea.vmem %s143_s23, 16  ;;  %s13536_s0 = scalar_lea.vmem %s143_s23, 32 }
  0x3c   :  { %p13533_p6 = scmp.ne.s32.totalorder %s143_s23, %s13532_s2  ;;  %p13537_p7 = scmp.lt.s32.totalorder %s143_s23, %s143_s23 }
  0x3d   :  { %p13538_p8 = scmp.lt.s32.totalorder %s13536_s0, %s13532_s2 }
  0x3f   :  { %p13539_p9 = por %p13538_p8, %p13537_p7 }
  0x41   :  { %p13540_p10 = pnand %p13539_p9, %p13533_p6 }
  0x43   :  { %13543 = shalt.err (!%p13540_p10)
}
  0x44   :  { %145 = dma.hbm_to_vmem [thread:$0]  %s17444_s10, 16, %s143_s23, [#allocation18]  }
  0x45   :  { %s13749_s27 = smov [#allocation20]   ;;  %s13750_s1 = smov [#allocation2]  }
  0x46   :  { %s169_s22 = sshll.u32 %s13749_s27, 4  ;;  %s39_s28 = sshll.u32 %s13750_s1, 4  ;;  %s170_s22 = int_to_ptr.vmem [resolvable:$true] %s169_s22  ;;  %s40_s28 = int_to_ptr.vmem [resolvable:$true] %s39_s28 }
  0x47   :  { %s13552_s24 = scalar_lea.vmem %s170_s22, 16384  ;;  %p13557_p12 = scmp.lt.s32.totalorder %s170_s22, %s170_s22 }
  0x48   :  { %p13553_p11 = scmp.ne.s32.totalorder %s170_s22, %s13552_s24  ;;  %p13558_p13 = scmp.lt.s32.totalorder %s13552_s24, %s13552_s24 }
  0x4a   :  { %p13559_p0 = por %p13558_p13, %p13557_p12 }
  0x4c   :  { %p13560_p1 = pnand %p13559_p0, %p13553_p11 }
  0x4e   :  { %13563 = shalt.err (!%p13560_p1)
}
  0x4f   :  { %175 = dma.hbm_to_vmem [thread:$0]  %s17449_s15, 16384, %s170_s22, [#allocation21], %s13745_s25, %s13745_s25, %s13746_s3  }
  0x50   :  { %s13572_s10 = scalar_lea.vmem %s40_s28, 1024  ;;  %p13577_p3 = scmp.lt.s32.totalorder %s40_s28, %s40_s28 }
  0x51   :  { %p13573_p2 = scmp.ne.s32.totalorder %s40_s28, %s13572_s10  ;;  %p13578_p4 = scmp.lt.s32.totalorder %s13572_s10, %s13572_s10 }
  0x53   :  { %p13579_p5 = por %p13578_p4, %p13577_p3 }
  0x55   :  { %p13580_p6 = pnand %p13579_p5, %p13573_p2 }
  0x57   :  { %13583 = shalt.err (!%p13580_p6)
}
  0x58   :  { %s17548_s23 = smov 128   ;;  %s17549_s0 = sld [smem:[#allocation57_spill]] }
  0x59   :  { %s13751_s4 = smov [#allocation7]   ;;  %s13752_s27 = smov [#allocation10]  }
  0x5a   :  { %s64_s30 = sshll.u32 %s13751_s4, 4  ;;  %s86_s15 = sshll.u32 %s13752_s27, 4  ;;  %s65_s30 = int_to_ptr.vmem [resolvable:$true] %s64_s30  ;;  %s87_s15 = int_to_ptr.vmem [resolvable:$true] %s86_s15 }
  0x5b   :  { %s13592_s25 = scalar_lea.vmem %s65_s30, 16  ;;  %s13596_s22 = scalar_lea.vmem %s65_s30, 32 }
  0x5c   :  { %p13593_p7 = scmp.ne.s32.totalorder %s65_s30, %s13592_s25  ;;  %p13597_p8 = scmp.lt.s32.totalorder %s65_s30, %s65_s30 }
  0x5d   :  { %p13598_p9 = scmp.lt.s32.totalorder %s13596_s22, %s13592_s25 }
  0x5e   :  { %45 = dma.hbm_to_vmem [thread:$0]  %s17549_s0, 1024, %s40_s28, [#allocation3], %s17548_s23, %s17548_s23, %s13743_s29  }
  0x5f   :  { %p13599_p10 = por %p13598_p9, %p13597_p8 }
  0x61   :  { %p13600_p11 = pnand %p13599_p10, %p13593_p7 }
  0x63   :  { %13603 = shalt.err (!%p13600_p11)
}
  0x64   :  { %s17550_s7 = sld [smem:[#allocation59_spill]]  ;;  %s13612_s5 = scalar_lea.vmem %s87_s15, 16 }
  0x65   :  { %p13613_p12 = scmp.ne.s32.totalorder %s87_s15, %s13612_s5  ;;  %s13616_s28 = scalar_lea.vmem %s87_s15, 32 }
  0x66   :  { %p13617_p13 = scmp.lt.s32.totalorder %s87_s15, %s87_s15  ;;  %p13618_p0 = scmp.lt.s32.totalorder %s13616_s28, %s13612_s5 }
  0x68   :  { %p13619_p1 = por %p13618_p0, %p13617_p13 }
  0x6a   :  { %67 = dma.hbm_to_vmem [thread:$0]  %s17550_s7, 16, %s65_s30, [#allocation6]  }
  0x6b   :  { %p13620_p2 = pnand %p13619_p1, %p13613_p12 }
  0x6d   :  { %13623 = shalt.err (!%p13620_p2)
}
  0x6e   :  { %s17551_s2 = sld [smem:[#allocation61_spill]]  ;;  %s13753_s0 = smov [#allocation13]  }
  0x6f   :  { %s108_s4 = sshll.u32 %s13753_s0, 4  ;;  %s13754_s27 = smov [#allocation16]   ;;  %s109_s4 = int_to_ptr.vmem [resolvable:$true] %s108_s4 }
  0x70   :  { %s132_s25 = sshll.u32 %s13754_s27, 4  ;;  %s13632_s22 = scalar_lea.vmem %s109_s4, 32  ;;  %s133_s25 = int_to_ptr.vmem [resolvable:$true] %s132_s25 }
  0x71   :  { %p13633_p3 = scmp.ne.s32.totalorder %s109_s4, %s13632_s22  ;;  %p13637_p4 = scmp.lt.s32.totalorder %s109_s4, %s109_s4 }
  0x72   :  { %p13638_p5 = scmp.lt.s32.totalorder %s13632_s22, %s13632_s22 }
  0x74   :  { %89 = dma.hbm_to_vmem [thread:$0]  %s17551_s2, 16, %s87_s15, [#allocation9]  }
  0x75   :  { %p13639_p6 = por %p13638_p5, %p13637_p4 }
  0x77   :  { %p13640_p7 = pnand %p13639_p6, %p13633_p3 }
  0x79   :  { %13643 = shalt.err (!%p13640_p7)
}
  0x7a   :  { %111 = dma.hbm_to_vmem [thread:$0]  %s17440_s6, 32, %s109_s4, [#allocation12]  }
  0x7b   :  { %s13652_s24 = scalar_lea.vmem %s133_s25, 16  ;;  %s13656_s15 = scalar_lea.vmem %s133_s25, 32 }
  0x7c   :  { %p13653_p8 = scmp.ne.s32.totalorder %s133_s25, %s13652_s24  ;;  %p13657_p9 = scmp.lt.s32.totalorder %s133_s25, %s133_s25 }
  0x7d   :  { %p13658_p10 = scmp.lt.s32.totalorder %s13656_s15, %s13652_s24 }
  0x7f   :  { %p13659_p11 = por %p13658_p10, %p13657_p9 }
  0x81   :  { %p13660_p12 = pnand %p13659_p11, %p13653_p8 }
  0x83   :  { %13663 = shalt.err (!%p13660_p12)
}
  0x84   :  { %135 = dma.hbm_to_vmem [thread:$0]  %s17443_s9, 16, %s133_s25, [#allocation15]  }
  0x85   :  { %s13755_s28 = smov [#allocation19]  }
  0x86   :  { %s151_s10 = sshll.u32 %s13755_s28, 4  ;;  %s152_s10 = int_to_ptr.vmem [resolvable:$true] %s151_s10 }
  0x87   :  { %s13672_s26 = scalar_lea.vmem %s152_s10, 4096  ;;  %p13677_p0 = scmp.lt.s32.totalorder %s152_s10, %s152_s10 }
  0x88   :  { %p13673_p13 = scmp.ne.s32.totalorder %s152_s10, %s13672_s26  ;;  %p13678_p1 = scmp.lt.s32.totalorder %s13672_s26, %s13672_s26 }
  0x8a   :  { %p13679_p2 = por %p13678_p1, %p13677_p0 }
  0x8c   :  { %p13680_p3 = pnand %p13679_p2, %p13673_p13 }
  0x8e   :  { %13683 = shalt.err (!%p13680_p3)
}
  0x8f   :  { %s13756_s6 = smov 512   ;;  %s13757_s2 = smov 32  }
  0x90   :  { %157 = dma.hbm_to_vmem [thread:$0]  %s17445_s11, 4096, %s152_s10, [#allocation18], %s13756_s6, %s13756_s6, %s13757_s2  }
  0x91   :  { %s13758_s27 = smov [#allocation22]  }
  0x92   :  { %s187_s22 = sshll.u32 %s13758_s27, 4  ;;  %s188_s22 = int_to_ptr.vmem [resolvable:$true] %s187_s22 }
  0x93   :  { %s13692_s9 = scalar_lea.vmem %s188_s22, 4096  ;;  %p13697_p5 = scmp.lt.s32.totalorder %s188_s22, %s188_s22 }
  0x94   :  { %p13693_p4 = scmp.ne.s32.totalorder %s188_s22, %s13692_s9  ;;  %p13698_p6 = scmp.lt.s32.totalorder %s13692_s9, %s13692_s9 }
  0x96   :  { %p13699_p7 = por %p13698_p6, %p13697_p5 }
  0x98   :  { %p13700_p8 = pnand %p13699_p7, %p13693_p4 }
  0x9a   :  { %13703 = shalt.err (!%p13700_p8)
}
  0x9b   :  { %193 = dma.hbm_to_vmem [thread:$0]  %s17453_s19, 4096, %s188_s22, [#allocation21], %s17548_s23, %s17548_s23, %s13743_s29  }
  0x9c   :  { %13724 = dma.done.wait [#allocation3], 1024  }
  0x9d   :  { %13725 = vsyncadd [#allocation3], 4294966272 }
  0x9e   :  { %13726 = dma.done.wait [#allocation6], 528  }
  0x9f   :  { %13727 = vsyncadd [#allocation6], 4294966768 }
  0xa0   :  { %13728 = dma.done.wait [#allocation9], 528  }
  0xa1   :  { %13729 = vsyncadd [#allocation9], 4294966768 }
  0xa2   :  { %13730 = dma.done.wait [#allocation12], 1056  }
  0xa3   :  { %13731 = vsyncadd [#allocation12], 4294966240 }
  0xa4   :  { %13732 = dma.done.wait [#allocation15], 2064  }
  0xa5   :  { %13733 = vsyncadd [#allocation15], 4294965232 }
  0xa6   :  { %13734 = dma.done.wait [#allocation18], 4112  }
  0xa7   :  { %13735 = vsyncadd [#allocation18], 4294963184 }
  0xa8   :  { %13736 = dma.done.wait [#allocation21], 20480  }
  0xa9   :  { %13737 = vsyncadd [#allocation21], 4294946816  ;;  %vm254_vm0 = vcmask 261120   ;;  %v246_v0 = vld [vmem:[#allocation5 + $0x18] sm:$0xff]  ;;  %v245_v1 = vld [vmem:[#allocation5 + $0x10] sm:$0xff]  ;;  %v17458_v12 = vmov 0.0  }
  0xaa   :  { %12221 = vmatprep.subr.mxu0 %v246_v0  ;;  %v235_v2 = vld [vmem:[#allocation2] sm:$0xff]  ;;  %12581 = vmatprep.subr.mxu1 %v246_v0  ;;  %v244_v3 = vld [vmem:[#allocation5 + $0x8] sm:$0xff]  ;;  %v237_v6 = vld [vmem:[#allocation2 + $0x10] sm:$0xff]  ;;  %vm13760_vm1 = vmmov 0   ;;  %s13761_s11 = smov 96   ;;  %vm395_vm2 = vcmask 64512  }
  0xab   :  { %12222 = vmatpush3.msra.mxu0 %v246_v0  ;;  %12229 = vmatprep.mubr.msk.f32.mxu0 %vm254_vm0, %v235_v2  ;;  %v243_v4 = vld [vmem:[#allocation5] sm:$0xff]  ;;  %v236_v5 = vld [vmem:[#allocation2 + $0x8] sm:$0xff]  ;;  %v241_v9 = vld [vmem:[#allocation2 + $0x30] sm:$0xff]  ;;  %s13762_s19 = smov 64   ;;  %s13763_s23 = smov 88   ;;  %vm5786_vm3 = vcmask 195584  }
  0xac   :  { %12223 = vmatprep.subr.mxu0 %v245_v1  ;;  %12585 = vmatpush3.msra.mxu1 %v246_v0  ;;  %v239_v7 = vld [vmem:[#allocation2 + $0x20] sm:$0xff]  ;;  %v240_v8 = vld [vmem:[#allocation2 + $0x28] sm:$0xff]  ;;  %v238_v10 = vld [vmem:[#allocation2 + $0x18] sm:$0xff]  ;;  %s13764_s1 = smov 120   ;;  %s13765_s24 = smov 56   ;;  %vm5777_vm4 = vcmask 130048  }
  0xad   :  { %12224 = vmatpush3.msra.mxu0 %v245_v1  ;;  %12582 = vmatprep.subr.mxu1 %v245_v1  ;;  %v242_v11 = vld [vmem:[#allocation2 + $0x38] sm:$0xff]  ;;  %v11900_v14 = vld [vmem:[#allocation7] ss:$0 sm:$0xff]  ;;  %s13766_s15 = smov 80   ;;  %s13767_s7 = smov 112   ;;  %vm6644_vm5 = vcmask 1041409  }
  0xae   :  { %12225 = vmatprep.subr.mxu0 %v244_v3  ;;  %12586 = vmatpush3.msra.mxu1 %v245_v1  ;;  %s13768_s5 = smov 48   ;;  %s13769_s28 = smov 72   ;;  %vm6647_vm6 = vcmask 1042434   ;;  %vm6650_vm7 = vcmask 1043459   ;;  %vm6653_vm8 = vcmask 1044484   ;;  %vm6656_vm9 = vcmask 1045509  }
  0xaf   :  { %12226 = vmatpush3.msra.mxu0 %v244_v3  ;;  %12583 = vmatprep.subr.mxu1 %v244_v3  ;;  %s13770_s10 = smov 104   ;;  %s13771_s26 = smov 40   ;;  %vm6659_vm10 = vcmask 1046534   ;;  %vm6662_vm11 = vcmask 1047559   ;;  %vm6120_vm12 = vcmask 523264   ;;  %vm7321_vm13 = vcmask 1046528  }
  0xb0   :  { %12227 = vmatprep.subr.mxu0 %v243_v4  ;;  %12587 = vmatpush3.msra.mxu1 %v244_v3  ;;  %s13772_s6 = smov 24   ;;  %vm7954_vm14 = vcmask 1045504   ;;  %vm8587_vm15 = vcmask 1044480   ;;  %s13773_s30 = smov [#allocation23]  }
  0xb1   :  { %12228 = vmatpush3.msra.mxu0 %v243_v4  ;;  %12584 = vmatprep.subr.mxu1 %v243_v4 }
  0xb2   :  { %12230 = vmatmul.mubr.msk.f32.vlgmr.msra.gmra.mxu0 %vm254_vm0, %v236_v5  ;;  %12588 = vmatpush3.msra.mxu1 %v243_v4 }
  0xb3   :  { %12232 = vmatprep.mubr.msk.f32.mxu0 %vm254_vm0, %v237_v6  ;;  %12235 = vmatprep.mubr.msk.f32.mxu1 %vm254_vm0, %v239_v7 }
  0xb4   :  { %12236 = vmatmul.mubr.msk.f32.vlgmr.msra.gmra.mxu1 %vm254_vm0, %v240_v8  ;;  %12241 = vmatprep.subr.mxu1 %v17458_v12 }
  0xb5   :  { %12238 = vmatprep.mubr.msk.f32.mxu1 %vm254_vm0, %v241_v9  ;;  %12266 = vmatprep.subr.mxu0 %v17458_v12 }
  0xb6   :  { %12233 = vmatmul.mubr.msk.f32.gmra.mxu0 %vm254_vm0, %v238_v10 }
  0xb7   :  { %12268 = vmatprep.mubr.msk.f32.mxu0 %vm13760_vm1, %v17458_v12 }
  0xb8   :  { %12239 = vmatmul.mubr.msk.f32.gmra.mxu1 %vm254_vm0, %v242_v11 }
  0xb9   :  { %12243 = vmatprep.mubr.msk.f32.mxu1 %vm13760_vm1, %v17458_v12 }
 0x172   :  { %v12231_v13 = vpop.f32.mrf.mxu0 }
 0x173   :  { %v13963_v21 = vadd.f32 %v12231_v13, %v11900_v14 }
 0x174   :  { %v345_v15 = vpop.f32.mrf.mxu0  ;;  %v12237_v16 = vpop.f32.mrf.mxu1 }
 0x175   :  { %v13959_v17 = vadd.f32 %v11900_v14, %v345_v15  ;;  %v13977_v27 = vadd.f32 %v12237_v16, %v11900_v14  ;;  %v14002_v34 = vmul.f32 0.35355338, %v13963_v21 }
 0x176   :  { %v12234_v18 = vpop.f32.mrf.mxu0  ;;  %v365_v19 = vpop.f32.mrf.mxu1 }
 0x177   :  { %393 = vrot.lane.b32.xlu0 %v13959_v17, %s13761_s11  ;;  %v13967_v24 = vadd.f32 %v12234_v18, %v11900_v14  ;;  %v13973_v25 = vadd.f32 %v11900_v14, %v365_v19  ;;  %v13994_v31 = vmul.f32 0.35355338, %v13959_v17  ;;  %v14021_v39 = vmul.f32 0.35355338, %v13977_v27 }
 0x178   :  { %v355_v20 = vpop.f32.mrf.mxu0  ;;  %v12240_v23 = vpop.f32.mrf.mxu1 }
 0x179   :  { %v13965_v22 = vadd.f32 %v11900_v14, %v355_v20  ;;  %v13985_v29 = vadd.f32 %v12240_v23, %v11900_v14  ;;  %v14025_v40 = vmul.f32 0.35355338, %v13967_v24  ;;  %v14042_v44 = vmul.f32 0.35355338, %v13973_v25 }
 0x17a   :  { %v375_v26 = vpop.f32.mrf.mxu1 }
 0x17b   :  { %550 = vrot.lane.b32.xlu1 %v13965_v22, %s13761_s11  ;;  %472 = vrot.lane.b32.xlu0 %v13963_v21, %s13761_s11  ;;  %v13981_v28 = vadd.f32 %v11900_v14, %v375_v26  ;;  %v14011_v36 = vmul.f32 0.35355338, %v13965_v22  ;;  %v14039_v42 = vmul.f32 0.35355338, %v13985_v29 }
 0x17d   :  { %v14054_v45 = vmul.f32 0.35355338, %v13981_v28 }
 0x17f   :  { %628 = vrot.lane.b32.xlu1 %v13967_v24, %s13761_s11  ;;  %706 = vrot.lane.b32.xlu0 %v13973_v25, %s13761_s11 }
 0x183   :  { %784 = vrot.lane.b32.xlu1 %v13977_v27, %s13761_s11  ;;  %862 = vrot.lane.b32.xlu0 %v13981_v28, %s13761_s11 }
 0x187   :  { %940 = vrot.lane.b32.xlu1 %v13985_v29, %s13761_s11 }
 0x1e9   :  { %v394_v30 = vpop.permute.xlu0 %393 }
 0x1ea   :  { %12242 = vmatpush3.xpose.msk.msra.mxu1 %vm395_vm2, %v394_v30 }
 0x1eb   :  { %12246 = vmatprep.subr.mxu1 %v17458_v12 }
 0x1ed   :  { %v551_v32 = vpop.permute.xlu1 %550  ;;  %v473_v33 = vpop.permute.xlu0 %472  ;;  %12244 = vmatmul.mubr.msk.f32.vlgmr.msra.gmra.mxu1 %vm395_vm2, %v13994_v31 }
 0x1ee   :  { %12247 = vmatpush3.xpose.msk.msra.mxu1 %vm395_vm2, %v473_v33  ;;  %12248 = vmatprep.mubr.msk.f32.mxu1 %vm13760_vm1, %v17458_v12 }
 0x1ef   :  { %12251 = vmatprep.subr.mxu1 %v17458_v12 }
 0x1f1   :  { %v629_v35 = vpop.permute.xlu1 %628  ;;  %12249 = vmatmul.mubr.msk.f32.vlgmr.msra.gmra.mxu1 %vm395_vm2, %v14002_v34  ;;  %v707_v38 = vpop.permute.xlu0 %706 }
 0x1f2   :  { %12252 = vmatpush3.xpose.msk.msra.mxu1 %vm395_vm2, %v551_v32  ;;  %12253 = vmatprep.mubr.msk.f32.mxu1 %vm13760_vm1, %v17458_v12 }
 0x1f3   :  { %12256 = vmatprep.subr.mxu1 %v17458_v12 }
 0x1f5   :  { %v785_v37 = vpop.permute.xlu1 %784  ;;  %12254 = vmatmul.mubr.msk.f32.vlgmr.msra.gmra.mxu1 %vm395_vm2, %v14011_v36  ;;  %v863_v43 = vpop.permute.xlu0 %862 }
 0x1f6   :  { %12257 = vmatpush3.xpose.msk.msra.mxu1 %vm395_vm2, %v629_v35  ;;  %12267 = vmatpush3.xpose.msk.msra.mxu0 %vm395_vm2, %v785_v37 }
 0x1f7   :  { %12258 = vmatprep.mubr.msk.f32.mxu1 %vm13760_vm1, %v17458_v12  ;;  %12276 = vmatprep.subr.mxu0 %v17458_v12 }
 0x1f8   :  { %12261 = vmatprep.subr.mxu1 %v17458_v12 }
 0x1f9   :  { %12269 = vmatmul.mubr.msk.f32.vlgmr.msra.gmra.mxu0 %vm395_vm2, %v14021_v39  ;;  %v941_v41 = vpop.permute.xlu1 %940  ;;  %12259 = vmatmul.mubr.msk.f32.vlgmr.msra.gmra.mxu1 %vm395_vm2, %v14025_v40 }
 0x1fa   :  { %12262 = vmatpush3.xpose.msk.msra.mxu1 %vm395_vm2, %v707_v38  ;;  %12277 = vmatpush3.xpose.msk.msra.mxu0 %vm395_vm2, %v941_v41 }
 0x1fb   :  { %12263 = vmatprep.mubr.msk.f32.mxu1 %vm13760_vm1, %v17458_v12  ;;  %12278 = vmatprep.mubr.msk.f32.mxu0 %vm13760_vm1, %v17458_v12 }
 0x1fc   :  { %12271 = vmatprep.subr.mxu1 %v17458_v12  ;;  %12286 = vmatprep.subr.mxu0 %v17458_v12 }
 0x1fd   :  { %12279 = vmatmul.mubr.msk.f32.vlgmr.msra.gmra.mxu0 %vm395_vm2, %v14039_v42  ;;  %12264 = vmatmul.mubr.msk.f32.vlgmr.msra.gmra.mxu1 %vm395_vm2, %v14042_v44 }
 0x1fe   :  { %12272 = vmatpush3.xpose.msk.msra.mxu1 %vm395_vm2, %v863_v43  ;;  %12273 = vmatprep.mubr.msk.f32.mxu1 %vm13760_vm1, %v17458_v12 }
 0x1ff   :  { %12281 = vmatprep.subr.mxu1 %v17458_v12  ;;  %12288 = vmatprep.mubr.msk.f32.mxu0 %vm13760_vm1, %v17458_v12 }
 0x201   :  { %12274 = vmatmul.mubr.msk.f32.vlgmr.msra.gmra.mxu1 %vm395_vm2, %v14054_v45 }
 0x202   :  { %12283 = vmatprep.mubr.msk.f32.mxu1 %vm13760_vm1, %v17458_v12 }
 0x2ad   :  { %v467_v46 = vpop.f32.mrf.mxu1 }
 0x2ae   :  { %v1017_v47 = vsel %vm395_vm2, %v467_v46, -inf }
 0x2af   :  { %1018 = vmax.xlane.f32.xlu0 %v1017_v47  ;;  %v12245_v48 = vpop.f32.mrf.mxu1 }
 0x2b1   :  { %v14064_v49 = vpop.f32.mrf.mxu1 }
 0x2b2   :  { %v1020_v50 = vsel %vm395_vm2, %v14064_v49, -inf }
 0x2b3   :  { %1021 = vmax.xlane.f32.xlu1 %v1020_v50  ;;  %v12250_v51 = vpop.f32.mrf.mxu1 }
 0x2b5   :  { %v623_v52 = vpop.f32.mrf.mxu1 }
 0x2b6   :  { %v1023_v53 = vsel %vm395_vm2, %v623_v52, -inf }
 0x2b7   :  { %1024 = vmax.xlane.f32.xlu0 %v1023_v53  ;;  %v12255_v54 = vpop.f32.mrf.mxu1 }
 0x2b9   :  { %v14069_v55 = vpop.f32.mrf.mxu1  ;;  %v857_v56 = vpop.f32.mrf.mxu0 }
 0x2ba   :  { %v1026_v57 = vsel %vm395_vm2, %v14069_v55, -inf  ;;  %v1032_v62 = vsel %vm395_vm2, %v857_v56, -inf }
 0x2bb   :  { %v12270_v58 = vpop.f32.mrf.mxu0  ;;  %1027 = vmax.xlane.f32.xlu0 %v1026_v57  ;;  %v12260_v59 = vpop.f32.mrf.mxu1 }
 0x2bd   :  { %v14073_v60 = vpop.f32.mrf.mxu1  ;;  %v1013_v61 = vpop.f32.mrf.mxu0 }
 0x2be   :  { %v1038_v2 = vsel %vm395_vm2, %v1013_v61, -inf  ;;  %v1029_v4 = vsel %vm395_vm2, %v14073_v60, -inf }
 0x2bf   :  { %v12280_v63 = vpop.f32.mrf.mxu0  ;;  %1033 = vmax.xlane.f32.xlu0 %v1032_v62  ;;  %v12265_v0 = vpop.f32.mrf.mxu1 }
 0x2c1   :  { %v14076_v1 = vpop.f32.mrf.mxu1 }
 0x2c2   :  { %v1035_v5 = vsel %vm395_vm2, %v14076_v1, -inf }
 0x2c3   :  { %1039 = vmax.xlane.f32.xlu0 %v1038_v2  ;;  %v12275_v3 = vpop.f32.mrf.mxu1 }
 0x2c4   :  { %1105 = vrot.lane.b32.xlu1 %v13959_v17, %s13762_s19 }
 0x2c8   :  { %1257 = vrot.lane.b32.xlu1 %v13965_v22, %s13762_s19 }
 0x2cc   :  { %1333 = vrot.lane.b32.xlu1 %v13967_v24, %s13762_s19 }
 0x2d0   :  { %1485 = vrot.lane.b32.xlu1 %v13977_v27, %s13762_s19 }
 0x2d4   :  { %1637 = vrot.lane.b32.xlu1 %v13985_v29, %s13762_s19 }
 0x2d8   :  { %1793 = vrot.lane.b32.xlu1 %v13963_v21, %s13763_s23 }
 0x2d9   :  { %1181 = vrot.lane.b32.xlu0 %v13963_v21, %s13762_s19 }
 0x2dd   :  { %1409 = vrot.lane.b32.xlu0 %v13973_v25, %s13762_s19 }
 0x2e1   :  { %1561 = vrot.lane.b32.xlu0 %v13981_v28, %s13762_s19 }
 0x2e5   :  { %1715 = vrot.lane.b32.xlu0 %v13959_v17, %s13763_s23 }
 0x2e9   :  { %1713 = vrot.lane.b32.xlu0 %v13994_v31, %s13764_s1 }
 0x2fc   :  { %1030 = vmax.xlane.f32.xlu1 %v1029_v4 }
 0x300   :  { %1036 = vmax.xlane.f32.xlu1 %v1035_v5 }
 0x311   :  { %1791 = vrot.lane.b32.xlu1 %v14002_v34, %s13764_s1 }
 0x338   :  { %v1019_v6 = vpop.xlane.xlu0 %1018 }
 0x339   :  { %v1041_v7 = vsub.f32 %v467_v46, %v1019_v6 }
 0x33b   :  { %v1049_v8 = vmul.f32 1.442695, %v1041_v7 }
 0x33c   :  { %v1022_v9 = vpop.xlane.xlu1 %1021 }
 0x33d   :  { %12623 = vpow2.f32 %v1049_v8  ;;  %v1042_v20 = vsub.f32 %v14064_v49, %v1022_v9 }
 0x33f   :  { %v1051_v33 = vmul.f32 1.442695, %v1042_v20 }
 0x340   :  { %v1106_v10 = vpop.permute.xlu1 %1105  ;;  %v1025_v11 = vpop.xlane.xlu0 %1024 }
 0x341   :  { %v1043_v13 = vsub.f32 %v623_v52, %v1025_v11  ;;  %12282 = vmatpush3.msra.mxu1 %v1106_v10 }
 0x342   :  { %12291 = vmatprep.subr.mxu1 %v17458_v12 }
 0x343   :  { %v1053_v14 = vmul.f32 1.442695, %v1043_v13 }
 0x344   :  { %v1028_v15 = vpop.xlane.xlu0 %1027 }
 0x345   :  { %12625 = vpow2.f32 %v1053_v14  ;;  %v1044_v35 = vsub.f32 %v14069_v55, %v1028_v15  ;;  %v1258_v55 = vpop.permute.xlu1 %1257 }
 0x347   :  { %v1055_v43 = vmul.f32 1.442695, %v1044_v35 }
 0x348   :  { %v1034_v16 = vpop.xlane.xlu0 %1033 }
 0x349   :  { %v1046_v18 = vsub.f32 %v857_v56, %v1034_v16  ;;  %v1334_v56 = vpop.permute.xlu1 %1333 }
 0x34a   :  { %v14108_v19 = vpop.eup %12623 }
 0x34b   :  { %v1059_v23 = vmul.f32 1.442695, %v1046_v18  ;;  %v1065_v26 = vsel %vm395_vm2, %v14108_v19, 0.0 }
 0x34c   :  { %v1040_v30 = vpop.xlane.xlu0 %1039  ;;  %1066 = vadd.xlane.f32.xlu1 %v1065_v26 }
 0x34d   :  { %12627 = vpow2.f32 %v1059_v23  ;;  %v1048_v32 = vsub.f32 %v1013_v61, %v1040_v30  ;;  %v14139_v57 = vpop.permute.xlu1 %1485 }
 0x34f   :  { %v1063_v37 = vmul.f32 1.442695, %v1048_v32 }
 0x350   :  { %v1182_v38 = vpop.permute.xlu0 %1181 }
 0x351   :  { %12629 = vpow2.f32 %v1063_v37  ;;  %12287 = vmatpush3.msra.mxu0 %v1182_v38  ;;  %v14141_v58 = vpop.permute.xlu1 %1637 }
 0x352   :  { %v14114_v41 = vpop.eup %12625  ;;  %12296 = vmatprep.subr.mxu0 %v17458_v12  ;;  %12631 = vpow2.f32 %v1051_v33 }
 0x353   :  { %v1071_v46 = vsel %vm395_vm2, %v14114_v41, 0.0  ;;  %12633 = vpow2.f32 %v1055_v43 }
 0x354   :  { %1072 = vadd.xlane.f32.xlu1 %v1071_v46  ;;  %v1410_v6 = vpop.permute.xlu0 %1409 }
 0x355   :  { %v14145_v59 = vpop.permute.xlu1 %1793 }
 0x358   :  { %v14177_v8 = vpop.permute.xlu0 %1561 }
 0x35a   :  { %v14119_v47 = vpop.eup %12627 }
 0x35b   :  { %v1080_v48 = vsel %vm395_vm2, %v14119_v47, 0.0 }
 0x35c   :  { %1081 = vadd.xlane.f32.xlu0 %v1080_v48  ;;  %v14179_v10 = vpop.permute.xlu0 %1715 }
 0x35e   :  { %v14123_v49 = vpop.eup %12629 }
 0x35f   :  { %v1086_v50 = vsel %vm395_vm2, %v14123_v49, 0.0  ;;  %v14127_v51 = vpop.eup %12631 }
 0x360   :  { %1087 = vadd.xlane.f32.xlu0 %v1086_v50  ;;  %v1068_v52 = vsel %vm395_vm2, %v14127_v51, 0.0  ;;  %v14131_v53 = vpop.eup %12633  ;;  %v14181_v13 = vpop.permute.xlu0 %1713 }
 0x361   :  { %v1074_v54 = vsel %vm395_vm2, %v14131_v53, 0.0 }
 0x364   :  { %1069 = vadd.xlane.f32.xlu0 %v1068_v52 }
 0x365   :  { %1949 = vrot.lane.b32.xlu1 %v13967_v24, %s13763_s23 }
 0x368   :  { %1075 = vadd.xlane.f32.xlu0 %v1074_v54 }
 0x369   :  { %1947 = vrot.lane.b32.xlu1 %v14025_v40, %s13764_s1 }
 0x37e   :  { %1871 = vrot.lane.b32.xlu0 %v13965_v22, %s13763_s23 }
 0x382   :  { %1869 = vrot.lane.b32.xlu0 %v14011_v36, %s13764_s1 }
 0x385   :  { %v1031_v61 = vpop.xlane.xlu1 %1030 }
 0x386   :  { %v1045_v62 = vsub.f32 %v14073_v60, %v1031_v61  ;;  %2027 = vrot.lane.b32.xlu0 %v13973_v25, %s13763_s23 }
 0x388   :  { %v1057_v63 = vmul.f32 1.442695, %v1045_v62 }
 0x389   :  { %v1037_v0 = vpop.xlane.xlu1 %1036 }
 0x38a   :  { %12635 = vpow2.f32 %v1057_v63  ;;  %v1047_v2 = vsub.f32 %v14076_v1, %v1037_v0  ;;  %2025 = vrot.lane.b32.xlu0 %v14042_v44, %s13764_s1 }
 0x38c   :  { %v1061_v3 = vmul.f32 1.442695, %v1047_v2 }
 0x38d   :  { %v1792_v7 = vpop.permute.xlu1 %1791 }
 0x38e   :  { %12637 = vpow2.f32 %v1061_v3  ;;  %2183 = vrot.lane.b32.xlu0 %v13981_v28, %s13763_s23 }
 0x392   :  { %2181 = vrot.lane.b32.xlu0 %v14054_v45, %s13764_s1 }
 0x397   :  { %v14159_v60 = vpop.eup %12635 }
 0x398   :  { %v1077_v4 = vsel %vm395_vm2, %v14159_v60, 0.0 }
 0x399   :  { %1078 = vadd.xlane.f32.xlu1 %v1077_v4 }
 0x39b   :  { %v14163_v5 = vpop.eup %12637 }
 0x39c   :  { %v1083_v1 = vsel %vm395_vm2, %v14163_v5, 0.0 }
 0x39d   :  { %1084 = vadd.xlane.f32.xlu1 %v1083_v1 }
 0x3ae   :  { %2105 = vrot.lane.b32.xlu1 %v13977_v27, %s13763_s23 }
 0x3b2   :  { %2103 = vrot.lane.b32.xlu1 %v14021_v39, %s13764_s1 }
 0x3b6   :  { %2261 = vrot.lane.b32.xlu1 %v13985_v29, %s13763_s23 }
 0x3ba   :  { %2259 = vrot.lane.b32.xlu1 %v14039_v42, %s13764_s1 }
 0x3be   :  { %2425 = vrot.lane.b32.xlu1 %v13959_v17, %s13765_s24 }
 0x3d5   :  { %v1067_v9 = vpop.xlane.xlu1 %1066 }
 0x3d6   :  { %12639 = vrcp.f32 %v1067_v9 }
 0x3dd   :  { %v1073_v11 = vpop.xlane.xlu1 %1072 }
 0x3de   :  { %12641 = vrcp.f32 %v1073_v11 }
 0x3e1   :  { %v1950_v46 = vpop.permute.xlu1 %1949 }
 0x3e3   :  { %v12640_v14 = vpop.eup %12639 }
 0x3e4   :  { %v1097_v15 = vmul.f32 %v12640_v14, %v14108_v19 }
 0x3e5   :  { %v1082_v16 = vpop.xlane.xlu0 %1081 }
 0x3e6   :  { %12284 = vmatmul.mubr.msk.f32.vlgmr.msra.gmra.mxu1 %vm395_vm2, %v1097_v15 }
 0x3e7   :  { %12292 = vmatpush3.msra.mxu1 %v1258_v55  ;;  %12293 = vmatprep.mubr.msk.f32.mxu1 %vm13760_vm1, %v17458_v12 }
 0x3e8   :  { %12301 = vmatprep.subr.mxu1 %v17458_v12 }
 0x3e9   :  { %v1088_v18 = vpop.xlane.xlu0 %1087 }
 0x3eb   :  { %v12642_v20 = vpop.eup %12641 }
 0x3ec   :  { %v1099_v23 = vmul.f32 %v12642_v20, %v14114_v41 }
 0x3ed   :  { %v1070_v26 = vpop.xlane.xlu0 %1069 }
 0x3ee   :  { %12643 = vrcp.f32 %v1070_v26  ;;  %12294 = vmatmul.mubr.msk.f32.vlgmr.msra.gmra.mxu1 %vm395_vm2, %v1099_v23 }
 0x3ef   :  { %12302 = vmatpush3.msra.mxu1 %v1410_v6  ;;  %12303 = vmatprep.mubr.msk.f32.mxu1 %vm13760_vm1, %v17458_v12 }
 0x3f0   :  { %12311 = vmatprep.subr.mxu1 %v17458_v12 }
 0x3f1   :  { %v1076_v19 = vpop.xlane.xlu0 %1075 }
 0x3f2   :  { %12645 = vrcp.f32 %v1076_v19 }
 0x3f3   :  { %12647 = vrcp.f32 %v1082_v16 }
 0x3f4   :  { %12649 = vrcp.f32 %v1088_v18 }
 0x3f5   :  { %v1872_v50 = vpop.permute.xlu0 %1871 }
 0x3f9   :  { %v1870_v52 = vpop.permute.xlu0 %1869 }
 0x3fb   :  { %v12644_v30 = vpop.eup %12643 }
 0x3fc   :  { %v1098_v32 = vmul.f32 %v12644_v30, %v14127_v51 }
 0x3fe   :  { %12289 = vmatmul.mubr.msk.f32.vlgmr.msra.gmra.mxu0 %vm395_vm2, %v1098_v32 }
 0x3ff   :  { %v12646_v33 = vpop.eup %12645  ;;  %12297 = vmatpush3.msra.mxu0 %v1334_v56  ;;  %12298 = vmatprep.mubr.msk.f32.mxu0 %vm13760_vm1, %v17458_v12 }
 0x400   :  { %12306 = vmatprep.subr.mxu0 %v17458_v12  ;;  %v1100_v35 = vmul.f32 %v12646_v33, %v14131_v53  ;;  %v12648_v37 = vpop.eup %12647 }
 0x401   :  { %v1102_v38 = vmul.f32 %v12648_v37, %v14119_v47  ;;  %v12650_v41 = vpop.eup %12649  ;;  %v1948_v47 = vpop.permute.xlu1 %1947 }
 0x402   :  { %12299 = vmatmul.mubr.msk.f32.vlgmr.msra.gmra.mxu0 %vm395_vm2, %v1100_v35  ;;  %v1104_v43 = vmul.f32 %v12650_v41, %v14123_v49 }
 0x403   :  { %12307 = vmatpush3.msra.mxu0 %v14139_v57  ;;  %12308 = vmatprep.mubr.msk.f32.mxu0 %vm13760_vm1, %v17458_v12 }
 0x404   :  { %12316 = vmatprep.subr.mxu0 %v17458_v12 }
 0x406   :  { %12309 = vmatmul.mubr.msk.f32.vlgmr.msra.gmra.mxu0 %vm395_vm2, %v1102_v38 }
 0x407   :  { %12317 = vmatpush3.msra.mxu0 %v14141_v58  ;;  %12318 = vmatprep.mubr.msk.f32.mxu0 %vm13760_vm1, %v17458_v12  ;;  %v2028_v58 = vpop.permute.xlu0 %2027 }
 0x408   :  { %12326 = vmatprep.subr.mxu0 %v17458_v12 }
 0x40a   :  { %12319 = vmatmul.mubr.msk.f32.vlgmr.msra.gmra.mxu0 %vm395_vm2, %v1104_v43 }
 0x40b   :  { %12327 = vmatpush3.xpose.msk.msra.mxu0 %vm395_vm2, %v14145_v59  ;;  %12328 = vmatprep.mubr.msk.f32.mxu0 %vm13760_vm1, %v17458_v12  ;;  %v2026_v62 = vpop.permute.xlu0 %2025 }
 0x40c   :  { %12336 = vmatprep.subr.mxu0 %v17458_v12 }
 0x40e   :  { %12329 = vmatmul.mubr.msk.f32.vlgmr.msra.gmra.mxu0 %vm395_vm2, %v1792_v7 }
 0x40f   :  { %12337 = vmatpush3.xpose.msk.msra.mxu0 %vm395_vm2, %v1950_v46  ;;  %12338 = vmatprep.mubr.msk.f32.mxu0 %vm13760_vm1, %v17458_v12  ;;  %v2184_v63 = vpop.permute.xlu0 %2183 }
 0x410   :  { %12346 = vmatprep.subr.mxu0 %v17458_v12 }
 0x412   :  { %12339 = vmatmul.mubr.msk.f32.vlgmr.msra.gmra.mxu0 %vm395_vm2, %v1948_v47 }
 0x413   :  { %12348 = vmatprep.mubr.msk.f32.mxu0 %vm13760_vm1, %v17458_v12  ;;  %v2182_v0 = vpop.permute.xlu0 %2181 }
 0x422   :  { %v1079_v48 = vpop.xlane.xlu1 %1078 }
 0x423   :  { %12651 = vrcp.f32 %v1079_v48 }
 0x426   :  { %v1085_v49 = vpop.xlane.xlu1 %1084 }
 0x427   :  { %12653 = vrcp.f32 %v1085_v49 }
 0x42a   :  { %v2106_v51 = vpop.permute.xlu1 %2105 }
 0x42b   :  { %12347 = vmatpush3.xpose.msk.msra.mxu0 %vm395_vm2, %v2106_v51 }
 0x42c   :  { %12356 = vmatprep.subr.mxu0 %v17458_v12 }
 0x42e   :  { %v2104_v53 = vpop.permute.xlu1 %2103 }
 0x42f   :  { %12349 = vmatmul.mubr.msk.f32.vlgmr.msra.gmra.mxu0 %vm395_vm2, %v2104_v53 }
 0x430   :  { %v12652_v54 = vpop.eup %12651  ;;  %12358 = vmatprep.mubr.msk.f32.mxu0 %vm13760_vm1, %v17458_v12 }
 0x431   :  { %v1101_v55 = vmul.f32 %v12652_v54, %v14159_v60 }
 0x432   :  { %v2262_v56 = vpop.permute.xlu1 %2261 }
 0x433   :  { %12304 = vmatmul.mubr.msk.f32.vlgmr.msra.gmra.mxu1 %vm395_vm2, %v1101_v55  ;;  %12357 = vmatpush3.xpose.msk.msra.mxu0 %vm395_vm2, %v2262_v56 }
 0x434   :  { %v12654_v57 = vpop.eup %12653  ;;  %12312 = vmatpush3.msra.mxu1 %v14177_v8  ;;  %12313 = vmatprep.mubr.msk.f32.mxu1 %vm13760_vm1, %v17458_v12 }
 0x435   :  { %12321 = vmatprep.subr.mxu1 %v17458_v12  ;;  %v1103_v59 = vmul.f32 %v12654_v57, %v14163_v5  ;;  %12366 = vmatprep.subr.mxu0 %v17458_v12 }
 0x436   :  { %v2260_v61 = vpop.permute.xlu1 %2259 }
 0x437   :  { %12314 = vmatmul.mubr.msk.f32.vlgmr.msra.gmra.mxu1 %vm395_vm2, %v1103_v59  ;;  %12359 = vmatmul.mubr.msk.f32.vlgmr.msra.gmra.mxu0 %vm395_vm2, %v2260_v61 }
 0x438   :  { %12322 = vmatpush3.xpose.msk.msra.mxu1 %vm395_vm2, %v14179_v10  ;;  %12323 = vmatprep.mubr.msk.f32.mxu1 %vm13760_vm1, %v17458_v12 }
 0x439   :  { %12331 = vmatprep.subr.mxu1 %v17458_v12  ;;  %12368 = vmatprep.mubr.msk.f32.mxu0 %vm13760_vm1, %v17458_v12 }
 0x43a   :  { %v2426_v2 = vpop.permute.xlu1 %2425 }
 0x43b   :  { %12324 = vmatmul.mubr.msk.f32.vlgmr.msra.gmra.mxu1 %vm395_vm2, %v14181_v13 }
 0x43c   :  { %12332 = vmatpush3.xpose.msk.msra.mxu1 %vm395_vm2, %v1872_v50  ;;  %12333 = vmatprep.mubr.msk.f32.mxu1 %vm13760_vm1, %v17458_v12 }
 0x43d   :  { %12341 = vmatprep.subr.mxu1 %v17458_v12 }
 0x43f   :  { %12334 = vmatmul.mubr.msk.f32.vlgmr.msra.gmra.mxu1 %vm395_vm2, %v1870_v52 }
 0x440   :  { %12342 = vmatpush3.xpose.msk.msra.mxu1 %vm395_vm2, %v2028_v58  ;;  %12343 = vmatprep.mubr.msk.f32.mxu1 %vm13760_vm1, %v17458_v12 }
 0x441   :  { %12351 = vmatprep.subr.mxu1 %v17458_v12 }
 0x443   :  { %12344 = vmatmul.mubr.msk.f32.vlgmr.msra.gmra.mxu1 %vm395_vm2, %v2026_v62 }
 0x444   :  { %12352 = vmatpush3.xpose.msk.msra.mxu1 %vm395_vm2, %v2184_v63  ;;  %12353 = vmatprep.mubr.msk.f32.mxu1 %vm13760_vm1, %v17458_v12 }
 0x445   :  { %12361 = vmatprep.subr.mxu1 %v17458_v12 }
 0x447   :  { %12354 = vmatmul.mubr.msk.f32.vlgmr.msra.gmra.mxu1 %vm395_vm2, %v2182_v0 }
 0x448   :  { %12362 = vmatpush3.msra.mxu1 %v2426_v2  ;;  %12363 = vmatprep.mubr.msk.f32.mxu1 %vm13760_vm1, %v17458_v12 }
 0x449   :  { %12371 = vmatprep.subr.mxu1 %v17458_v12 }
 0x4a6   :  { %v14268_v3 = vpop.f32.mrf.mxu1 }
 0x4a8   :  { %v12285_v60 = vpop.f32.mrf.mxu1 }
 0x4ae   :  { %v14270_v4 = vpop.f32.mrf.mxu1 }
 0x4b0   :  { %v12295_v5 = vpop.f32.mrf.mxu1 }
 0x4be   :  { %v14272_v1 = vpop.f32.mrf.mxu0 }
 0x4c0   :  { %v12290_v6 = vpop.f32.mrf.mxu0 }
 0x4c2   :  { %v14274_v7 = vpop.f32.mrf.mxu0 }
 0x4c4   :  { %v12300_v8 = vpop.f32.mrf.mxu0 }
 0x4c6   :  { %v14276_v9 = vpop.f32.mrf.mxu0 }
 0x4c8   :  { %v12310_v10 = vpop.f32.mrf.mxu0 }
 0x4ca   :  { %v14278_v11 = vpop.f32.mrf.mxu0 }
 0x4cc   :  { %v12320_v13 = vpop.f32.mrf.mxu0 }
 0x4ce   :  { %v1865_v14 = vpop.f32.mrf.mxu0 }
 0x4cf   :  { %v2340_v15 = vsel %vm395_vm2, %v1865_v14, -inf }
 0x4d0   :  { %2341 = vmax.xlane.f32.xlu1 %v2340_v15  ;;  %v12330_v16 = vpop.f32.mrf.mxu0 }
 0x4d2   :  { %v14281_v18 = vpop.f32.mrf.mxu0 }
 0x4d3   :  { %v2346_v50 = vsel %vm395_vm2, %v14281_v18, -inf }
 0x4d4   :  { %v12340_v20 = vpop.f32.mrf.mxu0 }
 0x4ef   :  { %v14283_v23 = vpop.f32.mrf.mxu0 }
 0x4f0   :  { %v2352_v54 = vsel %vm395_vm2, %v14283_v23, -inf }
 0x4f1   :  { %v12350_v26 = vpop.f32.mrf.mxu0 }
 0x4f3   :  { %v14285_v19 = vpop.f32.mrf.mxu1 }
 0x4f5   :  { %v12305_v30 = vpop.f32.mrf.mxu1 }
 0x4f7   :  { %v14287_v32 = vpop.f32.mrf.mxu1  ;;  %v14289_v33 = vpop.f32.mrf.mxu0 }
 0x4f8   :  { %v2358_v57 = vsel %vm395_vm2, %v14289_v33, -inf }
 0x4f9   :  { %v12315_v35 = vpop.f32.mrf.mxu1  ;;  %v12360_v37 = vpop.f32.mrf.mxu0 }
 0x4fb   :  { %v1787_v38 = vpop.f32.mrf.mxu1 }
 0x4fc   :  { %v2337_v41 = vsel %vm395_vm2, %v1787_v38, -inf }
 0x4fd   :  { %2338 = vmax.xlane.f32.xlu0 %v2337_v41  ;;  %v12325_v43 = vpop.f32.mrf.mxu1 }
 0x4ff   :  { %v1943_v46 = vpop.f32.mrf.mxu1 }
 0x500   :  { %v2343_v47 = vsel %vm395_vm2, %v1943_v46, -inf }
 0x501   :  { %2344 = vmax.xlane.f32.xlu0 %v2343_v47  ;;  %v12335_v48 = vpop.f32.mrf.mxu1 }
 0x503   :  { %v2099_v49 = vpop.f32.mrf.mxu1 }
 0x504   :  { %v2349_v51 = vsel %vm395_vm2, %v2099_v49, -inf }
 0x505   :  { %2347 = vmax.xlane.f32.xlu0 %v2346_v50  ;;  %2350 = vmax.xlane.f32.xlu1 %v2349_v51  ;;  %v12345_v52 = vpop.f32.mrf.mxu1 }
 0x507   :  { %v2255_v53 = vpop.f32.mrf.mxu1 }
 0x508   :  { %v2355_v55 = vsel %vm395_vm2, %v2255_v53, -inf }
 0x509   :  { %2353 = vmax.xlane.f32.xlu0 %v2352_v54  ;;  %2356 = vmax.xlane.f32.xlu1 %v2355_v55  ;;  %v12355_v56 = vpop.f32.mrf.mxu1 }
 0x50d   :  { %2359 = vmax.xlane.f32.xlu0 %v2358_v57 }
 0x51a   :  { %2577 = vrot.lane.b32.xlu1 %v13965_v22, %s13765_s24 }
 0x51e   :  { %2653 = vrot.lane.b32.xlu1 %v13967_v24, %s13765_s24 }
 0x522   :  { %2805 = vrot.lane.b32.xlu1 %v13977_v27, %s13765_s24 }
 0x523   :  { %2501 = vrot.lane.b32.xlu0 %v13963_v21, %s13765_s24 }
 0x526   :  { %2957 = vrot.lane.b32.xlu1 %v13985_v29, %s13765_s24 }
 0x527   :  { %2729 = vrot.lane.b32.xlu0 %v13973_v25, %s13765_s24 }
 0x52a   :  { %3113 = vrot.lane.b32.xlu1 %v13963_v21, %s13766_s15 }
 0x52b   :  { %2881 = vrot.lane.b32.xlu0 %v13981_v28, %s13765_s24 }
 0x52e   :  { %3111 = vrot.lane.b32.xlu1 %v14002_v34, %s13767_s7 }
 0x52f   :  { %3035 = vrot.lane.b32.xlu0 %v13959_v17, %s13766_s15 }
 0x532   :  { %3269 = vrot.lane.b32.xlu1 %v13967_v24, %s13766_s15 }
 0x533   :  { %3033 = vrot.lane.b32.xlu0 %v13994_v31, %s13767_s7 }
 0x536   :  { %3267 = vrot.lane.b32.xlu1 %v14025_v40, %s13767_s7 }
 0x537   :  { %3191 = vrot.lane.b32.xlu0 %v13965_v22, %s13766_s15 }
 0x53b   :  { %3189 = vrot.lane.b32.xlu0 %v14011_v36, %s13767_s7 }
 0x559   :  { %v2342_v58 = vpop.xlane.xlu1 %2341 }
 0x55a   :  { %v2362_v59 = vsub.f32 %v1865_v14, %v2342_v58 }
 0x55c   :  { %v2371_v61 = vmul.f32 1.442695, %v2362_v59 }
 0x55e   :  { %12655 = vpow2.f32 %v2371_v61 }
 0x56b   :  { %v14331_v62 = vpop.eup %12655 }
 0x56c   :  { %v2388_v63 = vsel %vm395_vm2, %v14331_v62, 0.0 }
 0x56d   :  { %2389 = vadd.xlane.f32.xlu0 %v2388_v63 }
 0x586   :  { %v2339_v0 = vpop.xlane.xlu0 %2338 }
 0x587   :  { %v2361_v2 = vsub.f32 %v1787_v38, %v2339_v0 }
 0x589   :  { %v2369_v60 = vmul.f32 1.442695, %v2361_v2 }
 0x58a   :  { %v2345_v5 = vpop.xlane.xlu0 %2344 }
 0x58b   :  { %12657 = vpow2.f32 %v2369_v60  ;;  %v2363_v6 = vsub.f32 %v1943_v46, %v2345_v5 }
 0x58d   :  { %v2373_v8 = vmul.f32 1.442695, %v2363_v6 }
 0x58e   :  { %v2348_v10 = vpop.xlane.xlu0 %2347  ;;  %v2351_v13 = vpop.xlane.xlu1 %2350 }
 0x58f   :  { %12659 = vpow2.f32 %v2373_v8  ;;  %v2364_v14 = vsub.f32 %v14281_v18, %v2348_v10  ;;  %v2365_v15 = vsub.f32 %v2099_v49, %v2351_v13 }
 0x591   :  { %v2375_v16 = vmul.f32 1.442695, %v2364_v14  ;;  %v2377_v20 = vmul.f32 1.442695, %v2365_v15 }
 0x592   :  { %v2354_v26 = vpop.xlane.xlu0 %2353  ;;  %v2357_v30 = vpop.xlane.xlu1 %2356 }
 0x593   :  { %12661 = vpow2.f32 %v2375_v16  ;;  %v2366_v35 = vsub.f32 %v14283_v23, %v2354_v26  ;;  %v2367_v37 = vsub.f32 %v2255_v53, %v2357_v30 }
 0x594   :  { %12663 = vpow2.f32 %v2377_v20 }
 0x595   :  { %v2379_v38 = vmul.f32 1.442695, %v2366_v35  ;;  %v2381_v41 = vmul.f32 1.442695, %v2367_v37 }
 0x596   :  { %v2360_v43 = vpop.xlane.xlu0 %2359  ;;  %v2578_v6 = vpop.permute.xlu1 %2577 }
 0x597   :  { %12665 = vpow2.f32 %v2379_v38  ;;  %v2368_v46 = vsub.f32 %v14289_v33, %v2360_v43 }
 0x598   :  { %v14338_v47 = vpop.eup %12657  ;;  %12667 = vpow2.f32 %v2381_v41 }
 0x599   :  { %v2383_v18 = vmul.f32 1.442695, %v2368_v46  ;;  %v2385_v48 = vsel %vm395_vm2, %v14338_v47, 0.0 }
 0x59a   :  { %v2502_v49 = vpop.permute.xlu0 %2501  ;;  %2386 = vadd.xlane.f32.xlu1 %v2385_v48  ;;  %v2654_v10 = vpop.permute.xlu1 %2653 }
 0x59b   :  { %12669 = vpow2.f32 %v2383_v18  ;;  %12367 = vmatpush3.msra.mxu0 %v2502_v49 }
 0x59c   :  { %v14342_v23 = vpop.eup %12659  ;;  %12376 = vmatprep.subr.mxu0 %v17458_v12 }
 0x59d   :  { %v2391_v50 = vsel %vm395_vm2, %v14342_v23, 0.0 }
 0x59e   :  { %2392 = vadd.xlane.f32.xlu1 %v2391_v50  ;;  %v2730_v61 = vpop.permute.xlu0 %2729  ;;  %v2806_v13 = vpop.permute.xlu1 %2805 }
 0x5a0   :  { %v14347_v33 = vpop.eup %12661 }
 0x5a1   :  { %v14349_v51 = vpop.eup %12663  ;;  %v2394_v52 = vsel %vm395_vm2, %v14347_v33, 0.0 }
 0x5a2   :  { %2395 = vadd.xlane.f32.xlu0 %v2394_v52  ;;  %v2397_v53 = vsel %vm395_vm2, %v14349_v51, 0.0  ;;  %v2882_v63 = vpop.permute.xlu0 %2881  ;;  %v2958_v16 = vpop.permute.xlu1 %2957 }
 0x5a3   :  { %2398 = vadd.xlane.f32.xlu1 %v2397_v53 }
 0x5a4   :  { %v14355_v54 = vpop.eup %12665 }
 0x5a5   :  { %v14357_v55 = vpop.eup %12667  ;;  %v2400_v56 = vsel %vm395_vm2, %v14355_v54, 0.0 }
 0x5a6   :  { %2401 = vadd.xlane.f32.xlu0 %v2400_v56  ;;  %v2403_v57 = vsel %vm395_vm2, %v14357_v55, 0.0  ;;  %v14383_v0 = vpop.permute.xlu0 %3035  ;;  %v3114_v20 = vpop.permute.xlu1 %3113 }
 0x5a7   :  { %2404 = vadd.xlane.f32.xlu1 %v2403_v57 }
 0x5a8   :  { %v14363_v58 = vpop.eup %12669 }
 0x5a9   :  { %v2406_v59 = vsel %vm395_vm2, %v14363_v58, 0.0 }
 0x5aa   :  { %2407 = vadd.xlane.f32.xlu0 %v2406_v59  ;;  %v14385_v2 = vpop.permute.xlu0 %3033  ;;  %v14396_v26 = vpop.permute.xlu1 %3111 }
 0x5ae   :  { %v14387_v60 = vpop.permute.xlu0 %3191  ;;  %v14398_v30 = vpop.permute.xlu1 %3269 }
 0x5b2   :  { %v14389_v5 = vpop.permute.xlu0 %3189  ;;  %v14400_v35 = vpop.permute.xlu1 %3267 }
 0x5b8   :  { %3425 = vrot.lane.b32.xlu1 %v13977_v27, %s13766_s15 }
 0x5bc   :  { %3423 = vrot.lane.b32.xlu1 %v14021_v39, %s13767_s7 }
 0x5c0   :  { %3581 = vrot.lane.b32.xlu1 %v13985_v29, %s13766_s15  ;;  %3347 = vrot.lane.b32.xlu0 %v13973_v25, %s13766_s15 }
 0x5c4   :  { %3579 = vrot.lane.b32.xlu1 %v14039_v42, %s13767_s7  ;;  %3345 = vrot.lane.b32.xlu0 %v14042_v44, %s13767_s7 }
 0x5c8   :  { %3503 = vrot.lane.b32.xlu0 %v13981_v28, %s13766_s15 }
 0x5cc   :  { %3501 = vrot.lane.b32.xlu0 %v14054_v45, %s13767_s7 }
 0x5f6   :  { %v2390_v8 = vpop.xlane.xlu0 %2389 }
 0x5f7   :  { %12671 = vrcp.f32 %v2390_v8 }
 0x604   :  { %v12672_v14 = vpop.eup %12671 }
 0x605   :  { %v2418_v15 = vmul.f32 %v12672_v14, %v14331_v62 }
 0x607   :  { %12369 = vmatmul.mubr.msk.f32.vlgmr.msra.gmra.mxu0 %vm395_vm2, %v2418_v15 }
 0x608   :  { %12377 = vmatpush3.msra.mxu0 %v2654_v10  ;;  %12378 = vmatprep.mubr.msk.f32.mxu0 %vm13760_vm1, %v17458_v12 }
 0x609   :  { %12386 = vmatprep.subr.mxu0 %v17458_v12 }
 0x623   :  { %v2387_v37 = vpop.xlane.xlu1 %2386 }
 0x624   :  { %12673 = vrcp.f32 %v2387_v37 }
 0x627   :  { %v2393_v38 = vpop.xlane.xlu1 %2392 }
 0x628   :  { %12675 = vrcp.f32 %v2393_v38 }
 0x62b   :  { %v2396_v62 = vpop.xlane.xlu0 %2395 }
 0x62c   :  { %12677 = vrcp.f32 %v2396_v62  ;;  %v2399_v41 = vpop.xlane.xlu1 %2398 }
 0x62d   :  { %12679 = vrcp.f32 %v2399_v41 }
 0x62f   :  { %v2402_v43 = vpop.xlane.xlu0 %2401 }
 0x630   :  { %12681 = vrcp.f32 %v2402_v43  ;;  %v2405_v46 = vpop.xlane.xlu1 %2404 }
 0x631   :  { %v12674_v18 = vpop.eup %12673  ;;  %12683 = vrcp.f32 %v2405_v46 }
 0x632   :  { %v2417_v48 = vmul.f32 %v12674_v18, %v14338_v47 }
 0x633   :  { %v2408_v49 = vpop.xlane.xlu0 %2407 }
 0x634   :  { %12685 = vrcp.f32 %v2408_v49  ;;  %12364 = vmatmul.mubr.msk.f32.vlgmr.msra.gmra.mxu1 %vm395_vm2, %v2417_v48  ;;  %v3426_v8 = vpop.permute.xlu1 %3425 }
 0x635   :  { %v12676_v50 = vpop.eup %12675  ;;  %12372 = vmatpush3.msra.mxu1 %v2578_v6  ;;  %12373 = vmatprep.mubr.msk.f32.mxu1 %vm13760_vm1, %v17458_v12 }
 0x636   :  { %12381 = vmatprep.subr.mxu1 %v17458_v12  ;;  %v2419_v52 = vmul.f32 %v12676_v50, %v14342_v23 }
 0x637   :  { %v3348_v6 = vpop.permute.xlu0 %3347 }
 0x638   :  { %12374 = vmatmul.mubr.msk.f32.vlgmr.msra.gmra.mxu1 %vm395_vm2, %v2419_v52 }
 0x639   :  { %v12678_v53 = vpop.eup %12677  ;;  %12382 = vmatpush3.msra.mxu1 %v2730_v61  ;;  %12383 = vmatprep.mubr.msk.f32.mxu1 %vm13760_vm1, %v17458_v12 }
 0x63a   :  { %v12680_v47 = vpop.eup %12679  ;;  %12391 = vmatprep.subr.mxu1 %v17458_v12  ;;  %v2420_v56 = vmul.f32 %v12678_v53, %v14347_v33 }
 0x63b   :  { %v2421_v57 = vmul.f32 %v12680_v47, %v14349_v51 }
 0x63c   :  { %12379 = vmatmul.mubr.msk.f32.vlgmr.msra.gmra.mxu0 %vm395_vm2, %v2420_v56 }
 0x63d   :  { %v12682_v59 = vpop.eup %12681  ;;  %12384 = vmatmul.mubr.msk.f32.vlgmr.msra.gmra.mxu1 %vm395_vm2, %v2421_v57  ;;  %12387 = vmatpush3.msra.mxu0 %v2806_v13 }
 0x63e   :  { %v12684_v23 = vpop.eup %12683  ;;  %12392 = vmatpush3.msra.mxu1 %v2882_v63  ;;  %12388 = vmatprep.mubr.msk.f32.mxu0 %vm13760_vm1, %v17458_v12  ;;  %v2422_v61 = vmul.f32 %v12682_v59, %v14355_v54 }
 0x63f   :  { %12393 = vmatprep.mubr.msk.f32.mxu1 %vm13760_vm1, %v17458_v12  ;;  %12396 = vmatprep.subr.mxu0 %v17458_v12  ;;  %v2423_v33 = vmul.f32 %v12684_v23, %v14357_v55  ;;  %v3346_v55 = vpop.permute.xlu0 %3345 }
 0x640   :  { %12401 = vmatprep.subr.mxu1 %v17458_v12  ;;  %12389 = vmatmul.mubr.msk.f32.vlgmr.msra.gmra.mxu0 %vm395_vm2, %v2422_v61 }
 0x641   :  { %v12686_v51 = vpop.eup %12685  ;;  %12394 = vmatmul.mubr.msk.f32.vlgmr.msra.gmra.mxu1 %vm395_vm2, %v2423_v33  ;;  %12397 = vmatpush3.msra.mxu0 %v2958_v16 }
 0x642   :  { %12402 = vmatpush3.xpose.msk.msra.mxu1 %vm395_vm2, %v14383_v0  ;;  %12398 = vmatprep.mubr.msk.f32.mxu0 %vm13760_vm1, %v17458_v12  ;;  %v2424_v54 = vmul.f32 %v12686_v51, %v14363_v58  ;;  %v3424_v58 = vpop.permute.xlu1 %3423 }
 0x643   :  { %12403 = vmatprep.mubr.msk.f32.mxu1 %vm13760_vm1, %v17458_v12  ;;  %12406 = vmatprep.subr.mxu0 %v17458_v12  ;;  %v3504_v63 = vpop.permute.xlu0 %3503 }
 0x644   :  { %12411 = vmatprep.subr.mxu1 %v17458_v12  ;;  %12399 = vmatmul.mubr.msk.f32.vlgmr.msra.gmra.mxu0 %vm395_vm2, %v2424_v54 }
 0x645   :  { %12404 = vmatmul.mubr.msk.f32.vlgmr.msra.gmra.mxu1 %vm395_vm2, %v14385_v2  ;;  %12407 = vmatpush3.xpose.msk.msra.mxu0 %vm395_vm2, %v3114_v20 }
 0x646   :  { %12412 = vmatpush3.xpose.msk.msra.mxu1 %vm395_vm2, %v14387_v60  ;;  %12408 = vmatprep.mubr.msk.f32.mxu0 %vm13760_vm1, %v17458_v12  ;;  %v3582_v0 = vpop.permute.xlu1 %3581 }
 0x647   :  { %12413 = vmatprep.mubr.msk.f32.mxu1 %vm13760_vm1, %v17458_v12  ;;  %12416 = vmatprep.subr.mxu0 %v17458_v12  ;;  %v3502_v2 = vpop.permute.xlu0 %3501 }
 0x648   :  { %12421 = vmatprep.subr.mxu1 %v17458_v12  ;;  %12409 = vmatmul.mubr.msk.f32.vlgmr.msra.gmra.mxu0 %vm395_vm2, %v14396_v26 }
 0x649   :  { %12414 = vmatmul.mubr.msk.f32.vlgmr.msra.gmra.mxu1 %vm395_vm2, %v14389_v5  ;;  %12417 = vmatpush3.xpose.msk.msra.mxu0 %vm395_vm2, %v14398_v30 }
 0x64a   :  { %12422 = vmatpush3.xpose.msk.msra.mxu1 %vm395_vm2, %v3348_v6  ;;  %12418 = vmatprep.mubr.msk.f32.mxu0 %vm13760_vm1, %v17458_v12  ;;  %v3580_v60 = vpop.permute.xlu1 %3579 }
 0x64b   :  { %12423 = vmatprep.mubr.msk.f32.mxu1 %vm13760_vm1, %v17458_v12  ;;  %12426 = vmatprep.subr.mxu0 %v17458_v12 }
 0x64c   :  { %12431 = vmatprep.subr.mxu1 %v17458_v12  ;;  %12419 = vmatmul.mubr.msk.f32.vlgmr.msra.gmra.mxu0 %vm395_vm2, %v14400_v35 }
 0x64d   :  { %12424 = vmatmul.mubr.msk.f32.vlgmr.msra.gmra.mxu1 %vm395_vm2, %v3346_v55  ;;  %12427 = vmatpush3.xpose.msk.msra.mxu0 %vm395_vm2, %v3426_v8 }
 0x64e   :  { %12432 = vmatpush3.xpose.msk.msra.mxu1 %vm395_vm2, %v3504_v63  ;;  %12428 = vmatprep.mubr.msk.f32.mxu0 %vm13760_vm1, %v17458_v12 }
 0x64f   :  { %12433 = vmatprep.mubr.msk.f32.mxu1 %vm13760_vm1, %v17458_v12  ;;  %12436 = vmatprep.subr.mxu0 %v17458_v12 }
 0x650   :  { %12429 = vmatmul.mubr.msk.f32.vlgmr.msra.gmra.mxu0 %vm395_vm2, %v3424_v58  ;;  %12441 = vmatprep.subr.mxu1 %v17458_v12 }
 0x651   :  { %12434 = vmatmul.mubr.msk.f32.vlgmr.msra.gmra.mxu1 %vm395_vm2, %v3502_v2  ;;  %12437 = vmatpush3.xpose.msk.msra.mxu0 %vm395_vm2, %v3582_v0 }
 0x652   :  { %12438 = vmatprep.mubr.msk.f32.mxu0 %vm13760_vm1, %v17458_v12  ;;  %12446 = vmatprep.subr.mxu0 %v17458_v12 }
 0x653   :  { %12443 = vmatprep.mubr.msk.f32.mxu1 %vm13760_vm1, %v17458_v12 }
 0x654   :  { %12439 = vmatmul.mubr.msk.f32.vlgmr.msra.gmra.mxu0 %vm395_vm2, %v3580_v60 }
 0x655   :  { %12448 = vmatprep.mubr.msk.f32.mxu0 %vm13760_vm1, %v17458_v12 }
 0x6c7   :  { %v14482_v5 = vpop.f32.mrf.mxu0 }
 0x6c9   :  { %v12370_v10 = vpop.f32.mrf.mxu0 }
 0x6f4   :  { %v14484_v13 = vpop.f32.mrf.mxu1 }
 0x6f6   :  { %v12365_v14 = vpop.f32.mrf.mxu1 }
 0x6f8   :  { %v14486_v15 = vpop.f32.mrf.mxu1 }
 0x6fa   :  { %v12375_v16 = vpop.f32.mrf.mxu1 }
 0x6fc   :  { %v14488_v20 = vpop.f32.mrf.mxu0 }
 0x6fd   :  { %v14490_v26 = vpop.f32.mrf.mxu1 }
 0x6fe   :  { %v12380_v30 = vpop.f32.mrf.mxu0 }
 0x6ff   :  { %v12385_v35 = vpop.f32.mrf.mxu1 }
 0x700   :  { %v14492_v37 = vpop.f32.mrf.mxu0 }
 0x701   :  { %v14494_v38 = vpop.f32.mrf.mxu1 }
 0x702   :  { %v12390_v62 = vpop.f32.mrf.mxu0 }
 0x703   :  { %v12395_v41 = vpop.f32.mrf.mxu1 }
 0x704   :  { %v14496_v43 = vpop.f32.mrf.mxu0 }
 0x705   :  { %v3107_v46 = vpop.f32.mrf.mxu1 }
 0x706   :  { %v12400_v18 = vpop.f32.mrf.mxu0  ;;  %v3657_v48 = vsel %vm395_vm2, %v3107_v46, -inf }
 0x707   :  { %3658 = vmax.xlane.f32.xlu0 %v3657_v48  ;;  %v12405_v49 = vpop.f32.mrf.mxu1 }
 0x708   :  { %v3185_v50 = vpop.f32.mrf.mxu0 }
 0x709   :  { %v3263_v52 = vpop.f32.mrf.mxu1  ;;  %v3660_v53 = vsel %vm395_vm2, %v3185_v50, -inf }
 0x70a   :  { %3661 = vmax.xlane.f32.xlu1 %v3660_v53  ;;  %v12410_v47 = vpop.f32.mrf.mxu0  ;;  %v3663_v56 = vsel %vm395_vm2, %v3263_v52, -inf }
 0x70b   :  { %3664 = vmax.xlane.f32.xlu0 %v3663_v56  ;;  %v12415_v57 = vpop.f32.mrf.mxu1 }
 0x70c   :  { %v3341_v59 = vpop.f32.mrf.mxu0 }
 0x70d   :  { %v3419_v23 = vpop.f32.mrf.mxu1  ;;  %v3666_v6 = vsel %vm395_vm2, %v3341_v59, -inf }
 0x70e   :  { %v12420_v61 = vpop.f32.mrf.mxu0  ;;  %v3669_v33 = vsel %vm395_vm2, %v3419_v23, -inf }
 0x70f   :  { %3667 = vmax.xlane.f32.xlu0 %v3666_v6  ;;  %3670 = vmax.xlane.f32.xlu1 %v3669_v33  ;;  %v12425_v51 = vpop.f32.mrf.mxu1 }
 0x710   :  { %v3497_v8 = vpop.f32.mrf.mxu0 }
 0x711   :  { %v3575_v54 = vpop.f32.mrf.mxu1  ;;  %v3672_v55 = vsel %vm395_vm2, %v3497_v8, -inf }
 0x712   :  { %v12430_v58 = vpop.f32.mrf.mxu0  ;;  %v3675_v63 = vsel %vm395_vm2, %v3575_v54, -inf }
 0x713   :  { %3673 = vmax.xlane.f32.xlu0 %v3672_v55  ;;  %3676 = vmax.xlane.f32.xlu1 %v3675_v63  ;;  %v12435_v0 = vpop.f32.mrf.mxu1 }
 0x714   :  { %v3653_v2 = vpop.f32.mrf.mxu0 }
 0x715   :  { %v3678_v60 = vsel %vm395_vm2, %v3653_v2, -inf }
 0x716   :  { %v12440_v10 = vpop.f32.mrf.mxu0 }
 0x717   :  { %3679 = vmax.xlane.f32.xlu0 %v3678_v60 }
 0x724   :  { %3745 = vrot.lane.b32.xlu1 %v13959_v17, %s13768_s5 }
 0x728   :  { %3897 = vrot.lane.b32.xlu1 %v13965_v22, %s13768_s5 }
 0x72c   :  { %3973 = vrot.lane.b32.xlu1 %v13967_v24, %s13768_s5 }
 0x72d   :  { %3821 = vrot.lane.b32.xlu0 %v13963_v21, %s13768_s5 }
 0x730   :  { %4125 = vrot.lane.b32.xlu1 %v13977_v27, %s13768_s5 }
 0x731   :  { %4049 = vrot.lane.b32.xlu0 %v13973_v25, %s13768_s5 }
 0x734   :  { %4277 = vrot.lane.b32.xlu1 %v13985_v29, %s13768_s5 }
 0x735   :  { %4201 = vrot.lane.b32.xlu0 %v13981_v28, %s13768_s5 }
 0x738   :  { %4433 = vrot.lane.b32.xlu1 %v13963_v21, %s13769_s28 }
 0x739   :  { %4355 = vrot.lane.b32.xlu0 %v13959_v17, %s13769_s28 }
 0x790   :  { %v3659_v14 = vpop.xlane.xlu0 %3658 }
 0x791   :  { %v3681_v16 = vsub.f32 %v3107_v46, %v3659_v14 }
 0x793   :  { %v3689_v30 = vmul.f32 1.442695, %v3681_v16  ;;  %v3662_v35 = vpop.xlane.xlu1 %3661 }
 0x794   :  { %v3682_v62 = vsub.f32 %v3185_v50, %v3662_v35  ;;  %v3665_v41 = vpop.xlane.xlu0 %3664 }
 0x795   :  { %12687 = vpow2.f32 %v3689_v30  ;;  %v3683_v18 = vsub.f32 %v3263_v52, %v3665_v41 }
 0x796   :  { %v3691_v48 = vmul.f32 1.442695, %v3682_v62 }
 0x797   :  { %v3693_v49 = vmul.f32 1.442695, %v3683_v18 }
 0x798   :  { %12689 = vpow2.f32 %v3691_v48  ;;  %v3668_v53 = vpop.xlane.xlu0 %3667  ;;  %v3671_v47 = vpop.xlane.xlu1 %3670 }
 0x799   :  { %12691 = vpow2.f32 %v3693_v49  ;;  %v3684_v56 = vsub.f32 %v3341_v59, %v3668_v53  ;;  %v3685_v57 = vsub.f32 %v3419_v23, %v3671_v47 }
 0x79b   :  { %v3695_v6 = vmul.f32 1.442695, %v3684_v56  ;;  %v3697_v61 = vmul.f32 1.442695, %v3685_v57 }
 0x79c   :  { %v3674_v33 = vpop.xlane.xlu0 %3673  ;;  %v3677_v51 = vpop.xlane.xlu1 %3676 }
 0x79d   :  { %12693 = vpow2.f32 %v3695_v6  ;;  %v3686_v46 = vsub.f32 %v3497_v8, %v3674_v33  ;;  %v3687_v55 = vsub.f32 %v3575_v54, %v3677_v51 }
 0x79e   :  { %12695 = vpow2.f32 %v3697_v61 }
 0x79f   :  { %v3699_v50 = vmul.f32 1.442695, %v3686_v46  ;;  %v3701_v58 = vmul.f32 1.442695, %v3687_v55 }
 0x7a0   :  { %v3680_v63 = vpop.xlane.xlu0 %3679  ;;  %v3746_v52 = vpop.permute.xlu1 %3745 }
 0x7a1   :  { %12697 = vpow2.f32 %v3699_v50  ;;  %v3688_v0 = vsub.f32 %v3653_v2, %v3680_v63  ;;  %12442 = vmatpush3.msra.mxu1 %v3746_v52 }
 0x7a2   :  { %v14518_v60 = vpop.eup %12687  ;;  %12699 = vpow2.f32 %v3701_v58  ;;  %12451 = vmatprep.subr.mxu1 %v17458_v12 }
 0x7a3   :  { %v3703_v59 = vmul.f32 1.442695, %v3688_v0  ;;  %v3705_v23 = vsel %vm395_vm2, %v14518_v60, 0.0 }
 0x7a4   :  { %v3822_v10 = vpop.permute.xlu0 %3821  ;;  %3706 = vadd.xlane.f32.xlu1 %v3705_v23 }
 0x7a5   :  { %v14523_v8 = vpop.eup %12689  ;;  %12701 = vpow2.f32 %v3703_v59  ;;  %12447 = vmatpush3.msra.mxu0 %v3822_v10 }
 0x7a6   :  { %v14525_v54 = vpop.eup %12691  ;;  %v3708_v2 = vsel %vm395_vm2, %v14523_v8, 0.0  ;;  %12456 = vmatprep.subr.mxu0 %v17458_v12 }
 0x7a7   :  { %3709 = vadd.xlane.f32.xlu0 %v3708_v2  ;;  %v3711_v14 = vsel %vm395_vm2, %v14525_v54, 0.0 }
 0x7a8   :  { %3712 = vadd.xlane.f32.xlu1 %v3711_v14 }
 0x7aa   :  { %v14532_v16 = vpop.eup %12693 }
 0x7ab   :  { %v14534_v30 = vpop.eup %12695  ;;  %v3714_v35 = vsel %vm395_vm2, %v14532_v16, 0.0 }
 0x7ac   :  { %3715 = vadd.xlane.f32.xlu0 %v3714_v35  ;;  %v3717_v62 = vsel %vm395_vm2, %v14534_v30, 0.0 }
 0x7ad   :  { %3718 = vadd.xlane.f32.xlu1 %v3717_v62 }
 0x7ae   :  { %v14540_v41 = vpop.eup %12697 }
 0x7af   :  { %v14542_v18 = vpop.eup %12699  ;;  %v3720_v48 = vsel %vm395_vm2, %v14540_v41, 0.0 }
 0x7b0   :  { %3721 = vadd.xlane.f32.xlu0 %v3720_v48  ;;  %v3723_v49 = vsel %vm395_vm2, %v14542_v18, 0.0 }
 0x7b1   :  { %3724 = vadd.xlane.f32.xlu1 %v3723_v49 }
 0x7b2   :  { %v14548_v53 = vpop.eup %12701 }
 0x7b3   :  { %v3726_v47 = vsel %vm395_vm2, %v14548_v53, 0.0 }
 0x7b4   :  { %3727 = vadd.xlane.f32.xlu0 %v3726_v47 }
 0x7c2   :  { %4431 = vrot.lane.b32.xlu1 %v14002_v34, %s13770_s10 }
 0x7c6   :  { %4589 = vrot.lane.b32.xlu1 %v13967_v24, %s13769_s28 }
 0x7ca   :  { %4587 = vrot.lane.b32.xlu1 %v14025_v40, %s13770_s10  ;;  %4353 = vrot.lane.b32.xlu0 %v13994_v31, %s13770_s10  ;;  %v3898_v31 = vpop.permute.xlu1 %3897 }
 0x7ce   :  { %4745 = vrot.lane.b32.xlu1 %v13977_v27, %s13769_s28  ;;  %4511 = vrot.lane.b32.xlu0 %v13965_v22, %s13769_s28  ;;  %v3974_v34 = vpop.permute.xlu1 %3973 }
 0x7d2   :  { %4743 = vrot.lane.b32.xlu1 %v14021_v39, %s13770_s10  ;;  %4509 = vrot.lane.b32.xlu0 %v14011_v36, %s13770_s10  ;;  %v4126_v36 = vpop.permute.xlu1 %4125  ;;  %v4050_v39 = vpop.permute.xlu0 %4049 }
 0x7d6   :  { %4901 = vrot.lane.b32.xlu1 %v13985_v29, %s13769_s28  ;;  %4667 = vrot.lane.b32.xlu0 %v13973_v25, %s13769_s28  ;;  %v14574_v40 = vpop.permute.xlu1 %4277  ;;  %v4202_v56 = vpop.permute.xlu0 %4201 }
 0x7da   :  { %4899 = vrot.lane.b32.xlu1 %v14039_v42, %s13770_s10  ;;  %4665 = vrot.lane.b32.xlu0 %v14042_v44, %s13770_s10  ;;  %v14576_v57 = vpop.permute.xlu1 %4433  ;;  %v4356_v42 = vpop.permute.xlu0 %4355 }
 0x7de   :  { %5065 = vrot.lane.b32.xlu1 %v13959_v17, %s13771_s26  ;;  %4823 = vrot.lane.b32.xlu0 %v13981_v28, %s13769_s28 }
 0x7e2   :  { %4821 = vrot.lane.b32.xlu0 %v14054_v45, %s13770_s10 }
 0x82d   :  { %v3707_v44 = vpop.xlane.xlu1 %3706 }
 0x82e   :  { %12703 = vrcp.f32 %v3707_v44 }
 0x830   :  { %v3710_v6 = vpop.xlane.xlu0 %3709 }
 0x831   :  { %12705 = vrcp.f32 %v3710_v6  ;;  %v3713_v17 = vpop.xlane.xlu1 %3712 }
 0x832   :  { %12707 = vrcp.f32 %v3713_v17 }
 0x835   :  { %v3716_v61 = vpop.xlane.xlu0 %3715 }
 0x836   :  { %12709 = vrcp.f32 %v3716_v61  ;;  %v3719_v33 = vpop.xlane.xlu1 %3718 }
 0x837   :  { %12711 = vrcp.f32 %v3719_v33 }
 0x839   :  { %v3722_v45 = vpop.xlane.xlu0 %3721 }
 0x83a   :  { %12713 = vrcp.f32 %v3722_v45  ;;  %v3725_v51 = vpop.xlane.xlu1 %3724 }
 0x83b   :  { %v12704_v46 = vpop.eup %12703  ;;  %12715 = vrcp.f32 %v3725_v51 }
 0x83c   :  { %v3737_v55 = vmul.f32 %v12704_v46, %v14518_v60 }
 0x83d   :  { %v3728_v50 = vpop.xlane.xlu0 %3727 }
 0x83e   :  { %v12706_v58 = vpop.eup %12705  ;;  %12717 = vrcp.f32 %v3728_v50  ;;  %v4432_v63 = vpop.permute.xlu1 %4431  ;;  %12444 = vmatmul.mubr.msk.f32.vlgmr.msra.gmra.mxu1 %vm395_vm2, %v3737_v55 }
 0x83f   :  { %v12708_v52 = vpop.eup %12707  ;;  %12452 = vmatpush3.msra.mxu1 %v3898_v31  ;;  %12453 = vmatprep.mubr.msk.f32.mxu1 %vm13760_vm1, %v17458_v12  ;;  %v3738_v0 = vmul.f32 %v12706_v58, %v14523_v8 }
 0x840   :  { %12461 = vmatprep.subr.mxu1 %v17458_v12  ;;  %v3739_v59 = vmul.f32 %v12708_v52, %v14525_v54 }
 0x841   :  { %v4354_v23 = vpop.permute.xlu0 %4353  ;;  %12449 = vmatmul.mubr.msk.f32.vlgmr.msra.gmra.mxu0 %vm395_vm2, %v3738_v0 }
 0x842   :  { %v4590_v60 = vpop.permute.xlu1 %4589  ;;  %12454 = vmatmul.mubr.msk.f32.vlgmr.msra.gmra.mxu1 %vm395_vm2, %v3739_v59  ;;  %12457 = vmatpush3.msra.mxu0 %v3974_v34 }
 0x843   :  { %v12710_v10 = vpop.eup %12709  ;;  %12462 = vmatpush3.msra.mxu1 %v4050_v39  ;;  %12458 = vmatprep.mubr.msk.f32.mxu0 %vm13760_vm1, %v17458_v12 }
 0x844   :  { %v12712_v2 = vpop.eup %12711  ;;  %12463 = vmatprep.mubr.msk.f32.mxu1 %vm13760_vm1, %v17458_v12  ;;  %12466 = vmatprep.subr.mxu0 %v17458_v12  ;;  %v3740_v8 = vmul.f32 %v12710_v10, %v14532_v16 }
 0x845   :  { %v4512_v54 = vpop.permute.xlu0 %4511  ;;  %12471 = vmatprep.subr.mxu1 %v17458_v12  ;;  %v3741_v14 = vmul.f32 %v12712_v2, %v14534_v30 }
 0x846   :  { %v4588_v35 = vpop.permute.xlu1 %4587  ;;  %12459 = vmatmul.mubr.msk.f32.vlgmr.msra.gmra.mxu0 %vm395_vm2, %v3740_v8 }
 0x847   :  { %v12714_v62 = vpop.eup %12713  ;;  %12464 = vmatmul.mubr.msk.f32.vlgmr.msra.gmra.mxu1 %vm395_vm2, %v3741_v14  ;;  %12467 = vmatpush3.msra.mxu0 %v4126_v36 }
 0x848   :  { %v12716_v48 = vpop.eup %12715  ;;  %12472 = vmatpush3.msra.mxu1 %v4202_v56  ;;  %12468 = vmatprep.mubr.msk.f32.mxu0 %vm13760_vm1, %v17458_v12  ;;  %v3742_v49 = vmul.f32 %v12714_v62, %v14540_v41 }
 0x849   :  { %v4510_v16 = vpop.permute.xlu0 %4509  ;;  %12473 = vmatprep.mubr.msk.f32.mxu1 %vm13760_vm1, %v17458_v12  ;;  %12476 = vmatprep.subr.mxu0 %v17458_v12  ;;  %v3743_v30 = vmul.f32 %v12716_v48, %v14542_v18 }
 0x84a   :  { %12481 = vmatprep.subr.mxu1 %v17458_v12  ;;  %v4746_v47 = vpop.permute.xlu1 %4745  ;;  %12469 = vmatmul.mubr.msk.f32.vlgmr.msra.gmra.mxu0 %vm395_vm2, %v3742_v49 }
 0x84b   :  { %v12718_v31 = vpop.eup %12717  ;;  %12474 = vmatmul.mubr.msk.f32.vlgmr.msra.gmra.mxu1 %vm395_vm2, %v3743_v30  ;;  %12477 = vmatpush3.msra.mxu0 %v14574_v40 }
 0x84c   :  { %12482 = vmatpush3.xpose.msk.msra.mxu1 %vm395_vm2, %v4356_v42  ;;  %12478 = vmatprep.mubr.msk.f32.mxu0 %vm13760_vm1, %v17458_v12  ;;  %v3744_v41 = vmul.f32 %v12718_v31, %v14548_v53 }
 0x84d   :  { %v4668_v34 = vpop.permute.xlu0 %4667  ;;  %12483 = vmatprep.mubr.msk.f32.mxu1 %vm13760_vm1, %v17458_v12  ;;  %12486 = vmatprep.subr.mxu0 %v17458_v12 }
 0x84e   :  { %12491 = vmatprep.subr.mxu1 %v17458_v12  ;;  %v4744_v18 = vpop.permute.xlu1 %4743  ;;  %12479 = vmatmul.mubr.msk.f32.vlgmr.msra.gmra.mxu0 %vm395_vm2, %v3744_v41 }
 0x84f   :  { %12484 = vmatmul.mubr.msk.f32.vlgmr.msra.gmra.mxu1 %vm395_vm2, %v4354_v23  ;;  %12487 = vmatpush3.xpose.msk.msra.mxu0 %vm395_vm2, %v14576_v57 }
 0x850   :  { %12492 = vmatpush3.xpose.msk.msra.mxu1 %vm395_vm2, %v4512_v54  ;;  %12488 = vmatprep.mubr.msk.f32.mxu0 %vm13760_vm1, %v17458_v12 }
 0x851   :  { %v4666_v53 = vpop.permute.xlu0 %4665  ;;  %12493 = vmatprep.mubr.msk.f32.mxu1 %vm13760_vm1, %v17458_v12  ;;  %12496 = vmatprep.subr.mxu0 %v17458_v12 }
 0x852   :  { %12501 = vmatprep.subr.mxu1 %v17458_v12  ;;  %v4902_v36 = vpop.permute.xlu1 %4901  ;;  %12489 = vmatmul.mubr.msk.f32.vlgmr.msra.gmra.mxu0 %vm395_vm2, %v4432_v63 }
 0x853   :  { %12494 = vmatmul.mubr.msk.f32.vlgmr.msra.gmra.mxu1 %vm395_vm2, %v4510_v16  ;;  %12497 = vmatpush3.xpose.msk.msra.mxu0 %vm395_vm2, %v4590_v60 }
 0x854   :  { %12502 = vmatpush3.xpose.msk.msra.mxu1 %vm395_vm2, %v4668_v34  ;;  %12498 = vmatprep.mubr.msk.f32.mxu0 %vm13760_vm1, %v17458_v12 }
 0x855   :  { %v4824_v39 = vpop.permute.xlu0 %4823  ;;  %12503 = vmatprep.mubr.msk.f32.mxu1 %vm13760_vm1, %v17458_v12  ;;  %12506 = vmatprep.subr.mxu0 %v17458_v12 }
 0x856   :  { %12511 = vmatprep.subr.mxu1 %v17458_v12  ;;  %v4900_v40 = vpop.permute.xlu1 %4899  ;;  %12499 = vmatmul.mubr.msk.f32.vlgmr.msra.gmra.mxu0 %vm395_vm2, %v4588_v35 }
 0x857   :  { %12504 = vmatmul.mubr.msk.f32.vlgmr.msra.gmra.mxu1 %vm395_vm2, %v4666_v53  ;;  %12507 = vmatpush3.xpose.msk.msra.mxu0 %vm395_vm2, %v4746_v47 }
 0x858   :  { %12512 = vmatpush3.xpose.msk.msra.mxu1 %vm395_vm2, %v4824_v39  ;;  %12508 = vmatprep.mubr.msk.f32.mxu0 %vm13760_vm1, %v17458_v12 }
 0x859   :  { %v4822_v56 = vpop.permute.xlu0 %4821  ;;  %12513 = vmatprep.mubr.msk.f32.mxu1 %vm13760_vm1, %v17458_v12  ;;  %12516 = vmatprep.subr.mxu0 %v17458_v12 }
 0x85a   :  { %12521 = vmatprep.subr.mxu1 %v17458_v12  ;;  %v5066_v57 = vpop.permute.xlu1 %5065  ;;  %12509 = vmatmul.mubr.msk.f32.vlgmr.msra.gmra.mxu0 %vm395_vm2, %v4744_v18 }
 0x85b   :  { %12514 = vmatmul.mubr.msk.f32.vlgmr.msra.gmra.mxu1 %vm395_vm2, %v4822_v56  ;;  %12517 = vmatpush3.xpose.msk.msra.mxu0 %vm395_vm2, %v4902_v36 }
 0x85c   :  { %12522 = vmatpush3.msra.mxu1 %v5066_v57  ;;  %12518 = vmatprep.mubr.msk.f32.mxu0 %vm13760_vm1, %v17458_v12 }
 0x85d   :  { %12526 = vmatprep.subr.mxu0 %v17458_v12  ;;  %12523 = vmatprep.mubr.msk.f32.mxu1 %vm13760_vm1, %v17458_v12 }
 0x85e   :  { %12519 = vmatmul.mubr.msk.f32.vlgmr.msra.gmra.mxu0 %vm395_vm2, %v4900_v40  ;;  %12531 = vmatprep.subr.mxu1 %v17458_v12 }
 0x85f   :  { %12528 = vmatprep.mubr.msk.f32.mxu0 %vm13760_vm1, %v17458_v12 }
 0x8fe   :  { %v14659_v42 = vpop.f32.mrf.mxu1 }
 0x900   :  { %v12445_v44 = vpop.f32.mrf.mxu1 }
 0x901   :  { %v14661_v6 = vpop.f32.mrf.mxu0 }
 0x902   :  { %v14663_v17 = vpop.f32.mrf.mxu1 }
 0x903   :  { %v12450_v61 = vpop.f32.mrf.mxu0 }
 0x904   :  { %v12455_v33 = vpop.f32.mrf.mxu1 }
 0x906   :  { %v14665_v45 = vpop.f32.mrf.mxu0 }
 0x907   :  { %v14667_v51 = vpop.f32.mrf.mxu1 }
 0x908   :  { %v12460_v46 = vpop.f32.mrf.mxu0 }
 0x909   :  { %v12465_v55 = vpop.f32.mrf.mxu1 }
 0x90a   :  { %v14669_v50 = vpop.f32.mrf.mxu0 }
 0x90b   :  { %v14671_v58 = vpop.f32.mrf.mxu1 }
 0x90c   :  { %v12470_v63 = vpop.f32.mrf.mxu0 }
 0x90d   :  { %v12475_v52 = vpop.f32.mrf.mxu1 }
 0x90e   :  { %v14673_v0 = vpop.f32.mrf.mxu0 }
 0x90f   :  { %v4427_v59 = vpop.f32.mrf.mxu1 }
 0x910   :  { %v12480_v23 = vpop.f32.mrf.mxu0  ;;  %v4977_v60 = vsel %vm395_vm2, %v4427_v59, -inf }
 0x911   :  { %4978 = vmax.xlane.f32.xlu0 %v4977_v60  ;;  %v12485_v10 = vpop.f32.mrf.mxu1 }
 0x912   :  { %v4505_v2 = vpop.f32.mrf.mxu0 }
 0x913   :  { %v4583_v8 = vpop.f32.mrf.mxu1  ;;  %v4980_v54 = vsel %vm395_vm2, %v4505_v2, -inf }
 0x914   :  { %4981 = vmax.xlane.f32.xlu1 %v4980_v54  ;;  %v12490_v14 = vpop.f32.mrf.mxu0  ;;  %v4983_v35 = vsel %vm395_vm2, %v4583_v8, -inf }
 0x915   :  { %4984 = vmax.xlane.f32.xlu0 %v4983_v35  ;;  %v12495_v62 = vpop.f32.mrf.mxu1 }
 0x916   :  { %v4661_v48 = vpop.f32.mrf.mxu0 }
 0x917   :  { %v4739_v49 = vpop.f32.mrf.mxu1  ;;  %v4986_v16 = vsel %vm395_vm2, %v4661_v48, -inf }
 0x918   :  { %v12500_v30 = vpop.f32.mrf.mxu0  ;;  %v4989_v47 = vsel %vm395_vm2, %v4739_v49, -inf }
 0x919   :  { %4987 = vmax.xlane.f32.xlu0 %v4986_v16  ;;  %4990 = vmax.xlane.f32.xlu1 %v4989_v47  ;;  %v12505_v31 = vpop.f32.mrf.mxu1 }
 0x91a   :  { %v4817_v41 = vpop.f32.mrf.mxu0 }
 0x91b   :  { %v4895_v34 = vpop.f32.mrf.mxu1  ;;  %v4992_v18 = vsel %vm395_vm2, %v4817_v41, -inf }
 0x91c   :  { %v12510_v53 = vpop.f32.mrf.mxu0  ;;  %v4995_v36 = vsel %vm395_vm2, %v4895_v34, -inf }
 0x91d   :  { %4993 = vmax.xlane.f32.xlu0 %v4992_v18  ;;  %4996 = vmax.xlane.f32.xlu1 %v4995_v36  ;;  %v12515_v39 = vpop.f32.mrf.mxu1 }
 0x91e   :  { %v4973_v40 = vpop.f32.mrf.mxu0 }
 0x91f   :  { %v4998_v56 = vsel %vm395_vm2, %v4973_v40, -inf }
 0x920   :  { %v12520_v57 = vpop.f32.mrf.mxu0 }
 0x921   :  { %4999 = vmax.xlane.f32.xlu0 %v4998_v56 }
 0x92e   :  { %5217 = vrot.lane.b32.xlu1 %v13965_v22, %s13771_s26 }
 0x932   :  { %5293 = vrot.lane.b32.xlu1 %v13967_v24, %s13771_s26 }
 0x937   :  { %5141 = vrot.lane.b32.xlu0 %v13963_v21, %s13771_s26 }
 0x99a   :  { %v4979_v44 = vpop.xlane.xlu0 %4978 }
 0x99b   :  { %v5001_v61 = vsub.f32 %v4427_v59, %v4979_v44 }
 0x99d   :  { %v5009_v33 = vmul.f32 1.442695, %v5001_v61  ;;  %v4982_v46 = vpop.xlane.xlu1 %4981 }
 0x99e   :  { %v5002_v55 = vsub.f32 %v4505_v2, %v4982_v46  ;;  %v4985_v63 = vpop.xlane.xlu0 %4984 }
 0x99f   :  { %12719 = vpow2.f32 %v5009_v33  ;;  %v5003_v52 = vsub.f32 %v4583_v8, %v4985_v63 }
 0x9a0   :  { %v5011_v23 = vmul.f32 1.442695, %v5002_v55 }
 0x9a1   :  { %v5013_v60 = vmul.f32 1.442695, %v5003_v52 }
 0x9a2   :  { %12721 = vpow2.f32 %v5011_v23  ;;  %v4988_v10 = vpop.xlane.xlu0 %4987  ;;  %v4991_v47 = vpop.xlane.xlu1 %4990 }
 0x9a3   :  { %12723 = vpow2.f32 %v5013_v60  ;;  %v5004_v22 = vsub.f32 %v4661_v48, %v4988_v10  ;;  %v5005_v31 = vsub.f32 %v4739_v49, %v4991_v47  ;;  %v5797_v47 = vld [vmem:[#allocation8 + $0x10] sm:$0xff] }
 0x9a5   :  { %v5015_v54 = vmul.f32 1.442695, %v5004_v22  ;;  %v5017_v36 = vmul.f32 1.442695, %v5005_v31  ;;  %v5796_v31 = vld [vmem:[#allocation8 + $0x8] sm:$0xff] }
 0x9a6   :  { %v4994_v14 = vpop.xlane.xlu0 %4993  ;;  %v4997_v18 = vpop.xlane.xlu1 %4996 }
 0x9a7   :  { %12725 = vpow2.f32 %v5015_v54  ;;  %v5006_v53 = vsub.f32 %v4817_v41, %v4994_v14  ;;  %v5007_v39 = vsub.f32 %v4895_v34, %v4997_v18  ;;  %v5795_v18 = vld [vmem:[#allocation8] sm:$0xff] }
 0x9a8   :  { %12727 = vpow2.f32 %v5017_v36 }
 0x9a9   :  { %v5019_v56 = vmul.f32 1.442695, %v5006_v53  ;;  %v5021_v57 = vmul.f32 1.442695, %v5007_v39 }
 0x9aa   :  { %v5000_v24 = vpop.xlane.xlu0 %4999 }
 0x9ab   :  { %v5008_v44 = vsub.f32 %v4973_v40, %v5000_v24  ;;  %12729 = vpow2.f32 %v5019_v56 }
 0x9ac   :  { %v14689_v35 = vpop.eup %12719  ;;  %12731 = vpow2.f32 %v5021_v57 }
 0x9ad   :  { %v5025_v21 = vsel %vm395_vm2, %v14689_v35, 0.0  ;;  %v5023_v61 = vmul.f32 1.442695, %v5008_v44 }
 0x9ae   :  { %v5142_v59 = vpop.permute.xlu0 %5141  ;;  %5026 = vadd.xlane.f32.xlu1 %v5025_v21 }
 0x9af   :  { %v14693_v2 = vpop.eup %12721  ;;  %12527 = vmatpush3.msra.mxu0 %v5142_v59  ;;  %12733 = vpow2.f32 %v5023_v61 }
 0x9b0   :  { %v14695_v8 = vpop.eup %12723  ;;  %v5028_v62 = vsel %vm395_vm2, %v14693_v2, 0.0  ;;  %12536 = vmatprep.subr.mxu0 %v17458_v12 }
 0x9b1   :  { %5029 = vadd.xlane.f32.xlu0 %v5028_v62  ;;  %v5031_v48 = vsel %vm395_vm2, %v14695_v8, 0.0 }
 0x9b2   :  { %5032 = vadd.xlane.f32.xlu1 %v5031_v48 }
 0x9b4   :  { %v14702_v16 = vpop.eup %12725 }
 0x9b5   :  { %v5034_v30 = vsel %vm395_vm2, %v14702_v16, 0.0  ;;  %v14710_v33 = vpop.eup %12727 }
 0x9b6   :  { %5035 = vadd.xlane.f32.xlu0 %v5034_v30  ;;  %v5798_v30 = vld [vmem:[#allocation8 + $0x18] sm:$0xff] }
 0x9c3   :  { %5445 = vrot.lane.b32.xlu1 %v13977_v27, %s13771_s26  ;;  %v14712_v27 = vpop.eup %12729 }
 0x9c4   :  { %v14716_v49 = vpop.eup %12731  ;;  %v5040_v41 = vsel %vm395_vm2, %v14712_v27, 0.0 }
 0x9c5   :  { %v5043_v34 = vsel %vm395_vm2, %v14716_v49, 0.0  ;;  %v14722_v40 = vpop.eup %12733 }
 0x9c6   :  { %v5046_v46 = vsel %vm395_vm2, %v14722_v40, 0.0 }
 0x9cc   :  { %5369 = vrot.lane.b32.xlu0 %v13973_v25, %s13771_s26  ;;  %v5037_v25 = vsel %vm395_vm2, %v14710_v33, 0.0 }
 0x9e7   :  { %5038 = vadd.xlane.f32.xlu1 %v5037_v25 }
 0x9eb   :  { %5041 = vadd.xlane.f32.xlu0 %v5040_v41  ;;  %5044 = vadd.xlane.f32.xlu1 %v5043_v34  ;;  %v5941_v34 = vld [vmem:[#allocation11 + $0x30] sm:$0xff] }
 0x9ef   :  { %5047 = vadd.xlane.f32.xlu0 %v5046_v46 }
 0x9fc   :  { %5597 = vrot.lane.b32.xlu1 %v13985_v29, %s13771_s26 }
 0xa00   :  { %5683 = vrot.lane.b32.xlu1 %v14482_v5, %s13743_s29 }
 0xa04   :  { %5715 = vrot.lane.b32.xlu1 %v14661_v6, %s13746_s3 }
 0xa05   :  { %5521 = vrot.lane.b32.xlu0 %v13981_v28, %s13771_s26  ;;  %v5218_v28 = vpop.permute.xlu1 %5217 }
 0xa08   :  { %5687 = vrot.lane.b32.xlu1 %v14488_v20, %s13743_s29 }
 0xa09   :  { %5681 = vrot.lane.b32.xlu0 %v14484_v13, %s13743_s29  ;;  %v5294_v29 = vpop.permute.xlu1 %5293 }
 0xa0c   :  { %5719 = vrot.lane.b32.xlu1 %v14665_v45, %s13746_s3 }
 0xa0d   :  { %5713 = vrot.lane.b32.xlu0 %v14659_v42, %s13746_s3 }
 0xa10   :  { %5691 = vrot.lane.b32.xlu1 %v14492_v37, %s13743_s29 }
 0xa11   :  { %5685 = vrot.lane.b32.xlu0 %v14486_v15, %s13743_s29 }
 0xa15   :  { %5717 = vrot.lane.b32.xlu0 %v14663_v17, %s13746_s3 }
 0xa19   :  { %5689 = vrot.lane.b32.xlu0 %v14490_v26, %s13743_s29 }
 0xa37   :  { %v5027_v5 = vpop.xlane.xlu1 %5026 }
 0xa38   :  { %12735 = vrcp.f32 %v5027_v5 }
 0xa3a   :  { %v5030_v13 = vpop.xlane.xlu0 %5029 }
 0xa3b   :  { %12737 = vrcp.f32 %v5030_v13  ;;  %v5033_v20 = vpop.xlane.xlu1 %5032 }
 0xa3c   :  { %12739 = vrcp.f32 %v5033_v20 }
 0xa3f   :  { %v5036_v42 = vpop.xlane.xlu0 %5035  ;;  %v5446_v23 = vpop.permute.xlu1 %5445 }
 0xa40   :  { %12741 = vrcp.f32 %v5036_v42 }
 0xa43   :  { %v5370_v55 = vpop.permute.xlu0 %5369 }
 0xa45   :  { %v12736_v37 = vpop.eup %12735 }
 0xa46   :  { %v5057_v6 = vmul.f32 %v12736_v37, %v14689_v35 }
 0xa48   :  { %v12738_v15 = vpop.eup %12737  ;;  %12524 = vmatmul.mubr.msk.f32.vlgmr.msra.gmra.mxu1 %vm395_vm2, %v5057_v6 }
 0xa49   :  { %v12740_v17 = vpop.eup %12739  ;;  %12532 = vmatpush3.msra.mxu1 %v5218_v28  ;;  %12533 = vmatprep.mubr.msk.f32.mxu1 %vm13760_vm1, %v17458_v12  ;;  %v5058_v26 = vmul.f32 %v12738_v15, %v14693_v2 }
 0xa4a   :  { %12541 = vmatprep.subr.mxu1 %v17458_v12  ;;  %v5059_v45 = vmul.f32 %v12740_v17, %v14695_v8 }
 0xa4b   :  { %12529 = vmatmul.mubr.msk.f32.vlgmr.msra.gmra.mxu0 %vm395_vm2, %v5058_v26 }
 0xa4c   :  { %12534 = vmatmul.mubr.msk.f32.vlgmr.msra.gmra.mxu1 %vm395_vm2, %v5059_v45  ;;  %12537 = vmatpush3.msra.mxu0 %v5294_v29 }
 0xa4d   :  { %v12742_v63 = vpop.eup %12741  ;;  %12542 = vmatpush3.msra.mxu1 %v5370_v55  ;;  %12538 = vmatprep.mubr.msk.f32.mxu0 %vm13760_vm1, %v17458_v12 }
 0xa4e   :  { %12546 = vmatprep.subr.mxu0 %v17458_v12  ;;  %v5060_v52 = vmul.f32 %v12742_v63, %v14702_v16  ;;  %12543 = vmatprep.mubr.msk.f32.mxu1 %vm13760_vm1, %v17458_v12 }
 0xa4f   :  { %12551 = vmatprep.subr.mxu1 %v17458_v12 }
 0xa50   :  { %12539 = vmatmul.mubr.msk.f32.vlgmr.msra.gmra.mxu0 %vm395_vm2, %v5060_v52 }
 0xa51   :  { %12547 = vmatpush3.msra.mxu0 %v5446_v23  ;;  %12548 = vmatprep.mubr.msk.f32.mxu0 %vm13760_vm1, %v17458_v12 }
 0xa52   :  { %12556 = vmatprep.subr.mxu0 %v17458_v12 }
 0xa70   :  { %v5039_v60 = vpop.xlane.xlu1 %5038 }
 0xa71   :  { %12743 = vrcp.f32 %v5039_v60  ;;  %v14814_v60 = vld [vmem:[#allocation14 + $0x70] sm:$0xff] }
 0xa74   :  { %v5042_v10 = vpop.xlane.xlu0 %5041  ;;  %v5045_v22 = vpop.xlane.xlu1 %5044 }
 0xa75   :  { %12745 = vrcp.f32 %v5042_v10 }
 0xa76   :  { %12747 = vrcp.f32 %v5045_v22  ;;  %v14817_v22 = vld [vmem:[#allocation14 + $0x68] sm:$0xff] }
 0xa78   :  { %v5048_v54 = vpop.xlane.xlu0 %5047  ;;  %v5598_v62 = vpop.permute.xlu1 %5597 }
 0xa79   :  { %12749 = vrcp.f32 %v5048_v54  ;;  %v14820_v54 = vld [vmem:[#allocation14 + $0x60] sm:$0xff] }
 0xa7c   :  { %v5522_v35 = vpop.permute.xlu0 %5521  ;;  %v5684_v5 = vpop.permute.xlu1 %5683 }
 0xa7d   :  { %v5770_v63 = vsel %vm395_vm2, %v14272_v1, %v5684_v5 }
 0xa7e   :  { %v12744_v14 = vpop.eup %12743 }
 0xa7f   :  { %v5061_v24 = vmul.f32 %v12744_v14, %v14710_v33  ;;  %v14823_v14 = vld [vmem:[#allocation14 + $0x58] sm:$0xff] }
 0xa80   :  { %v5682_v29 = vpop.permute.xlu0 %5681  ;;  %v5716_v13 = vpop.permute.xlu1 %5715 }
 0xa81   :  { %12544 = vmatmul.mubr.msk.f32.vlgmr.msra.gmra.mxu1 %vm395_vm2, %v5061_v24  ;;  %v5769_v17 = vsel %vm395_vm2, %v14268_v3, %v5682_v29  ;;  %v5779_v52 = vsel %vm5777_vm4, %v5770_v63, %v5716_v13  ;;  %v5939_v13 = vld [vmem:[#allocation11 + $0x20] sm:$0xff] }
 0xa82   :  { %v12746_v21 = vpop.eup %12745  ;;  %12552 = vmatpush3.msra.mxu1 %v5522_v35  ;;  %12553 = vmatprep.mubr.msk.f32.mxu1 %vm13760_vm1, %v17458_v12  ;;  %v14828_v35 = vld [vmem:[#allocation14 + $0x50] sm:$0xff] }
 0xa83   :  { %v12748_v59 = vpop.eup %12747  ;;  %v5062_v2 = vmul.f32 %v12746_v21, %v14712_v27  ;;  %12561 = vmatprep.subr.mxu1 %v5798_v30 }
 0xa84   :  { %v5063_v8 = vmul.f32 %v12748_v59, %v14716_v49  ;;  %v5688_v42 = vpop.permute.xlu1 %5687 }
 0xa85   :  { %12549 = vmatmul.mubr.msk.f32.vlgmr.msra.gmra.mxu0 %vm395_vm2, %v5062_v2  ;;  %v14832_v2 = vld [vmem:[#allocation14 + $0x48] sm:$0xff] }
 0xa86   :  { %v12750_v48 = vpop.eup %12749  ;;  %12554 = vmatmul.mubr.msk.f32.vlgmr.msra.gmra.mxu1 %vm395_vm2, %v5063_v8  ;;  %12557 = vmatpush3.msra.mxu0 %v5598_v62  ;;  %v14836_v62 = vld [vmem:[#allocation14 + $0x40] sm:$0xff] }
 0xa87   :  { %12558 = vmatprep.mubr.msk.f32.mxu0 %vm13760_vm1, %v17458_v12  ;;  %v5064_v16 = vmul.f32 %v12750_v48, %v14722_v40  ;;  %12562 = vmatpush3.msra.mxu1 %v5798_v30  ;;  %v14842_v48 = vld [vmem:[#allocation14 + $0x38] sm:$0xff]  ;;  %vm9220_vm1 = vcmask 1043456  }
 0xa88   :  { %12563 = vmatprep.subr.mxu1 %v5797_v47  ;;  %v5720_v6 = vpop.permute.xlu1 %5719 }
 0xa89   :  { %12559 = vmatmul.mubr.msk.f32.vlgmr.msra.gmra.mxu0 %vm395_vm2, %v5064_v16  ;;  %12564 = vmatpush3.msra.mxu1 %v5797_v47  ;;  %v14846_v47 = vld [vmem:[#allocation14 + $0x30] sm:$0xff] }
 0xa8a   :  { %6043 = vmatprep.mubr.f32.mxu0 %v17458_v12  ;;  %12565 = vmatprep.subr.mxu1 %v5796_v31 }
 0xa8b   :  { %12566 = vmatpush3.msra.mxu1 %v5796_v31 }
 0xa8c   :  { %12567 = vmatprep.subr.mxu1 %v5795_v18 }
 0xa8d   :  { %12568 = vmatpush3.msra.mxu1 %v5795_v18  ;;  %v14850_v18 = vld [vmem:[#allocation14 + $0x28] sm:$0xff] }
 0xb08   :  { %v5137_v53 = vpop.f32.mrf.mxu1 }
 0xb09   :  { %5745 = vrot.lane.b32.xlu0 %v5137_v53, %s13772_s6  ;;  %v14857_v53 = vld [vmem:[#allocation14 + $0x18] sm:$0xff] }
 0xb0a   :  { %v12525_v36 = vpop.f32.mrf.mxu1 }
 0xb0b   :  { %v5213_v39 = vpop.f32.mrf.mxu0  ;;  %v14860_v36 = vld [vmem:[#allocation14 + $0x10] sm:$0xff] }
 0xb0c   :  { %v5289_v56 = vpop.f32.mrf.mxu1  ;;  %5747 = vrot.lane.b32.xlu1 %v5213_v39, %s13772_s6  ;;  %v14863_v39 = vld [vmem:[#allocation14 + $0x8] sm:$0xff] }
 0xb0d   :  { %5721 = vrot.lane.b32.xlu0 %v14667_v51, %s13746_s3  ;;  %v12530_v57 = vpop.f32.mrf.mxu0  ;;  %v14796_v51 = vld [vmem:[#allocation14 + $0x78] sm:$0xff] }
 0xb0e   :  { %v12535_v44 = vpop.f32.mrf.mxu1  ;;  %6140 = vmatprep.subr.mxu1 %v14796_v51 }
 0xb10   :  { %v5365_v61 = vpop.f32.mrf.mxu0  ;;  %5723 = vrot.lane.b32.xlu1 %v14669_v50, %s13746_s3 }
 0xb11   :  { %5749 = vrot.lane.b32.xlu0 %v5289_v56, %s13772_s6  ;;  %v14866_v56 = vld [vmem:[#allocation14] sm:$0xff] }
 0xb12   :  { %v12540_v33 = vpop.f32.mrf.mxu0 }
 0xb14   :  { %5751 = vrot.lane.b32.xlu1 %v5365_v61, %s13772_s6 }
 0xb15   :  { %5693 = vrot.lane.b32.xlu0 %v14494_v38, %s13743_s29  ;;  %v5942_v38 = vld [vmem:[#allocation11 + $0x38] sm:$0xff] }
 0xb16   :  { %6003 = vmatprep.subr.mxu0 %v5942_v38 }
 0xb17   :  { %6004 = vmatpush1.msra.mxu0 %v5941_v34 }
 0xb18   :  { %5695 = vrot.lane.b32.xlu1 %v14496_v43, %s13743_s29  ;;  %v5940_v43 = vld [vmem:[#allocation11 + $0x28] sm:$0xff] }
 0xb19   :  { %6005 = vmatprep.subr.mxu0 %v5940_v43 }
 0xb1a   :  { %6006 = vmatpush1.msra.mxu0 %v5939_v13 }
 0xb41   :  { %v5441_v27 = vpop.f32.mrf.mxu1 }
 0xb42   :  { %5753 = vrot.lane.b32.xlu0 %v5441_v27, %s13772_s6 }
 0xb43   :  { %v12545_v25 = vpop.f32.mrf.mxu1 }
 0xb45   :  { %v5517_v50 = vpop.f32.mrf.mxu0 }
 0xb46   :  { %v5593_v49 = vpop.f32.mrf.mxu1  ;;  %5755 = vrot.lane.b32.xlu1 %v5517_v50, %s13772_s6  ;;  %5725 = vrot.lane.b32.xlu0 %v14671_v58, %s13746_s3  ;;  %v5714_v58 = vpop.permute.xlu0 %5713 }
 0xb47   :  { %v12550_v41 = vpop.f32.mrf.mxu0  ;;  %v5778_v26 = vsel %vm5777_vm4, %v5769_v17, %v5714_v58 }
 0xb48   :  { %v12555_v40 = vpop.f32.mrf.mxu1 }
 0xb49   :  { %v5669_v46 = vpop.f32.mrf.mxu0 }
 0xb4a   :  { %5727 = vrot.lane.b32.xlu1 %v14673_v0, %s13746_s3  ;;  %5757 = vrot.lane.b32.xlu0 %v5593_v49, %s13772_s6  ;;  %v5686_v20 = vpop.permute.xlu0 %5685  ;;  %v5692_v0 = vpop.permute.xlu1 %5691 }
 0xb4b   :  { %v12560_v28 = vpop.f32.mrf.mxu0  ;;  %v5771_v1 = vsel %vm395_vm2, %v14270_v4, %v5686_v20  ;;  %v5772_v4 = vsel %vm395_vm2, %v14274_v7, %v5688_v42  ;;  %v14854_v7 = vld [vmem:[#allocation14 + $0x20] sm:$0xff]  ;;  %v5774_v50 = vsel %vm395_vm2, %v14276_v9, %v5692_v0  ;;  %v5938_v20 = vld [vmem:[#allocation11 + $0x18] sm:$0xff] }
 0xb4c   :  { %v5781_v16 = vsel %vm5777_vm4, %v5772_v4, %v5720_v6  ;;  %6007 = vmatprep.subr.mxu0 %v5938_v20  ;;  %v5936_v42 = vld [vmem:[#allocation11 + $0x8] sm:$0xff]  ;;  %v12005_v6 = vld [vmem:[#allocation10] ss:$0 sm:$0xff] }
 0xb4e   :  { %5759 = vrot.lane.b32.xlu1 %v5669_v46, %s13772_s6  ;;  %v5718_v37 = vpop.permute.xlu0 %5717 }
 0xb4f   :  { %v5780_v21 = vsel %vm5777_vm4, %v5771_v1, %v5718_v37  ;;  %v5935_v37 = vld [vmem:[#allocation11] sm:$0xff] }
 0xb52   :  { %v5690_v15 = vpop.permute.xlu0 %5689 }
 0xb53   :  { %v5773_v44 = vsel %vm395_vm2, %v14285_v19, %v5690_v15 }
 0xb7b   :  { %v5746_v45 = vpop.permute.xlu0 %5745 }
 0xb7c   :  { %v5787_v55 = vsel %vm5786_vm3, %v5778_v26, %v5746_v45 }
 0xb7d   :  { %12569 = vmatprep.mubr.msk.f32.mxu1 %vm254_vm0, %v5787_v55 }
 0xb7e   :  { %v5748_v23 = vpop.permute.xlu1 %5747 }
 0xb7f   :  { %v5788_v10 = vsel %vm5786_vm3, %v5779_v52, %v5748_v23  ;;  %v5722_v3 = vpop.permute.xlu0 %5721  ;;  %v5945_v52 = vlaneseq }
 0xb80   :  { %12570 = vmatmul.mubr.msk.f32.vlgmr.msra.gmra.mxu1 %vm254_vm0, %v5788_v10  ;;  %v5782_v61 = vsel %vm5777_vm4, %v5773_v44, %v5722_v3 }
 0xb81   :  { %6141 = vmatpush1.msra.mxu1 %v14814_v60 }
 0xb82   :  { %v5724_v24 = vpop.permute.xlu1 %5723  ;;  %6142 = vmatprep.subr.mxu1 %v14817_v22 }
 0xb83   :  { %v5750_v59 = vpop.permute.xlu0 %5749  ;;  %6143 = vmatpush1.msra.mxu1 %v14820_v54  ;;  %v5783_v49 = vsel %vm5777_vm4, %v5774_v50, %v5724_v24 }
 0xb84   :  { %v5789_v8 = vsel %vm5786_vm3, %v5780_v21, %v5750_v59  ;;  %6144 = vmatprep.subr.mxu1 %v14823_v14 }
 0xb85   :  { %12572 = vmatprep.mubr.msk.f32.mxu1 %vm254_vm0, %v5789_v8  ;;  %6145 = vmatpush1.msra.mxu1 %v14828_v35 }
 0xb86   :  { %v5752_v30 = vpop.permute.xlu1 %5751  ;;  %6146 = vmatprep.subr.mxu1 %v14832_v2 }
 0xb87   :  { %v5790_v31 = vsel %vm5786_vm3, %v5781_v16, %v5752_v30  ;;  %6147 = vmatpush1.msra.mxu1 %v14836_v62  ;;  %v5694_v57 = vpop.permute.xlu0 %5693 }
 0xb88   :  { %12573 = vmatmul.mubr.msk.f32.gmra.mxu1 %vm254_vm0, %v5790_v31  ;;  %6148 = vmatprep.subr.mxu1 %v14842_v48  ;;  %v5775_v19 = vsel %vm395_vm2, %v14287_v32, %v5694_v57  ;;  %v5937_v32 = vld [vmem:[#allocation11 + $0x10] sm:$0xff] }
 0xb89   :  { %6149 = vmatpush1.msra.mxu1 %v14846_v47  ;;  %6008 = vmatpush1.msra.mxu0 %v5937_v32 }
 0xb8a   :  { %6150 = vmatprep.subr.mxu1 %v14850_v18  ;;  %v5696_v33 = vpop.permute.xlu1 %5695  ;;  %6009 = vmatprep.subr.mxu0 %v5936_v42 }
 0xb8b   :  { %6151 = vmatpush1.msra.mxu1 %v14854_v7  ;;  %v5776_v9 = vsel %vm395_vm2, %v14278_v11, %v5696_v33  ;;  %6010 = vmatpush1.msra.mxu0 %v5935_v37  ;;  %vm9855_vm2 = vcmask 1042432  }
 0xb8c   :  { %6152 = vmatprep.subr.mxu1 %v14857_v53  ;;  %7345 = vmatprep.subr.mxu0 %v14796_v51 }
 0xb8d   :  { %6153 = vmatpush1.msra.mxu1 %v14860_v36 }
 0xb8e   :  { %6154 = vmatprep.subr.mxu1 %v14863_v39 }
 0xb8f   :  { %6155 = vmatpush1.msra.mxu1 %v14866_v56 }
 0xb90   :  { %6713 = vmatprep.subr.mxu1 %v14796_v51 }
 0xbb4   :  { %v5754_v27 = vpop.permute.xlu0 %5753 }
 0xbb5   :  { %v5791_v25 = vsel %vm5786_vm3, %v5782_v61, %v5754_v27  ;;  %v15025_v27 = vld [vmem:[#allocation13] sm:$0x3] }
 0xbb6   :  { %12575 = vmatprep.mubr.msk.f32.mxu1 %vm254_vm0, %v5791_v25 }
 0xbb8   :  { %v5756_v41 = vpop.permute.xlu1 %5755  ;;  %v5726_v38 = vpop.permute.xlu0 %5725 }
 0xbb9   :  { %v5792_v34 = vsel %vm5786_vm3, %v5783_v49, %v5756_v41  ;;  %v5784_v40 = vsel %vm5777_vm4, %v5775_v19, %v5726_v38 }
 0xbba   :  { %12576 = vmatmul.mubr.msk.f32.gmra.mxu1 %vm254_vm0, %v5792_v34 }
 0xbbc   :  { %v5728_v43 = vpop.permute.xlu1 %5727  ;;  %v5758_v46 = vpop.permute.xlu0 %5757 }
 0xbbd   :  { %v5793_v28 = vsel %vm5786_vm3, %v5784_v40, %v5758_v46  ;;  %v5785_v29 = vsel %vm5777_vm4, %v5776_v9, %v5728_v43  ;;  %vm11121_vm4 = vcmask 1040384  }
 0xbbe   :  { %12578 = vmatprep.mubr.msk.f32.mxu1 %vm254_vm0, %v5793_v28 }
 0xbc0   :  { %v5760_v5 = vpop.permute.xlu1 %5759 }
 0xbc1   :  { %v5794_v58 = vsel %vm5786_vm3, %v5785_v29, %v5760_v5  ;;  %vm10490_vm3 = vcmask 1041408  }
 0xbc2   :  { %12579 = vmatmul.mubr.msk.f32.gmra.mxu1 %vm254_vm0, %v5794_v58 }
 0xbc3   :  { %6188 = vmatprep.mubr.f32.mxu1 %v17458_v12 }
 0xbc6   :  { %6189 = vmatmul.mubr.f32.vlgmr.msra.gmra.mxu1 %v17458_v12 }
 0xbc7   :  { %6714 = vmatpush1.msra.mxu1 %v14814_v60  ;;  %6761 = vmatprep.mubr.f32.mxu1 %v17458_v12 }
 0xbc8   :  { %6715 = vmatprep.subr.mxu1 %v14817_v22 }
 0xbc9   :  { %6716 = vmatpush1.msra.mxu1 %v14820_v54 }
 0xbca   :  { %6717 = vmatprep.subr.mxu1 %v14823_v14 }
 0xbcb   :  { %6718 = vmatpush1.msra.mxu1 %v14828_v35 }
 0xbcc   :  { %6719 = vmatprep.subr.mxu1 %v14832_v2 }
 0xbcd   :  { %6720 = vmatpush1.msra.mxu1 %v14836_v62 }
 0xbce   :  { %6721 = vmatprep.subr.mxu1 %v14842_v48 }
 0xbcf   :  { %6722 = vmatpush1.msra.mxu1 %v14846_v47 }
 0xbd0   :  { %6723 = vmatprep.subr.mxu1 %v14850_v18 }
 0xbd1   :  { %6724 = vmatpush1.msra.mxu1 %v14854_v7 }
 0xbd2   :  { %6725 = vmatprep.subr.mxu1 %v14857_v53 }
 0xbd3   :  { %6726 = vmatpush1.msra.mxu1 %v14860_v36 }
 0xbd4   :  { %6727 = vmatprep.subr.mxu1 %v14863_v39 }
 0xbd5   :  { %6728 = vmatpush1.msra.mxu1 %v14866_v56 }
 0xbd6   :  { %7978 = vmatprep.subr.mxu1 %v14796_v51 }
 0xc40   :  { %v12571_v11 = vpop.f32.mrf.mxu1 }
 0xc41   :  { %v5902_v0 = vadd.f32 %v12571_v11, %v12005_v6 }
 0xc42   :  { %v5896_v15 = vpop.f32.mrf.mxu1 }
 0xc43   :  { %v5897_v17 = vadd.f32 %v12005_v6, %v5896_v15 }
 0xc45   :  { %12014 = vmatmul.mubr.msk.f32.vlgmr.msra.gmra.mxu0 %vm254_vm0, %v5897_v17 }
 0xc46   :  { %6049 = vmatprep.mubr.f32.mxu0 %v17458_v12  ;;  %7346 = vmatpush1.msra.mxu0 %v14814_v60  ;;  %v14936_v60 = vshrl.u32 %v5945_v52, 7 }
 0xc47   :  { %7347 = vmatprep.subr.mxu0 %v14817_v22 }
 0xc48   :  { %v12574_v26 = vpop.f32.mrf.mxu1  ;;  %7348 = vmatpush1.msra.mxu0 %v14820_v54  ;;  %17552 = vst [vmem:[#allocation32_spill] sm:$0xff] %v14936_v60  ;;  %v14940_v22 = vsub.s32 0, %v14936_v60  ;;  %v6108_v54 = vld [vmem:[%s17442_s8] sm:$0x3] }
 0xc49   :  { %12015 = vmatmul.mubr.msk.f32.gmra.mxu0 %vm254_vm0, %v5902_v0  ;;  %7349 = vmatprep.subr.mxu0 %v14823_v14  ;;  %v5912_v63 = vadd.f32 %v12574_v26, %v12005_v6 }
 0xc4a   :  { %v5906_v45 = vpop.f32.mrf.mxu1  ;;  %6055 = vmatprep.mubr.f32.mxu0 %v17458_v12  ;;  %7350 = vmatpush1.msra.mxu0 %v14828_v35  ;;  %17553 = vst [vmem:[#allocation33_spill] sm:$0xff] %v14940_v22  ;;  %v14951_v24 = vrot.slane %v6108_v54, %v14940_v22  ;;  %v15029_v25 = vrot.slane %v15025_v27, %v14940_v22 }
 0xc4b   :  { %v5907_v55 = vadd.f32 %v12005_v6, %v5906_v45  ;;  %7351 = vmatprep.subr.mxu0 %v14832_v2 }
 0xc4c   :  { %7352 = vmatpush1.msra.mxu0 %v14836_v62  ;;  %17555 = vst [vmem:[#allocation35_spill] sm:$0xff] %v14951_v24 }
 0xc4d   :  { %12016 = vmatmul.mubr.msk.f32.gmra.mxu0 %vm254_vm0, %v5907_v55  ;;  %7353 = vmatprep.subr.mxu0 %v14842_v48 }
 0xc4e   :  { %6061 = vmatprep.mubr.f32.mxu0 %v17458_v12  ;;  %7354 = vmatpush1.msra.mxu0 %v14846_v47 }
 0xc4f   :  { %7355 = vmatprep.subr.mxu0 %v14850_v18 }
 0xc50   :  { %7356 = vmatpush1.msra.mxu0 %v14854_v7 }
 0xc51   :  { %12017 = vmatmul.mubr.msk.f32.gmra.mxu0 %vm254_vm0, %v5912_v63  ;;  %7357 = vmatprep.subr.mxu0 %v14857_v53 }
 0xc52   :  { %6067 = vmatprep.mubr.f32.mxu0 %v17458_v12  ;;  %7358 = vmatpush1.msra.mxu0 %v14860_v36 }
 0xc53   :  { %7359 = vmatprep.subr.mxu0 %v14863_v39 }
 0xc54   :  { %7360 = vmatpush1.msra.mxu0 %v14866_v56 }
 0xc55   :  { %8611 = vmatprep.subr.mxu0 %v14796_v51  ;;  %v14947_v51 = vsub.s32 1, %v14936_v60 }
 0xc57   :  { %17554 = vst [vmem:[#allocation34_spill] sm:$0xff] %v14947_v51  ;;  %v14955_v59 = vrot.slane %v6108_v54, %v14947_v51 }
 0xc59   :  { %17556 = vst [vmem:[#allocation36_spill] sm:$0xff] %v14955_v59 }
 0xc7a   :  { %v12577_v23 = vpop.f32.mrf.mxu1 }
 0xc7b   :  { %v5922_v14 = vadd.f32 %v12577_v23, %v12005_v6 }
 0xc7c   :  { %v5916_v10 = vpop.f32.mrf.mxu1 }
 0xc7d   :  { %v5917_v3 = vadd.f32 %v12005_v6, %v5916_v10 }
 0xc7f   :  { %12018 = vmatmul.mubr.msk.f32.gmra.mxu0 %vm254_vm0, %v5917_v3 }
 0xc80   :  { %6073 = vmatprep.mubr.f32.mxu0 %v17458_v12 }
 0xc82   :  { %v12580_v1 = vpop.f32.mrf.mxu1 }
 0xc83   :  { %12019 = vmatmul.mubr.msk.f32.gmra.mxu0 %vm254_vm0, %v5922_v14  ;;  %v5932_v4 = vadd.f32 %v12580_v1, %v12005_v6 }
 0xc84   :  { %v5926_v35 = vpop.f32.mrf.mxu1  ;;  %6079 = vmatprep.mubr.f32.mxu0 %v17458_v12 }
 0xc85   :  { %v5927_v21 = vadd.f32 %v12005_v6, %v5926_v35 }
 0xc86   :  { %v6190_v2 = vpop.f32.mrf.mxu1 }
 0xc87   :  { %12020 = vmatmul.mubr.msk.f32.gmra.mxu0 %vm254_vm0, %v5927_v21  ;;  %v14959_v8 = vadd.f32 %v6190_v2, %v14951_v24 }
 0xc88   :  { %6085 = vmatprep.mubr.f32.mxu0 %v17458_v12  ;;  %v6192_v62 = vpop.f32.mrf.mxu1 }
 0xc89   :  { %v6196_v48 = vrot.slane %v14959_v8, 1  ;;  %6251 = vrot.lane.b32.xlu1 %v14959_v8, %s13762_s19  ;;  %v14966_v16 = vadd.f32 %v6192_v62, %v14955_v59  ;;  %v6197_v30 = vrot.slane %v14959_v8, 2  ;;  %v6198_v47 = vrot.slane %v14959_v8, 3 }
 0xc8a   :  { %v14977_v18 = vrot.slane %v14959_v8, 4  ;;  %v14986_v53 = vrot.slane %v14959_v8, 5  ;;  %v15011_v61 = vrot.slane %v14959_v8, 6  ;;  %v15019_v33 = vrot.slane %v14959_v8, 7 }
 0xc8b   :  { %12021 = vmatmul.mubr.msk.f32.gmra.mxu0 %vm254_vm0, %v5932_v4  ;;  %6253 = vrot.lane.b32.xlu0 %v6196_v48, %s13762_s19  ;;  %v6436_v31 = vrot.slane %v14966_v16, 1  ;;  %v6439_v7 = vrot.slane %v14966_v16, 4  ;;  %v6440_v36 = vrot.slane %v14966_v16, 5  ;;  %v6437_v39 = vrot.slane %v14966_v16, 2 }
 0xc8c   :  { %7393 = vmatprep.mubr.f32.mxu0 %v17458_v12  ;;  %v6441_v56 = vrot.slane %v14966_v16, 6  ;;  %v6438_v57 = vrot.slane %v14966_v16, 3  ;;  %v6442_v44 = vrot.slane %v14966_v16, 7 }
 0xc8d   :  { %6255 = vrot.lane.b32.xlu1 %v6197_v30, %s13762_s19 }
 0xc8f   :  { %6257 = vrot.lane.b32.xlu0 %v6198_v47, %s13762_s19 }
 0xc91   :  { %6491 = vrot.lane.b32.xlu1 %v6436_v31, %s13762_s19 }
 0xc93   :  { %6259 = vrot.lane.b32.xlu0 %v14977_v18, %s13762_s19 }
 0xc95   :  { %6497 = vrot.lane.b32.xlu1 %v6439_v7, %s13762_s19 }
 0xc97   :  { %6261 = vrot.lane.b32.xlu0 %v14986_v53, %s13762_s19 }
 0xc99   :  { %6499 = vrot.lane.b32.xlu1 %v6440_v36, %s13762_s19 }
 0xc9b   :  { %6493 = vrot.lane.b32.xlu0 %v6437_v39, %s13762_s19 }
 0xc9d   :  { %6501 = vrot.lane.b32.xlu1 %v6441_v56, %s13762_s19 }
 0xc9f   :  { %6495 = vrot.lane.b32.xlu0 %v6438_v57, %s13762_s19 }
 0xca1   :  { %6503 = vrot.lane.b32.xlu1 %v6442_v44, %s13762_s19 }
 0xca3   :  { %6263 = vrot.lane.b32.xlu0 %v15011_v61, %s13762_s19 }
 0xca5   :  { %6505 = vrot.lane.b32.xlu1 %v14966_v16, %s13762_s19 }
 0xca7   :  { %6265 = vrot.lane.b32.xlu0 %v15019_v33, %s13762_s19 }
 0xcfb   :  { %v6252_v11 = vpop.permute.xlu1 %6251 }
 0xcfd   :  { %v6254_v40 = vpop.permute.xlu0 %6253 }
 0xcff   :  { %v6256_v10 = vpop.permute.xlu1 %6255 }
 0xd01   :  { %v15051_v37 = vpop.permute.xlu0 %6257 }
 0xd03   :  { %v6492_v2 = vpop.permute.xlu1 %6491 }
 0xd05   :  { %v6045_v50 = vpop.f32.mrf.mxu0  ;;  %v15061_v52 = vpop.permute.xlu0 %6259 }
 0xd06   :  { %v15032_v49 = vadd.f32 %v6045_v50, %v15029_v25 }
 0xd07   :  { %v15034_v41 = vpop.f32.mrf.mxu0 }
 0xd08   :  { %17557 = vst [vmem:[#allocation37_spill] sm:$0xff] %v15032_v49  ;;  %v6211_v38 = vadd.f32 %v14959_v8, %v15032_v49  ;;  %v6395_v34 = vadd.f32 %v6196_v48, %v15032_v49 }
 0xd09   :  { %v6051_v19 = vpop.f32.mrf.mxu0  ;;  %v15063_v21 = vpop.permute.xlu0 %6261 }
 0xd0a   :  { %v15040_v43 = vadd.f32 %v6051_v19, %v15029_v25  ;;  %v6219_v46 = vmul.f32 0.5, %v6211_v38  ;;  %v6403_v28 = vmul.f32 0.5, %v6395_v34 }
 0xd0b   :  { %v15042_v9 = vpop.f32.mrf.mxu0 }
 0xd0c   :  { %17558 = vst [vmem:[#allocation38_spill] sm:$0xff] %v15040_v43  ;;  %v6212_v29 = vadd.f32 %v6196_v48, %v15040_v43  ;;  %12751 = vtanh.f32 %v6219_v46  ;;  %v6396_v5 = vadd.f32 %v6197_v30, %v15040_v43 }
 0xd0d   :  { %v6057_v58 = vpop.f32.mrf.mxu0  ;;  %12753 = vtanh.f32 %v6403_v28  ;;  %v6494_v46 = vpop.permute.xlu0 %6493 }
 0xd0e   :  { %v15047_v13 = vadd.f32 %v6057_v58, %v15029_v25  ;;  %v6220_v20 = vmul.f32 0.5, %v6212_v29  ;;  %v6404_v32 = vmul.f32 0.5, %v6396_v5 }
 0xd0f   :  { %v15049_v42 = vpop.f32.mrf.mxu0 }
 0xd10   :  { %17559 = vst [vmem:[#allocation39_spill] sm:$0xff] %v15047_v13  ;;  %12755 = vtanh.f32 %v6220_v20  ;;  %v6213_v6 = vadd.f32 %v6197_v30, %v15047_v13  ;;  %v6397_v15 = vadd.f32 %v6198_v47, %v15047_v13 }
 0xd11   :  { %v6063_v17 = vpop.f32.mrf.mxu0  ;;  %12757 = vtanh.f32 %v6404_v32 }
 0xd12   :  { %v15056_v0 = vadd.f32 %v6063_v17, %v15029_v25  ;;  %v6221_v26 = vmul.f32 0.5, %v6213_v6  ;;  %v6405_v45 = vmul.f32 0.5, %v6397_v15 }
 0xd14   :  { %17560 = vst [vmem:[#allocation40_spill] sm:$0xff] %v15056_v0  ;;  %v6214_v55 = vadd.f32 %v6198_v47, %v15056_v0  ;;  %12759 = vtanh.f32 %v6221_v26  ;;  %v6398_v63 = vadd.f32 %v14977_v18, %v15056_v0 }
 0xd15   :  { %12761 = vtanh.f32 %v6405_v45 }
 0xd16   :  { %v6222_v23 = vmul.f32 0.5, %v6214_v55  ;;  %v6406_v3 = vmul.f32 0.5, %v6398_v63 }
 0xd18   :  { %12763 = vtanh.f32 %v6222_v23  ;;  %v6496_v23 = vpop.permute.xlu0 %6495 }
 0xd19   :  { %v12752_v54 = vpop.eup %12751  ;;  %12765 = vtanh.f32 %v6406_v3  ;;  %v6498_v3 = vpop.permute.xlu1 %6497 }
 0xd1a   :  { %v12754_v14 = vpop.eup %12753  ;;  %v6235_v1 = vadd.f32 1.0, %v12752_v54 }
 0xd1b   :  { %v6419_v35 = vadd.f32 1.0, %v12754_v14 }
 0xd1c   :  { %v15065_v47 = vmul.f32 0.5, %v6235_v1 }
 0xd1d   :  { %v12756_v62 = vpop.eup %12755  ;;  %v6427_v4 = vmul.f32 0.5, %v6419_v35  ;;  %v15086_v35 = vpop.f32.mrf.mxu0 }
 0xd1e   :  { %v12758_v48 = vpop.eup %12757  ;;  %v6236_v30 = vadd.f32 1.0, %v12756_v62  ;;  %v6275_v20 = vmul.f32 %v6252_v11, %v15065_v47 }
 0xd1f   :  { %v6515_v50 = vmul.f32 %v6492_v2, %v6427_v4  ;;  %v6420_v38 = vadd.f32 1.0, %v12758_v48 }
 0xd20   :  { %v15067_v34 = vmul.f32 0.5, %v6236_v30 }
 0xd21   :  { %v12760_v19 = vpop.eup %12759  ;;  %6531 = vrot.lane.b32.xlu1 %v6515_v50, %s13762_s19  ;;  %v6428_v58 = vmul.f32 0.5, %v6420_v38 }
 0xd22   :  { %v12762_v28 = vpop.eup %12761  ;;  %v6276_v29 = vmul.f32 %v6254_v40, %v15067_v34  ;;  %v6237_v5 = vadd.f32 1.0, %v12760_v19 }
 0xd23   :  { %v6421_v32 = vadd.f32 1.0, %v12762_v28  ;;  %v6516_v55 = vmul.f32 %v6494_v46, %v6428_v58 }
 0xd24   :  { %v15072_v6 = vmul.f32 0.5, %v6237_v5  ;;  %6293 = vrot.lane.b32.xlu0 %v6276_v29, %s13762_s19 }
 0xd25   :  { %v12764_v15 = vpop.eup %12763  ;;  %6291 = vrot.lane.b32.xlu1 %v6275_v20, %s13762_s19  ;;  %v6429_v63 = vmul.f32 0.5, %v6421_v32 }
 0xd26   :  { %v12766_v17 = vpop.eup %12765  ;;  %v6238_v26 = vadd.f32 1.0, %v12764_v15  ;;  %v6277_v45 = vmul.f32 %v6256_v10, %v15072_v6 }
 0xd27   :  { %v6422_v40 = vadd.f32 1.0, %v12766_v17  ;;  %v6517_v14 = vmul.f32 %v6496_v23, %v6429_v63 }
 0xd28   :  { %6533 = vrot.lane.b32.xlu0 %v6516_v55, %s13762_s19  ;;  %v15079_v54 = vmul.f32 0.5, %v6238_v26 }
 0xd29   :  { %6295 = vrot.lane.b32.xlu1 %v6277_v45, %s13762_s19  ;;  %v6430_v11 = vmul.f32 0.5, %v6422_v40 }
 0xd2a   :  { %v6278_v10 = vmul.f32 %v15051_v37, %v15079_v54 }
 0xd2b   :  { %v6518_v1 = vmul.f32 %v6498_v3, %v6430_v11  ;;  %v6500_v3 = vpop.permute.xlu1 %6499 }
 0xd2c   :  { %6535 = vrot.lane.b32.xlu0 %v6517_v14, %s13762_s19 }
 0xd2d   :  { %6537 = vrot.lane.b32.xlu1 %v6518_v1, %s13762_s19 }
 0xd30   :  { %6297 = vrot.lane.b32.xlu0 %v6278_v10, %s13762_s19 }
 0xd3f   :  { %v6069_v2 = vpop.f32.mrf.mxu0 }
 0xd40   :  { %v15089_v62 = vadd.f32 %v6069_v2, %v15029_v25 }
 0xd41   :  { %v15091_v4 = vpop.f32.mrf.mxu0 }
 0xd42   :  { %17561 = vst [vmem:[#allocation41_spill] sm:$0xff] %v15089_v62  ;;  %v6215_v48 = vadd.f32 %v14977_v18, %v15089_v62  ;;  %v6399_v30 = vadd.f32 %v14986_v53, %v15089_v62 }
 0xd43   :  { %v6075_v50 = vpop.f32.mrf.mxu0 }
 0xd44   :  { %v15098_v38 = vadd.f32 %v6075_v50, %v15029_v25  ;;  %v6223_v37 = vmul.f32 0.5, %v6215_v48  ;;  %v6407_v19 = vmul.f32 0.5, %v6399_v30  ;;  %v6502_v50 = vpop.permute.xlu1 %6501 }
 0xd45   :  { %v15100_v46 = vpop.f32.mrf.mxu0 }
 0xd46   :  { %17562 = vst [vmem:[#allocation42_spill] sm:$0xff] %v15098_v38  ;;  %12767 = vtanh.f32 %v6223_v37  ;;  %v6216_v28 = vadd.f32 %v14986_v53, %v15098_v38  ;;  %v6400_v29 = vadd.f32 %v15011_v61, %v15098_v38 }
 0xd47   :  { %v6081_v5 = vpop.f32.mrf.mxu0  ;;  %12769 = vtanh.f32 %v6407_v19 }
 0xd48   :  { %v15107_v18 = vadd.f32 %v6081_v5, %v15029_v25  ;;  %v6224_v58 = vmul.f32 0.5, %v6216_v28  ;;  %v6408_v20 = vmul.f32 0.5, %v6400_v29 }
 0xd49   :  { %v15109_v32 = vpop.f32.mrf.mxu0 }
 0xd4a   :  { %17563 = vst [vmem:[#allocation43_spill] sm:$0xff] %v15107_v18  ;;  %12771 = vtanh.f32 %v6224_v58  ;;  %v6217_v15 = vadd.f32 %v15011_v61, %v15107_v18  ;;  %v6401_v17 = vadd.f32 %v15019_v33, %v15107_v18 }
 0xd4b   :  { %v6087_v53 = vpop.f32.mrf.mxu0  ;;  %12773 = vtanh.f32 %v6408_v20 }
 0xd4c   :  { %v15116_v26 = vadd.f32 %v6087_v53, %v15029_v25  ;;  %v6225_v45 = vmul.f32 0.5, %v6217_v15  ;;  %v6409_v55 = vmul.f32 0.5, %v6401_v17  ;;  %v6264_v17 = vpop.permute.xlu0 %6263 }
 0xd4e   :  { %17564 = vst [vmem:[#allocation44_spill] sm:$0xff] %v15116_v26  ;;  %12775 = vtanh.f32 %v6225_v45  ;;  %v6218_v63 = vadd.f32 %v15019_v33, %v15116_v26  ;;  %v6402_v23 = vadd.f32 %v14959_v8, %v15116_v26 }
 0xd4f   :  { %12777 = vtanh.f32 %v6409_v55 }
 0xd50   :  { %v6226_v40 = vmul.f32 0.5, %v6218_v63  ;;  %v6410_v61 = vmul.f32 0.5, %v6402_v23 }
 0xd52   :  { %12779 = vtanh.f32 %v6226_v40 }
 0xd53   :  { %v12768_v11 = vpop.eup %12767  ;;  %12781 = vtanh.f32 %v6410_v61 }
 0xd54   :  { %v12770_v14 = vpop.eup %12769  ;;  %v6239_v1 = vadd.f32 1.0, %v12768_v11 }
 0xd55   :  { %v6423_v25 = vadd.f32 1.0, %v12770_v14 }
 0xd56   :  { %v15122_v10 = vmul.f32 0.5, %v6239_v1  ;;  %v6266_v1 = vpop.permute.xlu0 %6265 }
 0xd57   :  { %v12772_v2 = vpop.eup %12771  ;;  %v6431_v48 = vmul.f32 0.5, %v6423_v25 }
 0xd58   :  { %v12774_v30 = vpop.eup %12773  ;;  %v6279_v33 = vmul.f32 %v15061_v52, %v15122_v10  ;;  %v6240_v8 = vadd.f32 1.0, %v12772_v2  ;;  %v6504_v52 = vpop.permute.xlu1 %6503 }
 0xd59   :  { %v6519_v37 = vmul.f32 %v6500_v3, %v6431_v48  ;;  %v6424_v19 = vadd.f32 1.0, %v12774_v30 }
 0xd5a   :  { %6299 = vrot.lane.b32.xlu0 %v6279_v33, %s13762_s19  ;;  %v15127_v28 = vmul.f32 0.5, %v6240_v8 }
 0xd5b   :  { %v12776_v29 = vpop.eup %12775  ;;  %6539 = vrot.lane.b32.xlu1 %v6519_v37, %s13762_s19  ;;  %v6432_v5 = vmul.f32 0.5, %v6424_v19 }
 0xd5c   :  { %v12778_v58 = vpop.eup %12777  ;;  %v6280_v20 = vmul.f32 %v15063_v21, %v15127_v28  ;;  %v6241_v15 = vadd.f32 1.0, %v12776_v29  ;;  %v6506_v2 = vpop.permute.xlu1 %6505 }
 0xd5d   :  { %v6520_v53 = vmul.f32 %v6502_v50, %v6432_v5  ;;  %v6425_v45 = vadd.f32 1.0, %v12778_v58  ;;  %v15146_v50 = vrot.slane %v15025_v27, %v14947_v51 }
 0xd5e   :  { %6301 = vrot.lane.b32.xlu0 %v6280_v20, %s13762_s19  ;;  %v15133_v55 = vmul.f32 0.5, %v6241_v15 }
 0xd5f   :  { %v12780_v63 = vpop.eup %12779  ;;  %6541 = vrot.lane.b32.xlu1 %v6520_v53, %s13762_s19  ;;  %v6433_v23 = vmul.f32 0.5, %v6425_v45  ;;  %v15150_v33 = vadd.f32 %v15034_v41, %v15146_v50  ;;  %v15157_v20 = vadd.f32 %v15042_v9, %v15146_v50  ;;  %v15163_v53 = vadd.f32 %v15049_v42, %v15146_v50 }
 0xd60   :  { %v12782_v40 = vpop.eup %12781  ;;  %v6281_v61 = vmul.f32 %v6264_v17, %v15133_v55  ;;  %v6242_v3 = vadd.f32 1.0, %v12780_v63  ;;  %v15167_v45 = vadd.f32 %v15086_v35, %v15146_v50 }
 0xd61   :  { %v6521_v11 = vmul.f32 %v6504_v52, %v6433_v23  ;;  %v6426_v14 = vadd.f32 1.0, %v12782_v40  ;;  %17565 = vst [vmem:[#allocation45_spill] sm:$0xff] %v15150_v33  ;;  %17566 = vst [vmem:[#allocation46_spill] sm:$0xff] %v15157_v20 }
 0xd62   :  { %6303 = vrot.lane.b32.xlu0 %v6281_v61, %s13762_s19  ;;  %v15138_v21 = vmul.f32 0.5, %v6242_v3  ;;  %17567 = vst [vmem:[#allocation47_spill] sm:$0xff] %v15163_v53  ;;  %17568 = vst [vmem:[#allocation48_spill] sm:$0xff] %v15167_v45 }
 0xd63   :  { %6543 = vrot.lane.b32.xlu1 %v6521_v11, %s13762_s19  ;;  %v6434_v25 = vmul.f32 0.5, %v6426_v14 }
 0xd64   :  { %v6282_v48 = vmul.f32 %v6266_v1, %v15138_v21 }
 0xd65   :  { %v6522_v30 = vmul.f32 %v6506_v2, %v6434_v25 }
 0xd66   :  { %6305 = vrot.lane.b32.xlu0 %v6282_v48, %s13762_s19  ;;  %v15182_v48 = vadd.f32 %v15091_v4, %v15146_v50  ;;  %v15194_v4 = vadd.f32 %v15109_v32, %v15146_v50 }
 0xd67   :  { %6545 = vrot.lane.b32.xlu1 %v6522_v30, %s13762_s19 }
 0xd68   :  { %17570 = vst [vmem:[#allocation50_spill] sm:$0xff] %v15194_v4 }
 0xd93   :  { %v6532_v8 = vpop.permute.xlu1 %6531 }
 0xd94   :  { %v6555_v37 = vadd.f32 %v6532_v8, %v15150_v33 }
 0xd96   :  { %12783 = vtanh.f32 %v6555_v37  ;;  %v6294_v19 = vpop.permute.xlu0 %6293 }
 0xd97   :  { %v6316_v29 = vadd.f32 %v6294_v19, %v15040_v43  ;;  %v6292_v5 = vpop.permute.xlu1 %6291 }
 0xd98   :  { %v6315_v58 = vadd.f32 %v6292_v5, %v15032_v49 }
 0xd99   :  { %12785 = vtanh.f32 %v6316_v29  ;;  %v15188_v29 = vadd.f32 %v15100_v46, %v15146_v50 }
 0xd9a   :  { %12787 = vtanh.f32 %v6315_v58  ;;  %v6534_v27 = vpop.permute.xlu0 %6533 }
 0xd9b   :  { %v6556_v41 = vadd.f32 %v6534_v27, %v15157_v20  ;;  %v6296_v15 = vpop.permute.xlu1 %6295  ;;  %17569 = vst [vmem:[#allocation49_spill] sm:$0xff] %v15188_v29 }
 0xd9c   :  { %v6317_v17 = vadd.f32 %v6296_v15, %v15047_v13 }
 0xd9d   :  { %12789 = vtanh.f32 %v6556_v41 }
 0xd9e   :  { %12791 = vtanh.f32 %v6317_v17  ;;  %v6536_v9 = vpop.permute.xlu0 %6535  ;;  %v6089_v17 = vpop.f32.mrf.mxu0 }
 0xd9f   :  { %v6557_v52 = vadd.f32 %v6536_v9, %v15163_v53  ;;  %v6538_v63 = vpop.permute.xlu1 %6537 }
 0xda0   :  { %v6558_v23 = vadd.f32 %v6538_v63, %v15167_v45  ;;  %v15199_v63 = vadd.f32 %v6089_v17, %v15146_v50 }
 0xda1   :  { %12793 = vtanh.f32 %v6557_v52 }
 0xda2   :  { %12795 = vtanh.f32 %v6558_v23  ;;  %v6298_v40 = vpop.permute.xlu0 %6297  ;;  %17571 = vst [vmem:[#allocation51_spill] sm:$0xff] %v15199_v63 }
 0xda3   :  { %v12784_v61 = vpop.eup %12783  ;;  %v6318_v3 = vadd.f32 %v6298_v40, %v15056_v0 }
 0xda4   :  { %6587 = vrot.lane.b32.xlu1 %v12784_v61, %s13761_s11 }
 0xda5   :  { %12797 = vtanh.f32 %v6318_v3 }
 0xda6   :  { %v12786_v42 = vpop.eup %12785 }
 0xda7   :  { %v12788_v11 = vpop.eup %12787  ;;  %6349 = vrot.lane.b32.xlu0 %v12786_v42, %s13761_s11 }
 0xda8   :  { %6347 = vrot.lane.b32.xlu1 %v12788_v11, %s13761_s11 }
 0xdaa   :  { %v12790_v35 = vpop.eup %12789 }
 0xdab   :  { %v12792_v14 = vpop.eup %12791  ;;  %6589 = vrot.lane.b32.xlu0 %v12790_v35, %s13761_s11 }
 0xdac   :  { %6351 = vrot.lane.b32.xlu1 %v12792_v14, %s13761_s11 }
 0xdae   :  { %v12794_v1 = vpop.eup %12793 }
 0xdaf   :  { %v12796_v25 = vpop.eup %12795  ;;  %6591 = vrot.lane.b32.xlu0 %v12794_v1, %s13761_s11 }
 0xdb0   :  { %6593 = vrot.lane.b32.xlu1 %v12796_v25, %s13761_s11 }
 0xdb2   :  { %v12798_v2 = vpop.eup %12797 }
 0xdb3   :  { %6353 = vrot.lane.b32.xlu0 %v12798_v2, %s13761_s11 }
 0xdcc   :  { %v6300_v30 = vpop.permute.xlu0 %6299 }
 0xdcd   :  { %v6319_v8 = vadd.f32 %v6300_v30, %v15089_v62  ;;  %v6540_v37 = vpop.permute.xlu1 %6539  ;;  %v6332_v30 = vsub.f32 1.0, %v15067_v34 }
 0xdce   :  { %v6559_v19 = vadd.f32 %v6540_v37, %v15182_v48  ;;  %v6331_v37 = vsub.f32 1.0, %v15065_v47 }
 0xdcf   :  { %12799 = vtanh.f32 %v6319_v8 }
 0xdd0   :  { %12801 = vtanh.f32 %v6559_v19  ;;  %v6302_v5 = vpop.permute.xlu0 %6301  ;;  %v6380_v19 = vmul.f32 0.0, %v15067_v34 }
 0xdd1   :  { %v6320_v58 = vadd.f32 %v6302_v5, %v15098_v38  ;;  %v6542_v27 = vpop.permute.xlu1 %6541 }
 0xdd2   :  { %v6560_v41 = vadd.f32 %v6542_v27, %v15188_v29 }
 0xdd3   :  { %12803 = vtanh.f32 %v6320_v58 }
 0xdd4   :  { %12805 = vtanh.f32 %v6560_v41  ;;  %v6304_v15 = vpop.permute.xlu0 %6303 }
 0xdd5   :  { %v6321_v9 = vadd.f32 %v6304_v15, %v15107_v18  ;;  %v6544_v52 = vpop.permute.xlu1 %6543  ;;  %v6379_v15 = vmul.f32 0.0, %v15065_v47 }
 0xdd6   :  { %v6561_v46 = vadd.f32 %v6544_v52, %v15194_v4 }
 0xdd7   :  { %12807 = vtanh.f32 %v6321_v9  ;;  %v6333_v9 = vsub.f32 1.0, %v15072_v6 }
 0xdd8   :  { %12809 = vtanh.f32 %v6561_v46  ;;  %v6306_v23 = vpop.permute.xlu0 %6305 }
 0xdd9   :  { %v6322_v40 = vadd.f32 %v6306_v23, %v15116_v26  ;;  %v6546_v61 = vpop.permute.xlu1 %6545 }
 0xdda   :  { %v6562_v32 = vadd.f32 %v6546_v61, %v15199_v63 }
 0xddb   :  { %12811 = vtanh.f32 %v6322_v40  ;;  %v6381_v40 = vmul.f32 0.0, %v15072_v6  ;;  %v6452_v6 = vadd.f32 %v6437_v39, %v15157_v20  ;;  %v6455_v39 = vadd.f32 %v6440_v36, %v15182_v48 }
 0xddc   :  { %v12800_v3 = vpop.eup %12799  ;;  %12813 = vtanh.f32 %v6562_v32  ;;  %v6458_v36 = vadd.f32 %v14966_v16, %v15199_v63 }
 0xddd   :  { %v12802_v42 = vpop.eup %12801  ;;  %6355 = vrot.lane.b32.xlu0 %v12800_v3, %s13761_s11 }
 0xdde   :  { %6595 = vrot.lane.b32.xlu1 %v12802_v42, %s13761_s11 }
 0xde0   :  { %v12804_v11 = vpop.eup %12803 }
 0xde1   :  { %v12806_v35 = vpop.eup %12805  ;;  %6357 = vrot.lane.b32.xlu0 %v12804_v11, %s13761_s11  ;;  %v6334_v11 = vsub.f32 1.0, %v15079_v54 }
 0xde2   :  { %6597 = vrot.lane.b32.xlu1 %v12806_v35, %s13761_s11 }
 0xde4   :  { %v12808_v50 = vpop.eup %12807 }
 0xde5   :  { %v12810_v14 = vpop.eup %12809  ;;  %6359 = vrot.lane.b32.xlu0 %v12808_v50, %s13761_s11  ;;  %v6382_v50 = vmul.f32 0.0, %v15079_v54  ;;  %v6460_v54 = vmul.f32 0.5, %v6452_v6 }
 0xde6   :  { %6599 = vrot.lane.b32.xlu1 %v12810_v14, %s13761_s11 }
 0xde7   :  { %12815 = vtanh.f32 %v6460_v54 }
 0xde8   :  { %v12812_v1 = vpop.eup %12811 }
 0xde9   :  { %v12814_v25 = vpop.eup %12813  ;;  %6361 = vrot.lane.b32.xlu0 %v12812_v1, %s13761_s11 }
 0xdea   :  { %6601 = vrot.lane.b32.xlu1 %v12814_v25, %s13761_s11 }
 0xe16   :  { %v15211_v2 = vpop.permute.xlu1 %6587 }
 0xe19   :  { %v6350_v8 = vpop.permute.xlu0 %6349 }
 0xe1a   :  { %v6372_v5 = vmul.f32 %v6350_v8, %v6332_v30  ;;  %v6348_v58 = vpop.permute.xlu1 %6347  ;;  %v6453_v30 = vadd.f32 %v6438_v57, %v15163_v53  ;;  %v6451_v8 = vadd.f32 %v6436_v31, %v15150_v33  ;;  %v6456_v31 = vadd.f32 %v6441_v56, %v15188_v29 }
 0xe1b   :  { %v6371_v27 = vmul.f32 %v6348_v58, %v6331_v37 }
 0xe1c   :  { %v6388_v41 = vadd.f32 %v6380_v19, %v6372_v5  ;;  %v6454_v19 = vadd.f32 %v6439_v7, %v15167_v45  ;;  %v6461_v5 = vmul.f32 0.5, %v6453_v30  ;;  %v6459_v58 = vmul.f32 0.5, %v6451_v8 }
 0xe1d   :  { %v15217_v17 = vpop.permute.xlu0 %6589  ;;  %v6387_v46 = vadd.f32 %v6379_v15, %v6371_v27  ;;  %v6463_v27 = vmul.f32 0.5, %v6455_v39  ;;  %v6457_v7 = vadd.f32 %v6442_v44, %v15194_v4 }
 0xe1e   :  { %v6643_v52 = vrot.slane %v6388_v41, 7  ;;  %v6352_v23 = vpop.permute.xlu1 %6351  ;;  %v6462_v57 = vmul.f32 0.5, %v6454_v19  ;;  %12817 = vtanh.f32 %v6461_v5  ;;  %v6464_v41 = vmul.f32 0.5, %v6456_v31 }
 0xe1f   :  { %v6373_v61 = vmul.f32 %v6352_v23, %v6333_v9  ;;  %12819 = vtanh.f32 %v6459_v58  ;;  %v6465_v15 = vmul.f32 0.5, %v6457_v7  ;;  %v12816_v9 = vpop.eup %12815 }
 0xe20   :  { %v6645_v32 = vsel %vm6644_vm5, %v6643_v52, %v6387_v46  ;;  %12821 = vtanh.f32 %v6462_v57  ;;  %v6466_v52 = vmul.f32 0.5, %v6458_v36  ;;  %v6476_v23 = vadd.f32 1.0, %v12816_v9 }
 0xe21   :  { %v6389_v34 = vadd.f32 %v6381_v40, %v6373_v61  ;;  %v6592_v3 = vpop.permute.xlu0 %6591  ;;  %12823 = vtanh.f32 %v6463_v27  ;;  %v6335_v27 = vsub.f32 1.0, %v15122_v10 }
 0xe22   :  { %12825 = vtanh.f32 %v6464_v41  ;;  %v6594_v19 = vpop.permute.xlu1 %6593 }
 0xe23   :  { %v6646_v42 = vrot.slane %v6389_v34, 6  ;;  %12827 = vtanh.f32 %v6465_v15 }
 0xe24   :  { %12829 = vtanh.f32 %v6466_v52 }
 0xe25   :  { %v6648_v47 = vsel %vm6647_vm6, %v6646_v42, %v6645_v32  ;;  %v6354_v35 = vpop.permute.xlu0 %6353  ;;  %v6484_v42 = vmul.f32 0.5, %v6476_v23 }
 0xe26   :  { %v6374_v14 = vmul.f32 %v6354_v35, %v6334_v11 }
 0xe27   :  { %v6620_v39 = vmul.f32 0.0, %v6484_v42 }
 0xe28   :  { %v6390_v1 = vadd.f32 %v6382_v50, %v6374_v14  ;;  %v6572_v14 = vsub.f32 1.0, %v6484_v42 }
 0xe2a   :  { %v6649_v25 = vrot.slane %v6390_v1, 5  ;;  %v6612_v54 = vmul.f32 %v15217_v17, %v6572_v14  ;;  %v6383_v17 = vmul.f32 0.0, %v15122_v10 }
 0xe2b   :  { %v12818_v46 = vpop.eup %12817 }
 0xe2c   :  { %v15235_v37 = vsel %vm6650_vm7, %v6649_v25, %v6648_v47  ;;  %v12820_v56 = vpop.eup %12819  ;;  %v6477_v61 = vadd.f32 1.0, %v12818_v46 }
 0xe2d   :  { %v12822_v40 = vpop.eup %12821  ;;  %v6475_v34 = vadd.f32 1.0, %v12820_v56  ;;  %v6628_v56 = vadd.f32 %v6620_v39, %v6612_v54  ;;  %v6337_v39 = vsub.f32 1.0, %v15133_v55 }
 0xe2e   :  { %v12824_v32 = vpop.eup %12823  ;;  %v6478_v11 = vadd.f32 1.0, %v12822_v40  ;;  %v6485_v44 = vmul.f32 0.5, %v6477_v61 }
 0xe2f   :  { %v12826_v47 = vpop.eup %12825  ;;  %v6479_v35 = vadd.f32 1.0, %v12824_v32  ;;  %v6483_v50 = vmul.f32 0.5, %v6475_v34 }
 0xe30   :  { %v6486_v1 = vmul.f32 0.5, %v6478_v11  ;;  %v6480_v16 = vadd.f32 1.0, %v12826_v47  ;;  %v6573_v6 = vsub.f32 1.0, %v6485_v44  ;;  %v12828_v30 = vpop.eup %12827  ;;  %v6621_v7 = vmul.f32 0.0, %v6485_v44 }
 0xe31   :  { %v6487_v25 = vmul.f32 0.5, %v6479_v35  ;;  %v6571_v8 = vsub.f32 1.0, %v6483_v50  ;;  %v6619_v5 = vmul.f32 0.0, %v6483_v50  ;;  %v6481_v52 = vadd.f32 1.0, %v12828_v30  ;;  %v12830_v46 = vpop.eup %12829 }
 0xe32   :  { %v6613_v58 = vmul.f32 %v6592_v3, %v6573_v6  ;;  %v6574_v31 = vsub.f32 1.0, %v6486_v1  ;;  %v6488_v41 = vmul.f32 0.5, %v6480_v16  ;;  %v6622_v15 = vmul.f32 0.0, %v6486_v1 }
 0xe33   :  { %v6611_v57 = vmul.f32 %v15211_v2, %v6571_v8  ;;  %v6575_v9 = vsub.f32 1.0, %v6487_v25  ;;  %v6623_v3 = vmul.f32 0.0, %v6487_v25  ;;  %v6336_v2 = vsub.f32 1.0, %v15127_v28 }
 0xe34   :  { %v6614_v23 = vmul.f32 %v6594_v19, %v6574_v31  ;;  %v6629_v32 = vadd.f32 %v6621_v7, %v6613_v58  ;;  %v6384_v47 = vmul.f32 0.0, %v15127_v28  ;;  %v6576_v44 = vsub.f32 1.0, %v6488_v41 }
 0xe35   :  { %v6627_v42 = vadd.f32 %v6619_v5, %v6611_v57  ;;  %v6624_v50 = vmul.f32 0.0, %v6488_v41  ;;  %v6489_v14 = vmul.f32 0.5, %v6481_v52  ;;  %v6482_v1 = vadd.f32 1.0, %v12830_v46 }
 0xe36   :  { %v6676_v16 = vrot.slane %v6628_v56, 6  ;;  %v6630_v6 = vadd.f32 %v6622_v15, %v6614_v23  ;;  %v6678_v54 = vrot.slane %v6629_v32, 5  ;;  %v6385_v57 = vmul.f32 0.0, %v15133_v55 }
 0xe37   :  { %v6675_v5 = vrot.slane %v6627_v42, 7  ;;  %v6577_v41 = vsub.f32 1.0, %v6489_v14  ;;  %v6490_v7 = vmul.f32 0.5, %v6482_v1  ;;  %v6338_v55 = vsub.f32 1.0, %v15138_v21 }
 0xe39   :  { %v6677_v15 = vsel %vm6644_vm5, %v6676_v16, %v6675_v5 }
 0xe3a   :  { %v6679_v56 = vsel %vm6647_vm6, %v6678_v54, %v6677_v15  ;;  %v15299_v15 = vld [vmem:[#allocation14 + $0x40] sm:$0xff] }
 0xe4f   :  { %v6356_v36 = vpop.permute.xlu0 %6355 }
 0xe50   :  { %v6375_v40 = vmul.f32 %v6356_v36, %v6335_v27  ;;  %v6596_v61 = vpop.permute.xlu1 %6595  ;;  %v6680_v36 = vrot.slane %v6630_v6, 4 }
 0xe51   :  { %v6615_v34 = vmul.f32 %v6596_v61, %v6575_v9 }
 0xe52   :  { %v6391_v11 = vadd.f32 %v6383_v17, %v6375_v40  ;;  %v6625_v17 = vmul.f32 0.0, %v6489_v14  ;;  %v6681_v42 = vsel %vm6650_vm7, %v6680_v36, %v6679_v56  ;;  %v6626_v14 = vmul.f32 0.0, %v6490_v7  ;;  %v15302_v36 = vld [vmem:[#allocation14 + $0x38] sm:$0xff] }
 0xe53   :  { %v6358_v35 = vpop.permute.xlu0 %6357  ;;  %v6631_v25 = vadd.f32 %v6623_v3, %v6615_v34  ;;  %v15314_v56 = vld [vmem:[#allocation14 + $0x18] sm:$0xff] }
 0xe54   :  { %v6652_v10 = vrot.slane %v6391_v11, 4  ;;  %v6376_v30 = vmul.f32 %v6358_v35, %v6336_v2  ;;  %v6598_v8 = vpop.permute.xlu1 %6597  ;;  %v6578_v2 = vsub.f32 1.0, %v6490_v7  ;;  %v15296_v7 = vld [vmem:[#allocation14 + $0x48] sm:$0xff] }
 0xe55   :  { %v6616_v19 = vmul.f32 %v6598_v8, %v6576_v44  ;;  %v6682_v23 = vrot.slane %v6631_v25, 3 }
 0xe56   :  { %v6654_v28 = vsel %vm6653_vm8, %v6652_v10, %v15235_v37  ;;  %v6392_v58 = vadd.f32 %v6384_v47, %v6376_v30  ;;  %v6386_v47 = vmul.f32 0.0, %v15138_v21 }
 0xe57   :  { %v6632_v31 = vadd.f32 %v6624_v50, %v6616_v19  ;;  %v6360_v27 = vpop.permute.xlu0 %6359  ;;  %v6683_v16 = vsel %vm6653_vm8, %v6682_v23, %v6681_v42  ;;  %v15317_v23 = vld [vmem:[#allocation14 + $0x10] sm:$0xff] }
 0xe58   :  { %v6655_v9 = vrot.slane %v6392_v58, 3  ;;  %v6377_v52 = vmul.f32 %v6360_v27, %v6337_v39  ;;  %v6600_v46 = vpop.permute.xlu1 %6599  ;;  %v15280_v58 = vld [vmem:[#allocation14 + $0x70] sm:$0xff]  ;;  %v15290_v27 = vld [vmem:[#allocation14 + $0x58] sm:$0xff] }
 0xe59   :  { %v6617_v40 = vmul.f32 %v6600_v46, %v6577_v41  ;;  %v6684_v37 = vrot.slane %v6632_v31, 2  ;;  %v15287_v31 = vld [vmem:[#allocation14 + $0x60] sm:$0xff]  ;;  %v15293_v41 = vld [vmem:[#allocation14 + $0x50] sm:$0xff] }
 0xe5a   :  { %v6393_v61 = vadd.f32 %v6385_v57, %v6377_v52  ;;  %v6657_v32 = vsel %vm6656_vm9, %v6655_v9, %v6654_v28  ;;  %v15284_v57 = vld [vmem:[#allocation14 + $0x68] sm:$0xff]  ;;  %v15305_v9 = vld [vmem:[#allocation14 + $0x30] sm:$0xff]  ;;  %v15311_v46 = vld [vmem:[#allocation14 + $0x20] sm:$0xff] }
 0xe5b   :  { %v6633_v3 = vadd.f32 %v6625_v17, %v6617_v40  ;;  %v6362_v34 = vpop.permute.xlu0 %6361  ;;  %v6685_v10 = vsel %vm6656_vm9, %v6684_v37, %v6683_v16  ;;  %v15308_v52 = vld [vmem:[#allocation14 + $0x28] sm:$0xff]  ;;  %v15323_v40 = vld [vmem:[#allocation14] sm:$0xff]  ;;  %v15326_v37 = vld [vmem:[#allocation14 + $0x78] sm:$0xff] }
 0xe5c   :  { %v6658_v11 = vrot.slane %v6393_v61, 2  ;;  %v6378_v44 = vmul.f32 %v6362_v34, %v6338_v55  ;;  %v6602_v35 = vpop.permute.xlu1 %6601  ;;  %v15320_v17 = vld [vmem:[#allocation14 + $0x8] sm:$0xff] }
 0xe5d   :  { %v6686_v50 = vrot.slane %v6633_v3, 1  ;;  %v6618_v1 = vmul.f32 %v6602_v35, %v6578_v2 }
 0xe5e   :  { %v6394_v6 = vadd.f32 %v6386_v47, %v6378_v44  ;;  %v6660_v30 = vsel %vm6659_vm10, %v6658_v11, %v6657_v32 }
 0xe5f   :  { %v6634_v8 = vadd.f32 %v6626_v14, %v6618_v1  ;;  %v6687_v54 = vsel %vm6659_vm10, %v6686_v50, %v6685_v10 }
 0xe60   :  { %v6661_v25 = vrot.slane %v6394_v6, 1 }
 0xe61   :  { %v6688_v19 = vsel %vm6662_vm11, %v6634_v8, %v6687_v54 }
 0xe62   :  { %6689 = vrot.lane.b32.xlu1 %v6688_v19, %s13757_s2  ;;  %v6663_v21 = vsel %vm6662_vm11, %v6661_v25, %v6660_v30 }
 0xe63   :  { %6664 = vrot.lane.b32.xlu0 %v6663_v21, %s13761_s11 }
 0xed4   :  { %v6690_v39 = vpop.permute.xlu1 %6689 }
 0xed5   :  { %v6665_v5 = vpop.permute.xlu0 %6664 }
 0xed6   :  { %v15276_v28 = vsel %vm254_vm0, %v6665_v5, %v6690_v39 }
 0xed7   :  { %17572 = vst [vmem:[#allocation52_spill] sm:$0xff] %v15276_v28  ;;  %12022 = vmatmul.mubr.msk.f32.vlgmr.msra.gmra.mxu1 %vm6120_vm12, %v15276_v28 }
 0xed8   :  { %7979 = vmatpush1.msra.mxu1 %v15280_v58  ;;  %8026 = vmatprep.mubr.f32.mxu1 %v17458_v12 }
 0xed9   :  { %7980 = vmatprep.subr.mxu1 %v15284_v57 }
 0xeda   :  { %7981 = vmatpush1.msra.mxu1 %v15287_v31 }
 0xedb   :  { %7982 = vmatprep.subr.mxu1 %v15290_v27 }
 0xedc   :  { %7983 = vmatpush1.msra.mxu1 %v15293_v41 }
 0xedd   :  { %7984 = vmatprep.subr.mxu1 %v15296_v7 }
 0xede   :  { %7985 = vmatpush1.msra.mxu1 %v15299_v15 }
 0xedf   :  { %7986 = vmatprep.subr.mxu1 %v15302_v36 }
 0xee0   :  { %7987 = vmatpush1.msra.mxu1 %v15305_v9 }
 0xee1   :  { %7988 = vmatprep.subr.mxu1 %v15308_v52 }
 0xee2   :  { %7989 = vmatpush1.msra.mxu1 %v15311_v46 }
 0xee3   :  { %7990 = vmatprep.subr.mxu1 %v15314_v56 }
 0xee4   :  { %7991 = vmatpush1.msra.mxu1 %v15317_v23 }
 0xee5   :  { %7992 = vmatprep.subr.mxu1 %v15320_v17 }
 0xee6   :  { %7993 = vmatpush1.msra.mxu1 %v15323_v40 }
 0xee7   :  { %9244 = vmatprep.subr.mxu1 %v15326_v37 }
 0xf97   :  { %v6763_v61 = vpop.f32.mrf.mxu1 }
 0xf98   :  { %v15330_v55 = vadd.f32 %v6763_v61, %v14951_v24 }
 0xf99   :  { %v6765_v2 = vpop.f32.mrf.mxu1 }
 0xf9a   :  { %6826 = vrot.lane.b32.xlu0 %v15330_v55, %s13762_s19  ;;  %v15335_v32 = vrot.slane %v15330_v55, 1  ;;  %v6771_v3 = vrot.slane %v15330_v55, 2  ;;  %v15342_v34 = vrot.slane %v15330_v55, 7  ;;  %v6772_v42 = vrot.slane %v15330_v55, 3 }
 0xf9b   :  { %v15348_v11 = vadd.f32 %v6765_v2, %v14955_v59  ;;  %v6774_v47 = vrot.slane %v15330_v55, 5  ;;  %v6773_v44 = vrot.slane %v15330_v55, 4  ;;  %v6775_v14 = vrot.slane %v15330_v55, 6 }
 0xf9c   :  { %6828 = vrot.lane.b32.xlu1 %v15335_v32, %s13762_s19  ;;  %v6785_v8 = vadd.f32 %v15330_v55, %v15040_v43  ;;  %v6786_v54 = vadd.f32 %v15335_v32, %v15047_v13  ;;  %v6787_v19 = vadd.f32 %v6771_v3, %v15056_v0  ;;  %v6784_v39 = vadd.f32 %v15342_v34, %v15032_v49 }
 0xf9d   :  { %v17465_v35 = vrot.slane %v15348_v11, 2  ;;  %v17466_v50 = vrot.slane %v15348_v11, 3  ;;  %v17463_v1 = vrot.slane %v15348_v11, 4  ;;  %v17462_v16 = vrot.slane %v15348_v11, 5 }
 0xf9e   :  { %6830 = vrot.lane.b32.xlu0 %v6771_v3, %s13762_s19  ;;  %v17461_v6 = vrot.slane %v15348_v11, 6  ;;  %v17460_v10 = vrot.slane %v15348_v11, 7  ;;  %v17464_v30 = vrot.slane %v15348_v11, 1  ;;  %v6793_v25 = vmul.f32 0.5, %v6785_v8 }
 0xf9f   :  { %v6794_v21 = vmul.f32 0.5, %v6786_v54  ;;  %v6795_v5 = vmul.f32 0.5, %v6787_v19  ;;  %v6788_v61 = vadd.f32 %v6772_v42, %v15089_v62  ;;  %v6792_v2 = vmul.f32 0.5, %v6784_v39 }
 0xfa0   :  { %6824 = vrot.lane.b32.xlu1 %v15342_v34, %s13762_s19  ;;  %12831 = vtanh.f32 %v6793_v25  ;;  %v6790_v12 = vadd.f32 %v6774_v47, %v15107_v18  ;;  %v6791_v19 = vadd.f32 %v6775_v14, %v15116_v26  ;;  %v7001_v39 = vadd.f32 %v6773_v44, %v15047_v13 }
 0xfa1   :  { %12833 = vtanh.f32 %v6794_v21 }
 0xfa2   :  { %6832 = vrot.lane.b32.xlu0 %v6772_v42, %s13762_s19  ;;  %12835 = vtanh.f32 %v6795_v5  ;;  %v6798_v8 = vmul.f32 0.5, %v6790_v12 }
 0xfa3   :  { %12837 = vtanh.f32 %v6792_v2  ;;  %v7002_v2 = vadd.f32 %v6774_v47, %v15056_v0 }
 0xfa4   :  { %6836 = vrot.lane.b32.xlu1 %v6774_v47, %s13762_s19 }
 0xfa6   :  { %6834 = vrot.lane.b32.xlu0 %v6773_v44, %s13762_s19 }
 0xfa8   :  { %7095 = vrot.lane.b32.xlu1 %v17465_v35, %s13762_s19 }
 0xfaa   :  { %7097 = vrot.lane.b32.xlu0 %v17466_v50, %s13762_s19 }
 0xfac   :  { %6838 = vrot.lane.b32.xlu1 %v6775_v14, %s13762_s19 }
 0xfad   :  { %v12832_v5 = vpop.eup %12831 }
 0xfae   :  { %7099 = vrot.lane.b32.xlu0 %v17463_v1, %s13762_s19  ;;  %v7000_v1 = vadd.f32 %v6772_v42, %v15040_v43  ;;  %v12834_v12 = vpop.eup %12833  ;;  %v7005_v42 = vadd.f32 %v15330_v55, %v15107_v18  ;;  %v7006_v55 = vadd.f32 %v15335_v32, %v15116_v26 }
 0xfb0   :  { %7101 = vrot.lane.b32.xlu1 %v17462_v16, %s13762_s19  ;;  %v6999_v16 = vadd.f32 %v6771_v3, %v15032_v49  ;;  %v7008_v21 = vmul.f32 0.5, %v7000_v1  ;;  %v7009_v3 = vmul.f32 0.5, %v7001_v39  ;;  %v7010_v1 = vmul.f32 0.5, %v7002_v2 }
 0xfb1   :  { %v7014_v32 = vmul.f32 0.5, %v7006_v55 }
 0xfb2   :  { %7107 = vrot.lane.b32.xlu0 %v15348_v11, %s13762_s19  ;;  %v7007_v25 = vmul.f32 0.5, %v6999_v16  ;;  %v7003_v16 = vadd.f32 %v6775_v14, %v15089_v62 }
 0xfb4   :  { %7103 = vrot.lane.b32.xlu1 %v17461_v6, %s13762_s19  ;;  %v6789_v6 = vadd.f32 %v6773_v44, %v15098_v38  ;;  %v7004_v44 = vadd.f32 %v15342_v34, %v15098_v38  ;;  %v7011_v39 = vmul.f32 0.5, %v7003_v16 }
 0xfb6   :  { %7105 = vrot.lane.b32.xlu0 %v17460_v10, %s13762_s19  ;;  %v6796_v10 = vmul.f32 0.5, %v6788_v61  ;;  %v6797_v54 = vmul.f32 0.5, %v6789_v6  ;;  %v6799_v61 = vmul.f32 0.5, %v6791_v19  ;;  %v12836_v6 = vpop.eup %12835  ;;  %v7012_v34 = vmul.f32 0.5, %v7004_v44 }
 0xfb7   :  { %v6811_v47 = vadd.f32 1.0, %v12836_v6 }
 0xfb8   :  { %7109 = vrot.lane.b32.xlu1 %v17464_v30, %s13762_s19  ;;  %12839 = vtanh.f32 %v6796_v10  ;;  %v6809_v30 = vadd.f32 1.0, %v12832_v5  ;;  %v6810_v10 = vadd.f32 1.0, %v12834_v12 }
 0xfb9   :  { %12841 = vtanh.f32 %v6798_v8  ;;  %v12838_v8 = vpop.eup %12837 }
 0xfba   :  { %12843 = vtanh.f32 %v6797_v54  ;;  %v15407_v54 = vmul.f32 0.5, %v6809_v30  ;;  %v15412_v5 = vmul.f32 0.5, %v6810_v10 }
 0xfbb   :  { %12845 = vtanh.f32 %v7007_v25  ;;  %v7013_v25 = vmul.f32 0.5, %v7005_v42 }
 0xfbc   :  { %12847 = vtanh.f32 %v7008_v21 }
 0xfbd   :  { %12849 = vtanh.f32 %v6799_v61  ;;  %v6808_v61 = vadd.f32 1.0, %v12838_v8 }
 0xfbe   :  { %12851 = vtanh.f32 %v7009_v3  ;;  %v15416_v3 = vmul.f32 0.5, %v6811_v47 }
 0xfbf   :  { %12853 = vtanh.f32 %v7010_v1  ;;  %v15420_v10 = vmul.f32 0.5, %v6808_v61 }
 0xfc0   :  { %12855 = vtanh.f32 %v7013_v25 }
 0xfc1   :  { %12857 = vtanh.f32 %v7011_v39 }
 0xfc2   :  { %12859 = vtanh.f32 %v7012_v34 }
 0xfc3   :  { %12861 = vtanh.f32 %v7014_v32 }
 0xfc5   :  { %v12840_v19 = vpop.eup %12839 }
 0xfc6   :  { %v12842_v2 = vpop.eup %12841  ;;  %v6812_v42 = vadd.f32 1.0, %v12840_v19 }
 0xfc7   :  { %v12844_v6 = vpop.eup %12843  ;;  %v6814_v1 = vadd.f32 1.0, %v12842_v2 }
 0xfc8   :  { %v12846_v8 = vpop.eup %12845  ;;  %v15424_v47 = vmul.f32 0.5, %v6812_v42  ;;  %v6813_v25 = vadd.f32 1.0, %v12844_v6 }
 0xfc9   :  { %v12848_v19 = vpop.eup %12847  ;;  %v15428_v61 = vmul.f32 0.5, %v6814_v1  ;;  %v7023_v2 = vadd.f32 1.0, %v12846_v8 }
 0xfca   :  { %v12850_v39 = vpop.eup %12849  ;;  %v15432_v42 = vmul.f32 0.5, %v6813_v25  ;;  %v7024_v6 = vadd.f32 1.0, %v12848_v19 }
 0xfcb   :  { %v12852_v34 = vpop.eup %12851  ;;  %v6815_v1 = vadd.f32 1.0, %v12850_v39 }
 0xfcc   :  { %v7032_v35 = vmul.f32 0.5, %v7024_v6 }
 0xfcd   :  { %v15438_v19 = vmul.f32 0.5, %v6815_v1 }
0x100c   :  { %v6827_v21 = vpop.permute.xlu0 %6826 }
0x100d   :  { %v6849_v14 = vmul.f32 %v6827_v21, %v15407_v54 }
0x100e   :  { %v6829_v12 = vpop.permute.xlu1 %6828 }
0x100f   :  { %v6850_v30 = vmul.f32 %v6829_v12, %v15412_v5  ;;  %6866 = vrot.lane.b32.xlu0 %v6849_v14, %s13762_s19 }
0x1010   :  { %v6831_v16 = vpop.permute.xlu0 %6830 }
0x1011   :  { %v6851_v21 = vmul.f32 %v6831_v16, %v15416_v3  ;;  %6868 = vrot.lane.b32.xlu1 %v6850_v30, %s13762_s19 }
0x1012   :  { %v6825_v44 = vpop.permute.xlu1 %6824 }
0x1013   :  { %v6848_v12 = vmul.f32 %v6825_v44, %v15420_v10  ;;  %6870 = vrot.lane.b32.xlu0 %v6851_v21, %s13762_s19 }
0x1014   :  { %v6833_v55 = vpop.permute.xlu0 %6832 }
0x1015   :  { %v6852_v14 = vmul.f32 %v6833_v55, %v15424_v47  ;;  %6864 = vrot.lane.b32.xlu1 %v6848_v12, %s13762_s19  ;;  %v7031_v12 = vmul.f32 0.5, %v7023_v2  ;;  %v12854_v55 = vpop.eup %12853 }
0x1016   :  { %v6837_v30 = vpop.permute.xlu1 %6836  ;;  %v12856_v50 = vpop.eup %12855  ;;  %v7026_v51 = vadd.f32 1.0, %v12854_v55 }
0x1017   :  { %v6854_v16 = vmul.f32 %v6837_v30, %v15428_v61  ;;  %6872 = vrot.lane.b32.xlu0 %v6852_v14, %s13762_s19  ;;  %v7025_v30 = vadd.f32 1.0, %v12852_v34 }
0x1018   :  { %v6835_v21 = vpop.permute.xlu0 %6834  ;;  %v7034_v34 = vmul.f32 0.5, %v7026_v51 }
0x1019   :  { %v6853_v44 = vmul.f32 %v6835_v21, %v15432_v42  ;;  %6876 = vrot.lane.b32.xlu1 %v6854_v16, %s13762_s19  ;;  %v12858_v21 = vpop.eup %12857  ;;  %v7033_v39 = vmul.f32 0.5, %v7025_v30  ;;  %v7029_v16 = vadd.f32 1.0, %v12856_v50 }
0x101a   :  { %v7096_v8 = vpop.permute.xlu1 %7095 }
0x101b   :  { %v7119_v32 = vmul.f32 %v7096_v8, %v7031_v12  ;;  %6874 = vrot.lane.b32.xlu0 %v6853_v44, %s13762_s19  ;;  %v12860_v12 = vpop.eup %12859  ;;  %v7037_v55 = vmul.f32 0.5, %v7029_v16  ;;  %v6952_v16 = vrot.slane %v15276_v28, 7 }
0x101c   :  { %v7098_v14 = vpop.permute.xlu0 %7097  ;;  %v12862_v8 = vpop.eup %12861 }
0x101d   :  { %v7120_v25 = vmul.f32 %v7098_v14, %v7032_v35  ;;  %7135 = vrot.lane.b32.xlu1 %v7119_v32, %s13762_s19  ;;  %v7027_v35 = vadd.f32 1.0, %v12858_v21  ;;  %v7028_v14 = vadd.f32 1.0, %v12860_v12  ;;  %v7030_v50 = vadd.f32 1.0, %v12862_v8 }
0x101e   :  { %v6839_v22 = vpop.permute.xlu1 %6838  ;;  %v6953_v12 = vrot.slane %v15276_v28, 1  ;;  %v6958_v8 = vrot.slane %v15276_v28, 6 }
0x101f   :  { %v6855_v2 = vmul.f32 %v6839_v22, %v15438_v19  ;;  %7137 = vrot.lane.b32.xlu0 %v7120_v25, %s13762_s19  ;;  %v7035_v30 = vmul.f32 0.5, %v7027_v35  ;;  %v6957_v35 = vrot.slane %v15276_v28, 5 }
0x1020   :  { %v7100_v44 = vpop.permute.xlu0 %7099 }
0x1021   :  { %v7121_v6 = vmul.f32 %v7100_v44, %v7033_v39  ;;  %6878 = vrot.lane.b32.xlu1 %v6855_v2, %s13762_s19  ;;  %v7036_v2 = vmul.f32 0.5, %v7028_v14  ;;  %v7038_v39 = vmul.f32 0.5, %v7030_v50 }
0x1022   :  { %v7102_v32 = vpop.permute.xlu1 %7101 }
0x1023   :  { %v7122_v1 = vmul.f32 %v7102_v32, %v7034_v34  ;;  %7139 = vrot.lane.b32.xlu0 %v7121_v6, %s13762_s19  ;;  %v6956_v34 = vrot.slane %v15276_v28, 4 }
0x1024   :  { %v7108_v60 = vpop.permute.xlu0 %7107 }
0x1025   :  { %v7125_v22 = vmul.f32 %v7108_v60, %v7037_v55  ;;  %7141 = vrot.lane.b32.xlu1 %v7122_v1, %s13762_s19  ;;  %v6954_v60 = vrot.slane %v15276_v28, 2 }
0x1026   :  { %v7104_v25 = vpop.permute.xlu1 %7103 }
0x1027   :  { %v7123_v59 = vmul.f32 %v7104_v25, %v7035_v30  ;;  %7147 = vrot.lane.b32.xlu0 %v7125_v22, %s13762_s19 }
0x1028   :  { %v7106_v51 = vpop.permute.xlu0 %7105 }
0x1029   :  { %v7124_v21 = vmul.f32 %v7106_v51, %v7036_v2  ;;  %7143 = vrot.lane.b32.xlu1 %v7123_v59, %s13762_s19  ;;  %v6955_v59 = vrot.slane %v15276_v28, 3 }
0x102a   :  { %v7110_v44 = vpop.permute.xlu1 %7109 }
0x102b   :  { %v7126_v6 = vmul.f32 %v7110_v44, %v7038_v39  ;;  %7145 = vrot.lane.b32.xlu0 %v7124_v21, %s13762_s19 }
0x102d   :  { %7149 = vrot.lane.b32.xlu1 %v7126_v6, %s13762_s19 }
0x102f   :  { %7223 = vrot.lane.b32.xlu0 %v6954_v60, %s13761_s11 }
0x1031   :  { %6961 = vrot.lane.b32.xlu1 %v15276_v28, %s13757_s2 }
0x1033   :  { %6959 = vrot.lane.b32.xlu0 %v6952_v16, %s13757_s2 }
0x1035   :  { %7225 = vrot.lane.b32.xlu1 %v6955_v59, %s13761_s11 }
0x1039   :  { %6963 = vrot.lane.b32.xlu1 %v6953_v12, %s13757_s2 }
0x103d   :  { %7227 = vrot.lane.b32.xlu1 %v6956_v34, %s13761_s11 }
0x1041   :  { %6965 = vrot.lane.b32.xlu1 %v6954_v60, %s13757_s2 }
0x1045   :  { %7229 = vrot.lane.b32.xlu1 %v6957_v35, %s13761_s11 }
0x1049   :  { %6967 = vrot.lane.b32.xlu1 %v6955_v59, %s13757_s2 }
0x104d   :  { %7231 = vrot.lane.b32.xlu1 %v6958_v8, %s13761_s11 }
0x1051   :  { %6969 = vrot.lane.b32.xlu1 %v6956_v34, %s13757_s2 }
0x1055   :  { %6971 = vrot.lane.b32.xlu1 %v6957_v35, %s13757_s2 }
0x1059   :  { %7235 = vrot.lane.b32.xlu1 %v15276_v28, %s13761_s11 }
0x105d   :  { %6973 = vrot.lane.b32.xlu1 %v6958_v8, %s13757_s2 }
0x1081   :  { %v6867_v32 = vpop.permute.xlu0 %6866 }
0x1082   :  { %v6889_v1 = vadd.f32 %v6867_v32, %v15040_v43 }
0x1083   :  { %v6869_v55 = vpop.permute.xlu1 %6868 }
0x1084   :  { %12863 = vtanh.f32 %v6889_v1  ;;  %v6890_v14 = vadd.f32 %v6869_v55, %v15047_v13 }
0x1085   :  { %v6871_v22 = vpop.permute.xlu0 %6870 }
0x1086   :  { %v6891_v30 = vadd.f32 %v6871_v22, %v15056_v0  ;;  %12865 = vtanh.f32 %v6890_v14  ;;  %v6908_v0 = vsub.f32 1.0, %v15424_v47 }
0x1087   :  { %v6865_v50 = vpop.permute.xlu1 %6864 }
0x1088   :  { %12867 = vtanh.f32 %v6891_v30  ;;  %v6888_v25 = vadd.f32 %v6865_v50, %v15032_v49 }
0x1089   :  { %v6873_v2 = vpop.permute.xlu0 %6872 }
0x108a   :  { %12869 = vtanh.f32 %v6888_v25  ;;  %v6892_v21 = vadd.f32 %v6873_v2, %v15089_v62  ;;  %v6906_v62 = vsub.f32 1.0, %v15412_v5 }
0x108b   :  { %v6877_v51 = vpop.permute.xlu1 %6876 }
0x108c   :  { %12871 = vtanh.f32 %v6892_v21  ;;  %v6894_v32 = vadd.f32 %v6877_v51, %v15107_v18  ;;  %v17577_v18 = vrot.slane %v15348_v11, 5 }
0x108d   :  { %v6875_v39 = vpop.permute.xlu0 %6874 }
0x108e   :  { %v6893_v44 = vadd.f32 %v6875_v39, %v15098_v38 }
0x108f   :  { %v7136_v6 = vpop.permute.xlu1 %7135 }
0x1090   :  { %12873 = vtanh.f32 %v6893_v44  ;;  %v7159_v44 = vadd.f32 %v7136_v6, %v15150_v33 }
0x1091   :  { %v12864_v60 = vpop.eup %12863  ;;  %v7138_v59 = vpop.permute.xlu0 %7137 }
0x1092   :  { %v7160_v34 = vadd.f32 %v7138_v59, %v15157_v20  ;;  %6922 = vrot.lane.b32.xlu0 %v12864_v60, %s13761_s11 }
0x1093   :  { %v6879_v35 = vpop.permute.xlu1 %6878  ;;  %v12866_v8 = vpop.eup %12865 }
0x1094   :  { %12875 = vtanh.f32 %v7160_v34  ;;  %v6895_v2 = vadd.f32 %v6879_v35, %v15116_v26 }
0x1095   :  { %v12868_v1 = vpop.eup %12867  ;;  %v7140_v55 = vpop.permute.xlu0 %7139  ;;  %12877 = vtanh.f32 %v6894_v32 }
0x1096   :  { %6924 = vrot.lane.b32.xlu0 %v12866_v8, %s13761_s11  ;;  %6926 = vrot.lane.b32.xlu1 %v12868_v1, %s13761_s11  ;;  %v7161_v34 = vadd.f32 %v7140_v55, %v15163_v53 }
0x1097   :  { %v7142_v14 = vpop.permute.xlu1 %7141  ;;  %v12870_v22 = vpop.eup %12869 }
0x1098   :  { %v7162_v8 = vadd.f32 %v7142_v14, %v15167_v45 }
0x1099   :  { %v7148_v30 = vpop.permute.xlu0 %7147  ;;  %v12872_v51 = vpop.eup %12871 }
0x109a   :  { %v7165_v50 = vadd.f32 %v7148_v30, %v15194_v4  ;;  %6920 = vrot.lane.b32.xlu0 %v12870_v22, %s13761_s11 }
0x109b   :  { %v7144_v25 = vpop.permute.xlu1 %7143 }
0x109c   :  { %12879 = vtanh.f32 %v7165_v50  ;;  %v7163_v6 = vadd.f32 %v7144_v25, %v15182_v48 }
0x109d   :  { %v12874_v39 = vpop.eup %12873  ;;  %12881 = vtanh.f32 %v6895_v2  ;;  %v7146_v22 = vpop.permute.xlu0 %7145 }
0x109e   :  { %6928 = vrot.lane.b32.xlu0 %v12872_v51, %s13761_s11  ;;  %v7164_v55 = vadd.f32 %v7146_v22, %v15188_v29 }
0x109f   :  { %v7150_v21 = vpop.permute.xlu1 %7149 }
0x10a0   :  { %v7166_v60 = vadd.f32 %v7150_v21, %v15199_v63 }
0x10a1   :  { %v12876_v59 = vpop.eup %12875 }
0x10a2   :  { %12883 = vtanh.f32 %v7166_v60  ;;  %7193 = vrot.lane.b32.xlu1 %v12876_v59, %s13761_s11  ;;  %6930 = vrot.lane.b32.xlu0 %v12874_v39, %s13761_s11  ;;  %v12878_v35 = vpop.eup %12877 }
0x10a3   :  { %12885 = vtanh.f32 %v7159_v44  ;;  %v6962_v21 = vpop.permute.xlu1 %6961 }
0x10a4   :  { %12887 = vtanh.f32 %v7161_v34 }
0x10a5   :  { %12889 = vtanh.f32 %v7162_v8 }
0x10a6   :  { %6932 = vrot.lane.b32.xlu0 %v12878_v35, %s13761_s11  ;;  %12891 = vtanh.f32 %v7163_v6  ;;  %v17573_v6 = vrot.slane %v15348_v11, 3 }
0x10a7   :  { %12893 = vtanh.f32 %v7164_v55  ;;  %v15514_v39 = vpop.permute.xlu1 %7225 }
0x10a9   :  { %v12880_v32 = vpop.eup %12879 }
0x10aa   :  { %7203 = vrot.lane.b32.xlu0 %v12880_v32, %s13761_s11  ;;  %v12882_v1 = vpop.eup %12881  ;;  %v15522_v32 = vpop.permute.xlu0 %7223 }
0x10ae   :  { %6934 = vrot.lane.b32.xlu0 %v12882_v1, %s13761_s11  ;;  %v7056_v1 = vadd.f32 %v17573_v6, %v15157_v20  ;;  %v6960_v22 = vpop.permute.xlu0 %6959  ;;  %v17576_v6 = vrot.slane %v15348_v11, 4 }
0x10af   :  { %v12884_v30 = vpop.eup %12883 }
0x10b0   :  { %7205 = vrot.lane.b32.xlu1 %v12884_v30, %s13761_s11  ;;  %v12886_v50 = vpop.eup %12885  ;;  %v17574_v30 = vrot.slane %v15348_v11, 2  ;;  %v7057_v20 = vadd.f32 %v17576_v6, %v15163_v53  ;;  %v17578_v53 = vrot.slane %v15348_v11, 6 }
0x10b1   :  { %v12888_v14 = vpop.eup %12887 }
0x10b2   :  { %7191 = vrot.lane.b32.xlu0 %v12886_v50, %s13761_s11  ;;  %v12890_v25 = vpop.eup %12889  ;;  %v7055_v55 = vadd.f32 %v17574_v30, %v15150_v33  ;;  %v7064_v50 = vmul.f32 0.5, %v7056_v1  ;;  %v7058_v30 = vadd.f32 %v17577_v18, %v15167_v45  ;;  %v6905_v1 = vsub.f32 1.0, %v15407_v54 }
0x10b3   :  { %v12892_v2 = vpop.eup %12891  ;;  %v7065_v33 = vmul.f32 0.5, %v7057_v20  ;;  %v7059_v18 = vadd.f32 %v17578_v53, %v15182_v48 }
0x10b4   :  { %7237 = vrot.lane.b32.xlu1 %v6953_v12, %s13761_s11  ;;  %v12894_v51 = vpop.eup %12893  ;;  %v6964_v12 = vpop.permute.xlu1 %6963  ;;  %v7063_v28 = vmul.f32 0.5, %v7055_v55  ;;  %12895 = vtanh.f32 %v7064_v50  ;;  %v6904_v55 = vsub.f32 1.0, %v15420_v10  ;;  %v7066_v6 = vmul.f32 0.5, %v7058_v30 }
0x10b5   :  { %v6985_v43 = vmul.f32 %v6964_v12, %v15412_v5  ;;  %v7067_v53 = vmul.f32 0.5, %v7059_v18  ;;  %v17579_v5 = vrot.slane %v15348_v11, 7 }
0x10b6   :  { %7195 = vrot.lane.b32.xlu0 %v12888_v14, %s13761_s11  ;;  %v17575_v14 = vrot.slane %v15348_v11, 1  ;;  %12897 = vtanh.f32 %v7063_v28 }
0x10b7   :  { %v7060_v12 = vadd.f32 %v17579_v5, %v15188_v29 }
0x10b8   :  { %v15516_v44 = vpop.permute.xlu1 %7227 }
0x10ba   :  { %7197 = vrot.lane.b32.xlu0 %v12890_v25, %s13761_s11  ;;  %v7062_v25 = vadd.f32 %v17575_v14, %v15199_v63 }
0x10bc   :  { %v6966_v60 = vpop.permute.xlu1 %6965  ;;  %v7070_v26 = vmul.f32 0.5, %v7062_v25  ;;  %v6984_v25 = vmul.f32 %v6962_v21, %v15407_v54  ;;  %v7061_v54 = vadd.f32 %v15348_v11, %v15194_v4 }
0x10be   :  { %7199 = vrot.lane.b32.xlu0 %v12892_v2, %s13761_s11  ;;  %12899 = vtanh.f32 %v7070_v26  ;;  %v6907_v26 = vsub.f32 1.0, %v15416_v3 }
0x10bf   :  { %12901 = vtanh.f32 %v7065_v33 }
0x10c0   :  { %v15518_v59 = vpop.permute.xlu1 %7229  ;;  %12903 = vtanh.f32 %v7066_v6 }
0x10c1   :  { %12905 = vtanh.f32 %v7067_v53 }
0x10c2   :  { %7201 = vrot.lane.b32.xlu0 %v12894_v51, %s13761_s11 }
0x10c4   :  { %v6968_v34 = vpop.permute.xlu1 %6967 }
0x10c6   :  { %7233 = vrot.lane.b32.xlu0 %v6952_v16, %s13761_s11 }
0x10c8   :  { %v15520_v35 = vpop.permute.xlu1 %7231 }
0x10cc   :  { %v6970_v8 = vpop.permute.xlu1 %6969 }
0x10d0   :  { %v15527_v16 = vpop.permute.xlu1 %6971 }
0x10d1   :  { %v6989_v11 = vmul.f32 %v15527_v16, %v15428_v61 }
0x10d4   :  { %v15535_v51 = vpop.permute.xlu1 %7235 }
0x10d8   :  { %v15544_v14 = vpop.permute.xlu1 %6973 }
0x1104   :  { %v6923_v2 = vpop.permute.xlu0 %6922 }
0x1105   :  { %v6945_v63 = vmul.f32 %v6923_v2, %v6905_v1  ;;  %v6983_v2 = vmul.f32 %v6960_v22, %v15420_v10  ;;  %v12896_v10 = vpop.eup %12895 }
0x1107   :  { %v6992_v1 = vadd.f32 %v6984_v25, %v6945_v63  ;;  %v6986_v63 = vmul.f32 %v6966_v60, %v15416_v3  ;;  %v6910_v3 = vsub.f32 1.0, %v15428_v61  ;;  %v12898_v60 = vpop.eup %12897 }
0x1108   :  { %v6925_v38 = vpop.permute.xlu0 %6924  ;;  %v6927_v20 = vpop.permute.xlu1 %6926 }
0x1109   :  { %v6946_v28 = vmul.f32 %v6925_v38, %v6906_v62  ;;  %v6947_v30 = vmul.f32 %v6927_v20, %v6907_v26  ;;  %v6987_v62 = vmul.f32 %v6968_v34, %v15424_v47  ;;  %v7271_v22 = vrot.slane %v6992_v1, 7  ;;  %v12900_v20 = vpop.eup %12899 }
0x110a   :  { %v7080_v47 = vadd.f32 1.0, %v12896_v10  ;;  %v7068_v1 = vmul.f32 0.5, %v7060_v12 }
0x110b   :  { %v6993_v38 = vadd.f32 %v6985_v43, %v6946_v28  ;;  %v6994_v6 = vadd.f32 %v6986_v63, %v6947_v30  ;;  %v6911_v63 = vsub.f32 1.0, %v15438_v19 }
0x110c   :  { %v6921_v50 = vpop.permute.xlu0 %6920  ;;  %v7088_v53 = vmul.f32 0.5, %v7080_v47 }
0x110d   :  { %v6944_v45 = vmul.f32 %v6921_v50, %v6904_v55  ;;  %v6909_v55 = vsub.f32 1.0, %v15432_v42  ;;  %v7273_v34 = vrot.slane %v6993_v38, 6  ;;  %v7275_v26 = vrot.slane %v6994_v6, 5 }
0x110e   :  { %v6990_v6 = vmul.f32 %v15544_v14, %v15438_v19 }
0x110f   :  { %v6991_v33 = vadd.f32 %v6983_v2, %v6944_v45  ;;  %v7069_v45 = vmul.f32 0.5, %v7061_v54 }
0x1110   :  { %v6929_v49 = vpop.permute.xlu0 %6928 }
0x1111   :  { %v6948_v21 = vmul.f32 %v6929_v49, %v6908_v0  ;;  %v6988_v49 = vmul.f32 %v6970_v8, %v15432_v42  ;;  %v7272_v43 = vsel %vm6647_vm6, %v7271_v22, %v6991_v33  ;;  %12907 = vtanh.f32 %v7069_v45  ;;  %v12902_v33 = vpop.eup %12901 }
0x1112   :  { %v7274_v42 = vsel %vm6650_vm7, %v7273_v34, %v7272_v43  ;;  %12909 = vtanh.f32 %v7068_v1  ;;  %v7081_v12 = vadd.f32 1.0, %v12902_v33 }
0x1113   :  { %v6995_v0 = vadd.f32 %v6987_v62, %v6948_v21  ;;  %v7079_v21 = vadd.f32 1.0, %v12898_v60  ;;  %v7276_v38 = vsel %vm6653_vm8, %v7275_v26, %v7274_v42  ;;  %v7248_v60 = vmul.f32 %v15514_v39, %v7088_v53 }
0x1114   :  { %v6931_v50 = vpop.permute.xlu0 %6930  ;;  %v7194_v16 = vpop.permute.xlu1 %7193 }
0x1115   :  { %v6949_v25 = vmul.f32 %v6931_v50, %v6909_v55  ;;  %v7277_v8 = vrot.slane %v6995_v0, 4  ;;  %v7086_v55 = vadd.f32 1.0, %v12900_v20  ;;  %v12904_v50 = vpop.eup %12903  ;;  %v7087_v5 = vmul.f32 0.5, %v7079_v21 }
0x1116   :  { %v7082_v34 = vadd.f32 1.0, %v12904_v50 }
0x1117   :  { %v6996_v18 = vadd.f32 %v6988_v49, %v6949_v25  ;;  %v7278_v61 = vsel %vm6656_vm9, %v7277_v8, %v7276_v38  ;;  %v7176_v49 = vsub.f32 1.0, %v7088_v53  ;;  %v7094_v45 = vmul.f32 0.5, %v7086_v55 }
0x1118   :  { %v6933_v28 = vpop.permute.xlu0 %6932  ;;  %v7090_v21 = vmul.f32 0.5, %v7082_v34 }
0x1119   :  { %v6950_v2 = vmul.f32 %v6933_v28, %v6910_v3  ;;  %v7279_v54 = vrot.slane %v6996_v18, 3  ;;  %v7216_v43 = vmul.f32 %v7194_v16, %v7176_v49  ;;  %v12906_v3 = vpop.eup %12905  ;;  %v7089_v28 = vmul.f32 0.5, %v7081_v12 }
0x111a   :  { %v7182_v42 = vsub.f32 1.0, %v7094_v45 }
0x111b   :  { %v6997_v30 = vadd.f32 %v6989_v11, %v6950_v2  ;;  %v7280_v22 = vsel %vm6659_vm10, %v7279_v54, %v7278_v61  ;;  %v7175_v11 = vsub.f32 1.0, %v7087_v5  ;;  %v7247_v2 = vmul.f32 %v15522_v32, %v7087_v5 }
0x111c   :  { %v15570_v62 = vpop.permute.xlu0 %7203  ;;  %v7256_v1 = vadd.f32 %v7248_v60, %v7216_v43  ;;  %v7177_v39 = vsub.f32 1.0, %v7089_v28  ;;  %v7249_v53 = vmul.f32 %v15516_v44, %v7089_v28 }
0x111d   :  { %v7281_v10 = vrot.slane %v6997_v30, 2  ;;  %v7083_v30 = vadd.f32 1.0, %v12906_v3 }
0x111e   :  { %v12908_v14 = vpop.eup %12907  ;;  %v7299_v61 = vrot.slane %v7256_v1, 4 }
0x111f   :  { %v7282_v0 = vsel %vm6662_vm11, %v7281_v10, %v7280_v22  ;;  %v7091_v22 = vmul.f32 0.5, %v7083_v30  ;;  %v7085_v50 = vadd.f32 1.0, %v12908_v14  ;;  %v12910_v5 = vpop.eup %12909 }
0x1120   :  { %v6935_v25 = vpop.permute.xlu0 %6934  ;;  %7284 = vrot.lane.b32.xlu0 %v7282_v0, %s13761_s11  ;;  %v7178_v0 = vsub.f32 1.0, %v7090_v21  ;;  %v7084_v60 = vadd.f32 1.0, %v12910_v5 }
0x1121   :  { %v6951_v47 = vmul.f32 %v6935_v25, %v6911_v63  ;;  %v7093_v44 = vmul.f32 0.5, %v7085_v50  ;;  %v7179_v3 = vsub.f32 1.0, %v7091_v22 }
0x1122   :  { %v7206_v18 = vpop.permute.xlu1 %7205  ;;  %v7092_v1 = vmul.f32 0.5, %v7084_v60  ;;  %v17584_v60 = vld [vmem:[#allocation40_spill] sm:$0xff] }
0x1123   :  { %v6998_v20 = vadd.f32 %v6990_v6, %v6951_v47  ;;  %v7222_v33 = vmul.f32 %v7206_v18, %v7182_v42  ;;  %v7253_v30 = vmul.f32 %v15535_v51, %v7093_v44 }
0x1124   :  { %v7192_v8 = vpop.permute.xlu0 %7191 }
0x1125   :  { %v7283_v26 = vrot.slane %v6998_v20, 1  ;;  %v7215_v54 = vmul.f32 %v7192_v8, %v7175_v11  ;;  %v7251_v20 = vmul.f32 %v15520_v35, %v7091_v22  ;;  %v7181_v8 = vsub.f32 1.0, %v7093_v44 }
0x1126   :  { %v7238_v19 = vpop.permute.xlu1 %7237 }
0x1127   :  { %v7255_v38 = vadd.f32 %v7247_v2, %v7215_v54  ;;  %v7254_v55 = vmul.f32 %v7238_v19, %v7094_v45  ;;  %7286 = vrot.lane.b32.xlu1 %v7283_v26, %s13761_s11  ;;  %v7250_v45 = vmul.f32 %v15518_v59, %v7090_v21  ;;  %v7221_v26 = vmul.f32 %v15570_v62, %v7181_v8 }
0x1128   :  { %v7196_v10 = vpop.permute.xlu0 %7195  ;;  %v7180_v19 = vsub.f32 1.0, %v7092_v1 }
0x1129   :  { %v7298_v16 = vrot.slane %v7255_v38, 5  ;;  %v7262_v63 = vadd.f32 %v7254_v55, %v7222_v33  ;;  %v7217_v32 = vmul.f32 %v7196_v10, %v7177_v39  ;;  %v7261_v33 = vadd.f32 %v7253_v30, %v7221_v26  ;;  %v17587_v26 = vld [vmem:[#allocation42_spill] sm:$0xff] }
0x112b   :  { %v7300_v12 = vsel %vm6647_vm6, %v7299_v61, %v7298_v16  ;;  %v7257_v49 = vadd.f32 %v7249_v53, %v7217_v32  ;;  %v7310_v25 = vrot.slane %v7262_v63, 6  ;;  %v7308_v53 = vrot.slane %v7261_v33, 7 }
0x112c   :  { %v7198_v6 = vpop.permute.xlu0 %7197 }
0x112d   :  { %v7301_v43 = vrot.slane %v7257_v49, 3  ;;  %v7218_v47 = vmul.f32 %v7198_v6, %v7178_v0  ;;  %7313 = vrot.lane.b32.xlu1 %v7310_v25, %s13757_s2  ;;  %v17580_v49 = vmov 0.0  }
0x112f   :  { %v7302_v34 = vsel %vm6650_vm7, %v7301_v43, %v7300_v12  ;;  %v7258_v18 = vadd.f32 %v7250_v45, %v7218_v47  ;;  %v17582_v43 = vld [vmem:[#allocation38_spill] sm:$0xff] }
0x1130   :  { %v7200_v28 = vpop.permute.xlu0 %7199 }
0x1131   :  { %v7303_v11 = vrot.slane %v7258_v18, 2  ;;  %v7219_v42 = vmul.f32 %v7200_v28, %v7179_v3 }
0x1133   :  { %v7259_v2 = vadd.f32 %v7251_v20, %v7219_v42  ;;  %v7304_v59 = vsel %vm6653_vm8, %v7303_v11, %v7302_v34  ;;  %v17583_v34 = vld [vmem:[#allocation37_spill] sm:$0xff] }
0x1134   :  { %v7202_v54 = vpop.permute.xlu0 %7201  ;;  %v17585_v11 = vld [vmem:[#allocation41_spill] sm:$0xff] }
0x1135   :  { %v7305_v21 = vrot.slane %v7259_v2, 1  ;;  %v7220_v55 = vmul.f32 %v7202_v54, %v7180_v19  ;;  %v17586_v2 = vld [vmem:[#allocation43_spill] sm:$0xff] }
0x1137   :  { %v7306_v14 = vsel %vm6656_vm9, %v7305_v21, %v7304_v59 }
0x1138   :  { %v7234_v38 = vpop.permute.xlu0 %7233 }
0x1139   :  { %v7252_v35 = vmul.f32 %v7234_v38, %v7092_v1 }
0x113b   :  { %v7260_v39 = vadd.f32 %v7252_v35, %v7220_v55 }
0x113d   :  { %v7307_v10 = vsel %vm6659_vm10, %v7260_v39, %v7306_v14  ;;  %v17588_v14 = vld [vmem:[#allocation44_spill] sm:$0xff] }
0x113e   :  { %v7309_v61 = vsel %vm6662_vm11, %v7308_v53, %v7307_v10 }
0x113f   :  { %7311 = vrot.lane.b32.xlu0 %v7309_v61, %s13757_s2 }
0x1192   :  { %v7285_v16 = vpop.permute.xlu0 %7284 }
0x1199   :  { %v7287_v62 = vpop.permute.xlu1 %7286 }
0x119f   :  { %v7314_v63 = vpop.permute.xlu1 %7313 }
0x11a0   :  { %v15597_v51 = vsel %vm254_vm0, %v7287_v62, %v7314_v63 }
0x11a1   :  { %v7323_v50 = vrot.slane %v15597_v51, 1 }
0x11b1   :  { %v7312_v32 = vpop.permute.xlu0 %7311 }
0x11b2   :  { %v15600_v22 = vsel %vm254_vm0, %v7285_v16, %v7312_v32 }
0x11b3   :  { %v15604_v5 = vrot.slane %v15600_v22, 1 }
0x11b5   :  { %v15607_v12 = vsel %vm7321_vm13, %v15604_v5, %v7323_v50 }
0x11b6   :  { %12023 = vmatmul.mubr.msk.f32.vlgmr.msra.gmra.mxu0 %vm6120_vm12, %v15607_v12 }
0x11b7   :  { %8612 = vmatpush1.msra.mxu0 %v15280_v58  ;;  %8659 = vmatprep.mubr.f32.mxu0 %v17580_v49 }
0x11b8   :  { %8613 = vmatprep.subr.mxu0 %v15284_v57 }
0x11b9   :  { %8614 = vmatpush1.msra.mxu0 %v15287_v31 }
0x11ba   :  { %8615 = vmatprep.subr.mxu0 %v15290_v27 }
0x11bb   :  { %8616 = vmatpush1.msra.mxu0 %v15293_v41 }
0x11bc   :  { %8617 = vmatprep.subr.mxu0 %v15296_v7 }
0x11bd   :  { %8618 = vmatpush1.msra.mxu0 %v15299_v15 }
0x11be   :  { %8619 = vmatprep.subr.mxu0 %v15302_v36  ;;  %v17581_v36 = vld [vmem:[#allocation36_spill] sm:$0xff] }
0x11bf   :  { %8620 = vmatpush1.msra.mxu0 %v15305_v9 }
0x11c0   :  { %8621 = vmatprep.subr.mxu0 %v15308_v52 }
0x11c1   :  { %8622 = vmatpush1.msra.mxu0 %v15311_v46 }
0x11c2   :  { %8623 = vmatprep.subr.mxu0 %v15314_v56 }
0x11c3   :  { %8624 = vmatpush1.msra.mxu0 %v15317_v23 }
0x11c4   :  { %8625 = vmatprep.subr.mxu0 %v15320_v17 }
0x11c5   :  { %8626 = vmatpush1.msra.mxu0 %v15323_v40 }
0x11c6   :  { %9879 = vmatprep.subr.mxu0 %v15326_v37 }
0x1276   :  { %v7395_v58 = vpop.f32.mrf.mxu0 }
0x1277   :  { %v7396_v57 = vadd.f32 %v7395_v58, %v14951_v24 }
0x1278   :  { %v7397_v7 = vpop.f32.mrf.mxu0 }
0x1279   :  { %7460 = vrot.lane.b32.xlu1 %v7396_v57, %s13762_s19  ;;  %v7402_v31 = vrot.slane %v7396_v57, 7  ;;  %v15631_v27 = vrot.slane %v7396_v57, 6  ;;  %v15635_v41 = vrot.slane %v7396_v57, 1  ;;  %v15639_v15 = vrot.slane %v7396_v57, 2 }
0x127a   :  { %v15642_v9 = vadd.f32 %v7397_v7, %v17581_v36  ;;  %v7406_v52 = vrot.slane %v7396_v57, 4  ;;  %v7405_v46 = vrot.slane %v7396_v57, 3  ;;  %v7407_v23 = vrot.slane %v7396_v57, 5 }
0x127b   :  { %7458 = vrot.lane.b32.xlu0 %v7402_v31, %s13762_s19  ;;  %v7418_v45 = vadd.f32 %v7396_v57, %v15047_v13  ;;  %v7417_v47 = vadd.f32 %v7402_v31, %v17582_v43  ;;  %v7416_v18 = vadd.f32 %v15631_v27, %v17583_v34  ;;  %v7419_v28 = vadd.f32 %v15635_v41, %v17584_v60 }
0x127c   :  { %v7672_v56 = vrot.slane %v15642_v9, 4  ;;  %v7673_v17 = vrot.slane %v15642_v9, 5  ;;  %v7675_v40 = vrot.slane %v15642_v9, 7  ;;  %v7671_v37 = vrot.slane %v15642_v9, 3 }
0x127d   :  { %7456 = vrot.lane.b32.xlu1 %v15631_v27, %s13762_s19  ;;  %v7674_v0 = vrot.slane %v15642_v9, 6  ;;  %v7677_v25 = vrot.slane %v15642_v9, 2  ;;  %v7676_v6 = vrot.slane %v15642_v9, 1  ;;  %v7426_v44 = vmul.f32 0.5, %v7418_v45 }
0x127e   :  { %v7425_v3 = vmul.f32 0.5, %v7417_v47  ;;  %v7424_v20 = vmul.f32 0.5, %v7416_v18  ;;  %v7420_v42 = vadd.f32 %v15639_v15, %v17585_v11  ;;  %v7427_v8 = vmul.f32 0.5, %v7419_v28 }
0x127f   :  { %7462 = vrot.lane.b32.xlu0 %v15635_v41, %s13762_s19  ;;  %12911 = vtanh.f32 %v7426_v44  ;;  %v7422_v1 = vadd.f32 %v7406_v52, %v17586_v2  ;;  %v7421_v54 = vadd.f32 %v7405_v46, %v17587_v26  ;;  %v7631_v30 = vadd.f32 %v7406_v52, %v17582_v43 }
0x1280   :  { %12913 = vtanh.f32 %v7425_v3  ;;  %v7428_v59 = vmul.f32 0.5, %v7420_v42  ;;  %v7423_v33 = vadd.f32 %v7407_v23, %v17588_v14  ;;  %v7632_v55 = vadd.f32 %v7407_v23, %v15047_v13 }
0x1281   :  { %7464 = vrot.lane.b32.xlu1 %v15639_v15, %s13762_s19  ;;  %12915 = vtanh.f32 %v7424_v20  ;;  %v7430_v21 = vmul.f32 0.5, %v7422_v1  ;;  %v7429_v19 = vmul.f32 0.5, %v7421_v54  ;;  %v7639_v38 = vmul.f32 0.5, %v7631_v30 }
0x1282   :  { %12917 = vtanh.f32 %v7427_v8  ;;  %v7431_v35 = vmul.f32 0.5, %v7423_v33  ;;  %v7635_v39 = vadd.f32 %v7396_v57, %v17587_v26  ;;  %v7640_v10 = vmul.f32 0.5, %v7632_v55 }
0x1283   :  { %7468 = vrot.lane.b32.xlu0 %v7406_v52, %s13762_s19  ;;  %12919 = vtanh.f32 %v7428_v59  ;;  %v7634_v61 = vadd.f32 %v7402_v31, %v17585_v11  ;;  %v7630_v32 = vadd.f32 %v7405_v46, %v17583_v34  ;;  %v7633_v58 = vadd.f32 %v15631_v27, %v17584_v60 }
0x1284   :  { %12921 = vtanh.f32 %v7430_v21  ;;  %v7643_v63 = vmul.f32 0.5, %v7635_v39  ;;  %v7637_v57 = vadd.f32 %v15639_v15, %v17588_v14 }
0x1285   :  { %7466 = vrot.lane.b32.xlu1 %v7405_v46, %s13762_s19  ;;  %12923 = vtanh.f32 %v7429_v19  ;;  %v7642_v52 = vmul.f32 0.5, %v7634_v61  ;;  %v7638_v47 = vmul.f32 0.5, %v7630_v32  ;;  %v7641_v3 = vmul.f32 0.5, %v7633_v58 }
0x1286   :  { %12925 = vtanh.f32 %v7639_v38  ;;  %v7636_v46 = vadd.f32 %v15635_v41, %v17586_v2  ;;  %v7645_v15 = vmul.f32 0.5, %v7637_v57 }
0x1287   :  { %7728 = vrot.lane.b32.xlu0 %v7672_v56, %s13762_s19  ;;  %12927 = vtanh.f32 %v7431_v35 }
0x1288   :  { %12929 = vtanh.f32 %v7640_v10  ;;  %v7644_v41 = vmul.f32 0.5, %v7636_v46 }
0x1289   :  { %7470 = vrot.lane.b32.xlu1 %v7407_v23, %s13762_s19  ;;  %12931 = vtanh.f32 %v7643_v63 }
0x128a   :  { %12933 = vtanh.f32 %v7642_v52 }
0x128b   :  { %7730 = vrot.lane.b32.xlu0 %v7673_v17, %s13762_s19  ;;  %12935 = vtanh.f32 %v7638_v47 }
0x128c   :  { %v12912_v53 = vpop.eup %12911  ;;  %12937 = vtanh.f32 %v7641_v3 }
0x128d   :  { %7736 = vrot.lane.b32.xlu1 %v15642_v9, %s13762_s19  ;;  %v12914_v62 = vpop.eup %12913  ;;  %v7442_v16 = vadd.f32 1.0, %v12912_v53  ;;  %12939 = vtanh.f32 %v7645_v15 }
0x128e   :  { %v12916_v50 = vpop.eup %12915  ;;  %v7441_v7 = vadd.f32 1.0, %v12914_v62  ;;  %12941 = vtanh.f32 %v7644_v41 }
0x128f   :  { %7734 = vrot.lane.b32.xlu0 %v7675_v40, %s13762_s19  ;;  %v12918_v23 = vpop.eup %12917  ;;  %v15699_v45 = vmul.f32 0.5, %v7442_v16  ;;  %v7440_v31 = vadd.f32 1.0, %v12916_v50 }
0x1290   :  { %v12920_v44 = vpop.eup %12919  ;;  %v15704_v28 = vmul.f32 0.5, %v7441_v7  ;;  %v7443_v20 = vadd.f32 1.0, %v12918_v23 }
0x1291   :  { %7726 = vrot.lane.b32.xlu1 %v7671_v37, %s13762_s19  ;;  %v12922_v42 = vpop.eup %12921  ;;  %v15708_v59 = vmul.f32 0.5, %v7440_v31  ;;  %v7444_v54 = vadd.f32 1.0, %v12920_v44 }
0x1292   :  { %v12924_v21 = vpop.eup %12923  ;;  %v15712_v33 = vmul.f32 0.5, %v7443_v20  ;;  %v7446_v38 = vadd.f32 1.0, %v12922_v42 }
0x1293   :  { %7732 = vrot.lane.b32.xlu0 %v7674_v0, %s13762_s19  ;;  %v12926_v55 = vpop.eup %12925  ;;  %v15716_v53 = vmul.f32 0.5, %v7444_v54  ;;  %v7445_v10 = vadd.f32 1.0, %v12924_v21 }
0x1294   :  { %v12928_v61 = vpop.eup %12927  ;;  %v15720_v63 = vmul.f32 0.5, %v7446_v38  ;;  %v7655_v32 = vadd.f32 1.0, %v12926_v55 }
0x1295   :  { %7740 = vrot.lane.b32.xlu1 %v7677_v25, %s13762_s19  ;;  %v12930_v50 = vpop.eup %12929  ;;  %v15724_v52 = vmul.f32 0.5, %v7445_v10  ;;  %v7447_v23 = vadd.f32 1.0, %v12928_v61 }
0x1296   :  { %v12932_v57 = vpop.eup %12931  ;;  %v7663_v44 = vmul.f32 0.5, %v7655_v32 }
0x1297   :  { %7738 = vrot.lane.b32.xlu0 %v7676_v6, %s13762_s19  ;;  %v12934_v3 = vpop.eup %12933  ;;  %v15729_v20 = vmul.f32 0.5, %v7447_v23  ;;  %v7659_v42 = vadd.f32 1.0, %v12932_v57 }
0x1298   :  { %v7658_v21 = vadd.f32 1.0, %v12934_v3 }
0x1299   :  { %v7667_v38 = vmul.f32 0.5, %v7659_v42 }
0x129a   :  { %v7666_v61 = vmul.f32 0.5, %v7658_v21  ;;  %v7584_v21 = vrot.slane %v15600_v22, 7 }
0x12eb   :  { %v7461_v18 = vpop.permute.xlu1 %7460 }
0x12ec   :  { %v7482_v27 = vmul.f32 %v7461_v18, %v15699_v45  ;;  %v7656_v18 = vadd.f32 1.0, %v12930_v50 }
0x12ed   :  { %v7459_v8 = vpop.permute.xlu0 %7458 }
0x12ee   :  { %v7481_v1 = vmul.f32 %v7459_v8, %v15704_v28  ;;  %7500 = vrot.lane.b32.xlu1 %v7482_v27, %s13762_s19  ;;  %v12936_v8 = vpop.eup %12935  ;;  %v7664_v54 = vmul.f32 0.5, %v7656_v18 }
0x12ef   :  { %v7457_v30 = vpop.permute.xlu1 %7456  ;;  %v7654_v55 = vadd.f32 1.0, %v12936_v8 }
0x12f0   :  { %v7480_v19 = vmul.f32 %v7457_v30, %v15708_v59  ;;  %7498 = vrot.lane.b32.xlu0 %v7481_v1, %s13762_s19  ;;  %v12938_v30 = vpop.eup %12937 }
0x12f1   :  { %v7463_v35 = vpop.permute.xlu0 %7462 }
0x12f2   :  { %v7483_v39 = vmul.f32 %v7463_v35, %v15712_v33  ;;  %7496 = vrot.lane.b32.xlu1 %v7480_v19, %s13762_s19  ;;  %v12940_v35 = vpop.eup %12939 }
0x12f3   :  { %v7465_v62 = vpop.permute.xlu1 %7464 }
0x12f4   :  { %v7484_v16 = vmul.f32 %v7465_v62, %v15716_v53  ;;  %7502 = vrot.lane.b32.xlu0 %v7483_v39, %s13762_s19  ;;  %v7657_v62 = vadd.f32 1.0, %v12938_v30  ;;  %v7854_v30 = vrot.slane %v15600_v22, 6 }
0x12f5   :  { %v7469_v58 = vpop.permute.xlu0 %7468 }
0x12f6   :  { %v7486_v7 = vmul.f32 %v7469_v58, %v15720_v63  ;;  %7504 = vrot.lane.b32.xlu1 %v7484_v16, %s13762_s19  ;;  %v12942_v16 = vpop.eup %12941  ;;  %v7662_v58 = vmul.f32 0.5, %v7654_v55 }
0x12f7   :  { %v7467_v31 = vpop.permute.xlu1 %7466 }
0x12f8   :  { %v7485_v47 = vmul.f32 %v7467_v31, %v15724_v52  ;;  %7508 = vrot.lane.b32.xlu0 %v7486_v7, %s13762_s19  ;;  %v7661_v7 = vadd.f32 1.0, %v12940_v35  ;;  %v7665_v31 = vmul.f32 0.5, %v7657_v62 }
0x12f9   :  { %v7729_v46 = vpop.permute.xlu0 %7728 }
0x12fa   :  { %v7751_v27 = vmul.f32 %v7729_v46, %v7663_v44  ;;  %7506 = vrot.lane.b32.xlu1 %v7485_v47, %s13762_s19  ;;  %v7660_v47 = vadd.f32 1.0, %v12942_v16  ;;  %v7669_v3 = vmul.f32 0.5, %v7661_v7 }
0x12fb   :  { %v7471_v15 = vpop.permute.xlu1 %7470 }
0x12fc   :  { %v7487_v1 = vmul.f32 %v7471_v15, %v15729_v20  ;;  %7768 = vrot.lane.b32.xlu0 %v7751_v27, %s13762_s19  ;;  %v7668_v42 = vmul.f32 0.5, %v7660_v47 }
0x12fd   :  { %v7731_v41 = vpop.permute.xlu0 %7730 }
0x12fe   :  { %v7752_v19 = vmul.f32 %v7731_v41, %v7664_v54  ;;  %7510 = vrot.lane.b32.xlu1 %v7487_v1, %s13762_s19  ;;  %v7587_v1 = vrot.slane %v15600_v22, 4  ;;  %v7588_v54 = vrot.slane %v15600_v22, 5  ;;  %v7585_v41 = vrot.slane %v15600_v22, 2 }
0x12ff   :  { %v7737_v39 = vpop.permute.xlu1 %7736 }
0x1300   :  { %v7755_v10 = vmul.f32 %v7737_v39, %v7667_v38  ;;  %7770 = vrot.lane.b32.xlu0 %v7752_v19, %s13762_s19  ;;  %v7586_v19 = vrot.slane %v15600_v22, 3  ;;  %v7589_v38 = vrot.slane %v15597_v51, 6 }
0x1301   :  { %v7735_v32 = vpop.permute.xlu0 %7734 }
0x1302   :  { %v7754_v50 = vmul.f32 %v7735_v32, %v7666_v61  ;;  %7776 = vrot.lane.b32.xlu1 %v7755_v10, %s13762_s19 }
0x1303   :  { %v7727_v23 = vpop.permute.xlu1 %7726 }
0x1304   :  { %v7750_v57 = vmul.f32 %v7727_v23, %v7662_v58  ;;  %7774 = vrot.lane.b32.xlu0 %v7754_v50, %s13762_s19 }
0x1305   :  { %v7733_v44 = vpop.permute.xlu0 %7732 }
0x1306   :  { %v7753_v18 = vmul.f32 %v7733_v44, %v7665_v31  ;;  %7766 = vrot.lane.b32.xlu1 %v7750_v57, %s13762_s19 }
0x1307   :  { %v7741_v46 = vpop.permute.xlu1 %7740 }
0x1308   :  { %v7757_v27 = vmul.f32 %v7741_v46, %v7669_v3  ;;  %7772 = vrot.lane.b32.xlu0 %v7753_v18, %s13762_s19 }
0x1309   :  { %v7739_v8 = vpop.permute.xlu0 %7738 }
0x130a   :  { %v7756_v15 = vmul.f32 %v7739_v8, %v7668_v42  ;;  %7780 = vrot.lane.b32.xlu1 %v7757_v27, %s13762_s19 }
0x130c   :  { %7778 = vrot.lane.b32.xlu0 %v7756_v15, %s13762_s19  ;;  %v17589_v15 = vld [vmem:[#allocation46_spill] sm:$0xff] }
0x130e   :  { %7592 = vrot.lane.b32.xlu1 %v15600_v22, %s13757_s2 }
0x1310   :  { %7856 = vrot.lane.b32.xlu0 %v7587_v1, %s13761_s11 }
0x1312   :  { %7858 = vrot.lane.b32.xlu1 %v7588_v54, %s13761_s11 }
0x1314   :  { %7590 = vrot.lane.b32.xlu0 %v7584_v21, %s13757_s2 }
0x1316   :  { %7594 = vrot.lane.b32.xlu1 %v15604_v5, %s13757_s2 }
0x1318   :  { %7602 = vrot.lane.b32.xlu0 %v7588_v54, %s13757_s2 }
0x131a   :  { %7860 = vrot.lane.b32.xlu1 %v7854_v30, %s13761_s11 }
0x131c   :  { %7862 = vrot.lane.b32.xlu0 %v7584_v21, %s13761_s11 }
0x131e   :  { %7596 = vrot.lane.b32.xlu1 %v7585_v41, %s13757_s2 }
0x1322   :  { %7598 = vrot.lane.b32.xlu1 %v7586_v19, %s13757_s2  ;;  %v17590_v19 = vld [vmem:[#allocation45_spill] sm:$0xff] }
0x1326   :  { %7864 = vrot.lane.b32.xlu1 %v15600_v22, %s13761_s11  ;;  %v7687_v22 = vadd.f32 %v7672_v56, %v17589_v15  ;;  %v7691_v56 = vadd.f32 %v15642_v9, %v15188_v29 }
0x132a   :  { %7600 = vrot.lane.b32.xlu1 %v7587_v1, %s13757_s2 }
0x132e   :  { %7604 = vrot.lane.b32.xlu1 %v7589_v38, %s13757_s2 }
0x1332   :  { %7866 = vrot.lane.b32.xlu1 %v15604_v5, %s13761_s11 }
0x1360   :  { %v7501_v55 = vpop.permute.xlu1 %7500 }
0x1361   :  { %v7522_v35 = vadd.f32 %v7501_v55, %v15047_v13 }
0x1362   :  { %v7499_v39 = vpop.permute.xlu0 %7498 }
0x1363   :  { %12943 = vtanh.f32 %v7522_v35  ;;  %v7521_v10 = vadd.f32 %v7499_v39, %v17582_v43  ;;  %v17591_v35 = vld [vmem:[#allocation47_spill] sm:$0xff] }
0x1364   :  { %v7497_v61 = vpop.permute.xlu1 %7496 }
0x1365   :  { %12945 = vtanh.f32 %v7521_v10  ;;  %v7520_v16 = vadd.f32 %v7497_v61, %v17583_v34 }
0x1366   :  { %v7503_v62 = vpop.permute.xlu0 %7502 }
0x1367   :  { %v7523_v32 = vadd.f32 %v7503_v62, %v17584_v60  ;;  %v17592_v62 = vld [vmem:[#allocation51_spill] sm:$0xff] }
0x1368   :  { %v7505_v50 = vpop.permute.xlu1 %7504 }
0x1369   :  { %12947 = vtanh.f32 %v7523_v32  ;;  %v7524_v5 = vadd.f32 %v7505_v50, %v17585_v11 }
0x136a   :  { %v7509_v58 = vpop.permute.xlu0 %7508  ;;  %12949 = vtanh.f32 %v7520_v16 }
0x136b   :  { %v7526_v7 = vadd.f32 %v7509_v58, %v17586_v2 }
0x136c   :  { %v7507_v23 = vpop.permute.xlu1 %7506 }
0x136d   :  { %12951 = vtanh.f32 %v7526_v7  ;;  %v7525_v31 = vadd.f32 %v7507_v23, %v17587_v26  ;;  %v17593_v7 = vld [vmem:[#allocation48_spill] sm:$0xff] }
0x136e   :  { %v7769_v57 = vpop.permute.xlu0 %7768  ;;  %12953 = vtanh.f32 %v7524_v5 }
0x136f   :  { %12955 = vtanh.f32 %v7525_v31  ;;  %v7791_v1 = vadd.f32 %v7769_v57, %v17589_v15 }
0x1370   :  { %v12944_v47 = vpop.eup %12943  ;;  %v7511_v44 = vpop.permute.xlu1 %7510 }
0x1371   :  { %7556 = vrot.lane.b32.xlu0 %v12944_v47, %s13761_s11  ;;  %v7527_v18 = vadd.f32 %v7511_v44, %v17588_v14 }
0x1372   :  { %v7771_v3 = vpop.permute.xlu0 %7770  ;;  %v12946_v46 = vpop.eup %12945 }
0x1373   :  { %12957 = vtanh.f32 %v7527_v18  ;;  %v7792_v39 = vadd.f32 %v7771_v3, %v17591_v35 }
0x1374   :  { %v7777_v27 = vpop.permute.xlu1 %7776 }
0x1375   :  { %v7795_v42 = vadd.f32 %v7777_v27, %v15188_v29  ;;  %7554 = vrot.lane.b32.xlu0 %v12946_v46, %s13761_s11  ;;  %v7855_v27 = vrot.slane %v15597_v51, 3 }
0x1376   :  { %v12948_v8 = vpop.eup %12947  ;;  %v7775_v21 = vpop.permute.xlu0 %7774 }
0x1377   :  { %12959 = vtanh.f32 %v7795_v42  ;;  %7558 = vrot.lane.b32.xlu1 %v12948_v8, %s13761_s11  ;;  %v12950_v54 = vpop.eup %12949  ;;  %v7794_v50 = vadd.f32 %v7775_v21, %v15182_v48 }
0x1378   :  { %v7767_v30 = vpop.permute.xlu1 %7766  ;;  %12961 = vtanh.f32 %v7791_v1 }
0x1379   :  { %v7790_v38 = vadd.f32 %v7767_v30, %v17590_v19  ;;  %7552 = vrot.lane.b32.xlu0 %v12950_v54, %s13761_s11 }
0x137a   :  { %v12952_v55 = vpop.eup %12951  ;;  %v7773_v32 = vpop.permute.xlu0 %7772 }
0x137b   :  { %12963 = vtanh.f32 %v7790_v38  ;;  %7564 = vrot.lane.b32.xlu1 %v12952_v55, %s13761_s11  ;;  %v12954_v10 = vpop.eup %12953  ;;  %v7793_v23 = vadd.f32 %v7773_v32, %v17593_v7 }
0x137c   :  { %v7781_v61 = vpop.permute.xlu1 %7780  ;;  %12965 = vtanh.f32 %v7792_v39  ;;  %v12956_v58 = vpop.eup %12955 }
0x137d   :  { %v7797_v16 = vadd.f32 %v7781_v61, %v17592_v62  ;;  %7560 = vrot.lane.b32.xlu0 %v12954_v10, %s13761_s11 }
0x137e   :  { %v7779_v31 = vpop.permute.xlu0 %7778 }
0x137f   :  { %12967 = vtanh.f32 %v7797_v16  ;;  %v7796_v44 = vadd.f32 %v7779_v31, %v15194_v4  ;;  %v7686_v16 = vadd.f32 %v7671_v37, %v17590_v19  ;;  %v7690_v37 = vadd.f32 %v7675_v40, %v15182_v48 }
0x1380   :  { %v12958_v5 = vpop.eup %12957  ;;  %12969 = vtanh.f32 %v7794_v50  ;;  %v7593_v54 = vpop.permute.xlu1 %7592 }
0x1381   :  { %7562 = vrot.lane.b32.xlu0 %v12956_v58, %s13761_s11  ;;  %12971 = vtanh.f32 %v7793_v23  ;;  %v7694_v50 = vmul.f32 0.5, %v7686_v16  ;;  %v7688_v58 = vadd.f32 %v7673_v17, %v17591_v35  ;;  %v7689_v17 = vadd.f32 %v7674_v0, %v17593_v7 }
0x1382   :  { %12973 = vtanh.f32 %v7796_v44  ;;  %v15809_v55 = vpop.permute.xlu0 %7856  ;;  %v7698_v44 = vmul.f32 0.5, %v7690_v37  ;;  %v7615_v16 = vmul.f32 %v7593_v54, %v15704_v28  ;;  %v7536_v0 = vsub.f32 1.0, %v15708_v59 }
0x1383   :  { %12975 = vtanh.f32 %v7694_v50 }
0x1384   :  { %v12960_v57 = vpop.eup %12959  ;;  %v15805_v21 = vpop.permute.xlu1 %7858 }
0x1385   :  { %7566 = vrot.lane.b32.xlu0 %v12958_v5, %s13761_s11  ;;  %7832 = vrot.lane.b32.xlu1 %v12960_v57, %s13761_s11  ;;  %v12962_v47 = vpop.eup %12961  ;;  %v7695_v5 = vmul.f32 0.5, %v7687_v22  ;;  %v7696_v57 = vmul.f32 0.5, %v7688_v58  ;;  %v7692_v22 = vadd.f32 %v7676_v6, %v15194_v4 }
0x1386   :  { %v7591_v10 = vpop.permute.xlu0 %7590 }
0x1387   :  { %12977 = vtanh.f32 %v7695_v5  ;;  %v7700_v6 = vmul.f32 0.5, %v7692_v22 }
0x1388   :  { %v12964_v18 = vpop.eup %12963  ;;  %v7595_v30 = vpop.permute.xlu1 %7594  ;;  %12979 = vtanh.f32 %v7696_v57  ;;  %v7614_v57 = vmul.f32 %v7591_v10, %v15708_v59 }
0x1389   :  { %7824 = vrot.lane.b32.xlu1 %v12962_v47, %s13761_s11  ;;  %7822 = vrot.lane.b32.xlu0 %v12964_v18, %s13761_s11  ;;  %v12966_v3 = vpop.eup %12965  ;;  %v7699_v18 = vmul.f32 0.5, %v7691_v56  ;;  %12981 = vtanh.f32 %v7698_v44  ;;  %v7616_v44 = vmul.f32 %v7595_v30, %v15699_v45  ;;  %v7541_v30 = vsub.f32 1.0, %v15724_v52 }
0x138a   :  { %v15816_v32 = vpop.permute.xlu0 %7602 }
0x138b   :  { %12983 = vtanh.f32 %v7699_v18 }
0x138c   :  { %v12968_v46 = vpop.eup %12967  ;;  %v15807_v51 = vpop.permute.xlu1 %7860 }
0x138d   :  { %7826 = vrot.lane.b32.xlu0 %v12966_v3, %s13761_s11  ;;  %7836 = vrot.lane.b32.xlu1 %v12968_v46, %s13761_s11  ;;  %v12970_v42 = vpop.eup %12969  ;;  %v7537_v3 = vsub.f32 1.0, %v15704_v28 }
0x138e   :  { %v12972_v8 = vpop.eup %12971  ;;  %v15826_v23 = vpop.permute.xlu0 %7862 }
0x138f   :  { %v12974_v1 = vpop.eup %12973 }
0x1390   :  { %v7597_v38 = vpop.permute.xlu1 %7596  ;;  %v12976_v28 = vpop.eup %12975 }
0x1391   :  { %7830 = vrot.lane.b32.xlu0 %v12970_v42, %s13761_s11  ;;  %7870 = vrot.lane.b32.xlu1 %v7855_v27, %s13761_s11  ;;  %v7693_v42 = vadd.f32 %v7677_v25, %v17592_v62  ;;  %v7539_v25 = vsub.f32 1.0, %v15712_v33 }
0x1394   :  { %v7599_v39 = vpop.permute.xlu1 %7598  ;;  %v12978_v9 = vpop.eup %12977 }
0x1395   :  { %7828 = vrot.lane.b32.xlu0 %v12972_v8, %s13761_s11  ;;  %v7697_v8 = vmul.f32 0.5, %v7689_v17  ;;  %v7701_v17 = vmul.f32 0.5, %v7693_v42  ;;  %v7618_v59 = vmul.f32 %v7599_v39, %v15716_v53  ;;  %v7542_v42 = vsub.f32 1.0, %v15720_v63 }
0x1396   :  { %v7543_v39 = vsub.f32 1.0, %v15729_v20 }
0x1397   :  { %12985 = vtanh.f32 %v7697_v8  ;;  %v12980_v8 = vpop.eup %12979 }
0x1398   :  { %v15811_v61 = vpop.permute.xlu1 %7864  ;;  %12987 = vtanh.f32 %v7701_v17 }
0x1399   :  { %7834 = vrot.lane.b32.xlu0 %v12974_v1, %s13761_s11  ;;  %v7538_v1 = vsub.f32 1.0, %v15699_v45  ;;  %12989 = vtanh.f32 %v7700_v6 }
0x139d   :  { %7868 = vrot.lane.b32.xlu0 %v7585_v41, %s13761_s11  ;;  %v15821_v41 = vpop.permute.xlu1 %7600 }
0x13a1   :  { %v15831_v31 = vpop.permute.xlu1 %7604 }
0x13a5   :  { %v15839_v46 = vpop.permute.xlu1 %7866 }
0x13e3   :  { %v7557_v47 = vpop.permute.xlu0 %7556 }
0x13e4   :  { %v7578_v50 = vmul.f32 %v7557_v47, %v7538_v1  ;;  %v7617_v1 = vmul.f32 %v7597_v38, %v15712_v33  ;;  %v7619_v33 = vmul.f32 %v15821_v41, %v15724_v52  ;;  %v7621_v52 = vmul.f32 %v15831_v31, %v15729_v20 }
0x13e6   :  { %v7624_v47 = vadd.f32 %v7616_v44, %v7578_v50  ;;  %v12982_v44 = vpop.eup %12981 }
0x13e7   :  { %v7555_v27 = vpop.permute.xlu0 %7554 }
0x13e8   :  { %v7577_v40 = vmul.f32 %v7555_v27, %v7537_v3  ;;  %v7540_v3 = vsub.f32 1.0, %v15716_v53 }
0x13e9   :  { %v7559_v58 = vpop.permute.xlu1 %7558 }
0x13ea   :  { %v7623_v37 = vadd.f32 %v7615_v16, %v7577_v40  ;;  %v7579_v54 = vmul.f32 %v7559_v58, %v7539_v25  ;;  %v7710_v16 = vadd.f32 1.0, %v12976_v28  ;;  %v7712_v25 = vadd.f32 1.0, %v12980_v8 }
0x13eb   :  { %v7553_v5 = vpop.permute.xlu0 %7552 }
0x13ec   :  { %v7576_v56 = vmul.f32 %v7553_v5, %v7536_v0  ;;  %v7904_v10 = vrot.slane %v7623_v37, 7  ;;  %v7711_v0 = vadd.f32 1.0, %v12978_v9  ;;  %v7625_v58 = vadd.f32 %v7617_v1, %v7579_v54  ;;  %v12984_v9 = vpop.eup %12983 }
0x13ed   :  { %v7565_v45 = vpop.permute.xlu1 %7564  ;;  %v7906_v5 = vrot.slane %v7624_v47, 6  ;;  %v7718_v37 = vmul.f32 0.5, %v7710_v16  ;;  %v7620_v54 = vmul.f32 %v15816_v32, %v15720_v63  ;;  %v7715_v63 = vadd.f32 1.0, %v12984_v9 }
0x13ee   :  { %v7622_v18 = vadd.f32 %v7614_v57, %v7576_v56  ;;  %v7582_v53 = vmul.f32 %v7565_v45, %v7542_v42  ;;  %v7719_v28 = vmul.f32 0.5, %v7711_v0  ;;  %v12986_v45 = vpop.eup %12985 }
0x13ef   :  { %v7561_v27 = vpop.permute.xlu0 %7560  ;;  %v7806_v16 = vsub.f32 1.0, %v7718_v37  ;;  %v7880_v20 = vmul.f32 %v15809_v55, %v7718_v37 }
0x13f0   :  { %v7580_v40 = vmul.f32 %v7561_v27, %v7540_v3  ;;  %v7905_v22 = vsel %vm6650_vm7, %v7904_v10, %v7622_v18  ;;  %v7908_v18 = vrot.slane %v7625_v58, 5  ;;  %v7628_v47 = vadd.f32 %v7620_v54, %v7582_v53 }
0x13f1   :  { %v7907_v17 = vsel %vm6653_vm8, %v7906_v5, %v7905_v22  ;;  %v7720_v10 = vmul.f32 0.5, %v7712_v25  ;;  %v7807_v8 = vsub.f32 1.0, %v7719_v28  ;;  %v7881_v31 = vmul.f32 %v15805_v21, %v7719_v28 }
0x13f2   :  { %v7626_v50 = vadd.f32 %v7618_v59, %v7580_v40  ;;  %v7909_v59 = vsel %vm6656_vm9, %v7908_v18, %v7907_v17  ;;  %v7714_v40 = vadd.f32 1.0, %v12982_v44  ;;  %v7914_v22 = vrot.slane %v7628_v47, 2 }
0x13f3   :  { %v7563_v57 = vpop.permute.xlu0 %7562  ;;  %v7723_v25 = vmul.f32 0.5, %v7715_v63  ;;  %v7882_v37 = vmul.f32 %v15807_v51, %v7720_v10 }
0x13f4   :  { %v7581_v38 = vmul.f32 %v7563_v57, %v7541_v30  ;;  %v7910_v56 = vrot.slane %v7626_v50, 4  ;;  %v7722_v53 = vmul.f32 0.5, %v7714_v40 }
0x13f5   :  { %v7811_v9 = vsub.f32 1.0, %v7723_v25  ;;  %v7885_v63 = vmul.f32 %v15839_v46, %v7723_v25 }
0x13f6   :  { %v7627_v3 = vadd.f32 %v7619_v33, %v7581_v38  ;;  %v7911_v42 = vsel %vm6659_vm10, %v7910_v56, %v7909_v59  ;;  %v7713_v33 = vadd.f32 1.0, %v12986_v45  ;;  %v7808_v38 = vsub.f32 1.0, %v7720_v10 }
0x13f7   :  { %v7567_v41 = vpop.permute.xlu0 %7566  ;;  %v7833_v6 = vpop.permute.xlu1 %7832  ;;  %v7810_v47 = vsub.f32 1.0, %v7722_v53  ;;  %v7884_v45 = vmul.f32 %v15811_v61, %v7722_v53 }
0x13f8   :  { %v7912_v27 = vrot.slane %v7627_v3, 3  ;;  %v7583_v1 = vmul.f32 %v7567_v41, %v7543_v39  ;;  %v12988_v39 = vpop.eup %12987  ;;  %v7721_v3 = vmul.f32 0.5, %v7713_v33  ;;  %v7851_v59 = vmul.f32 %v7833_v6, %v7811_v9 }
0x13f9   :  { %v12990_v21 = vpop.eup %12989 }
0x13fa   :  { %v7629_v32 = vadd.f32 %v7621_v52, %v7583_v1  ;;  %v7913_v30 = vsel %vm6662_vm11, %v7912_v27, %v7911_v42  ;;  %v7809_v51 = vsub.f32 1.0, %v7721_v3  ;;  %v7716_v10 = vadd.f32 1.0, %v12990_v21 }
0x13fb   :  { %v7823_v0 = vpop.permute.xlu0 %7822  ;;  %7917 = vrot.lane.b32.xlu0 %v7913_v30, %s13761_s11  ;;  %v7825_v58 = vpop.permute.xlu1 %7824 }
0x13fc   :  { %v7915_v50 = vrot.slane %v7629_v32, 1  ;;  %v7846_v5 = vmul.f32 %v7823_v0, %v7806_v16  ;;  %v7847_v57 = vmul.f32 %v7825_v58, %v7807_v8  ;;  %v7717_v16 = vadd.f32 1.0, %v12988_v39 }
0x13fe   :  { %v7888_v56 = vadd.f32 %v7880_v20, %v7846_v5  ;;  %v7889_v17 = vadd.f32 %v7881_v31, %v7847_v57  ;;  %v7916_v44 = vsel %vm6644_vm5, %v7915_v50, %v7914_v22  ;;  %v7883_v20 = vmul.f32 %v15826_v23, %v7721_v3 }
0x13ff   :  { %v7827_v55 = vpop.permute.xlu0 %7826  ;;  %7919 = vrot.lane.b32.xlu1 %v7916_v44, %s13761_s11  ;;  %v7837_v27 = vpop.permute.xlu1 %7836  ;;  %v7893_v31 = vadd.f32 %v7885_v63, %v7851_v59  ;;  %v7725_v0 = vmul.f32 0.5, %v7717_v16  ;;  %v7724_v50 = vmul.f32 0.5, %v7716_v10  ;;  %v17594_v59 = vld [vmem:[#allocation52_spill] sm:$0xff] }
0x1400   :  { %v7931_v28 = vrot.slane %v7888_v56, 3  ;;  %v7932_v54 = vrot.slane %v7889_v17, 2  ;;  %v7848_v18 = vmul.f32 %v7827_v55, %v7808_v38  ;;  %v15907_v63 = vld [vmem:[#allocation14 + $0x68] sm:$0xff]  ;;  %v15916_v10 = vld [vmem:[#allocation14 + $0x50] sm:$0xff] }
0x1401   :  { %v7939_v33 = vrot.slane %v7893_v31, 6  ;;  %v7813_v61 = vsub.f32 1.0, %v7725_v0  ;;  %v7812_v25 = vsub.f32 1.0, %v7724_v50  ;;  %v15931_v31 = vld [vmem:[#allocation14 + $0x28] sm:$0xff] }
0x1402   :  { %v7933_v52 = vsel %vm6650_vm7, %v7932_v54, %v7931_v28  ;;  %v7890_v41 = vadd.f32 %v7882_v37, %v7848_v18 }
0x1403   :  { %v7831_v1 = vpop.permute.xlu0 %7830  ;;  %v7871_v22 = vpop.permute.xlu1 %7870  ;;  %v7853_v39 = vmul.f32 %v7837_v27, %v7813_v61 }
0x1404   :  { %v7934_v40 = vrot.slane %v7890_v41, 1  ;;  %v7850_v42 = vmul.f32 %v7831_v1, %v7810_v47  ;;  %v7887_v53 = vmul.f32 %v7871_v22, %v7725_v0  ;;  %v15934_v0 = vld [vmem:[#allocation14 + $0x20] sm:$0xff]  ;;  %v15940_v22 = vld [vmem:[#allocation14 + $0x10] sm:$0xff] }
0x1405   :  { %17595 = vst [vmem:[#allocation52_spill] sm:$0xff] %v15934_v0  ;;  %17597 = vst [vmem:[#allocation54_spill] sm:$0xff] %v15940_v22 }
0x1406   :  { %v7935_v32 = vsel %vm6653_vm8, %v7934_v40, %v7933_v52  ;;  %v7892_v30 = vadd.f32 %v7884_v45, %v7850_v42  ;;  %v7895_v17 = vadd.f32 %v7887_v53, %v7853_v39  ;;  %v7326_v40 = vadd.f32 %v15607_v12, %v17594_v59  ;;  %v15903_v45 = vld [vmem:[#allocation14 + $0x70] sm:$0xff]  ;;  %v15913_v12 = vld [vmem:[#allocation14 + $0x58] sm:$0xff] }
0x1407   :  { %v7829_v8 = vpop.permute.xlu0 %7828 }
0x1408   :  { %v7849_v58 = vmul.f32 %v7829_v8, %v7809_v51  ;;  %v7937_v5 = vrot.slane %v7892_v30, 7  ;;  %v7942_v37 = vrot.slane %v7895_v17, 4  ;;  %v15910_v51 = vld [vmem:[#allocation14 + $0x60] sm:$0xff]  ;;  %v15925_v8 = vld [vmem:[#allocation14 + $0x38] sm:$0xff] }
0x1409   :  { %v15922_v30 = vld [vmem:[#allocation14 + $0x40] sm:$0xff] }
0x140a   :  { %v7891_v6 = vadd.f32 %v7883_v20, %v7849_v58  ;;  %v15928_v20 = vld [vmem:[#allocation14 + $0x30] sm:$0xff]  ;;  %v15937_v58 = vld [vmem:[#allocation14 + $0x18] sm:$0xff] }
0x140b   :  { %v7835_v57 = vpop.permute.xlu0 %7834  ;;  %17596 = vst [vmem:[#allocation53_spill] sm:$0xff] %v15937_v58 }
0x140c   :  { %v7936_v46 = vsel %vm6656_vm9, %v7891_v6, %v7935_v32  ;;  %v7852_v44 = vmul.f32 %v7835_v57, %v7812_v25  ;;  %v15919_v32 = vld [vmem:[#allocation14 + $0x48] sm:$0xff] }
0x140d   :  { %v7938_v38 = vsel %vm6659_vm10, %v7937_v5, %v7936_v46  ;;  %v15943_v6 = vld [vmem:[#allocation14 + $0x8] sm:$0xff]  ;;  %v13428_v5 = vld [vmem:[#allocation14 + $0x78] sm:$0xff] }
0x140e   :  { %v7940_v56 = vsel %vm6662_vm11, %v7939_v33, %v7938_v38  ;;  %17598 = vst [vmem:[#allocation55_spill] sm:$0xff] %v15943_v6 }
0x140f   :  { %v7869_v23 = vpop.permute.xlu0 %7868  ;;  %7944 = vrot.lane.b32.xlu0 %v7940_v56, %s13757_s2 }
0x1410   :  { %v7886_v55 = vmul.f32 %v7869_v23, %v7724_v50  ;;  %v15946_v50 = vld [vmem:[#allocation14] sm:$0xff] }
0x1411   :  { %17599 = vst [vmem:[#allocation56_spill] sm:$0xff] %v15946_v50 }
0x1412   :  { %v7894_v21 = vadd.f32 %v7886_v55, %v7852_v44 }
0x1414   :  { %v7941_v28 = vrot.slane %v7894_v21, 5 }
0x1416   :  { %v7943_v54 = vsel %vm6644_vm5, %v7942_v37, %v7941_v28 }
0x1417   :  { %7946 = vrot.lane.b32.xlu1 %v7943_v54, %s13757_s2 }
0x146d   :  { %v7918_v18 = vpop.permute.xlu0 %7917 }
0x1471   :  { %v7920_v3 = vpop.permute.xlu1 %7919 }
0x1481   :  { %v7945_v9 = vpop.permute.xlu0 %7944 }
0x1482   :  { %v15888_v52 = vsel %vm254_vm0, %v7918_v18, %v7945_v9 }
0x1483   :  { %v15895_v1 = vrot.slane %v15888_v52, 2 }
0x1489   :  { %v7947_v41 = vpop.permute.xlu1 %7946 }
0x148a   :  { %v15891_v47 = vsel %vm254_vm0, %v7920_v3, %v7947_v41 }
0x148b   :  { %v7956_v27 = vrot.slane %v15891_v47, 2 }
0x148d   :  { %v7957_v16 = vsel %vm7954_vm14, %v15895_v1, %v7956_v27 }
0x148e   :  { %v15900_v42 = vadd.f32 %v7957_v16, %v7326_v40  ;;  %12024 = vmatmul.mubr.msk.f32.vlgmr.msra.gmra.mxu1 %vm6120_vm12, %v7957_v16 }
0x148f   :  { %9245 = vmatpush1.msra.mxu1 %v15903_v45  ;;  %9292 = vmatprep.mubr.f32.mxu1 %v17580_v49 }
0x1490   :  { %9246 = vmatprep.subr.mxu1 %v15907_v63 }
0x1491   :  { %9247 = vmatpush1.msra.mxu1 %v15910_v51 }
0x1492   :  { %9248 = vmatprep.subr.mxu1 %v15913_v12 }
0x1493   :  { %9249 = vmatpush1.msra.mxu1 %v15916_v10 }
0x1494   :  { %9250 = vmatprep.subr.mxu1 %v15919_v32 }
0x1495   :  { %9251 = vmatpush1.msra.mxu1 %v15922_v30 }
0x1496   :  { %9252 = vmatprep.subr.mxu1 %v15925_v8 }
0x1497   :  { %9253 = vmatpush1.msra.mxu1 %v15928_v20 }
0x1498   :  { %9254 = vmatprep.subr.mxu1 %v15931_v31 }
0x1499   :  { %9255 = vmatpush1.msra.mxu1 %v15934_v0 }
0x149a   :  { %9256 = vmatprep.subr.mxu1 %v15937_v58 }
0x149b   :  { %9257 = vmatpush1.msra.mxu1 %v15940_v22 }
0x149c   :  { %9258 = vmatprep.subr.mxu1 %v15943_v6 }
0x149d   :  { %9259 = vmatpush1.msra.mxu1 %v15946_v50 }
0x149e   :  { %10514 = vmatprep.subr.mxu1 %v13428_v5 }
0x154e   :  { %v8028_v57 = vpop.f32.mrf.mxu1 }
0x154f   :  { %v15950_v33 = vadd.f32 %v8028_v57, %v14951_v24 }
0x1550   :  { %v8030_v46 = vpop.f32.mrf.mxu1 }
0x1551   :  { %8095 = vrot.lane.b32.xlu1 %v15950_v33, %s13762_s19  ;;  %v8035_v61 = vrot.slane %v15950_v33, 6  ;;  %v15957_v53 = vrot.slane %v15950_v33, 3  ;;  %v8036_v38 = vrot.slane %v15950_v33, 7  ;;  %v15963_v39 = vadd.f32 %v8030_v46, %v17581_v36 }
0x1552   :  { %v8040_v25 = vrot.slane %v15950_v33, 4  ;;  %v8034_v56 = vrot.slane %v15950_v33, 5  ;;  %v8038_v17 = vrot.slane %v15950_v33, 2  ;;  %v8037_v55 = vrot.slane %v15950_v33, 1 }
0x1553   :  { %8091 = vrot.lane.b32.xlu0 %v8035_v61, %s13762_s19  ;;  %v17506_v23 = vrot.slane %v15963_v39, 4  ;;  %v17505_v44 = vrot.slane %v15963_v39, 6  ;;  %v17502_v21 = vrot.slane %v15963_v39, 7  ;;  %v17503_v37 = vrot.slane %v15963_v39, 5 }
0x1554   :  { %v17501_v28 = vrot.slane %v15963_v39, 2  ;;  %v17500_v54 = vrot.slane %v15963_v39, 1  ;;  %v17504_v18 = vrot.slane %v15963_v39, 3  ;;  %v8052_v3 = vadd.f32 %v15950_v33, %v17584_v60 }
0x1555   :  { %8101 = vrot.lane.b32.xlu1 %v15957_v53, %s13762_s19  ;;  %v8050_v9 = vadd.f32 %v8035_v61, %v17582_v43  ;;  %v8055_v27 = vadd.f32 %v15957_v53, %v17586_v2  ;;  %v8051_v40 = vadd.f32 %v8036_v38, %v15047_v13  ;;  %v8056_v5 = vadd.f32 %v8040_v25, %v17588_v14 }
0x1556   :  { %v8060_v41 = vmul.f32 0.5, %v8052_v3  ;;  %v8049_v46 = vadd.f32 %v8034_v56, %v17583_v34 }
0x1557   :  { %8093 = vrot.lane.b32.xlu0 %v8036_v38, %s13762_s19  ;;  %v8058_v59 = vmul.f32 0.5, %v8050_v9  ;;  %v8063_v16 = vmul.f32 0.5, %v8055_v27  ;;  %v8059_v57 = vmul.f32 0.5, %v8051_v40  ;;  %v8053_v27 = vadd.f32 %v8037_v55, %v17585_v11 }
0x1558   :  { %12991 = vtanh.f32 %v8060_v41  ;;  %v8057_v3 = vmul.f32 0.5, %v8049_v46  ;;  %v8266_v40 = vadd.f32 %v8036_v38, %v17584_v60  ;;  %v8270_v38 = vadd.f32 %v15957_v53, %v17588_v14 }
0x1559   :  { %8103 = vrot.lane.b32.xlu1 %v8040_v25, %s13762_s19  ;;  %12993 = vtanh.f32 %v8058_v59 }
0x155a   :  { %12995 = vtanh.f32 %v8063_v16  ;;  %v8278_v53 = vmul.f32 0.5, %v8270_v38 }
0x155b   :  { %8089 = vrot.lane.b32.xlu0 %v8034_v56, %s13762_s19  ;;  %12997 = vtanh.f32 %v8059_v57 }
0x155d   :  { %8359 = vrot.lane.b32.xlu1 %v17506_v23, %s13762_s19 }
0x155f   :  { %8099 = vrot.lane.b32.xlu0 %v8038_v17, %s13762_s19 }
0x1561   :  { %8363 = vrot.lane.b32.xlu1 %v17505_v44, %s13762_s19 }
0x1563   :  { %8097 = vrot.lane.b32.xlu0 %v8037_v55, %s13762_s19 }
0x1565   :  { %8365 = vrot.lane.b32.xlu1 %v17502_v21, %s13762_s19  ;;  %v8054_v21 = vadd.f32 %v8038_v17, %v17587_v26  ;;  %v12992_v16 = vpop.eup %12991 }
0x1566   :  { %v12994_v57 = vpop.eup %12993  ;;  %v8076_v46 = vadd.f32 1.0, %v12992_v16 }
0x1567   :  { %8361 = vrot.lane.b32.xlu0 %v17503_v37, %s13762_s19  ;;  %v8265_v37 = vadd.f32 %v8035_v61, %v15047_v13  ;;  %v8062_v41 = vmul.f32 0.5, %v8054_v21  ;;  %v12996_v61 = vpop.eup %12995  ;;  %v8268_v21 = vadd.f32 %v8037_v55, %v17587_v26 }
0x1569   :  { %8371 = vrot.lane.b32.xlu1 %v17501_v28, %s13762_s19  ;;  %v8263_v28 = vadd.f32 %v8040_v25, %v17583_v34  ;;  %v8273_v59 = vmul.f32 0.5, %v8265_v37  ;;  %v8264_v25 = vadd.f32 %v8034_v56, %v17582_v43  ;;  %v12998_v37 = vpop.eup %12997 }
0x156b   :  { %8369 = vrot.lane.b32.xlu0 %v17500_v54, %s13762_s19  ;;  %v8064_v54 = vmul.f32 0.5, %v8056_v5  ;;  %v8271_v9 = vmul.f32 0.5, %v8263_v28  ;;  %v8061_v5 = vmul.f32 0.5, %v8053_v27  ;;  %v8269_v28 = vadd.f32 %v8038_v17, %v17586_v2 }
0x156c   :  { %v8079_v27 = vadd.f32 1.0, %v12996_v61  ;;  %v8267_v17 = vadd.f32 %v15950_v33, %v17585_v11 }
0x156d   :  { %8373 = vrot.lane.b32.xlu1 %v17504_v18, %s13762_s19  ;;  %12999 = vtanh.f32 %v8064_v54  ;;  %v8274_v54 = vmul.f32 0.5, %v8266_v40  ;;  %v8277_v56 = vmul.f32 0.5, %v8269_v28  ;;  %v8276_v40 = vmul.f32 0.5, %v8268_v21 }
0x156e   :  { %13001 = vtanh.f32 %v8057_v3  ;;  %v8074_v3 = vadd.f32 1.0, %v12994_v57  ;;  %v8275_v33 = vmul.f32 0.5, %v8267_v17 }
0x156f   :  { %8367 = vrot.lane.b32.xlu0 %v15963_v39, %s13762_s19  ;;  %13003 = vtanh.f32 %v8271_v9  ;;  %v8272_v9 = vmul.f32 0.5, %v8264_v25 }
0x1570   :  { %13005 = vtanh.f32 %v8062_v41  ;;  %v16022_v41 = vmul.f32 0.5, %v8076_v46  ;;  %v16027_v57 = vmul.f32 0.5, %v8074_v3 }
0x1571   :  { %13007 = vtanh.f32 %v8273_v59 }
0x1572   :  { %13009 = vtanh.f32 %v8061_v5  ;;  %v8075_v5 = vadd.f32 1.0, %v12998_v37 }
0x1573   :  { %13011 = vtanh.f32 %v8274_v54  ;;  %v16031_v54 = vmul.f32 0.5, %v8079_v27 }
0x1574   :  { %13013 = vtanh.f32 %v8272_v9  ;;  %v16035_v3 = vmul.f32 0.5, %v8075_v5 }
0x1575   :  { %13015 = vtanh.f32 %v8277_v56 }
0x1576   :  { %13017 = vtanh.f32 %v8276_v40 }
0x1577   :  { %13019 = vtanh.f32 %v8278_v53 }
0x1578   :  { %13021 = vtanh.f32 %v8275_v33 }
0x157a   :  { %v13000_v16 = vpop.eup %12999 }
0x157b   :  { %v13002_v25 = vpop.eup %13001  ;;  %v8080_v28 = vadd.f32 1.0, %v13000_v16 }
0x157c   :  { %v13004_v61 = vpop.eup %13003  ;;  %v8073_v9 = vadd.f32 1.0, %v13002_v25 }
0x157d   :  { %v13006_v37 = vpop.eup %13005  ;;  %v16039_v27 = vmul.f32 0.5, %v8080_v28  ;;  %v8287_v56 = vadd.f32 1.0, %v13004_v61 }
0x157e   :  { %v13008_v16 = vpop.eup %13007  ;;  %v16043_v5 = vmul.f32 0.5, %v8073_v9  ;;  %v8078_v25 = vadd.f32 1.0, %v13006_v37 }
0x157f   :  { %v13010_v40 = vpop.eup %13009  ;;  %v8295_v28 = vmul.f32 0.5, %v8287_v56 }
0x1580   :  { %v13012_v61 = vpop.eup %13011 }
0x1581   :  { %v13014_v9 = vpop.eup %13013 }
0x1582   :  { %v13016_v23 = vpop.eup %13015 }
0x15c3   :  { %v8096_v59 = vpop.permute.xlu1 %8095 }
0x15c4   :  { %v8116_v55 = vmul.f32 %v8096_v59, %v16022_v41 }
0x15c5   :  { %v8092_v18 = vpop.permute.xlu0 %8091 }
0x15c6   :  { %v8114_v46 = vmul.f32 %v8092_v18, %v16027_v57  ;;  %8135 = vrot.lane.b32.xlu1 %v8116_v55, %s13762_s19 }
0x15c7   :  { %v8102_v21 = vpop.permute.xlu1 %8101 }
0x15c8   :  { %v8119_v59 = vmul.f32 %v8102_v21, %v16031_v54  ;;  %8131 = vrot.lane.b32.xlu0 %v8114_v46, %s13762_s19 }
0x15c9   :  { %v8094_v38 = vpop.permute.xlu0 %8093 }
0x15ca   :  { %v8115_v18 = vmul.f32 %v8094_v38, %v16035_v3  ;;  %8141 = vrot.lane.b32.xlu1 %v8119_v59, %s13762_s19  ;;  %v8289_v59 = vadd.f32 1.0, %v13008_v16 }
0x15cb   :  { %v8104_v17 = vpop.permute.xlu1 %8103 }
0x15cc   :  { %v8120_v55 = vmul.f32 %v8104_v17, %v16039_v27  ;;  %8133 = vrot.lane.b32.xlu0 %v8115_v18, %s13762_s19  ;;  %v16048_v17 = vmul.f32 0.5, %v8078_v25  ;;  %v8077_v18 = vadd.f32 1.0, %v13010_v40  ;;  %v8297_v37 = vmul.f32 0.5, %v8289_v59 }
0x15cd   :  { %v8090_v46 = vpop.permute.xlu0 %8089 }
0x15ce   :  { %v8113_v21 = vmul.f32 %v8090_v46, %v16043_v5  ;;  %8143 = vrot.lane.b32.xlu1 %v8120_v55, %s13762_s19  ;;  %v8290_v46 = vadd.f32 1.0, %v13012_v61  ;;  %v16053_v16 = vmul.f32 0.5, %v8077_v18 }
0x15cf   :  { %v8360_v53 = vpop.permute.xlu1 %8359 }
0x15d0   :  { %v8383_v38 = vmul.f32 %v8360_v53, %v8295_v28  ;;  %8129 = vrot.lane.b32.xlu0 %v8113_v21, %s13762_s19  ;;  %v8288_v28 = vadd.f32 1.0, %v13014_v9  ;;  %v13018_v21 = vpop.eup %13017  ;;  %v8298_v53 = vmul.f32 0.5, %v8290_v46 }
0x15d1   :  { %v8100_v44 = vpop.permute.xlu0 %8099  ;;  %v13020_v36 = vpop.eup %13019 }
0x15d2   :  { %v8118_v33 = vmul.f32 %v8100_v44, %v16048_v17  ;;  %8399 = vrot.lane.b32.xlu1 %v8383_v38, %s13762_s19  ;;  %v8293_v44 = vadd.f32 1.0, %v13016_v23  ;;  %v8296_v61 = vmul.f32 0.5, %v8288_v28  ;;  %v8294_v24 = vadd.f32 1.0, %v13020_v36 }
0x15d3   :  { %v8364_v55 = vpop.permute.xlu1 %8363  ;;  %v8217_v36 = vrot.slane %v15888_v52, 7 }
0x15d4   :  { %v8385_v56 = vmul.f32 %v8364_v55, %v8297_v37  ;;  %8139 = vrot.lane.b32.xlu0 %v8118_v33, %s13762_s19  ;;  %v8292_v37 = vadd.f32 1.0, %v13018_v21  ;;  %v13022_v55 = vpop.eup %13021  ;;  %v8301_v9 = vmul.f32 0.5, %v8293_v44  ;;  %v8219_v44 = vrot.slane %v15888_v52, 3 }
0x15d5   :  { %v8098_v25 = vpop.permute.xlu0 %8097  ;;  %v8291_v23 = vadd.f32 1.0, %v13022_v55 }
0x15d6   :  { %v8117_v40 = vmul.f32 %v8098_v25, %v16053_v16  ;;  %8403 = vrot.lane.b32.xlu1 %v8385_v56, %s13762_s19  ;;  %v8300_v46 = vmul.f32 0.5, %v8292_v37  ;;  %v8488_v37 = vrot.slane %v15891_v47, 4 }
0x15d7   :  { %v8366_v38 = vpop.permute.xlu1 %8365 }
0x15d8   :  { %v8386_v59 = vmul.f32 %v8366_v38, %v8298_v53  ;;  %8137 = vrot.lane.b32.xlu0 %v8117_v40, %s13762_s19  ;;  %v8302_v40 = vmul.f32 0.5, %v8294_v24  ;;  %v8299_v53 = vmul.f32 0.5, %v8291_v23  ;;  %v8487_v24 = vrot.slane %v15888_v52, 6 }
0x15d9   :  { %v8362_v33 = vpop.permute.xlu0 %8361 }
0x15da   :  { %v8384_v18 = vmul.f32 %v8362_v33, %v8296_v61  ;;  %8405 = vrot.lane.b32.xlu1 %v8386_v59, %s13762_s19  ;;  %v8221_v61 = vrot.slane %v15891_v47, 5 }
0x15db   :  { %v8372_v50 = vpop.permute.xlu1 %8371 }
0x15dc   :  { %v8389_v25 = vmul.f32 %v8372_v50, %v8301_v9  ;;  %8401 = vrot.lane.b32.xlu0 %v8384_v18, %s13762_s19  ;;  %v8218_v50 = vrot.slane %v15888_v52, 1 }
0x15dd   :  { %v8370_v56 = vpop.permute.xlu0 %8369 }
0x15de   :  { %v8388_v6 = vmul.f32 %v8370_v56, %v8300_v46  ;;  %8411 = vrot.lane.b32.xlu1 %v8389_v25, %s13762_s19 }
0x15df   :  { %v8374_v28 = vpop.permute.xlu1 %8373 }
0x15e0   :  { %v8390_v21 = vmul.f32 %v8374_v28, %v8302_v40  ;;  %8409 = vrot.lane.b32.xlu0 %v8388_v6, %s13762_s19  ;;  %v8220_v6 = vrot.slane %v15888_v52, 4 }
0x15e1   :  { %v8368_v38 = vpop.permute.xlu0 %8367 }
0x15e2   :  { %v8387_v59 = vmul.f32 %v8368_v38, %v8299_v53  ;;  %8413 = vrot.lane.b32.xlu1 %v8390_v21, %s13762_s19 }
0x15e4   :  { %8407 = vrot.lane.b32.xlu0 %v8387_v59, %s13762_s19 }
0x15e6   :  { %8225 = vrot.lane.b32.xlu1 %v15888_v52, %s13757_s2 }
0x15e8   :  { %8223 = vrot.lane.b32.xlu0 %v8217_v36, %s13757_s2 }
0x15ea   :  { %8489 = vrot.lane.b32.xlu1 %v8487_v24, %s13761_s11 }
0x15ec   :  { %8233 = vrot.lane.b32.xlu0 %v8220_v6, %s13757_s2 }
0x15ee   :  { %8227 = vrot.lane.b32.xlu1 %v8218_v50, %s13757_s2 }
0x15f0   :  { %8491 = vrot.lane.b32.xlu0 %v8217_v36, %s13761_s11 }
0x15f2   :  { %8493 = vrot.lane.b32.xlu1 %v15888_v52, %s13761_s11  ;;  %v8222_v52 = vrot.slane %v15891_v47, 6 }
0x15f4   :  { %8499 = vrot.lane.b32.xlu0 %v8219_v44, %s13761_s11 }
0x15f6   :  { %8229 = vrot.lane.b32.xlu1 %v15895_v1, %s13757_s2 }
0x15f8   :  { %8231 = vrot.lane.b32.xlu0 %v8219_v44, %s13757_s2 }
0x15fa   :  { %8235 = vrot.lane.b32.xlu1 %v8221_v61, %s13757_s2 }
0x15fe   :  { %8495 = vrot.lane.b32.xlu1 %v8218_v50, %s13761_s11 }
0x1602   :  { %8501 = vrot.lane.b32.xlu1 %v8488_v37, %s13761_s11 }
0x1606   :  { %8237 = vrot.lane.b32.xlu1 %v8222_v52, %s13757_s2 }
0x1638   :  { %v8136_v55 = vpop.permute.xlu1 %8135 }
0x1639   :  { %v8156_v33 = vadd.f32 %v8136_v55, %v17584_v60 }
0x163a   :  { %v8132_v18 = vpop.permute.xlu0 %8131 }
0x163b   :  { %13023 = vtanh.f32 %v8156_v33  ;;  %v8154_v9 = vadd.f32 %v8132_v18, %v17582_v43 }
0x163c   :  { %v8142_v25 = vpop.permute.xlu1 %8141 }
0x163d   :  { %13025 = vtanh.f32 %v8154_v9  ;;  %v8159_v46 = vadd.f32 %v8142_v25, %v17586_v2 }
0x163e   :  { %v8134_v23 = vpop.permute.xlu0 %8133 }
0x163f   :  { %13027 = vtanh.f32 %v8159_v46  ;;  %v8155_v56 = vadd.f32 %v8134_v23, %v15047_v13 }
0x1640   :  { %v8144_v40 = vpop.permute.xlu1 %8143 }
0x1641   :  { %13029 = vtanh.f32 %v8155_v56  ;;  %v8160_v28 = vadd.f32 %v8144_v40, %v17588_v14  ;;  %v17604_v14 = vrot.slane %v15963_v39, 7 }
0x1642   :  { %v8130_v21 = vpop.permute.xlu0 %8129 }
0x1643   :  { %13031 = vtanh.f32 %v8160_v28  ;;  %v8153_v53 = vadd.f32 %v8130_v21, %v17583_v34  ;;  %v8322_v2 = vadd.f32 %v17604_v14, %v17593_v7  ;;  %v8171_v14 = vsub.f32 1.0, %v16035_v3 }
0x1644   :  { %v8400_v38 = vpop.permute.xlu1 %8399 }
0x1645   :  { %13033 = vtanh.f32 %v8153_v53  ;;  %v8330_v43 = vmul.f32 0.5, %v8322_v2 }
0x1646   :  { %v8140_v59 = vpop.permute.xlu0 %8139 }
0x1647   :  { %v8158_v36 = vadd.f32 %v8140_v59, %v17587_v26 }
0x1648   :  { %v13024_v24 = vpop.eup %13023  ;;  %v8404_v6 = vpop.permute.xlu1 %8403 }
0x1649   :  { %13035 = vtanh.f32 %v8158_v36  ;;  %8191 = vrot.lane.b32.xlu1 %v13024_v24, %s13761_s11  ;;  %v8423_v24 = vadd.f32 %v8400_v38, %v17590_v19 }
0x164a   :  { %v13026_v50 = vpop.eup %13025  ;;  %v8138_v44 = vpop.permute.xlu0 %8137 }
0x164b   :  { %v8157_v37 = vadd.f32 %v8138_v44, %v17585_v11  ;;  %8187 = vrot.lane.b32.xlu0 %v13026_v50, %s13761_s11  ;;  %v8175_v11 = vsub.f32 1.0, %v16031_v54 }
0x164c   :  { %v13028_v52 = vpop.eup %13027  ;;  %v8406_v55 = vpop.permute.xlu1 %8405 }
0x164d   :  { %13037 = vtanh.f32 %v8157_v37  ;;  %v8426_v33 = vadd.f32 %v8406_v55, %v17593_v7  ;;  %8197 = vrot.lane.b32.xlu1 %v13028_v52, %s13761_s11  ;;  %v8425_v37 = vadd.f32 %v8404_v6, %v17591_v35  ;;  %v8169_v7 = vsub.f32 1.0, %v16043_v5 }
0x164e   :  { %v13030_v18 = vpop.eup %13029  ;;  %v8402_v9 = vpop.permute.xlu0 %8401 }
0x164f   :  { %13039 = vtanh.f32 %v8426_v33  ;;  %8189 = vrot.lane.b32.xlu0 %v13030_v18, %s13761_s11  ;;  %v8424_v55 = vadd.f32 %v8402_v9, %v17589_v15 }
0x1650   :  { %v13032_v25 = vpop.eup %13031  ;;  %v8412_v46 = vpop.permute.xlu1 %8411 }
0x1651   :  { %v8429_v23 = vadd.f32 %v8412_v46, %v15194_v4  ;;  %8199 = vrot.lane.b32.xlu1 %v13032_v25, %s13761_s11 }
0x1652   :  { %v13034_v56 = vpop.eup %13033  ;;  %v8410_v40 = vpop.permute.xlu0 %8409 }
0x1653   :  { %13041 = vtanh.f32 %v8429_v23  ;;  %8185 = vrot.lane.b32.xlu0 %v13034_v56, %s13761_s11  ;;  %v8428_v38 = vadd.f32 %v8410_v40, %v15188_v29 }
0x1654   :  { %v8414_v28 = vpop.permute.xlu1 %8413 }
0x1655   :  { %v8430_v21 = vadd.f32 %v8414_v28, %v17592_v62 }
0x1656   :  { %v13036_v53 = vpop.eup %13035  ;;  %v8408_v59 = vpop.permute.xlu0 %8407 }
0x1657   :  { %13043 = vtanh.f32 %v8430_v21  ;;  %v8427_v36 = vadd.f32 %v8408_v59, %v15182_v48  ;;  %8195 = vrot.lane.b32.xlu0 %v13036_v53, %s13761_s11 }
0x1658   :  { %v8226_v23 = vpop.permute.xlu1 %8225 }
0x1659   :  { %13045 = vtanh.f32 %v8427_v36 }
0x165a   :  { %v13038_v50 = vpop.eup %13037  ;;  %13047 = vtanh.f32 %v8423_v24  ;;  %v8224_v28 = vpop.permute.xlu0 %8223 }
0x165b   :  { %8193 = vrot.lane.b32.xlu0 %v13038_v50, %s13761_s11  ;;  %13049 = vtanh.f32 %v8425_v37  ;;  %v8247_v2 = vmul.f32 %v8224_v28, %v16043_v5 }
0x165c   :  { %v13040_v44 = vpop.eup %13039  ;;  %13051 = vtanh.f32 %v8424_v55  ;;  %v16128_v56 = vpop.permute.xlu1 %8489 }
0x165d   :  { %8461 = vrot.lane.b32.xlu1 %v13040_v44, %s13761_s11  ;;  %13053 = vtanh.f32 %v8428_v38  ;;  %v17601_v38 = vrot.slane %v15963_v39, 6 }
0x165e   :  { %v8234_v53 = vpop.permute.xlu0 %8233 }
0x1660   :  { %v13042_v52 = vpop.eup %13041  ;;  %v8228_v47 = vpop.permute.xlu1 %8227 }
0x1661   :  { %8467 = vrot.lane.b32.xlu1 %v13042_v52, %s13761_s11  ;;  %v17600_v52 = vrot.slane %v15963_v39, 4  ;;  %v8249_v58 = vmul.f32 %v8228_v47, %v16035_v3 }
0x1662   :  { %v16134_v36 = vpop.permute.xlu0 %8491 }
0x1663   :  { %v8319_v55 = vadd.f32 %v17600_v52, %v17590_v19  ;;  %v17605_v52 = vrot.slane %v15963_v39, 2 }
0x1664   :  { %v13044_v33 = vpop.eup %13043 }
0x1665   :  { %8469 = vrot.lane.b32.xlu1 %v13044_v33, %s13761_s11  ;;  %v8327_v34 = vmul.f32 0.5, %v8319_v55  ;;  %v8325_v19 = vadd.f32 %v17605_v52, %v15194_v4  ;;  %v8248_v52 = vmul.f32 %v8226_v23, %v16027_v57 }
0x1666   :  { %v13046_v18 = vpop.eup %13045  ;;  %v16138_v50 = vpop.permute.xlu0 %8499 }
0x1667   :  { %8463 = vrot.lane.b32.xlu0 %v13046_v18, %s13761_s11  ;;  %v13048_v6 = vpop.eup %13047  ;;  %v8321_v18 = vadd.f32 %v17601_v38, %v17591_v35  ;;  %v8170_v38 = vsub.f32 1.0, %v16027_v57  ;;  %13055 = vtanh.f32 %v8327_v34  ;;  %v8333_v4 = vmul.f32 0.5, %v8325_v19 }
0x1668   :  { %v13050_v9 = vpop.eup %13049  ;;  %v8174_v34 = vsub.f32 1.0, %v16048_v17 }
0x1669   :  { %8503 = vrot.lane.b32.xlu1 %v8221_v61, %s13761_s11  ;;  %v13052_v25 = vpop.eup %13051  ;;  %v16130_v61 = vpop.permute.xlu1 %8493  ;;  %v8329_v26 = vmul.f32 0.5, %v8321_v18  ;;  %v8176_v18 = vsub.f32 1.0, %v16039_v27 }
0x166a   :  { %v13054_v46 = vpop.eup %13053 }
0x166b   :  { %8455 = vrot.lane.b32.xlu0 %v13048_v6, %s13761_s11  ;;  %v17602_v6 = vrot.slane %v15963_v39, 3  ;;  %13057 = vtanh.f32 %v8329_v26 }
0x166c   :  { %13059 = vtanh.f32 %v8330_v43 }
0x166d   :  { %v8230_v40 = vpop.permute.xlu1 %8229 }
0x166f   :  { %8459 = vrot.lane.b32.xlu0 %v13050_v9, %s13761_s11  ;;  %v8326_v9 = vadd.f32 %v17602_v6, %v17592_v62  ;;  %v17606_v62 = vrot.slane %v15963_v39, 1 }
0x1671   :  { %v8236_v21 = vpop.permute.xlu1 %8235  ;;  %v8334_v13 = vmul.f32 0.5, %v8326_v9 }
0x1672   :  { %v8253_v0 = vmul.f32 %v8236_v21, %v16031_v54  ;;  %v8173_v54 = vsub.f32 1.0, %v16053_v16 }
0x1673   :  { %8457 = vrot.lane.b32.xlu0 %v13052_v25, %s13761_s11  ;;  %v17603_v25 = vrot.slane %v15963_v39, 5 }
0x1675   :  { %v16132_v59 = vpop.permute.xlu1 %8495 }
0x1677   :  { %8465 = vrot.lane.b32.xlu0 %v13054_v46, %s13761_s11  ;;  %v8320_v46 = vadd.f32 %v17603_v25, %v17589_v15  ;;  %v8324_v25 = vadd.f32 %v17606_v62, %v15188_v29 }
0x1679   :  { %v16136_v24 = vpop.permute.xlu1 %8501  ;;  %v8328_v6 = vmul.f32 0.5, %v8320_v46  ;;  %v8332_v19 = vmul.f32 0.5, %v8324_v25 }
0x167b   :  { %8497 = vrot.lane.b32.xlu0 %v15895_v1, %s13761_s11  ;;  %v8232_v1 = vpop.permute.xlu0 %8231  ;;  %13061 = vtanh.f32 %v8328_v6 }
0x167c   :  { %13063 = vtanh.f32 %v8333_v4  ;;  %v8251_v28 = vmul.f32 %v8232_v1, %v16053_v16  ;;  %v13056_v16 = vpop.eup %13055 }
0x167d   :  { %v8238_v44 = vpop.permute.xlu1 %8237  ;;  %13065 = vtanh.f32 %v8332_v19 }
0x167e   :  { %v8254_v57 = vmul.f32 %v8238_v44, %v16039_v27  ;;  %v8323_v27 = vadd.f32 %v15963_v39, %v15182_v48  ;;  %13067 = vtanh.f32 %v8334_v13 }
0x16bb   :  { %v8192_v37 = vpop.permute.xlu1 %8191 }
0x16bd   :  { %v8188_v33 = vpop.permute.xlu0 %8187 }
0x16be   :  { %v8210_v15 = vmul.f32 %v8188_v33, %v8170_v38  ;;  %v8172_v33 = vsub.f32 1.0, %v16022_v41 }
0x16bf   :  { %v8198_v60 = vpop.permute.xlu1 %8197 }
0x16c0   :  { %v8215_v46 = vmul.f32 %v8198_v60, %v8175_v11  ;;  %v8256_v38 = vadd.f32 %v8248_v52, %v8210_v15  ;;  %v8212_v26 = vmul.f32 %v8192_v37, %v8172_v33  ;;  %v8250_v15 = vmul.f32 %v8230_v40, %v16022_v41 }
0x16c1   :  { %v8190_v35 = vpop.permute.xlu0 %8189  ;;  %v8331_v37 = vmul.f32 0.5, %v8323_v27 }
0x16c2   :  { %v8211_v22 = vmul.f32 %v8190_v35, %v8171_v14  ;;  %v8252_v35 = vmul.f32 %v8234_v53, %v16048_v17  ;;  %v8537_v3 = vrot.slane %v8256_v38, 7  ;;  %v8258_v21 = vadd.f32 %v8250_v15, %v8212_v26  ;;  %v13058_v14 = vpop.eup %13057 }
0x16c3   :  { %v8200_v55 = vpop.permute.xlu1 %8199  ;;  %13069 = vtanh.f32 %v8331_v37  ;;  %v13060_v13 = vpop.eup %13059 }
0x16c4   :  { %v8216_v29 = vmul.f32 %v8200_v55, %v8176_v18  ;;  %v8257_v5 = vadd.f32 %v8249_v58, %v8211_v22  ;;  %v8541_v39 = vrot.slane %v8258_v21, 5  ;;  %v8343_v18 = vadd.f32 1.0, %v13056_v16 }
0x16c5   :  { %v8186_v9 = vpop.permute.xlu0 %8185 }
0x16c6   :  { %v8209_v62 = vmul.f32 %v8186_v9, %v8169_v7  ;;  %v8261_v7 = vadd.f32 %v8253_v0, %v8215_v46  ;;  %v8262_v47 = vadd.f32 %v8254_v57, %v8216_v29  ;;  %v8539_v17 = vrot.slane %v8257_v5, 6  ;;  %v13062_v9 = vpop.eup %13061 }
0x16c7   :  { %v8345_v46 = vadd.f32 1.0, %v13058_v14  ;;  %v13064_v33 = vpop.eup %13063  ;;  %v8351_v19 = vmul.f32 0.5, %v8343_v18  ;;  %v8344_v57 = vadd.f32 1.0, %v13062_v9 }
0x16c8   :  { %v8255_v60 = vadd.f32 %v8247_v2, %v8209_v62  ;;  %v8546_v22 = vrot.slane %v8261_v7, 2  ;;  %v8548_v40 = vrot.slane %v8262_v47, 1  ;;  %v8346_v62 = vadd.f32 1.0, %v13060_v13 }
0x16c9   :  { %v8196_v11 = vpop.permute.xlu0 %8195  ;;  %v8352_v15 = vmul.f32 0.5, %v8344_v57 }
0x16ca   :  { %v8214_v23 = vmul.f32 %v8196_v11, %v8174_v34  ;;  %v8538_v0 = vsel %vm6653_vm8, %v8537_v3, %v8255_v60  ;;  %v13066_v34 = vpop.eup %13065  ;;  %v8353_v60 = vmul.f32 0.5, %v8345_v46  ;;  %v8354_v11 = vmul.f32 0.5, %v8346_v62 }
0x16cb   :  { %v8540_v44 = vsel %vm6656_vm9, %v8539_v17, %v8538_v0  ;;  %v13068_v26 = vpop.eup %13067  ;;  %v8348_v3 = vadd.f32 1.0, %v13066_v34  ;;  %v8514_v14 = vmul.f32 %v16134_v36, %v8352_v15 }
0x16cc   :  { %v8260_v43 = vadd.f32 %v8252_v35, %v8214_v23  ;;  %v8542_v55 = vsel %vm6659_vm10, %v8541_v39, %v8540_v44  ;;  %v8349_v35 = vadd.f32 1.0, %v13064_v33  ;;  %v8439_v23 = vsub.f32 1.0, %v8351_v19 }
0x16cd   :  { %v8194_v58 = vpop.permute.xlu0 %8193  ;;  %v8350_v47 = vadd.f32 1.0, %v13068_v26 }
0x16ce   :  { %v8545_v53 = vrot.slane %v8260_v43, 3  ;;  %v8213_v41 = vmul.f32 %v8194_v58, %v8173_v54  ;;  %v8357_v43 = vmul.f32 0.5, %v8349_v35  ;;  %v8442_v54 = vsub.f32 1.0, %v8354_v11 }
0x16cf   :  { %v8462_v25 = vpop.permute.xlu1 %8461  ;;  %v8513_v58 = vmul.f32 %v16128_v56, %v8351_v19 }
0x16d0   :  { %v8259_v29 = vadd.f32 %v8251_v28, %v8213_v41  ;;  %v8547_v4 = vsel %vm6644_vm5, %v8546_v22, %v8545_v53  ;;  %v8441_v28 = vsub.f32 1.0, %v8353_v60  ;;  %v13070_v21 = vpop.eup %13069  ;;  %v8482_v22 = vmul.f32 %v8462_v25, %v8442_v54 }
0x16d1   :  { %v8549_v6 = vsel %vm6647_vm6, %v8548_v40, %v8547_v4  ;;  %v8515_v53 = vmul.f32 %v16130_v61, %v8353_v60  ;;  %v8356_v41 = vmul.f32 0.5, %v8348_v3  ;;  %v8358_v40 = vmul.f32 0.5, %v8350_v47 }
0x16d2   :  { %v8543_v1 = vrot.slane %v8259_v29, 4  ;;  %8552 = vrot.lane.b32.xlu1 %v8549_v6, %s13761_s11  ;;  %v8440_v29 = vsub.f32 1.0, %v8352_v15  ;;  %v8516_v4 = vmul.f32 %v16132_v59, %v8354_v11  ;;  %v8445_v44 = vsub.f32 1.0, %v8357_v43 }
0x16d3   :  { %v8468_v2 = vpop.permute.xlu1 %8467  ;;  %v8347_v37 = vadd.f32 1.0, %v13070_v21  ;;  %v8446_v25 = vsub.f32 1.0, %v8358_v40  ;;  %v8444_v18 = vsub.f32 1.0, %v8356_v41  ;;  %v8519_v61 = vmul.f32 %v16136_v24, %v8357_v43 }
0x16d4   :  { %v8544_v52 = vsel %vm6662_vm11, %v8543_v1, %v8542_v55  ;;  %v8524_v55 = vadd.f32 %v8516_v4, %v8482_v22  ;;  %v8518_v59 = vmul.f32 %v16138_v50, %v8356_v41 }
0x16d5   :  { %8550 = vrot.lane.b32.xlu0 %v8544_v52, %s13761_s11  ;;  %v8485_v52 = vmul.f32 %v8468_v2, %v8445_v44  ;;  %v8355_v9 = vmul.f32 0.5, %v8347_v37 }
0x16d6   :  { %v8568_v57 = vrot.slane %v8524_v55, 6 }
0x16d7   :  { %v8470_v5 = vpop.permute.xlu1 %8469  ;;  %v8527_v26 = vadd.f32 %v8519_v61, %v8485_v52  ;;  %v8443_v35 = vsub.f32 1.0, %v8355_v9 }
0x16d8   :  { %v8486_v33 = vmul.f32 %v8470_v5, %v8446_v25 }
0x16d9   :  { %v8464_v38 = vpop.permute.xlu0 %8463  ;;  %v8573_v15 = vrot.slane %v8527_v26, 3  ;;  %v17617_v26 = vld [vmem:[#allocation42_spill] sm:$0xff] }
0x16da   :  { %v8483_v3 = vmul.f32 %v8464_v38, %v8443_v35 }
0x16db   :  { %v8504_v39 = vpop.permute.xlu1 %8503 }
0x16dc   :  { %v8520_v13 = vmul.f32 %v8504_v39, %v8358_v40 }
0x16dd   :  { %v8456_v7 = vpop.permute.xlu0 %8455 }
0x16de   :  { %v8479_v27 = vmul.f32 %v8456_v7, %v8439_v23  ;;  %v8528_v2 = vadd.f32 %v8520_v13, %v8486_v33 }
0x16e0   :  { %v8521_v6 = vadd.f32 %v8513_v58, %v8479_v27  ;;  %v8575_v5 = vrot.slane %v8528_v2, 2  ;;  %v17618_v2 = vld [vmem:[#allocation37_spill] sm:$0xff] }
0x16e1   :  { %v8460_v0 = vpop.permute.xlu0 %8459 }
0x16e2   :  { %v8481_v17 = vmul.f32 %v8460_v0, %v8441_v28  ;;  %v8564_v46 = vrot.slane %v8521_v6, 1  ;;  %v17613_v6 = vld [vmem:[#allocation36_spill] sm:$0xff] }
0x16e4   :  { %v8523_v16 = vadd.f32 %v8515_v53, %v8481_v17 }
0x16e5   :  { %v8458_v1 = vpop.permute.xlu0 %8457 }
0x16e6   :  { %v8480_v56 = vmul.f32 %v8458_v1, %v8440_v29  ;;  %v8566_v34 = vrot.slane %v8523_v16, 7 }
0x16e8   :  { %v8522_v62 = vadd.f32 %v8514_v14, %v8480_v56 }
0x16e9   :  { %v8466_v19 = vpop.permute.xlu0 %8465 }
0x16ea   :  { %v8565_v36 = vsel %vm6653_vm8, %v8522_v62, %v8564_v46  ;;  %v8484_v60 = vmul.f32 %v8466_v19, %v8444_v18  ;;  %v17615_v62 = vld [vmem:[#allocation38_spill] sm:$0xff] }
0x16eb   :  { %v8567_v11 = vsel %vm6656_vm9, %v8566_v34, %v8565_v36  ;;  %v17616_v34 = vld [vmem:[#allocation39_spill] sm:$0xff] }
0x16ec   :  { %v8526_v7 = vadd.f32 %v8518_v59, %v8484_v60  ;;  %v8569_v24 = vsel %vm6659_vm10, %v8568_v57, %v8567_v11 }
0x16ed   :  { %v8498_v23 = vpop.permute.xlu0 %8497 }
0x16ee   :  { %v8572_v47 = vrot.slane %v8526_v7, 4  ;;  %v8517_v50 = vmul.f32 %v8498_v23, %v8355_v9  ;;  %v17614_v9 = vld [vmem:[#allocation41_spill] sm:$0xff]  ;;  %v17619_v7 = vld [vmem:[#allocation43_spill] sm:$0xff] }
0x16f0   :  { %v8525_v43 = vadd.f32 %v8517_v50, %v8483_v3  ;;  %v8574_v54 = vsel %vm6644_vm5, %v8573_v15, %v8572_v47  ;;  %v17620_v15 = vld [vmem:[#allocation44_spill] sm:$0xff] }
0x16f1   :  { %v8576_v27 = vsel %vm6647_vm6, %v8575_v5, %v8574_v54  ;;  %v17621_v50 = vld [vmem:[#allocation40_spill] sm:$0xff] }
0x16f2   :  { %v8570_v28 = vrot.slane %v8525_v43, 5  ;;  %8579 = vrot.lane.b32.xlu1 %v8576_v27, %s13757_s2 }
0x16f4   :  { %v8571_v21 = vsel %vm6662_vm11, %v8570_v28, %v8569_v24 }
0x16f5   :  { %8577 = vrot.lane.b32.xlu0 %v8571_v21, %s13757_s2 }
0x1744   :  { %v8553_v0 = vpop.permute.xlu1 %8552 }
0x1747   :  { %v8551_v58 = vpop.permute.xlu0 %8550 }
0x1764   :  { %v8580_v22 = vpop.permute.xlu1 %8579 }
0x1765   :  { %v16202_v38 = vsel %vm254_vm0, %v8553_v0, %v8580_v22 }
0x1766   :  { %v8589_v41 = vrot.slane %v16202_v38, 3 }
0x1767   :  { %v8578_v17 = vpop.permute.xlu0 %8577 }
0x1768   :  { %v16205_v53 = vsel %vm254_vm0, %v8551_v58, %v8578_v17 }
0x1769   :  { %v16209_v40 = vrot.slane %v16205_v53, 3 }
0x176b   :  { %v8590_v29 = vsel %vm8587_vm15, %v16209_v40, %v8589_v41 }
0x176c   :  { %v16213_v4 = vadd.f32 %v8590_v29, %v15900_v42  ;;  %12025 = vmatmul.mubr.msk.f32.vlgmr.msra.gmra.mxu0 %vm6120_vm12, %v8590_v29  ;;  %v17607_v42 = vld [vmem:[#allocation52_spill] sm:$0xff] }
0x176d   :  { %9880 = vmatpush1.msra.mxu0 %v15903_v45  ;;  %9927 = vmatprep.mubr.f32.mxu0 %v17580_v49  ;;  %v17608_v45 = vld [vmem:[#allocation53_spill] sm:$0xff] }
0x176e   :  { %9881 = vmatprep.subr.mxu0 %v15907_v63  ;;  %v17609_v63 = vld [vmem:[#allocation54_spill] sm:$0xff] }
0x176f   :  { %9882 = vmatpush1.msra.mxu0 %v15910_v51  ;;  %v17610_v51 = vld [vmem:[#allocation55_spill] sm:$0xff] }
0x1770   :  { %9883 = vmatprep.subr.mxu0 %v15913_v12  ;;  %v17611_v12 = vld [vmem:[#allocation56_spill] sm:$0xff] }
0x1771   :  { %9884 = vmatpush1.msra.mxu0 %v15916_v10 }
0x1772   :  { %9885 = vmatprep.subr.mxu0 %v15919_v32  ;;  %v17612_v32 = vld [vmem:[#allocation35_spill] sm:$0xff] }
0x1773   :  { %9886 = vmatpush1.msra.mxu0 %v15922_v30 }
0x1774   :  { %9887 = vmatprep.subr.mxu0 %v15925_v8 }
0x1775   :  { %9888 = vmatpush1.msra.mxu0 %v15928_v20 }
0x1776   :  { %9889 = vmatprep.subr.mxu0 %v15931_v31 }
0x1777   :  { %9890 = vmatpush1.msra.mxu0 %v17607_v42 }
0x1778   :  { %9891 = vmatprep.subr.mxu0 %v17608_v45 }
0x1779   :  { %9892 = vmatpush1.msra.mxu0 %v17609_v63 }
0x177a   :  { %9893 = vmatprep.subr.mxu0 %v17610_v51 }
0x177b   :  { %9894 = vmatpush1.msra.mxu0 %v17611_v12 }
0x182c   :  { %v8661_v10 = vpop.f32.mrf.mxu0 }
0x182d   :  { %v16233_v44 = vadd.f32 %v8661_v10, %v17612_v32 }
0x182e   :  { %v8663_v37 = vpop.f32.mrf.mxu0 }
0x182f   :  { %8730 = vrot.lane.b32.xlu1 %v16233_v44, %s13762_s19  ;;  %v8668_v30 = vrot.slane %v16233_v44, 5  ;;  %v8669_v8 = vrot.slane %v16233_v44, 6  ;;  %v8671_v20 = vrot.slane %v16233_v44, 1  ;;  %v16244_v31 = vrot.slane %v16233_v44, 4 }
0x1830   :  { %v8672_v39 = vrot.slane %v16233_v44, 2  ;;  %v16250_v16 = vadd.f32 %v8663_v37, %v17613_v6  ;;  %v8673_v1 = vrot.slane %v16233_v44, 3  ;;  %v8670_v14 = vrot.slane %v16233_v44, 7 }
0x1831   :  { %8724 = vrot.lane.b32.xlu0 %v8668_v30, %s13762_s19  ;;  %v8686_v46 = vadd.f32 %v16233_v44, %v17614_v9  ;;  %v8683_v59 = vadd.f32 %v8668_v30, %v17615_v62  ;;  %v8684_v19 = vadd.f32 %v8669_v8, %v17616_v34  ;;  %v8687_v36 = vadd.f32 %v8671_v20, %v17617_v26 }
0x1832   :  { %v8937_v55 = vrot.slane %v16250_v16, 5  ;;  %v8938_v52 = vrot.slane %v16250_v16, 6  ;;  %v8940_v56 = vrot.slane %v16250_v16, 1  ;;  %v8941_v25 = vrot.slane %v16250_v16, 2 }
0x1833   :  { %8726 = vrot.lane.b32.xlu1 %v8669_v8, %s13762_s19  ;;  %v8939_v13 = vrot.slane %v16250_v16, 7  ;;  %v8942_v18 = vrot.slane %v16250_v16, 3  ;;  %v8943_v61 = vrot.slane %v16250_v16, 4  ;;  %v8694_v33 = vmul.f32 0.5, %v8686_v46 }
0x1834   :  { %v8691_v57 = vmul.f32 0.5, %v8683_v59  ;;  %v8692_v60 = vmul.f32 0.5, %v8684_v19  ;;  %v8682_v11 = vadd.f32 %v16244_v31, %v17618_v2  ;;  %v8695_v35 = vmul.f32 0.5, %v8687_v36 }
0x1835   :  { %8732 = vrot.lane.b32.xlu0 %v8671_v20, %s13762_s19  ;;  %13071 = vtanh.f32 %v8694_v33  ;;  %v8688_v24 = vadd.f32 %v8672_v39, %v17619_v7  ;;  %v8689_v3 = vadd.f32 %v8673_v1, %v17620_v15  ;;  %v8685_v5 = vadd.f32 %v8670_v14, %v17621_v50 }
0x1836   :  { %13073 = vtanh.f32 %v8691_v57  ;;  %v8690_v23 = vmul.f32 0.5, %v8682_v11  ;;  %v8896_v54 = vadd.f32 %v8668_v30, %v17618_v2  ;;  %v8897_v28 = vadd.f32 %v8669_v8, %v17615_v62 }
0x1837   :  { %8722 = vrot.lane.b32.xlu1 %v16244_v31, %s13762_s19  ;;  %13075 = vtanh.f32 %v8692_v60  ;;  %v8696_v47 = vmul.f32 0.5, %v8688_v24  ;;  %v8697_v43 = vmul.f32 0.5, %v8689_v3  ;;  %v8693_v27 = vmul.f32 0.5, %v8685_v5 }
0x1838   :  { %13077 = vtanh.f32 %v8695_v35  ;;  %v8904_v21 = vmul.f32 0.5, %v8896_v54  ;;  %v8900_v0 = vadd.f32 %v8671_v20, %v17614_v9  ;;  %v8905_v22 = vmul.f32 0.5, %v8897_v28 }
0x1839   :  { %8734 = vrot.lane.b32.xlu0 %v8672_v39, %s13762_s19  ;;  %13079 = vtanh.f32 %v8690_v23  ;;  %v8901_v17 = vadd.f32 %v8672_v39, %v17617_v26  ;;  %v8898_v45 = vadd.f32 %v8670_v14, %v17616_v34  ;;  %v8902_v51 = vadd.f32 %v8673_v1, %v17619_v7 }
0x183a   :  { %13081 = vtanh.f32 %v8696_v47  ;;  %v8908_v42 = vmul.f32 0.5, %v8900_v0  ;;  %v8903_v8 = vadd.f32 %v16244_v31, %v17620_v15 }
0x183b   :  { %8736 = vrot.lane.b32.xlu1 %v8673_v1, %s13762_s19  ;;  %13083 = vtanh.f32 %v8697_v43  ;;  %v8909_v10 = vmul.f32 0.5, %v8901_v17  ;;  %v8906_v39 = vmul.f32 0.5, %v8898_v45  ;;  %v8910_v33 = vmul.f32 0.5, %v8902_v51 }
0x183c   :  { %13085 = vtanh.f32 %v8693_v27  ;;  %v8911_v31 = vmul.f32 0.5, %v8903_v8 }
0x183d   :  { %8728 = vrot.lane.b32.xlu0 %v8670_v14, %s13762_s19  ;;  %13087 = vtanh.f32 %v8904_v21  ;;  %v8899_v14 = vadd.f32 %v16233_v44, %v17621_v50 }
0x183e   :  { %13089 = vtanh.f32 %v8905_v22 }
0x183f   :  { %8992 = vrot.lane.b32.xlu1 %v8937_v55, %s13762_s19  ;;  %13091 = vtanh.f32 %v8908_v42  ;;  %v8907_v44 = vmul.f32 0.5, %v8899_v14 }
0x1840   :  { %13093 = vtanh.f32 %v8909_v10 }
0x1841   :  { %8994 = vrot.lane.b32.xlu0 %v8938_v52, %s13762_s19  ;;  %13095 = vtanh.f32 %v8906_v39 }
0x1842   :  { %v13072_v58 = vpop.eup %13071  ;;  %13097 = vtanh.f32 %v8910_v33 }
0x1843   :  { %9000 = vrot.lane.b32.xlu1 %v8940_v56, %s13762_s19  ;;  %v13074_v41 = vpop.eup %13073  ;;  %v8710_v29 = vadd.f32 1.0, %v13072_v58  ;;  %13099 = vtanh.f32 %v8911_v31 }
0x1844   :  { %v13076_v63 = vpop.eup %13075  ;;  %v8707_v12 = vadd.f32 1.0, %v13074_v41  ;;  %13101 = vtanh.f32 %v8907_v44 }
0x1845   :  { %9002 = vrot.lane.b32.xlu0 %v8941_v25, %s13762_s19  ;;  %v13078_v30 = vpop.eup %13077  ;;  %v16305_v20 = vmul.f32 0.5, %v8710_v29  ;;  %v8708_v37 = vadd.f32 1.0, %v13076_v63 }
0x1846   :  { %v13080_v46 = vpop.eup %13079  ;;  %v16310_v19 = vmul.f32 0.5, %v8707_v12  ;;  %v8711_v57 = vadd.f32 1.0, %v13078_v30 }
0x1847   :  { %8996 = vrot.lane.b32.xlu1 %v8939_v13, %s13762_s19  ;;  %v13082_v36 = vpop.eup %13081  ;;  %v16314_v35 = vmul.f32 0.5, %v8708_v37  ;;  %v8706_v24 = vadd.f32 1.0, %v13080_v46 }
0x1848   :  { %v13084_v23 = vpop.eup %13083  ;;  %v16318_v5 = vmul.f32 0.5, %v8711_v57  ;;  %v8712_v43 = vadd.f32 1.0, %v13082_v36 }
0x1849   :  { %9004 = vrot.lane.b32.xlu0 %v8942_v18, %s13762_s19  ;;  %v13086_v54 = vpop.eup %13085  ;;  %v16322_v21 = vmul.f32 0.5, %v8706_v24  ;;  %v8713_v0 = vadd.f32 1.0, %v13084_v23 }
0x184a   :  { %v13088_v58 = vpop.eup %13087  ;;  %v16326_v41 = vmul.f32 0.5, %v8712_v43  ;;  %v8709_v29 = vadd.f32 1.0, %v13086_v54 }
0x184b   :  { %9006 = vrot.lane.b32.xlu1 %v8943_v61, %s13762_s19  ;;  %v13090_v42 = vpop.eup %13089  ;;  %v16330_v51 = vmul.f32 0.5, %v8713_v0  ;;  %v8920_v12 = vadd.f32 1.0, %v13088_v58 }
0x184c   :  { %v13092_v10 = vpop.eup %13091  ;;  %v16334_v37 = vmul.f32 0.5, %v8709_v29  ;;  %v8921_v39 = vadd.f32 1.0, %v13090_v42 }
0x184d   :  { %8998 = vrot.lane.b32.xlu0 %v16250_v16, %s13762_s19  ;;  %v13094_v46 = vpop.eup %13093  ;;  %v8928_v14 = vmul.f32 0.5, %v8920_v12 }
0x184e   :  { %v13096_v57 = vpop.eup %13095  ;;  %v8929_v31 = vmul.f32 0.5, %v8921_v39 }
0x184f   :  { %v13098_v24 = vpop.eup %13097 }
0x1850   :  { %v13100_v43 = vpop.eup %13099  ;;  %v8926_v0 = vadd.f32 1.0, %v13098_v24  ;;  %v8855_v24 = vrot.slane %v16202_v38, 6 }
0x1851   :  { %v13102_v58 = vpop.eup %13101  ;;  %v8927_v42 = vadd.f32 1.0, %v13100_v43 }
0x1852   :  { %v8934_v12 = vmul.f32 0.5, %v8926_v0 }
0x1853   :  { %v8935_v39 = vmul.f32 0.5, %v8927_v42 }
0x18a1   :  { %v8731_v59 = vpop.permute.xlu1 %8730 }
0x18a2   :  { %v8750_v1 = vmul.f32 %v8731_v59, %v16305_v20 }
0x18a3   :  { %v8725_v60 = vpop.permute.xlu0 %8724 }
0x18a4   :  { %v8747_v11 = vmul.f32 %v8725_v60, %v16310_v19  ;;  %8770 = vrot.lane.b32.xlu1 %v8750_v1, %s13762_s19  ;;  %v8924_v1 = vadd.f32 1.0, %v13092_v10  ;;  %v8923_v10 = vadd.f32 1.0, %v13102_v58 }
0x18a5   :  { %v8727_v3 = vpop.permute.xlu1 %8726 }
0x18a6   :  { %v8748_v47 = vmul.f32 %v8727_v3, %v16314_v35  ;;  %8764 = vrot.lane.b32.xlu0 %v8747_v11, %s13762_s19  ;;  %v8925_v11 = vadd.f32 1.0, %v13094_v46  ;;  %v8932_v44 = vmul.f32 0.5, %v8924_v1 }
0x18a7   :  { %v8733_v27 = vpop.permute.xlu0 %8732 }
0x18a8   :  { %v8751_v28 = vmul.f32 %v8733_v27, %v16318_v5  ;;  %8766 = vrot.lane.b32.xlu1 %v8748_v47, %s13762_s19  ;;  %v8922_v47 = vadd.f32 1.0, %v13096_v57  ;;  %v8853_v57 = vrot.slane %v16202_v38, 4 }
0x18a9   :  { %v8723_v22 = vpop.permute.xlu1 %8722 }
0x18aa   :  { %v8746_v17 = vmul.f32 %v8723_v22, %v16322_v21  ;;  %8772 = vrot.lane.b32.xlu0 %v8751_v28, %s13762_s19  ;;  %v8933_v28 = vmul.f32 0.5, %v8925_v11  ;;  %v8930_v29 = vmul.f32 0.5, %v8922_v47  ;;  %v8852_v11 = vrot.slane %v16205_v53, 2 }
0x18ab   :  { %v8735_v45 = vpop.permute.xlu0 %8734 }
0x18ac   :  { %v8752_v63 = vmul.f32 %v8735_v45, %v16326_v41  ;;  %8762 = vrot.lane.b32.xlu1 %v8746_v17, %s13762_s19 }
0x18ad   :  { %v8737_v30 = vpop.permute.xlu1 %8736 }
0x18ae   :  { %v8753_v8 = vmul.f32 %v8737_v30, %v16330_v51  ;;  %8774 = vrot.lane.b32.xlu0 %v8752_v63, %s13762_s19 }
0x18af   :  { %v8729_v59 = vpop.permute.xlu0 %8728 }
0x18b0   :  { %v8749_v33 = vmul.f32 %v8729_v59, %v16334_v37  ;;  %8776 = vrot.lane.b32.xlu1 %v8753_v8, %s13762_s19 }
0x18b1   :  { %v8993_v36 = vpop.permute.xlu1 %8992 }
0x18b2   :  { %v9016_v60 = vmul.f32 %v8993_v36, %v8928_v14  ;;  %8768 = vrot.lane.b32.xlu0 %v8749_v33, %s13762_s19  ;;  %v8931_v33 = vmul.f32 0.5, %v8923_v10  ;;  %v8851_v36 = vrot.slane %v16205_v53, 1 }
0x18b3   :  { %v8995_v23 = vpop.permute.xlu0 %8994 }
0x18b4   :  { %v9017_v3 = vmul.f32 %v8995_v23, %v8929_v31  ;;  %9032 = vrot.lane.b32.xlu1 %v9016_v60, %s13762_s19  ;;  %v9120_v60 = vrot.slane %v16205_v53, 4  ;;  %v8854_v31 = vrot.slane %v16202_v38, 5  ;;  %v8850_v23 = vrot.slane %v16205_v53, 7 }
0x18b5   :  { %v9001_v54 = vpop.permute.xlu1 %9000 }
0x18b6   :  { %v9020_v27 = vmul.f32 %v9001_v54, %v8932_v44  ;;  %9034 = vrot.lane.b32.xlu0 %v9017_v3, %s13762_s19 }
0x18b7   :  { %v9003_v22 = vpop.permute.xlu0 %9002 }
0x18b8   :  { %v9021_v17 = vmul.f32 %v9003_v22, %v8933_v28  ;;  %9040 = vrot.lane.b32.xlu1 %v9020_v27, %s13762_s19 }
0x18b9   :  { %v8997_v45 = vpop.permute.xlu1 %8996 }
0x18ba   :  { %v9018_v63 = vmul.f32 %v8997_v45, %v8930_v29  ;;  %9042 = vrot.lane.b32.xlu0 %v9021_v17, %s13762_s19 }
0x18bb   :  { %v9005_v30 = vpop.permute.xlu0 %9004 }
0x18bc   :  { %v9022_v8 = vmul.f32 %v9005_v30, %v8934_v12  ;;  %9036 = vrot.lane.b32.xlu1 %v9018_v63, %s13762_s19  ;;  %v17622_v30 = vld [vmem:[#allocation46_spill] sm:$0xff] }
0x18bd   :  { %v9007_v46 = vpop.permute.xlu1 %9006 }
0x18be   :  { %v9023_v59 = vmul.f32 %v9007_v46, %v8935_v39  ;;  %9044 = vrot.lane.b32.xlu0 %v9022_v8, %s13762_s19 }
0x18bf   :  { %v8999_v14 = vpop.permute.xlu0 %8998 }
0x18c0   :  { %v9019_v1 = vmul.f32 %v8999_v14, %v8931_v33  ;;  %9046 = vrot.lane.b32.xlu1 %v9023_v59, %s13762_s19  ;;  %v17623_v59 = vld [vmem:[#allocation49_spill] sm:$0xff] }
0x18c2   :  { %9038 = vrot.lane.b32.xlu0 %v9019_v1, %s13762_s19 }
0x18c4   :  { %8858 = vrot.lane.b32.xlu1 %v16205_v53, %s13757_s2 }
0x18c6   :  { %8864 = vrot.lane.b32.xlu0 %v16209_v40, %s13757_s2 }
0x18c8   :  { %8866 = vrot.lane.b32.xlu1 %v8853_v57, %s13757_s2 }
0x18ca   :  { %9122 = vrot.lane.b32.xlu0 %v16205_v53, %s13761_s11 }
0x18cc   :  { %9124 = vrot.lane.b32.xlu1 %v8851_v36, %s13761_s11 }
0x18ce   :  { %9130 = vrot.lane.b32.xlu0 %v9120_v60, %s13761_s11  ;;  %v17624_v60 = vld [vmem:[#allocation50_spill] sm:$0xff] }
0x18d0   :  { %9132 = vrot.lane.b32.xlu1 %v8854_v31, %s13761_s11 }
0x18d2   :  { %8860 = vrot.lane.b32.xlu0 %v8851_v36, %s13757_s2 }
0x18d4   :  { %8868 = vrot.lane.b32.xlu1 %v8854_v31, %s13757_s2 }
0x18d6   :  { %9126 = vrot.lane.b32.xlu0 %v8852_v11, %s13761_s11 }
0x18d8   :  { %9134 = vrot.lane.b32.xlu1 %v8855_v24, %s13761_s11 }
0x18da   :  { %8862 = vrot.lane.b32.xlu0 %v8852_v11, %s13757_s2 }
0x18dc   :  { %8856 = vrot.lane.b32.xlu1 %v8850_v23, %s13757_s2 }
0x18e0   :  { %8870 = vrot.lane.b32.xlu1 %v8855_v24, %s13757_s2 }
0x18e4   :  { %9128 = vrot.lane.b32.xlu1 %v16209_v40, %s13761_s11 }
0x1916   :  { %v8771_v3 = vpop.permute.xlu1 %8770 }
0x1917   :  { %v8790_v44 = vadd.f32 %v8771_v3, %v17614_v9 }
0x1918   :  { %v8765_v47 = vpop.permute.xlu0 %8764 }
0x1919   :  { %13103 = vtanh.f32 %v8790_v44  ;;  %v8787_v43 = vadd.f32 %v8765_v47, %v17615_v62  ;;  %v17625_v44 = vld [vmem:[#allocation48_spill] sm:$0xff] }
0x191a   :  { %v8767_v54 = vpop.permute.xlu1 %8766 }
0x191b   :  { %13105 = vtanh.f32 %v8787_v43  ;;  %v8788_v53 = vadd.f32 %v8767_v54, %v17616_v34  ;;  %v17626_v54 = vld [vmem:[#allocation45_spill] sm:$0xff] }
0x191c   :  { %v8773_v27 = vpop.permute.xlu0 %8772 }
0x191d   :  { %v8791_v28 = vadd.f32 %v8773_v27, %v17617_v26 }
0x191e   :  { %v8763_v0 = vpop.permute.xlu1 %8762 }
0x191f   :  { %13107 = vtanh.f32 %v8791_v28  ;;  %v8786_v40 = vadd.f32 %v8763_v0, %v17618_v2 }
0x1920   :  { %v8775_v58 = vpop.permute.xlu0 %8774  ;;  %13109 = vtanh.f32 %v8788_v53 }
0x1921   :  { %v8792_v22 = vadd.f32 %v8775_v58, %v17619_v7 }
0x1922   :  { %v8777_v17 = vpop.permute.xlu1 %8776 }
0x1923   :  { %13111 = vtanh.f32 %v8792_v22  ;;  %v8793_v63 = vadd.f32 %v8777_v17, %v17620_v15  ;;  %v17627_v22 = vld [vmem:[#allocation47_spill] sm:$0xff] }
0x1924   :  { %v8769_v29 = vpop.permute.xlu0 %8768  ;;  %13113 = vtanh.f32 %v8786_v40 }
0x1925   :  { %v8789_v42 = vadd.f32 %v8769_v29, %v17621_v50 }
0x1926   :  { %v13104_v45 = vpop.eup %13103  ;;  %v9033_v14 = vpop.permute.xlu1 %9032 }
0x1927   :  { %13115 = vtanh.f32 %v8789_v42  ;;  %8826 = vrot.lane.b32.xlu1 %v13104_v45, %s13761_s11  ;;  %v9056_v27 = vadd.f32 %v9033_v14, %v17626_v54  ;;  %v17628_v42 = vld [vmem:[#allocation51_spill] sm:$0xff] }
0x1928   :  { %v13106_v12 = vpop.eup %13105  ;;  %v9035_v10 = vpop.permute.xlu0 %9034  ;;  %13117 = vtanh.f32 %v8793_v63  ;;  %v9121_v63 = vrot.slane %v16202_v38, 7 }
0x1929   :  { %v9057_v8 = vadd.f32 %v9035_v10, %v17622_v30  ;;  %8820 = vrot.lane.b32.xlu0 %v13106_v12, %s13761_s11 }
0x192a   :  { %v9041_v23 = vpop.permute.xlu1 %9040 }
0x192b   :  { %13119 = vtanh.f32 %v9057_v8  ;;  %v9060_v0 = vadd.f32 %v9041_v23, %v15182_v48 }
0x192c   :  { %v13108_v39 = vpop.eup %13107  ;;  %v9043_v46 = vpop.permute.xlu0 %9042 }
0x192d   :  { %v9061_v33 = vadd.f32 %v9043_v46, %v17623_v59  ;;  %8828 = vrot.lane.b32.xlu0 %v13108_v39, %s13761_s11  ;;  %v13110_v1 = vpop.eup %13109 }
0x192e   :  { %v9037_v53 = vpop.permute.xlu1 %9036 }
0x192f   :  { %13121 = vtanh.f32 %v9061_v33  ;;  %v9058_v40 = vadd.f32 %v9037_v53, %v17627_v22  ;;  %v8952_v53 = vadd.f32 %v8937_v55, %v17626_v54  ;;  %v8955_v55 = vadd.f32 %v16250_v16, %v17625_v44 }
0x1930   :  { %v13112_v57 = vpop.eup %13111  ;;  %v9045_v36 = vpop.permute.xlu0 %9044 }
0x1931   :  { %v9062_v31 = vadd.f32 %v9045_v36, %v17624_v60  ;;  %8822 = vrot.lane.b32.xlu0 %v13110_v1, %s13761_s11  ;;  %8830 = vrot.lane.b32.xlu1 %v13112_v57, %s13761_s11  ;;  %v13114_v11 = vpop.eup %13113 }
0x1932   :  { %v9047_v29 = vpop.permute.xlu1 %9046 }
0x1933   :  { %13123 = vtanh.f32 %v9062_v31  ;;  %v9063_v45 = vadd.f32 %v9047_v29, %v17628_v42 }
0x1934   :  { %v13116_v24 = vpop.eup %13115  ;;  %v9039_v3 = vpop.permute.xlu0 %9038 }
0x1935   :  { %v9059_v47 = vadd.f32 %v9039_v3, %v17625_v44  ;;  %8824 = vrot.lane.b32.xlu1 %v13116_v24, %s13761_s11  ;;  %8818 = vrot.lane.b32.xlu0 %v13114_v11, %s13761_s11  ;;  %v13118_v43 = vpop.eup %13117 }
0x1936   :  { %v8859_v33 = vpop.permute.xlu1 %8858 }
0x1937   :  { %13125 = vtanh.f32 %v9059_v47 }
0x1938   :  { %v13120_v28 = vpop.eup %13119  ;;  %13127 = vtanh.f32 %v9056_v27  ;;  %v8865_v1 = vpop.permute.xlu0 %8864  ;;  %v8953_v27 = vadd.f32 %v8938_v52, %v17622_v30  ;;  %v8805_v30 = vsub.f32 1.0, %v16334_v37 }
0x1939   :  { %9090 = vrot.lane.b32.xlu1 %v13120_v28, %s13761_s11  ;;  %8832 = vrot.lane.b32.xlu0 %v13118_v43, %s13761_s11  ;;  %13129 = vtanh.f32 %v9060_v0  ;;  %v8956_v0 = vadd.f32 %v8940_v56, %v15182_v48  ;;  %v8954_v56 = vadd.f32 %v8939_v13, %v17627_v22  ;;  %v8884_v16 = vmul.f32 %v8865_v1, %v16305_v20 }
0x193a   :  { %13131 = vtanh.f32 %v9058_v40  ;;  %v8867_v38 = vpop.permute.xlu1 %8866  ;;  %v8957_v40 = vadd.f32 %v8941_v25, %v17623_v59 }
0x193b   :  { %13133 = vtanh.f32 %v9063_v45  ;;  %v8960_v45 = vmul.f32 0.5, %v8952_v53  ;;  %v8804_v53 = vsub.f32 1.0, %v16314_v35 }
0x193c   :  { %v13122_v58 = vpop.eup %13121  ;;  %v16411_v36 = vpop.permute.xlu0 %9122 }
0x193d   :  { %9098 = vrot.lane.b32.xlu1 %v13122_v58, %s13761_s11  ;;  %v8961_v58 = vmul.f32 0.5, %v8953_v27  ;;  %v8807_v27 = vsub.f32 1.0, %v16318_v5 }
0x193e   :  { %v16407_v14 = vpop.permute.xlu1 %9124 }
0x193f   :  { %13135 = vtanh.f32 %v8961_v58 }
0x1940   :  { %v13124_v17 = vpop.eup %13123  ;;  %v16413_v11 = vpop.permute.xlu0 %9130  ;;  %13137 = vtanh.f32 %v8960_v45  ;;  %v8881_v45 = vmul.f32 %v8859_v33, %v16310_v19 }
0x1941   :  { %9100 = vrot.lane.b32.xlu1 %v13124_v17, %s13761_s11  ;;  %v8958_v17 = vadd.f32 %v8942_v18, %v17624_v60  ;;  %v8803_v18 = vsub.f32 1.0, %v16310_v19 }
0x1942   :  { %v16409_v57 = vpop.permute.xlu1 %9132 }
0x1944   :  { %v13126_v12 = vpop.eup %13125  ;;  %v8861_v23 = vpop.permute.xlu0 %8860 }
0x1945   :  { %9136 = vrot.lane.b32.xlu1 %v9121_v63, %s13761_s11  ;;  %9094 = vrot.lane.b32.xlu0 %v13126_v12, %s13761_s11  ;;  %v13128_v10 = vpop.eup %13127  ;;  %v8964_v63 = vmul.f32 0.5, %v8956_v0  ;;  %v8965_v12 = vmul.f32 0.5, %v8957_v40  ;;  %v8962_v0 = vmul.f32 0.5, %v8954_v56  ;;  %v8808_v40 = vsub.f32 1.0, %v16326_v41 }
0x1946   :  { %v13130_v8 = vpop.eup %13129  ;;  %v8869_v31 = vpop.permute.xlu1 %8868  ;;  %v8802_v56 = vsub.f32 1.0, %v16322_v21 }
0x1947   :  { %v13132_v39 = vpop.eup %13131  ;;  %13139 = vtanh.f32 %v8964_v63  ;;  %v8806_v63 = vsub.f32 1.0, %v16305_v20 }
0x1948   :  { %v13134_v46 = vpop.eup %13133  ;;  %v16417_v47 = vpop.permute.xlu0 %9126  ;;  %13141 = vtanh.f32 %v8965_v12  ;;  %v8882_v12 = vmul.f32 %v8861_v23, %v16314_v35 }
0x1949   :  { %9088 = vrot.lane.b32.xlu0 %v13128_v10, %s13761_s11  ;;  %v8966_v10 = vmul.f32 0.5, %v8958_v17  ;;  %v8959_v17 = vadd.f32 %v8943_v61, %v17628_v42  ;;  %v8886_v61 = vmul.f32 %v8869_v31, %v16326_v41 }
0x194a   :  { %v16415_v24 = vpop.permute.xlu1 %9134 }
0x194b   :  { %13143 = vtanh.f32 %v8966_v10  ;;  %v8885_v10 = vmul.f32 %v8867_v38, %v16318_v5  ;;  %v8809_v38 = vsub.f32 1.0, %v16330_v51 }
0x194c   :  { %v8863_v28 = vpop.permute.xlu0 %8862  ;;  %v13136_v41 = vpop.eup %13135 }
0x194d   :  { %9096 = vrot.lane.b32.xlu0 %v13130_v8, %s13761_s11  ;;  %v8883_v19 = vmul.f32 %v8863_v28, %v16334_v37 }
0x194e   :  { %v8857_v3 = vpop.permute.xlu1 %8856 }
0x194f   :  { %v8880_v35 = vmul.f32 %v8857_v3, %v16322_v21 }
0x1951   :  { %9092 = vrot.lane.b32.xlu0 %v13132_v39, %s13761_s11  ;;  %v8963_v39 = vmul.f32 0.5, %v8955_v55 }
0x1952   :  { %v16419_v43 = vpop.permute.xlu1 %8870 }
0x1953   :  { %13145 = vtanh.f32 %v8963_v39  ;;  %v8887_v37 = vmul.f32 %v16419_v43, %v16330_v51 }
0x1954   :  { %13147 = vtanh.f32 %v8962_v0  ;;  %v13138_v0 = vpop.eup %13137 }
0x1955   :  { %9102 = vrot.lane.b32.xlu0 %v13134_v46, %s13761_s11 }
0x1956   :  { %v16436_v29 = vpop.permute.xlu1 %9128 }
0x1999   :  { %v8827_v25 = vpop.permute.xlu1 %8826 }
0x199a   :  { %v8846_v59 = vmul.f32 %v8827_v25, %v8806_v63  ;;  %v8967_v25 = vmul.f32 0.5, %v8959_v17 }
0x199b   :  { %v8821_v52 = vpop.permute.xlu0 %8820 }
0x199c   :  { %v8843_v46 = vmul.f32 %v8821_v52, %v8803_v18  ;;  %13149 = vtanh.f32 %v8967_v25 }
0x199e   :  { %v8889_v60 = vadd.f32 %v8881_v45, %v8843_v46  ;;  %v8892_v46 = vadd.f32 %v8884_v16, %v8846_v59  ;;  %v13140_v59 = vpop.eup %13139  ;;  %v8976_v16 = vadd.f32 1.0, %v13138_v0 }
0x199f   :  { %v8829_v8 = vpop.permute.xlu0 %8828  ;;  %v13142_v51 = vpop.eup %13141 }
0x19a0   :  { %v8847_v55 = vmul.f32 %v8829_v8, %v8807_v27  ;;  %v9176_v17 = vrot.slane %v8892_v46, 4  ;;  %v13144_v43 = vpop.eup %13143 }
0x19a2   :  { %v8893_v23 = vadd.f32 %v8885_v10, %v8847_v55  ;;  %v13146_v10 = vpop.eup %13145 }
0x19a3   :  { %v8823_v58 = vpop.permute.xlu0 %8822  ;;  %v8831_v13 = vpop.permute.xlu1 %8830  ;;  %v8979_v25 = vadd.f32 1.0, %v13146_v10 }
0x19a4   :  { %v8844_v52 = vmul.f32 %v8823_v58, %v8804_v53  ;;  %v8848_v18 = vmul.f32 %v8831_v13, %v8808_v40  ;;  %v9170_v58 = vrot.slane %v8889_v60, 7  ;;  %v9177_v40 = vrot.slane %v8893_v23, 3 }
0x19a5   :  { %v8977_v60 = vadd.f32 1.0, %v13136_v41  ;;  %v8984_v23 = vmul.f32 0.5, %v8976_v16 }
0x19a6   :  { %v8890_v33 = vadd.f32 %v8882_v12, %v8844_v52  ;;  %v8894_v5 = vadd.f32 %v8886_v61, %v8848_v18  ;;  %v9178_v18 = vsel %vm6644_vm5, %v9177_v40, %v9176_v17 }
0x19a7   :  { %v8819_v8 = vpop.permute.xlu0 %8818  ;;  %v8825_v27 = vpop.permute.xlu1 %8824  ;;  %v8985_v61 = vmul.f32 0.5, %v8977_v60  ;;  %v9072_v40 = vsub.f32 1.0, %v8984_v23  ;;  %v9146_v0 = vmul.f32 %v16411_v36, %v8984_v23 }
0x19a8   :  { %v8842_v39 = vmul.f32 %v8819_v8, %v8802_v56  ;;  %v8845_v53 = vmul.f32 %v8825_v27, %v8805_v30  ;;  %v9172_v31 = vrot.slane %v8890_v33, 6  ;;  %v9179_v13 = vrot.slane %v8894_v5, 2 }
0x19a9   :  { %v8982_v8 = vadd.f32 1.0, %v13144_v43  ;;  %v9073_v5 = vsub.f32 1.0, %v8985_v61  ;;  %v9147_v41 = vmul.f32 %v16407_v14, %v8985_v61 }
0x19aa   :  { %v8888_v20 = vadd.f32 %v8880_v35, %v8842_v39  ;;  %v8891_v1 = vadd.f32 %v8883_v19, %v8845_v53  ;;  %v9180_v56 = vsel %vm6647_vm6, %v9179_v13, %v9178_v18  ;;  %v8981_v19 = vadd.f32 1.0, %v13142_v51  ;;  %v13148_v35 = vpop.eup %13147 }
0x19ab   :  { %v8833_v28 = vpop.permute.xlu0 %8832  ;;  %v9091_v55 = vpop.permute.xlu1 %9090  ;;  %v8980_v39 = vadd.f32 1.0, %v13140_v59 }
0x19ac   :  { %v9174_v21 = vrot.slane %v8891_v1, 5  ;;  %v8849_v3 = vmul.f32 %v8833_v28, %v8809_v38  ;;  %v9171_v30 = vsel %vm6656_vm9, %v9170_v58, %v8888_v20  ;;  %v8989_v53 = vmul.f32 0.5, %v8981_v19  ;;  %v13150_v1 = vpop.eup %13149 }
0x19ad   :  { %v9173_v45 = vsel %vm6659_vm10, %v9172_v31, %v9171_v30  ;;  %v8990_v38 = vmul.f32 0.5, %v8982_v8  ;;  %v9113_v58 = vmul.f32 %v9091_v55, %v9073_v5  ;;  %v8978_v20 = vadd.f32 1.0, %v13148_v35 }
0x19ae   :  { %v8895_v63 = vadd.f32 %v8887_v37, %v8849_v3  ;;  %v9175_v52 = vsel %vm6662_vm11, %v9174_v21, %v9173_v45  ;;  %v8988_v37 = vmul.f32 0.5, %v8980_v39  ;;  %v9077_v31 = vsub.f32 1.0, %v8989_v53 }
0x19af   :  { %9183 = vrot.lane.b32.xlu0 %v9175_v52, %s13761_s11  ;;  %v9099_v27 = vpop.permute.xlu1 %9098  ;;  %v8987_v21 = vmul.f32 0.5, %v8979_v25  ;;  %v9078_v3 = vsub.f32 1.0, %v8990_v38  ;;  %v9155_v13 = vadd.f32 %v9147_v41, %v9113_v58  ;;  %v8986_v60 = vmul.f32 0.5, %v8978_v20 }
0x19b0   :  { %v9181_v12 = vrot.slane %v8895_v63, 1  ;;  %v9117_v45 = vmul.f32 %v9099_v27, %v9077_v31  ;;  %v9151_v63 = vmul.f32 %v16409_v57, %v8989_v53  ;;  %v8983_v55 = vadd.f32 1.0, %v13150_v1 }
0x19b1   :  { %v9076_v51 = vsub.f32 1.0, %v8988_v37  ;;  %v9150_v14 = vmul.f32 %v16413_v11, %v8988_v37  ;;  %v9152_v43 = vmul.f32 %v16415_v24, %v8990_v38  ;;  %v9074_v27 = vsub.f32 1.0, %v8986_v60 }
0x19b2   :  { %v9182_v33 = vsel %vm6650_vm7, %v9181_v12, %v9180_v56  ;;  %v9075_v12 = vsub.f32 1.0, %v8987_v21  ;;  %v9198_v56 = vrot.slane %v9155_v13, 6  ;;  %v9159_v10 = vadd.f32 %v9151_v63, %v9117_v45 }
0x19b3   :  { %9185 = vrot.lane.b32.xlu1 %v9182_v33, %s13761_s11  ;;  %v9101_v28 = vpop.permute.xlu1 %9100  ;;  %v8991_v33 = vmul.f32 0.5, %v8983_v55  ;;  %v9149_v35 = vmul.f32 %v16436_v29, %v8987_v21  ;;  %v9148_v11 = vmul.f32 %v16417_v47, %v8986_v60 }
0x19b4   :  { %v9118_v17 = vmul.f32 %v9101_v28, %v9078_v3  ;;  %v9205_v39 = vrot.slane %v9159_v10, 2  ;;  %v13435_v10 = vld [vmem:[#allocation14 + $0x40] sm:$0xff] }
0x19b5   :  { %v9079_v20 = vsub.f32 1.0, %v8991_v33 }
0x19b6   :  { %v9160_v61 = vadd.f32 %v9152_v43, %v9118_v17  ;;  %v13431_v43 = vld [vmem:[#allocation14 + $0x60] sm:$0xff] }
0x19b7   :  { %v9095_v46 = vpop.permute.xlu0 %9094  ;;  %v9137_v25 = vpop.permute.xlu1 %9136 }
0x19b8   :  { %v9115_v19 = vmul.f32 %v9095_v46, %v9075_v12  ;;  %v9207_v5 = vrot.slane %v9160_v61, 1  ;;  %v9153_v37 = vmul.f32 %v9137_v25, %v8991_v33  ;;  %v13432_v12 = vld [vmem:[#allocation14 + $0x58] sm:$0xff]  ;;  %v13439_v61 = vld [vmem:[#allocation14 + $0x20] sm:$0xff]  ;;  %v13441_v33 = vld [vmem:[#allocation14 + $0x10] sm:$0xff] }
0x19ba   :  { %v9157_v38 = vadd.f32 %v9149_v35, %v9115_v19  ;;  %v13440_v19 = vld [vmem:[#allocation14 + $0x18] sm:$0xff] }
0x19bb   :  { %v9089_v30 = vpop.permute.xlu0 %9088 }
0x19bc   :  { %v9112_v59 = vmul.f32 %v9089_v30, %v9072_v40  ;;  %v9202_v29 = vrot.slane %v9157_v38, 4 }
0x19be   :  { %v9154_v52 = vadd.f32 %v9146_v0, %v9112_v59 }
0x19bf   :  { %v9097_v18 = vpop.permute.xlu0 %9096 }
0x19c0   :  { %v9197_v16 = vrot.slane %v9154_v52, 7  ;;  %v9116_v36 = vmul.f32 %v9097_v18, %v9076_v51  ;;  %v13429_v51 = vld [vmem:[#allocation14 + $0x70] sm:$0xff] }
0x19c1   :  { %v13433_v18 = vld [vmem:[#allocation14 + $0x50] sm:$0xff] }
0x19c2   :  { %v9158_v8 = vadd.f32 %v9150_v14, %v9116_v36  ;;  %v9199_v57 = vsel %vm6656_vm9, %v9198_v56, %v9197_v16  ;;  %v13430_v14 = vld [vmem:[#allocation14 + $0x68] sm:$0xff]  ;;  %v13437_v16 = vld [vmem:[#allocation14 + $0x30] sm:$0xff] }
0x19c3   :  { %v9093_v23 = vpop.permute.xlu0 %9092  ;;  %v13434_v56 = vld [vmem:[#allocation14 + $0x48] sm:$0xff] }
0x19c4   :  { %v9204_v24 = vrot.slane %v9158_v8, 3  ;;  %v9114_v53 = vmul.f32 %v9093_v23, %v9074_v27  ;;  %v13438_v36 = vld [vmem:[#allocation14 + $0x28] sm:$0xff]  ;;  %v13443_v27 = vld [vmem:[#allocation14] sm:$0xff] }
0x19c5   :  { %v13442_v8 = vld [vmem:[#allocation14 + $0x8] sm:$0xff] }
0x19c6   :  { %v9156_v58 = vadd.f32 %v9148_v11, %v9114_v53  ;;  %v9206_v46 = vsel %vm6644_vm5, %v9205_v39, %v9204_v24 }
0x19c7   :  { %v9103_v1 = vpop.permute.xlu0 %9102  ;;  %v9208_v41 = vsel %vm6647_vm6, %v9207_v5, %v9206_v46 }
0x19c8   :  { %v9200_v31 = vrot.slane %v9156_v58, 5  ;;  %v9119_v28 = vmul.f32 %v9103_v1, %v9079_v20 }
0x19ca   :  { %v9161_v40 = vadd.f32 %v9153_v37, %v9119_v28  ;;  %v9201_v47 = vsel %vm6659_vm10, %v9200_v31, %v9199_v57 }
0x19cb   :  { %v9203_v21 = vsel %vm6662_vm11, %v9202_v29, %v9201_v47 }
0x19cc   :  { %9210 = vrot.lane.b32.xlu0 %v9203_v21, %s13757_s2  ;;  %v9209_v3 = vsel %vm6650_vm7, %v9161_v40, %v9208_v41 }
0x19cd   :  { %9212 = vrot.lane.b32.xlu1 %v9209_v3, %s13757_s2 }
0x1a21   :  { %v9184_v30 = vpop.permute.xlu0 %9183 }
0x1a25   :  { %v9186_v0 = vpop.permute.xlu1 %9185 }
0x1a3e   :  { %v9211_v13 = vpop.permute.xlu0 %9210 }
0x1a3f   :  { %v16487_v45 = vsel %vm254_vm0, %v9184_v30, %v9211_v13  ;;  %v9213_v59 = vpop.permute.xlu1 %9212 }
0x1a40   :  { %v16490_v60 = vsel %vm254_vm0, %v9186_v0, %v9213_v59  ;;  %v9221_v17 = vrot.slane %v16487_v45, 4 }
0x1a41   :  { %v9222_v63 = vrot.slane %v16490_v60, 4 }
0x1a43   :  { %v9223_v55 = vsel %vm9220_vm1, %v9221_v17, %v9222_v63 }
0x1a44   :  { %v16499_v52 = vadd.f32 %v9223_v55, %v16213_v4  ;;  %12026 = vmatmul.mubr.msk.f32.vlgmr.msra.gmra.mxu1 %vm6120_vm12, %v9223_v55  ;;  %v13436_v4 = vld [vmem:[#allocation14 + $0x38] sm:$0xff] }
0x1a45   :  { %10515 = vmatpush1.msra.mxu1 %v13429_v51  ;;  %10562 = vmatprep.mubr.f32.mxu1 %v17580_v49 }
0x1a46   :  { %10516 = vmatprep.subr.mxu1 %v13430_v14 }
0x1a47   :  { %10517 = vmatpush1.msra.mxu1 %v13431_v43 }
0x1a48   :  { %10518 = vmatprep.subr.mxu1 %v13432_v12 }
0x1a49   :  { %10519 = vmatpush1.msra.mxu1 %v13433_v18 }
0x1a4a   :  { %10520 = vmatprep.subr.mxu1 %v13434_v56 }
0x1a4b   :  { %10521 = vmatpush1.msra.mxu1 %v13435_v10 }
0x1a4c   :  { %10522 = vmatprep.subr.mxu1 %v13436_v4 }
0x1a4d   :  { %10523 = vmatpush1.msra.mxu1 %v13437_v16 }
0x1a4e   :  { %10524 = vmatprep.subr.mxu1 %v13438_v36 }
0x1a4f   :  { %10525 = vmatpush1.msra.mxu1 %v13439_v61 }
0x1a50   :  { %10526 = vmatprep.subr.mxu1 %v13440_v19 }
0x1a51   :  { %10527 = vmatpush1.msra.mxu1 %v13441_v33 }
0x1a52   :  { %10528 = vmatprep.subr.mxu1 %v13442_v8 }
0x1a53   :  { %10529 = vmatpush1.msra.mxu1 %v13443_v27 }
0x1b04   :  { %v9294_v57 = vpop.f32.mrf.mxu1 }
0x1b05   :  { %v9295_v35 = vadd.f32 %v9294_v57, %v17612_v32 }
0x1b06   :  { %v9296_v24 = vpop.f32.mrf.mxu1 }
0x1b07   :  { %9365 = vrot.lane.b32.xlu0 %v9295_v35, %s13762_s19  ;;  %v16505_v23 = vrot.slane %v9295_v35, 7  ;;  %v9303_v11 = vrot.slane %v9295_v35, 6  ;;  %v9301_v39 = vrot.slane %v9295_v35, 4  ;;  %v9305_v53 = vrot.slane %v9295_v35, 1 }
0x1b08   :  { %v16512_v5 = vadd.f32 %v9296_v24, %v17613_v6  ;;  %v9306_v38 = vrot.slane %v9295_v35, 2  ;;  %v9302_v25 = vrot.slane %v9295_v35, 5  ;;  %v9300_v28 = vrot.slane %v9295_v35, 3 }
0x1b09   :  { %9363 = vrot.lane.b32.xlu1 %v16505_v23, %s13762_s19  ;;  %v9320_v29 = vadd.f32 %v9295_v35, %v17617_v26  ;;  %v9319_v40 = vadd.f32 %v16505_v23, %v17614_v9  ;;  %v9318_v21 = vadd.f32 %v9303_v11, %v17621_v50  ;;  %v9316_v30 = vadd.f32 %v9301_v39, %v17615_v62 }
0x1b0a   :  { %v9573_v58 = vrot.slane %v16512_v5, 2  ;;  %v9570_v20 = vrot.slane %v16512_v5, 6  ;;  %v9572_v46 = vrot.slane %v16512_v5, 1  ;;  %v9575_v1 = vrot.slane %v16512_v5, 4 }
0x1b0b   :  { %9361 = vrot.lane.b32.xlu0 %v9303_v11, %s13762_s19  ;;  %v9571_v41 = vrot.slane %v16512_v5, 7  ;;  %v9574_v37 = vrot.slane %v16512_v5, 3  ;;  %v9576_v31 = vrot.slane %v16512_v5, 5  ;;  %v9328_v47 = vmul.f32 0.5, %v9320_v29 }
0x1b0c   :  { %v9327_v3 = vmul.f32 0.5, %v9319_v40  ;;  %v9326_v0 = vmul.f32 0.5, %v9318_v21  ;;  %v9321_v13 = vadd.f32 %v9305_v53, %v17619_v7  ;;  %v9324_v59 = vmul.f32 0.5, %v9316_v30 }
0x1b0d   :  { %9357 = vrot.lane.b32.xlu1 %v9301_v39, %s13762_s19  ;;  %13151 = vtanh.f32 %v9328_v47  ;;  %v9322_v55 = vadd.f32 %v9306_v38, %v17620_v15  ;;  %v9317_v14 = vadd.f32 %v9302_v25, %v17616_v34  ;;  %v9533_v12 = vadd.f32 %v9306_v38, %v17614_v9 }
0x1b0e   :  { %13153 = vtanh.f32 %v9327_v3  ;;  %v9329_v51 = vmul.f32 0.5, %v9321_v13  ;;  %v9531_v56 = vadd.f32 %v9295_v35, %v17616_v34  ;;  %v9529_v4 = vadd.f32 %v9303_v11, %v17618_v2 }
0x1b0f   :  { %9367 = vrot.lane.b32.xlu0 %v9305_v53, %s13762_s19  ;;  %13155 = vtanh.f32 %v9326_v0  ;;  %v9330_v43 = vmul.f32 0.5, %v9322_v55  ;;  %v9325_v18 = vmul.f32 0.5, %v9317_v14  ;;  %v9541_v10 = vmul.f32 0.5, %v9533_v12 }
0x1b10   :  { %13157 = vtanh.f32 %v9324_v59  ;;  %v9539_v16 = vmul.f32 0.5, %v9531_v56  ;;  %v9532_v36 = vadd.f32 %v9305_v53, %v17621_v50  ;;  %v9537_v19 = vmul.f32 0.5, %v9529_v4 }
0x1b11   :  { %9369 = vrot.lane.b32.xlu1 %v9306_v38, %s13762_s19  ;;  %13159 = vtanh.f32 %v9329_v51  ;;  %v9535_v33 = vadd.f32 %v9301_v39, %v17619_v7  ;;  %v9530_v35 = vadd.f32 %v16505_v23, %v17615_v62  ;;  %v9534_v38 = vadd.f32 %v9300_v28, %v17617_v26 }
0x1b12   :  { %13161 = vtanh.f32 %v9330_v43  ;;  %v9540_v57 = vmul.f32 0.5, %v9532_v36  ;;  %v9536_v53 = vadd.f32 %v9302_v25, %v17620_v15  ;;  %v9315_v13 = vadd.f32 %v9300_v28, %v17618_v2 }
0x1b13   :  { %9359 = vrot.lane.b32.xlu0 %v9302_v25, %s13762_s19  ;;  %13163 = vtanh.f32 %v9325_v18  ;;  %v9543_v29 = vmul.f32 0.5, %v9535_v33  ;;  %v9538_v39 = vmul.f32 0.5, %v9530_v35  ;;  %v9542_v0 = vmul.f32 0.5, %v9534_v38 }
0x1b14   :  { %13165 = vtanh.f32 %v9541_v10  ;;  %v9544_v43 = vmul.f32 0.5, %v9536_v53 }
0x1b15   :  { %9633 = vrot.lane.b32.xlu1 %v9573_v58, %s13762_s19  ;;  %13167 = vtanh.f32 %v9539_v16 }
0x1b16   :  { %13169 = vtanh.f32 %v9537_v19 }
0x1b17   :  { %9629 = vrot.lane.b32.xlu0 %v16512_v5, %s13762_s19  ;;  %13171 = vtanh.f32 %v9540_v57 }
0x1b18   :  { %13173 = vtanh.f32 %v9543_v29 }
0x1b19   :  { %9625 = vrot.lane.b32.xlu1 %v9570_v20, %s13762_s19  ;;  %13175 = vtanh.f32 %v9538_v39 }
0x1b1a   :  { %v13152_v61 = vpop.eup %13151  ;;  %13177 = vtanh.f32 %v9542_v0 }
0x1b1b   :  { %9631 = vrot.lane.b32.xlu0 %v9572_v46, %s13762_s19  ;;  %v13154_v8 = vpop.eup %13153  ;;  %v9344_v27 = vadd.f32 1.0, %v13152_v61  ;;  %13179 = vtanh.f32 %v9544_v43 }
0x1b1c   :  { %v13156_v24 = vpop.eup %13155  ;;  %v9343_v11 = vadd.f32 1.0, %v13154_v8 }
0x1b1d   :  { %9637 = vrot.lane.b32.xlu1 %v9575_v1, %s13762_s19  ;;  %v13158_v40 = vpop.eup %13157  ;;  %v16565_v47 = vmul.f32 0.5, %v9344_v27  ;;  %v9342_v21 = vadd.f32 1.0, %v13156_v24 }
0x1b1e   :  { %v13160_v3 = vpop.eup %13159  ;;  %v16569_v59 = vmul.f32 0.5, %v9343_v11  ;;  %v9340_v55 = vadd.f32 1.0, %v13158_v40 }
0x1b1f   :  { %9627 = vrot.lane.b32.xlu0 %v9571_v41, %s13762_s19  ;;  %v13162_v51 = vpop.eup %13161  ;;  %v16573_v12 = vmul.f32 0.5, %v9342_v21  ;;  %v9345_v18 = vadd.f32 1.0, %v13160_v3 }
0x1b20   :  { %v13164_v56 = vpop.eup %13163  ;;  %v16577_v16 = vmul.f32 0.5, %v9340_v55  ;;  %v9346_v36 = vadd.f32 1.0, %v13162_v51 }
0x1b21   :  { %9635 = vrot.lane.b32.xlu1 %v9574_v37, %s13762_s19  ;;  %v13166_v61 = vpop.eup %13165  ;;  %v16581_v8 = vmul.f32 0.5, %v9345_v18  ;;  %v9341_v27 = vadd.f32 1.0, %v13164_v56 }
0x1b22   :  { %v13168_v57 = vpop.eup %13167  ;;  %v16585_v38 = vmul.f32 0.5, %v9346_v36  ;;  %v9557_v11 = vadd.f32 1.0, %v13166_v61 }
0x1b23   :  { %9639 = vrot.lane.b32.xlu0 %v9576_v31, %s13762_s19  ;;  %v13170_v29 = vpop.eup %13169  ;;  %v16589_v21 = vmul.f32 0.5, %v9341_v27  ;;  %v9555_v39 = vadd.f32 1.0, %v13168_v57 }
0x1b24   :  { %v13172_v3 = vpop.eup %13171 }
0x1b25   :  { %9355 = vrot.lane.b32.xlu1 %v9300_v28, %s13762_s19  ;;  %v9323_v28 = vmul.f32 0.5, %v9315_v13  ;;  %v9565_v13 = vmul.f32 0.5, %v9557_v11  ;;  %v13174_v55 = vpop.eup %13173  ;;  %v9563_v43 = vmul.f32 0.5, %v9555_v39 }
0x1b26   :  { %v13176_v18 = vpop.eup %13175 }
0x1b27   :  { %13181 = vtanh.f32 %v9323_v28  ;;  %v13178_v36 = vpop.eup %13177  ;;  %v9554_v27 = vadd.f32 1.0, %v13176_v18 }
0x1b28   :  { %v13180_v57 = vpop.eup %13179 }
0x1b79   :  { %v9366_v30 = vpop.permute.xlu0 %9365 }
0x1b7a   :  { %v9384_v23 = vmul.f32 %v9366_v30, %v16565_v47 }
0x1b7b   :  { %v9364_v14 = vpop.permute.xlu1 %9363 }
0x1b7c   :  { %v9383_v25 = vmul.f32 %v9364_v14, %v16569_v59  ;;  %9405 = vrot.lane.b32.xlu0 %v9384_v23, %s13762_s19  ;;  %v9553_v23 = vadd.f32 1.0, %v13170_v29  ;;  %v9558_v29 = vadd.f32 1.0, %v13178_v36  ;;  %v9486_v36 = vrot.slane %v16490_v60, 3 }
0x1b7d   :  { %v9362_v10 = vpop.permute.xlu0 %9361 }
0x1b7e   :  { %v9382_v4 = vmul.f32 %v9362_v10, %v16573_v12  ;;  %9403 = vrot.lane.b32.xlu1 %v9383_v25, %s13762_s19  ;;  %v9556_v25 = vadd.f32 1.0, %v13172_v3  ;;  %v9561_v28 = vmul.f32 0.5, %v9553_v23  ;;  %v9562_v3 = vmul.f32 0.5, %v9554_v27 }
0x1b7f   :  { %v9358_v19 = vpop.permute.xlu1 %9357  ;;  %v9566_v23 = vmul.f32 0.5, %v9558_v29  ;;  %v9487_v27 = vrot.slane %v16490_v60, 5 }
0x1b80   :  { %v9380_v33 = vmul.f32 %v9358_v19, %v16577_v16  ;;  %9401 = vrot.lane.b32.xlu0 %v9382_v4, %s13762_s19  ;;  %v9559_v4 = vadd.f32 1.0, %v13174_v55 }
0x1b81   :  { %v9368_v35 = vpop.permute.xlu0 %9367 }
0x1b82   :  { %v9385_v24 = vmul.f32 %v9368_v35, %v16581_v8  ;;  %9397 = vrot.lane.b32.xlu1 %v9380_v33, %s13762_s19  ;;  %v9564_v33 = vmul.f32 0.5, %v9556_v25  ;;  %v9567_v11 = vmul.f32 0.5, %v9559_v4  ;;  %v9485_v4 = vrot.slane %v16487_v45, 2 }
0x1b83   :  { %v9370_v40 = vpop.permute.xlu1 %9369 }
0x1b84   :  { %v9386_v53 = vmul.f32 %v9370_v40, %v16585_v38  ;;  %9407 = vrot.lane.b32.xlu0 %v9385_v24, %s13762_s19  ;;  %v13182_v40 = vpop.eup %13181 }
0x1b85   :  { %v9360_v30 = vpop.permute.xlu0 %9359  ;;  %v9339_v55 = vadd.f32 1.0, %v13182_v40 }
0x1b86   :  { %v9381_v0 = vmul.f32 %v9360_v30, %v16589_v21  ;;  %9409 = vrot.lane.b32.xlu1 %v9386_v53, %s13762_s19  ;;  %v9560_v30 = vadd.f32 1.0, %v13180_v57  ;;  %v9484_v57 = vrot.slane %v16487_v45, 1 }
0x1b87   :  { %v9634_v51 = vpop.permute.xlu1 %9633 }
0x1b88   :  { %v9653_v14 = vmul.f32 %v9634_v51, %v9565_v13  ;;  %9399 = vrot.lane.b32.xlu0 %v9381_v0, %s13762_s19 }
0x1b89   :  { %v9630_v56 = vpop.permute.xlu0 %9629 }
0x1b8a   :  { %v9651_v10 = vmul.f32 %v9630_v56, %v9563_v43  ;;  %9673 = vrot.lane.b32.xlu1 %v9653_v14, %s13762_s19  ;;  %v9568_v43 = vmul.f32 0.5, %v9560_v30  ;;  %v16601_v56 = vmul.f32 0.5, %v9339_v55 }
0x1b8b   :  { %v9626_v61 = vpop.permute.xlu1 %9625 }
0x1b8c   :  { %v9649_v19 = vmul.f32 %v9626_v61, %v9561_v28  ;;  %9669 = vrot.lane.b32.xlu0 %v9651_v10, %s13762_s19  ;;  %v9754_v61 = vrot.slane %v16487_v45, 5 }
0x1b8d   :  { %v9632_v35 = vpop.permute.xlu0 %9631 }
0x1b8e   :  { %v9652_v24 = vmul.f32 %v9632_v35, %v9564_v33  ;;  %9665 = vrot.lane.b32.xlu1 %v9649_v19, %s13762_s19  ;;  %v9488_v19 = vrot.slane %v16490_v60, 6  ;;  %v9753_v33 = vrot.slane %v16487_v45, 3  ;;  %v9755_v35 = vrot.slane %v16490_v60, 7 }
0x1b8f   :  { %v9638_v53 = vpop.permute.xlu1 %9637 }
0x1b90   :  { %v9655_v39 = vmul.f32 %v9638_v53, %v9567_v11  ;;  %9671 = vrot.lane.b32.xlu0 %v9652_v24, %s13762_s19 }
0x1b91   :  { %v9628_v0 = vpop.permute.xlu0 %9627 }
0x1b92   :  { %v9650_v13 = vmul.f32 %v9628_v0, %v9562_v3  ;;  %9677 = vrot.lane.b32.xlu1 %v9655_v39, %s13762_s19 }
0x1b93   :  { %v9636_v51 = vpop.permute.xlu1 %9635 }
0x1b94   :  { %v9654_v14 = vmul.f32 %v9636_v51, %v9566_v23  ;;  %9667 = vrot.lane.b32.xlu0 %v9650_v13, %s13762_s19 }
0x1b95   :  { %v9640_v25 = vpop.permute.xlu0 %9639 }
0x1b96   :  { %v9656_v18 = vmul.f32 %v9640_v25, %v9568_v43  ;;  %9675 = vrot.lane.b32.xlu1 %v9654_v14, %s13762_s19 }
0x1b97   :  { %v9356_v10 = vpop.permute.xlu1 %9355 }
0x1b98   :  { %v9379_v28 = vmul.f32 %v9356_v10, %v16601_v56  ;;  %9679 = vrot.lane.b32.xlu0 %v9656_v18, %s13762_s19 }
0x1b9a   :  { %9395 = vrot.lane.b32.xlu1 %v9379_v28, %s13762_s19 }
0x1b9c   :  { %9495 = vrot.lane.b32.xlu0 %v9485_v4, %s13757_s2 }
0x1b9e   :  { %9497 = vrot.lane.b32.xlu1 %v9486_v36, %s13757_s2 }
0x1ba0   :  { %9763 = vrot.lane.b32.xlu0 %v9754_v61, %s13761_s11 }
0x1ba2   :  { %9765 = vrot.lane.b32.xlu1 %v9488_v19, %s13761_s11 }
0x1ba4   :  { %9491 = vrot.lane.b32.xlu0 %v16487_v45, %s13757_s2 }
0x1ba6   :  { %9499 = vrot.lane.b32.xlu1 %v9222_v63, %s13757_s2  ;;  %v9756_v63 = vrot.slane %v16490_v60, 1 }
0x1ba8   :  { %9759 = vrot.lane.b32.xlu0 %v9753_v33, %s13761_s11 }
0x1baa   :  { %9501 = vrot.lane.b32.xlu1 %v9487_v27, %s13757_s2 }
0x1bac   :  { %9493 = vrot.lane.b32.xlu0 %v9484_v57, %s13757_s2 }
0x1bae   :  { %9757 = vrot.lane.b32.xlu1 %v9485_v4, %s13761_s11 }
0x1bb0   :  { %9767 = vrot.lane.b32.xlu0 %v9755_v35, %s13761_s11 }
0x1bb2   :  { %9769 = vrot.lane.b32.xlu1 %v16490_v60, %s13761_s11 }
0x1bb6   :  { %9503 = vrot.lane.b32.xlu1 %v9488_v19, %s13757_s2 }
0x1bba   :  { %9761 = vrot.lane.b32.xlu1 %v9221_v17, %s13761_s11 }
0x1bbe   :  { %9771 = vrot.lane.b32.xlu1 %v9756_v63, %s13761_s11  ;;  %v17629_v63 = vld [vmem:[#allocation46_spill] sm:$0xff] }
0x1bee   :  { %v9406_v24 = vpop.permute.xlu0 %9405 }
0x1bef   :  { %v9424_v11 = vadd.f32 %v9406_v24, %v17617_v26 }
0x1bf0   :  { %v9404_v29 = vpop.permute.xlu1 %9403 }
0x1bf1   :  { %13183 = vtanh.f32 %v9424_v11  ;;  %v9423_v40 = vadd.f32 %v9404_v29, %v17614_v9  ;;  %v17630_v11 = vld [vmem:[#allocation50_spill] sm:$0xff] }
0x1bf2   :  { %v9402_v53 = vpop.permute.xlu0 %9401 }
0x1bf3   :  { %13185 = vtanh.f32 %v9423_v40  ;;  %v9422_v39 = vadd.f32 %v9402_v53, %v17621_v50 }
0x1bf4   :  { %v9398_v3 = vpop.permute.xlu1 %9397 }
0x1bf5   :  { %13187 = vtanh.f32 %v9422_v39  ;;  %v9420_v30 = vadd.f32 %v9398_v3, %v17615_v62  ;;  %v17631_v39 = vld [vmem:[#allocation49_spill] sm:$0xff] }
0x1bf6   :  { %v9408_v17 = vpop.permute.xlu0 %9407 }
0x1bf7   :  { %v9425_v60 = vadd.f32 %v9408_v17, %v17619_v7  ;;  %13189 = vtanh.f32 %v9420_v30 }
0x1bf8   :  { %v9410_v0 = vpop.permute.xlu1 %9409 }
0x1bf9   :  { %13191 = vtanh.f32 %v9425_v60  ;;  %v9426_v13 = vadd.f32 %v9410_v0, %v17620_v15 }
0x1bfa   :  { %v9400_v23 = vpop.permute.xlu0 %9399 }
0x1bfb   :  { %v9421_v55 = vadd.f32 %v9400_v23, %v17616_v34  ;;  %13193 = vtanh.f32 %v9426_v13 }
0x1bfc   :  { %v9674_v51 = vpop.permute.xlu1 %9673 }
0x1bfd   :  { %13195 = vtanh.f32 %v9421_v55  ;;  %v9693_v14 = vadd.f32 %v9674_v51, %v15182_v48 }
0x1bfe   :  { %v13184_v43 = vpop.eup %13183  ;;  %v9670_v25 = vpop.permute.xlu0 %9669 }
0x1bff   :  { %v9691_v18 = vadd.f32 %v9670_v25, %v17627_v22  ;;  %9461 = vrot.lane.b32.xlu0 %v13184_v43, %s13761_s11  ;;  %13197 = vtanh.f32 %v9693_v14 }
0x1c00   :  { %v13186_v10 = vpop.eup %13185  ;;  %v9666_v28 = vpop.permute.xlu1 %9665 }
0x1c01   :  { %13199 = vtanh.f32 %v9691_v18  ;;  %9459 = vrot.lane.b32.xlu1 %v13186_v10, %s13761_s11  ;;  %v9689_v19 = vadd.f32 %v9666_v28, %v17626_v54  ;;  %v9483_v10 = vrot.slane %v16487_v45, 7 }
0x1c02   :  { %v13188_v4 = vpop.eup %13187  ;;  %v9672_v36 = vpop.permute.xlu0 %9671 }
0x1c03   :  { %v9692_v61 = vadd.f32 %v9672_v36, %v17625_v44  ;;  %9457 = vrot.lane.b32.xlu0 %v13188_v4, %s13761_s11 }
0x1c04   :  { %v9678_v33 = vpop.permute.xlu1 %9677  ;;  %v13190_v27 = vpop.eup %13189 }
0x1c05   :  { %13201 = vtanh.f32 %v9692_v61  ;;  %v9695_v29 = vadd.f32 %v9678_v33, %v17630_v11 }
0x1c06   :  { %v13192_v57 = vpop.eup %13191  ;;  %v9668_v35 = vpop.permute.xlu0 %9667  ;;  %13203 = vtanh.f32 %v9689_v19 }
0x1c07   :  { %v9690_v24 = vadd.f32 %v9668_v35, %v17629_v63  ;;  %9453 = vrot.lane.b32.xlu0 %v13190_v27, %s13761_s11  ;;  %9463 = vrot.lane.b32.xlu1 %v13192_v57, %s13761_s11 }
0x1c08   :  { %v9676_v40 = vpop.permute.xlu1 %9675  ;;  %v13194_v53 = vpop.eup %13193 }
0x1c09   :  { %13205 = vtanh.f32 %v9690_v24  ;;  %v9694_v3 = vadd.f32 %v9676_v40, %v17631_v39 }
0x1c0a   :  { %v13196_v30 = vpop.eup %13195  ;;  %v9680_v17 = vpop.permute.xlu0 %9679  ;;  %13207 = vtanh.f32 %v9695_v29  ;;  %v9589_v29 = vadd.f32 %v9573_v58, %v15182_v48  ;;  %v9585_v58 = vadd.f32 %v9570_v20, %v17626_v54  ;;  %v9592_v20 = vadd.f32 %v9576_v31, %v17628_v42 }
0x1c0b   :  { %9455 = vrot.lane.b32.xlu0 %v13196_v30, %s13761_s11  ;;  %9465 = vrot.lane.b32.xlu1 %v13194_v53, %s13761_s11  ;;  %13209 = vtanh.f32 %v9694_v3  ;;  %v9696_v0 = vadd.f32 %v9680_v17, %v17628_v42  ;;  %v9588_v53 = vadd.f32 %v9572_v46, %v17625_v44  ;;  %v9587_v17 = vadd.f32 %v16512_v5, %v17627_v22 }
0x1c0c   :  { %v13198_v60 = vpop.eup %13197  ;;  %v9396_v23 = vpop.permute.xlu1 %9395  ;;  %v9597_v30 = vmul.f32 0.5, %v9589_v29  ;;  %v9440_v5 = vsub.f32 1.0, %v16565_v47 }
0x1c0d   :  { %13211 = vtanh.f32 %v9696_v0  ;;  %v9419_v55 = vadd.f32 %v9396_v23, %v17618_v2  ;;  %v9586_v0 = vadd.f32 %v9571_v41, %v17629_v63  ;;  %v9595_v23 = vmul.f32 0.5, %v9587_v17 }
0x1c0e   :  { %v13200_v13 = vpop.eup %13199  ;;  %v9496_v33 = vpop.permute.xlu0 %9495  ;;  %v9591_v41 = vadd.f32 %v9575_v1, %v17630_v11  ;;  %v9438_v1 = vsub.f32 1.0, %v16573_v12 }
0x1c0f   :  { %9725 = vrot.lane.b32.xlu0 %v13200_v13, %s13761_s11  ;;  %9729 = vrot.lane.b32.xlu1 %v13198_v60, %s13761_s11  ;;  %13213 = vtanh.f32 %v9419_v55  ;;  %v9596_v60 = vmul.f32 0.5, %v9588_v53  ;;  %v9594_v46 = vmul.f32 0.5, %v9586_v0 }
0x1c10   :  { %v9498_v36 = vpop.permute.xlu1 %9497  ;;  %13215 = vtanh.f32 %v9597_v30 }
0x1c11   :  { %13217 = vtanh.f32 %v9596_v60  ;;  %v9516_v60 = vmul.f32 %v9496_v33, %v16573_v12  ;;  %v9517_v0 = vmul.f32 %v9498_v36, %v16569_v59 }
0x1c12   :  { %v13202_v51 = vpop.eup %13201  ;;  %v16672_v57 = vpop.permute.xlu0 %9763  ;;  %13219 = vtanh.f32 %v9595_v23 }
0x1c13   :  { %9727 = vrot.lane.b32.xlu0 %v13202_v51, %s13761_s11  ;;  %v13204_v14 = vpop.eup %13203  ;;  %v9590_v51 = vadd.f32 %v9574_v37, %v17631_v39  ;;  %13221 = vtanh.f32 %v9594_v46  ;;  %v9600_v37 = vmul.f32 0.5, %v9592_v20 }
0x1c14   :  { %v16670_v61 = vpop.permute.xlu1 %9765 }
0x1c16   :  { %v13206_v43 = vpop.eup %13205  ;;  %v16676_v24 = vpop.permute.xlu0 %9491 }
0x1c17   :  { %9721 = vrot.lane.b32.xlu0 %v13204_v14, %s13761_s11  ;;  %9723 = vrot.lane.b32.xlu1 %v13206_v43, %s13761_s11  ;;  %v13208_v25 = vpop.eup %13207  ;;  %v9593_v14 = vmul.f32 0.5, %v9585_v58 }
0x1c18   :  { %v13210_v18 = vpop.eup %13209  ;;  %v9500_v19 = vpop.permute.xlu1 %9499 }
0x1c19   :  { %13223 = vtanh.f32 %v9593_v14  ;;  %v9441_v14 = vsub.f32 1.0, %v16581_v8 }
0x1c1a   :  { %v13212_v28 = vpop.eup %13211  ;;  %v16683_v40 = vpop.permute.xlu0 %9759 }
0x1c1b   :  { %9733 = vrot.lane.b32.xlu0 %v13208_v25, %s13761_s11  ;;  %9731 = vrot.lane.b32.xlu1 %v13210_v18, %s13761_s11  ;;  %v9598_v25 = vmul.f32 0.5, %v9590_v51 }
0x1c1c   :  { %v13214_v4 = vpop.eup %13213  ;;  %v9502_v27 = vpop.permute.xlu1 %9501 }
0x1c1d   :  { %13225 = vtanh.f32 %v9598_v25  ;;  %v13216_v53 = vpop.eup %13215  ;;  %v9519_v12 = vmul.f32 %v9502_v27, %v16581_v8 }
0x1c1e   :  { %v16693_v13 = vpop.permute.xlu0 %9493  ;;  %v13218_v58 = vpop.eup %13217  ;;  %v9613_v23 = vadd.f32 1.0, %v13216_v53 }
0x1c1f   :  { %9735 = vrot.lane.b32.xlu0 %v13212_v28, %s13761_s11  ;;  %9489 = vrot.lane.b32.xlu1 %v9483_v10, %s13757_s2  ;;  %v9599_v10 = vmul.f32 0.5, %v9591_v41 }
0x1c20   :  { %v16674_v35 = vpop.permute.xlu1 %9757  ;;  %v9621_v36 = vmul.f32 0.5, %v9613_v23 }
0x1c21   :  { %13227 = vtanh.f32 %v9599_v10  ;;  %v13220_v10 = vpop.eup %13219 }
0x1c22   :  { %v16706_v43 = vpop.permute.xlu0 %9767  ;;  %13229 = vtanh.f32 %v9600_v37 }
0x1c23   :  { %9451 = vrot.lane.b32.xlu0 %v13214_v4, %s13761_s11  ;;  %v9439_v4 = vsub.f32 1.0, %v16569_v59  ;;  %v13222_v59 = vpop.eup %13221 }
0x1c24   :  { %v16678_v45 = vpop.permute.xlu1 %9769  ;;  %v9610_v8 = vadd.f32 1.0, %v13222_v59 }
0x1c28   :  { %v9504_v3 = vpop.permute.xlu1 %9503 }
0x1c2c   :  { %v16698_v55 = vpop.permute.xlu1 %9761 }
0x1c30   :  { %v16711_v18 = vpop.permute.xlu1 %9771 }
0x1c71   :  { %v9462_v28 = vpop.permute.xlu0 %9461 }
0x1c72   :  { %v9480_v46 = vmul.f32 %v9462_v28, %v9440_v5  ;;  %v9442_v28 = vsub.f32 1.0, %v16585_v38 }
0x1c73   :  { %v9460_v29 = vpop.permute.xlu1 %9459 }
0x1c74   :  { %v9479_v30 = vmul.f32 %v9460_v29, %v9439_v4  ;;  %v9518_v4 = vmul.f32 %v9500_v19, %v16565_v47  ;;  %v9612_v29 = vadd.f32 1.0, %v13218_v58 }
0x1c75   :  { %v9458_v17 = vpop.permute.xlu0 %9457 }
0x1c76   :  { %v9478_v31 = vmul.f32 %v9458_v17, %v9438_v1  ;;  %v9525_v41 = vadd.f32 %v9517_v0, %v9479_v30  ;;  %v9526_v37 = vadd.f32 %v9518_v4, %v9480_v46  ;;  %v13224_v17 = vpop.eup %13223  ;;  %v9520_v0 = vmul.f32 %v9504_v3, %v16585_v38 }
0x1c77   :  { %v9620_v19 = vmul.f32 0.5, %v9612_v29  ;;  %v9609_v23 = vadd.f32 1.0, %v13224_v17  ;;  %v9618_v38 = vmul.f32 0.5, %v9610_v8 }
0x1c78   :  { %v9524_v51 = vadd.f32 %v9516_v60, %v9478_v31  ;;  %v9611_v60 = vadd.f32 1.0, %v13220_v10  ;;  %v9810_v30 = vrot.slane %v9525_v41, 4  ;;  %v9812_v46 = vrot.slane %v9526_v37, 3 }
0x1c79   :  { %v16719_v25 = vpop.permute.xlu0 %9453  ;;  %v9464_v20 = vpop.permute.xlu1 %9463  ;;  %v9708_v29 = vsub.f32 1.0, %v9620_v19 }
0x1c7a   :  { %v9481_v33 = vmul.f32 %v9464_v20, %v9441_v14  ;;  %v9809_v1 = vrot.slane %v9524_v51, 5  ;;  %v13226_v51 = vpop.eup %13225  ;;  %v9709_v20 = vsub.f32 1.0, %v9621_v36 }
0x1c7b   :  { %v13228_v4 = vpop.eup %13227  ;;  %v9614_v3 = vadd.f32 1.0, %v13226_v51 }
0x1c7c   :  { %v9527_v53 = vadd.f32 %v9519_v12, %v9481_v33  ;;  %v9811_v27 = vsel %vm6644_vm5, %v9810_v30, %v9809_v1  ;;  %v9619_v12 = vmul.f32 0.5, %v9611_v60  ;;  %v13230_v1 = vpop.eup %13229  ;;  %v9615_v37 = vadd.f32 1.0, %v13228_v4 }
0x1c7d   :  { %v16724_v5 = vpop.permute.xlu0 %9455  ;;  %v9466_v31 = vpop.permute.xlu1 %9465  ;;  %v9813_v54 = vsel %vm6647_vm6, %v9812_v46, %v9811_v27  ;;  %v9622_v8 = vmul.f32 0.5, %v9614_v3  ;;  %v9616_v27 = vadd.f32 1.0, %v13230_v1 }
0x1c7e   :  { %v9482_v47 = vmul.f32 %v9466_v31, %v9442_v28  ;;  %v9814_v58 = vrot.slane %v9527_v53, 2  ;;  %v9785_v53 = vmul.f32 %v16670_v61, %v9621_v36  ;;  %v9617_v28 = vmul.f32 0.5, %v9609_v23 }
0x1c7f   :  { %v9707_v30 = vsub.f32 1.0, %v9619_v12  ;;  %v9784_v31 = vmul.f32 %v16672_v57, %v9620_v19  ;;  %v9623_v46 = vmul.f32 0.5, %v9615_v37  ;;  %v9782_v61 = vmul.f32 %v16683_v40, %v9618_v38 }
0x1c80   :  { %v9528_v14 = vadd.f32 %v9520_v0, %v9482_v47  ;;  %v9815_v59 = vsel %vm6650_vm7, %v9814_v58, %v9813_v54  ;;  %v9705_v58 = vsub.f32 1.0, %v9617_v28  ;;  %v9781_v36 = vmul.f32 %v16674_v35, %v9617_v28 }
0x1c81   :  { %v9726_v10 = vpop.permute.xlu0 %9725  ;;  %v9730_v41 = vpop.permute.xlu1 %9729  ;;  %v9783_v23 = vmul.f32 %v16698_v55, %v9619_v12  ;;  %v9624_v19 = vmul.f32 0.5, %v9616_v27  ;;  %v9711_v1 = vsub.f32 1.0, %v9623_v46  ;;  %v9786_v40 = vmul.f32 %v16706_v43, %v9622_v8 }
0x1c82   :  { %v9816_v33 = vrot.slane %v9528_v14, 1  ;;  %v9749_v42 = vmul.f32 %v9730_v41, %v9709_v20  ;;  %v9747_v51 = vmul.f32 %v9726_v10, %v9707_v30  ;;  %v9706_v14 = vsub.f32 1.0, %v9618_v38 }
0x1c83   :  { %v9787_v35 = vmul.f32 %v16678_v45, %v9623_v46  ;;  %v9436_v55 = vsub.f32 1.0, %v16577_v16  ;;  %v9514_v45 = vmul.f32 %v16676_v24, %v16577_v16 }
0x1c84   :  { %v9817_v17 = vsel %vm6653_vm8, %v9816_v33, %v9815_v59  ;;  %v9793_v0 = vadd.f32 %v9785_v53, %v9749_v42  ;;  %v9791_v3 = vadd.f32 %v9783_v23, %v9747_v51 }
0x1c85   :  { %v9728_v60 = vpop.permute.xlu0 %9727  ;;  %9820 = vrot.lane.b32.xlu1 %v9817_v17, %s13761_s11 }
0x1c86   :  { %v9748_v47 = vmul.f32 %v9728_v60, %v9708_v29  ;;  %v9838_v41 = vrot.slane %v9793_v0, 1  ;;  %v9710_v29 = vsub.f32 1.0, %v9622_v8  ;;  %v9437_v60 = vsub.f32 1.0, %v16589_v21 }
0x1c87   :  { %v9712_v0 = vsub.f32 1.0, %v9624_v19 }
0x1c88   :  { %v9792_v54 = vadd.f32 %v9784_v31, %v9748_v47  ;;  %v9835_v31 = vrot.slane %v9791_v3, 3  ;;  %v9476_v47 = vmul.f32 %v16719_v25, %v9436_v55  ;;  %v9477_v8 = vmul.f32 %v16724_v5, %v9437_v60 }
0x1c89   :  { %v9722_v20 = vpop.permute.xlu0 %9721  ;;  %v9724_v4 = vpop.permute.xlu1 %9723  ;;  %v9515_v25 = vmul.f32 %v16693_v13, %v16589_v21 }
0x1c8a   :  { %v9837_v33 = vrot.slane %v9792_v54, 2  ;;  %v9745_v57 = vmul.f32 %v9722_v20, %v9705_v58  ;;  %v9746_v42 = vmul.f32 %v9724_v4, %v9706_v14  ;;  %v9788_v58 = vmul.f32 %v16711_v18, %v9624_v19 }
0x1c8b   :  { %v9522_v20 = vadd.f32 %v9514_v45, %v9476_v47  ;;  %v9523_v24 = vadd.f32 %v9515_v25, %v9477_v8 }
0x1c8c   :  { %v9789_v10 = vadd.f32 %v9781_v36, %v9745_v57  ;;  %v9790_v59 = vadd.f32 %v9782_v61, %v9746_v42  ;;  %v9839_v53 = vsel %vm6644_vm5, %v9838_v41, %v9837_v33  ;;  %v9435_v41 = vsub.f32 1.0, %v16601_v56 }
0x1c8d   :  { %v9734_v12 = vpop.permute.xlu0 %9733  ;;  %v9732_v38 = vpop.permute.xlu1 %9731  ;;  %v9805_v42 = vrot.slane %v9522_v20, 7 }
0x1c8e   :  { %v9832_v28 = vrot.slane %v9789_v10, 5  ;;  %v9833_v37 = vrot.slane %v9790_v59, 4  ;;  %v9751_v17 = vmul.f32 %v9734_v12, %v9711_v1  ;;  %v9750_v30 = vmul.f32 %v9732_v38, %v9710_v29 }
0x1c8f   :  { %v9807_v29 = vrot.slane %v9523_v24, 6 }
0x1c90   :  { %v9795_v27 = vadd.f32 %v9787_v35, %v9751_v17  ;;  %v9794_v51 = vadd.f32 %v9786_v40, %v9750_v30  ;;  %v9834_v43 = vsel %vm6659_vm10, %v9833_v37, %v9832_v28 }
0x1c91   :  { %v9736_v46 = vpop.permute.xlu0 %9735  ;;  %v9836_v54 = vsel %vm6662_vm11, %v9835_v31, %v9834_v43  ;;  %v9490_v23 = vpop.permute.xlu1 %9489 }
0x1c92   :  { %v9841_v14 = vrot.slane %v9795_v27, 7  ;;  %v9752_v61 = vmul.f32 %v9736_v46, %v9712_v0  ;;  %v9840_v36 = vsel %vm6647_vm6, %v9794_v51, %v9839_v53  ;;  %v9513_v57 = vmul.f32 %v9490_v23, %v16601_v56 }
0x1c94   :  { %v9796_v4 = vadd.f32 %v9788_v58, %v9752_v61  ;;  %v9842_v16 = vsel %vm6650_vm7, %v9841_v14, %v9840_v36 }
0x1c95   :  { %v9452_v5 = vpop.permute.xlu0 %9451 }
0x1c96   :  { %v9843_v33 = vrot.slane %v9796_v4, 6  ;;  %v9475_v18 = vmul.f32 %v9452_v5, %v9435_v41 }
0x1c98   :  { %v9521_v19 = vadd.f32 %v9513_v57, %v9475_v18  ;;  %v9844_v3 = vsel %vm6653_vm8, %v9843_v33, %v9842_v16 }
0x1c99   :  { %9847 = vrot.lane.b32.xlu1 %v9844_v3, %s13757_s2 }
0x1c9a   :  { %v9806_v21 = vsel %vm6659_vm10, %v9805_v42, %v9521_v19 }
0x1c9b   :  { %v9808_v13 = vsel %vm6662_vm11, %v9807_v29, %v9806_v21 }
0x1c9c   :  { %9818 = vrot.lane.b32.xlu0 %v9808_v13, %s13761_s11 }
0x1ca0   :  { %9845 = vrot.lane.b32.xlu0 %v9836_v54, %s13757_s2 }
0x1cf7   :  { %v9821_v10 = vpop.permute.xlu1 %9820 }
0x1d0b   :  { %v9848_v59 = vpop.permute.xlu1 %9847 }
0x1d0c   :  { %v16762_v56 = vsel %vm254_vm0, %v9821_v10, %v9848_v59 }
0x1d0d   :  { %v9857_v55 = vrot.slane %v16762_v56, 5 }
0x1d0e   :  { %v9819_v1 = vpop.permute.xlu0 %9818 }
0x1d12   :  { %v9846_v53 = vpop.permute.xlu0 %9845 }
0x1d13   :  { %v16765_v40 = vsel %vm254_vm0, %v9819_v1, %v9846_v53 }
0x1d14   :  { %v9856_v35 = vrot.slane %v16765_v40, 5 }
0x1d16   :  { %v9858_v12 = vsel %vm9855_vm2, %v9856_v35, %v9857_v55 }
0x1d17   :  { %v16774_v38 = vadd.f32 %v9858_v12, %v16499_v52  ;;  %12027 = vmatmul.mubr.msk.f32.vlgmr.msra.gmra.mxu0 %vm6120_vm12, %v9858_v12 }
0x1d18   :  { %11279 = vmatprep.mubr.f32.mxu0 %v17580_v49 }
0x1dd7   :  { %v9929_v28 = vpop.f32.mrf.mxu0 }
0x1dd8   :  { %v9930_v37 = vadd.f32 %v9929_v28, %v17612_v32 }
0x1dd9   :  { %v9931_v60 = vpop.f32.mrf.mxu0 }
0x1dda   :  { %10002 = vrot.lane.b32.xlu0 %v9930_v37, %s13762_s19  ;;  %v16780_v17 = vrot.slane %v9930_v37, 5  ;;  %v9937_v30 = vrot.slane %v9930_v37, 4  ;;  %v16785_v52 = vrot.slane %v9930_v37, 6  ;;  %v16788_v31 = vadd.f32 %v9931_v60, %v17613_v6 }
0x1ddb   :  { %v9936_v0 = vrot.slane %v9930_v37, 3  ;;  %v9940_v47 = vrot.slane %v9930_v37, 7  ;;  %v9941_v51 = vrot.slane %v9930_v37, 1  ;;  %v9935_v14 = vrot.slane %v9930_v37, 2 }
0x1ddc   :  { %9996 = vrot.lane.b32.xlu1 %v16780_v17, %s13762_s19  ;;  %v10206_v27 = vrot.slane %v16788_v31, 1  ;;  %v10208_v43 = vrot.slane %v16788_v31, 3  ;;  %v10207_v45 = vrot.slane %v16788_v31, 2  ;;  %v10209_v8 = vrot.slane %v16788_v31, 4 }
0x1ddd   :  { %v10205_v46 = vrot.slane %v16788_v31, 7  ;;  %v10210_v54 = vrot.slane %v16788_v31, 5  ;;  %v10211_v58 = vrot.slane %v16788_v31, 6  ;;  %v9956_v61 = vadd.f32 %v9930_v37, %v17619_v7 }
0x1dde   :  { %9994 = vrot.lane.b32.xlu0 %v9937_v30, %s13762_s19  ;;  %v9953_v36 = vadd.f32 %v16780_v17, %v17621_v50  ;;  %v9952_v23 = vadd.f32 %v9937_v30, %v17616_v34  ;;  %v9954_v4 = vadd.f32 %v16785_v52, %v17614_v9  ;;  %v9951_v16 = vadd.f32 %v9936_v0, %v17615_v62 }
0x1ddf   :  { %v9964_v25 = vmul.f32 0.5, %v9956_v61  ;;  %v9955_v5 = vadd.f32 %v9940_v47, %v17617_v26  ;;  %v10166_v57 = vadd.f32 %v9941_v51, %v17616_v34  ;;  %v9957_v42 = vadd.f32 %v9941_v51, %v17620_v15 }
0x1de0   :  { %9998 = vrot.lane.b32.xlu1 %v16785_v52, %s13762_s19  ;;  %v9961_v20 = vmul.f32 0.5, %v9953_v36  ;;  %v9960_v41 = vmul.f32 0.5, %v9952_v23  ;;  %v9962_v24 = vmul.f32 0.5, %v9954_v4  ;;  %v9959_v33 = vmul.f32 0.5, %v9951_v16 }
0x1de1   :  { %13231 = vtanh.f32 %v9964_v25  ;;  %v9963_v18 = vmul.f32 0.5, %v9955_v5  ;;  %v10174_v19 = vmul.f32 0.5, %v10166_v57  ;;  %v10168_v3 = vadd.f32 %v9936_v0, %v17614_v9 }
0x1de2   :  { %9992 = vrot.lane.b32.xlu0 %v9936_v0, %s13762_s19  ;;  %13233 = vtanh.f32 %v9961_v20  ;;  %v9965_v29 = vmul.f32 0.5, %v9957_v42  ;;  %v10165_v21 = vadd.f32 %v9930_v37, %v17615_v62  ;;  %v10167_v10 = vadd.f32 %v9935_v14, %v17621_v50 }
0x1de3   :  { %13235 = vtanh.f32 %v9960_v41  ;;  %v10176_v13 = vmul.f32 0.5, %v10168_v3  ;;  %v10169_v53 = vadd.f32 %v9937_v30, %v17617_v26  ;;  %v10170_v61 = vadd.f32 %v16780_v17, %v17619_v7 }
0x1de4   :  { %10000 = vrot.lane.b32.xlu1 %v9940_v47, %s13762_s19  ;;  %13237 = vtanh.f32 %v9962_v24  ;;  %v10173_v1 = vmul.f32 0.5, %v10165_v21  ;;  %v10175_v60 = vmul.f32 0.5, %v10167_v10  ;;  %v10171_v23 = vadd.f32 %v16785_v52, %v17620_v15 }
0x1de5   :  { %13239 = vtanh.f32 %v9959_v33  ;;  %v10177_v36 = vmul.f32 0.5, %v10169_v53  ;;  %v10178_v24 = vmul.f32 0.5, %v10170_v61 }
0x1de6   :  { %10264 = vrot.lane.b32.xlu0 %v10206_v27, %s13762_s19  ;;  %13241 = vtanh.f32 %v9963_v18  ;;  %v10179_v42 = vmul.f32 0.5, %v10171_v23 }
0x1de7   :  { %13243 = vtanh.f32 %v10174_v19 }
0x1de8   :  { %10004 = vrot.lane.b32.xlu1 %v9941_v51, %s13762_s19  ;;  %13245 = vtanh.f32 %v9965_v29  ;;  %v10164_v51 = vadd.f32 %v9940_v47, %v17618_v2  ;;  %v9950_v47 = vadd.f32 %v9935_v14, %v17618_v2 }
0x1de9   :  { %13247 = vtanh.f32 %v10176_v13 }
0x1dea   :  { %10268 = vrot.lane.b32.xlu0 %v10208_v43, %s13762_s19  ;;  %13249 = vtanh.f32 %v10173_v1  ;;  %v10172_v4 = vmul.f32 0.5, %v10164_v51 }
0x1deb   :  { %13251 = vtanh.f32 %v10175_v60 }
0x1dec   :  { %10262 = vrot.lane.b32.xlu1 %v16788_v31, %s13762_s19  ;;  %13253 = vtanh.f32 %v10177_v36 }
0x1ded   :  { %13255 = vtanh.f32 %v10172_v4 }
0x1dee   :  { %10266 = vrot.lane.b32.xlu0 %v10207_v45, %s13762_s19  ;;  %v13232_v59 = vpop.eup %13231  ;;  %13257 = vtanh.f32 %v10178_v24 }
0x1def   :  { %v13234_v12 = vpop.eup %13233  ;;  %v9980_v28 = vadd.f32 1.0, %v13232_v59  ;;  %13259 = vtanh.f32 %v10179_v42 }
0x1df0   :  { %10270 = vrot.lane.b32.xlu1 %v10209_v8, %s13762_s19  ;;  %v13236_v0 = vpop.eup %13235  ;;  %v9977_v37 = vadd.f32 1.0, %v13234_v12 }
0x1df1   :  { %v13238_v25 = vpop.eup %13237  ;;  %v16845_v20 = vmul.f32 0.5, %v9980_v28  ;;  %v9976_v30 = vadd.f32 1.0, %v13236_v0 }
0x1df2   :  { %10260 = vrot.lane.b32.xlu0 %v10205_v46, %s13762_s19  ;;  %v13240_v41 = vpop.eup %13239  ;;  %v16849_v17 = vmul.f32 0.5, %v9977_v37  ;;  %v9978_v33 = vadd.f32 1.0, %v13238_v25 }
0x1df3   :  { %v13242_v57 = vpop.eup %13241  ;;  %v16853_v19 = vmul.f32 0.5, %v9976_v30  ;;  %v9975_v3 = vadd.f32 1.0, %v13240_v41 }
0x1df4   :  { %10272 = vrot.lane.b32.xlu1 %v10210_v54, %s13762_s19  ;;  %v13244_v29 = vpop.eup %13243  ;;  %v16857_v10 = vmul.f32 0.5, %v9978_v33  ;;  %v9979_v59 = vadd.f32 1.0, %v13242_v57 }
0x1df5   :  { %v13246_v1 = vpop.eup %13245  ;;  %v16861_v28 = vmul.f32 0.5, %v9975_v3  ;;  %v10190_v60 = vadd.f32 1.0, %v13244_v29 }
0x1df6   :  { %10274 = vrot.lane.b32.xlu0 %v10211_v58, %s13762_s19  ;;  %v13248_v51 = vpop.eup %13247  ;;  %v16865_v37 = vmul.f32 0.5, %v9979_v59  ;;  %v9981_v36 = vadd.f32 1.0, %v13246_v1 }
0x1df7   :  { %v13250_v25 = vpop.eup %13249  ;;  %v10198_v4 = vmul.f32 0.5, %v10190_v60  ;;  %v10192_v41 = vadd.f32 1.0, %v13248_v51 }
0x1df8   :  { %9990 = vrot.lane.b32.xlu1 %v9935_v14, %s13762_s19  ;;  %v9958_v14 = vmul.f32 0.5, %v9950_v47  ;;  %v10189_v33 = vadd.f32 1.0, %v13250_v25 }
0x1dfa   :  { %13261 = vtanh.f32 %v9958_v14 }
0x1e4c   :  { %v10003_v16 = vpop.permute.xlu0 %10002 }
0x1e4d   :  { %v10020_v5 = vmul.f32 %v10003_v16, %v16845_v20  ;;  %v13252_v16 = vpop.eup %13251 }
0x1e4e   :  { %v9997_v18 = vpop.permute.xlu1 %9996  ;;  %v13254_v57 = vpop.eup %13253  ;;  %v10191_v3 = vadd.f32 1.0, %v13252_v16 }
0x1e4f   :  { %v10017_v52 = vmul.f32 %v9997_v18, %v16849_v17  ;;  %10042 = vrot.lane.b32.xlu0 %v10020_v5, %s13762_s19  ;;  %v16870_v5 = vmul.f32 0.5, %v9981_v36  ;;  %v13256_v29 = vpop.eup %13255  ;;  %v10193_v59 = vadd.f32 1.0, %v13254_v57 }
0x1e50   :  { %v9995_v21 = vpop.permute.xlu0 %9994  ;;  %v13258_v1 = vpop.eup %13257  ;;  %v10199_v60 = vmul.f32 0.5, %v10191_v3  ;;  %v10188_v51 = vadd.f32 1.0, %v13256_v29 }
0x1e51   :  { %v10016_v13 = vmul.f32 %v9995_v21, %v16853_v19  ;;  %10036 = vrot.lane.b32.xlu1 %v10017_v52, %s13762_s19  ;;  %v10200_v52 = vmul.f32 0.5, %v10192_v41  ;;  %v10201_v25 = vmul.f32 0.5, %v10193_v59 }
0x1e52   :  { %v9999_v53 = vpop.permute.xlu1 %9998  ;;  %v10196_v16 = vmul.f32 0.5, %v10188_v51  ;;  %v10121_v51 = vrot.slane %v16762_v56, 3 }
0x1e53   :  { %v10018_v12 = vmul.f32 %v9999_v53, %v16857_v10  ;;  %10034 = vrot.lane.b32.xlu0 %v10016_v13, %s13762_s19  ;;  %v10197_v13 = vmul.f32 0.5, %v10189_v33 }
0x1e54   :  { %v9993_v0 = vpop.permute.xlu0 %9992 }
0x1e55   :  { %v10015_v61 = vmul.f32 %v9993_v0, %v16861_v28  ;;  %10038 = vrot.lane.b32.xlu1 %v10018_v12, %s13762_s19  ;;  %v13260_v0 = vpop.eup %13259 }
0x1e56   :  { %v10001_v23 = vpop.permute.xlu1 %10000 }
0x1e57   :  { %v10019_v30 = vmul.f32 %v10001_v23, %v16865_v37  ;;  %10032 = vrot.lane.b32.xlu0 %v10015_v61, %s13762_s19  ;;  %v10194_v23 = vadd.f32 1.0, %v13258_v1  ;;  %v10119_v1 = vrot.slane %v16765_v40, 1 }
0x1e58   :  { %v10265_v24 = vpop.permute.xlu0 %10264 }
0x1e59   :  { %v10286_v47 = vmul.f32 %v10265_v24, %v10198_v4  ;;  %10040 = vrot.lane.b32.xlu1 %v10019_v30, %s13762_s19  ;;  %v13262_v30 = vpop.eup %13261  ;;  %v10195_v24 = vadd.f32 1.0, %v13260_v0  ;;  %v10202_v57 = vmul.f32 0.5, %v10194_v23  ;;  %v10122_v0 = vrot.slane %v16762_v56, 4 }
0x1e5a   :  { %v10005_v18 = vpop.permute.xlu1 %10004 }
0x1e5b   :  { %v10021_v42 = vmul.f32 %v10005_v18, %v16870_v5  ;;  %10304 = vrot.lane.b32.xlu0 %v10286_v47, %s13762_s19  ;;  %v9974_v18 = vadd.f32 1.0, %v13262_v30  ;;  %v10203_v3 = vmul.f32 0.5, %v10195_v24 }
0x1e5c   :  { %v10269_v21 = vpop.permute.xlu0 %10268 }
0x1e5d   :  { %v10288_v14 = vmul.f32 %v10269_v21, %v10200_v52  ;;  %10044 = vrot.lane.b32.xlu1 %v10021_v42, %s13762_s19 }
0x1e5e   :  { %v10263_v53 = vpop.permute.xlu1 %10262 }
0x1e5f   :  { %v10285_v12 = vmul.f32 %v10263_v53, %v10197_v13  ;;  %10308 = vrot.lane.b32.xlu0 %v10288_v14, %s13762_s19  ;;  %v16881_v14 = vmul.f32 0.5, %v9974_v18  ;;  %v10120_v53 = vrot.slane %v16762_v56, 2 }
0x1e60   :  { %v10267_v61 = vpop.permute.xlu0 %10266 }
0x1e61   :  { %v10287_v36 = vmul.f32 %v10267_v61, %v10199_v60  ;;  %10302 = vrot.lane.b32.xlu1 %v10285_v12, %s13762_s19  ;;  %v10390_v12 = vrot.slane %v16762_v56, 7  ;;  %v10389_v60 = vrot.slane %v16765_v40, 6  ;;  %v10391_v61 = vrot.slane %v16762_v56, 1 }
0x1e62   :  { %v10271_v4 = vpop.permute.xlu1 %10270 }
0x1e63   :  { %v10289_v41 = vmul.f32 %v10271_v4, %v10201_v25  ;;  %10306 = vrot.lane.b32.xlu0 %v10287_v36, %s13762_s19  ;;  %v10123_v36 = vrot.slane %v16762_v56, 6 }
0x1e64   :  { %v10261_v47 = vpop.permute.xlu0 %10260 }
0x1e65   :  { %v10284_v33 = vmul.f32 %v10261_v47, %v10196_v16  ;;  %10310 = vrot.lane.b32.xlu1 %v10289_v41, %s13762_s19 }
0x1e66   :  { %v10273_v42 = vpop.permute.xlu1 %10272 }
0x1e67   :  { %v10290_v52 = vmul.f32 %v10273_v42, %v10202_v57  ;;  %10300 = vrot.lane.b32.xlu0 %v10284_v33, %s13762_s19 }
0x1e68   :  { %v10275_v29 = vpop.permute.xlu0 %10274 }
0x1e69   :  { %v10291_v21 = vmul.f32 %v10275_v29, %v10203_v3  ;;  %10312 = vrot.lane.b32.xlu1 %v10290_v52, %s13762_s19 }
0x1e6a   :  { %v9991_v13 = vpop.permute.xlu1 %9990 }
0x1e6b   :  { %v10014_v59 = vmul.f32 %v9991_v13, %v16881_v14  ;;  %10314 = vrot.lane.b32.xlu0 %v10291_v21, %s13762_s19 }
0x1e6d   :  { %10030 = vrot.lane.b32.xlu1 %v10014_v59, %s13762_s19 }
0x1e6f   :  { %10128 = vrot.lane.b32.xlu0 %v10119_v1, %s13757_s2 }
0x1e71   :  { %10130 = vrot.lane.b32.xlu1 %v10120_v53, %s13757_s2 }
0x1e73   :  { %10398 = vrot.lane.b32.xlu0 %v10390_v12, %s13761_s11 }
0x1e75   :  { %10396 = vrot.lane.b32.xlu1 %v10389_v60, %s13761_s11 }
0x1e77   :  { %10126 = vrot.lane.b32.xlu0 %v16765_v40, %s13757_s2 }
0x1e79   :  { %10132 = vrot.lane.b32.xlu1 %v10121_v51, %s13757_s2 }
0x1e7b   :  { %10394 = vrot.lane.b32.xlu0 %v9856_v35, %s13761_s11  ;;  %v10388_v35 = vrot.slane %v16765_v40, 4 }
0x1e7d   :  { %10400 = vrot.lane.b32.xlu1 %v16762_v56, %s13761_s11 }
0x1e81   :  { %10134 = vrot.lane.b32.xlu1 %v10122_v0, %s13757_s2 }
0x1e85   :  { %10402 = vrot.lane.b32.xlu1 %v10391_v61, %s13761_s11 }
0x1e89   :  { %10136 = vrot.lane.b32.xlu1 %v9857_v55, %s13757_s2 }
0x1e8d   :  { %10404 = vrot.lane.b32.xlu1 %v10120_v53, %s13761_s11 }
0x1e91   :  { %10138 = vrot.lane.b32.xlu1 %v10123_v36, %s13757_s2 }
0x1e95   :  { %10392 = vrot.lane.b32.xlu1 %v10388_v35, %s13761_s11 }
0x1e99   :  { %10406 = vrot.lane.b32.xlu1 %v10121_v51, %s13761_s11 }
0x1ec1   :  { %v10043_v25 = vpop.permute.xlu0 %10042 }
0x1ec2   :  { %v10060_v23 = vadd.f32 %v10043_v25, %v17619_v7 }
0x1ec3   :  { %v10037_v30 = vpop.permute.xlu1 %10036 }
0x1ec4   :  { %13263 = vtanh.f32 %v10060_v23  ;;  %v10057_v4 = vadd.f32 %v10037_v30, %v17621_v50 }
0x1ec5   :  { %v10035_v55 = vpop.permute.xlu0 %10034 }
0x1ec6   :  { %13265 = vtanh.f32 %v10057_v4  ;;  %v10056_v41 = vadd.f32 %v10035_v55, %v17616_v34 }
0x1ec7   :  { %v10039_v56 = vpop.permute.xlu1 %10038 }
0x1ec8   :  { %13267 = vtanh.f32 %v10056_v41  ;;  %v10058_v16 = vadd.f32 %v10039_v56, %v17614_v9  ;;  %v17632_v56 = vld [vmem:[#allocation45_spill] sm:$0xff] }
0x1ec9   :  { %v10033_v24 = vpop.permute.xlu0 %10032 }
0x1eca   :  { %13269 = vtanh.f32 %v10058_v16  ;;  %v10055_v42 = vadd.f32 %v10033_v24, %v17615_v62 }
0x1ecb   :  { %v10041_v47 = vpop.permute.xlu1 %10040 }
0x1ecc   :  { %v10059_v33 = vadd.f32 %v10041_v47, %v17617_v26 }
0x1ecd   :  { %v10305_v57 = vpop.permute.xlu0 %10304 }
0x1ece   :  { %13271 = vtanh.f32 %v10059_v33  ;;  %v10326_v59 = vadd.f32 %v10305_v57, %v17627_v22  ;;  %v17633_v57 = vld [vmem:[#allocation51_spill] sm:$0xff] }
0x1ecf   :  { %v10045_v18 = vpop.permute.xlu1 %10044 }
0x1ed0   :  { %v10061_v52 = vadd.f32 %v10045_v18, %v17620_v15 }
0x1ed1   :  { %v13264_v3 = vpop.eup %13263  ;;  %v10309_v21 = vpop.permute.xlu0 %10308 }
0x1ed2   :  { %13273 = vtanh.f32 %v10061_v52  ;;  %10098 = vrot.lane.b32.xlu0 %v13264_v3, %s13761_s11  ;;  %v10328_v60 = vadd.f32 %v10309_v21, %v15182_v48  ;;  %v10118_v3 = vrot.slane %v16765_v40, 7 }
0x1ed3   :  { %v13266_v29 = vpop.eup %13265  ;;  %v10303_v13 = vpop.permute.xlu1 %10302  ;;  %13275 = vtanh.f32 %v10055_v42 }
0x1ed4   :  { %v10325_v1 = vadd.f32 %v10303_v13, %v17629_v63  ;;  %10092 = vrot.lane.b32.xlu1 %v13266_v29, %s13761_s11 }
0x1ed5   :  { %v13268_v53 = vpop.eup %13267  ;;  %v10307_v61 = vpop.permute.xlu0 %10306 }
0x1ed6   :  { %13277 = vtanh.f32 %v10325_v1  ;;  %10090 = vrot.lane.b32.xlu0 %v13268_v53, %s13761_s11  ;;  %v10327_v36 = vadd.f32 %v10307_v61, %v17625_v44 }
0x1ed7   :  { %v10311_v12 = vpop.permute.xlu1 %10310  ;;  %13279 = vtanh.f32 %v10326_v59  ;;  %v13270_v0 = vpop.eup %13269 }
0x1ed8   :  { %v10329_v51 = vadd.f32 %v10311_v12, %v17631_v39 }
0x1ed9   :  { %v10301_v30 = vpop.permute.xlu0 %10300 }
0x1eda   :  { %13281 = vtanh.f32 %v10329_v51  ;;  %10094 = vrot.lane.b32.xlu0 %v13270_v0, %s13761_s11  ;;  %v10324_v16 = vadd.f32 %v10301_v30, %v17632_v56  ;;  %v10222_v30 = vadd.f32 %v10206_v27, %v17627_v22 }
0x1edb   :  { %13283 = vtanh.f32 %v10328_v60  ;;  %v13272_v35 = vpop.eup %13271  ;;  %v10313_v25 = vpop.permute.xlu1 %10312 }
0x1edc   :  { %13285 = vtanh.f32 %v10327_v36  ;;  %v10330_v4 = vadd.f32 %v10313_v25, %v17630_v11 }
0x1edd   :  { %v10315_v47 = vpop.permute.xlu0 %10314 }
0x1ede   :  { %10096 = vrot.lane.b32.xlu0 %v13272_v35, %s13761_s11  ;;  %13287 = vtanh.f32 %v10330_v4  ;;  %v10331_v18 = vadd.f32 %v10315_v47, %v17633_v57 }
0x1edf   :  { %v13274_v23 = vpop.eup %13273  ;;  %13289 = vtanh.f32 %v10324_v16  ;;  %v10031_v52 = vpop.permute.xlu1 %10030  ;;  %v10225_v16 = vadd.f32 %v10209_v8, %v17631_v39  ;;  %v10226_v8 = vadd.f32 %v10210_v54, %v17630_v11  ;;  %v10073_v54 = vsub.f32 1.0, %v16849_v17 }
0x1ee0   :  { %10100 = vrot.lane.b32.xlu1 %v13274_v23, %s13761_s11  ;;  %v13276_v55 = vpop.eup %13275  ;;  %13291 = vtanh.f32 %v10331_v18  ;;  %v10054_v29 = vadd.f32 %v10031_v52, %v17618_v2  ;;  %v10221_v52 = vadd.f32 %v16788_v31, %v17629_v63 }
0x1ee1   :  { %v10129_v35 = vpop.permute.xlu0 %10128  ;;  %v10233_v18 = vmul.f32 0.5, %v10225_v16 }
0x1ee2   :  { %10088 = vrot.lane.b32.xlu0 %v13276_v55, %s13761_s11  ;;  %13293 = vtanh.f32 %v10054_v29  ;;  %v10224_v55 = vadd.f32 %v10208_v43, %v15182_v48 }
0x1ee3   :  { %v13278_v41 = vpop.eup %13277  ;;  %v10131_v40 = vpop.permute.xlu1 %10130 }
0x1ee4   :  { %10358 = vrot.lane.b32.xlu1 %v13278_v41, %s13761_s11  ;;  %v13280_v24 = vpop.eup %13279  ;;  %v10232_v47 = vmul.f32 0.5, %v10224_v55  ;;  %v10151_v31 = vmul.f32 %v10131_v40, %v16849_v17 }
0x1ee5   :  { %v16958_v23 = vpop.permute.xlu0 %10398 }
0x1ee6   :  { %10360 = vrot.lane.b32.xlu0 %v13280_v24, %s13761_s11  ;;  %v10230_v24 = vmul.f32 0.5, %v10222_v30 }
0x1ee7   :  { %v13282_v33 = vpop.eup %13281  ;;  %v16950_v12 = vpop.permute.xlu1 %10396 }
0x1ee8   :  { %10366 = vrot.lane.b32.xlu1 %v13282_v33, %s13761_s11  ;;  %v13284_v42 = vpop.eup %13283  ;;  %v10223_v33 = vadd.f32 %v10207_v45, %v17625_v44  ;;  %13295 = vtanh.f32 %v10230_v24  ;;  %v10229_v45 = vmul.f32 0.5, %v10221_v52  ;;  %v10150_v24 = vmul.f32 %v10129_v35, %v16853_v19 }
0x1ee9   :  { %v13286_v21 = vpop.eup %13285  ;;  %v16968_v41 = vpop.permute.xlu0 %10126  ;;  %13297 = vtanh.f32 %v10232_v47 }
0x1eea   :  { %10364 = vrot.lane.b32.xlu0 %v13284_v42, %s13761_s11  ;;  %v10231_v43 = vmul.f32 0.5, %v10223_v33  ;;  %13299 = vtanh.f32 %v10233_v18  ;;  %v10076_v18 = vsub.f32 1.0, %v16845_v20 }
0x1eeb   :  { %v13288_v13 = vpop.eup %13287  ;;  %v10133_v60 = vpop.permute.xlu1 %10132 }
0x1eec   :  { %10124 = vrot.lane.b32.xlu1 %v10118_v3, %s13757_s2  ;;  %v13290_v59 = vpop.eup %13289  ;;  %13301 = vtanh.f32 %v10231_v43 }
0x1eed   :  { %v13292_v1 = vpop.eup %13291  ;;  %v16978_v42 = vpop.permute.xlu0 %10394  ;;  %13303 = vtanh.f32 %v10229_v45 }
0x1eee   :  { %10362 = vrot.lane.b32.xlu0 %v13286_v21, %s13761_s11  ;;  %v10220_v21 = vadd.f32 %v10205_v46, %v17632_v56  ;;  %v10074_v46 = vsub.f32 1.0, %v16857_v10 }
0x1eef   :  { %v13294_v53 = vpop.eup %13293  ;;  %v16952_v51 = vpop.permute.xlu1 %10400 }
0x1ef0   :  { %v10228_v16 = vmul.f32 0.5, %v10220_v21 }
0x1ef2   :  { %10368 = vrot.lane.b32.xlu0 %v13288_v13, %s13761_s11  ;;  %v10234_v13 = vmul.f32 0.5, %v10226_v8 }
0x1ef3   :  { %v10135_v0 = vpop.permute.xlu1 %10134 }
0x1ef4   :  { %13305 = vtanh.f32 %v10234_v13  ;;  %v10075_v13 = vsub.f32 1.0, %v16865_v37  ;;  %v10153_v17 = vmul.f32 %v10135_v0, %v16865_v37 }
0x1ef5   :  { %v13296_v52 = vpop.eup %13295  ;;  %13307 = vtanh.f32 %v10228_v16 }
0x1ef6   :  { %10356 = vrot.lane.b32.xlu0 %v13290_v59, %s13761_s11  ;;  %v10072_v59 = vsub.f32 1.0, %v16853_v19 }
0x1ef7   :  { %v16954_v61 = vpop.permute.xlu1 %10402 }
0x1efa   :  { %10370 = vrot.lane.b32.xlu0 %v13292_v1, %s13761_s11  ;;  %v10227_v1 = vadd.f32 %v10211_v58, %v17633_v57  ;;  %v10152_v58 = vmul.f32 %v10133_v60, %v16857_v10 }
0x1efb   :  { %v10137_v36 = vpop.permute.xlu1 %10136 }
0x1efc   :  { %v10235_v33 = vmul.f32 0.5, %v10227_v1  ;;  %v10154_v1 = vmul.f32 %v10137_v36, %v16845_v20 }
0x1efe   :  { %10086 = vrot.lane.b32.xlu0 %v13294_v53, %s13761_s11  ;;  %13309 = vtanh.f32 %v10235_v33 }
0x1eff   :  { %v16956_v25 = vpop.permute.xlu1 %10404 }
0x1f03   :  { %v16963_v4 = vpop.permute.xlu1 %10138 }
0x1f07   :  { %v16976_v27 = vpop.permute.xlu1 %10392 }
0x1f0b   :  { %v16985_v3 = vpop.permute.xlu1 %10406 }
0x1f44   :  { %v10099_v29 = vpop.permute.xlu0 %10098 }
0x1f45   :  { %v10116_v45 = vmul.f32 %v10099_v29, %v10076_v18 }
0x1f46   :  { %v10093_v53 = vpop.permute.xlu1 %10092 }
0x1f47   :  { %v10113_v47 = vmul.f32 %v10093_v53, %v10073_v54  ;;  %v10246_v54 = vadd.f32 1.0, %v13296_v52  ;;  %v10162_v29 = vadd.f32 %v10154_v1, %v10116_v45 }
0x1f48   :  { %v10091_v30 = vpop.permute.xlu0 %10090 }
0x1f49   :  { %v10112_v55 = vmul.f32 %v10091_v30, %v10072_v59  ;;  %v13298_v59 = vpop.eup %13297  ;;  %v10159_v19 = vadd.f32 %v10151_v31, %v10113_v47  ;;  %v10077_v30 = vsub.f32 1.0, %v16870_v5  ;;  %v10254_v18 = vmul.f32 0.5, %v10246_v54 }
0x1f4a   :  { %v13300_v21 = vpop.eup %13299  ;;  %v10248_v60 = vadd.f32 1.0, %v13298_v59  ;;  %v10449_v31 = vrot.slane %v10162_v29, 2 }
0x1f4b   :  { %v10158_v8 = vadd.f32 %v10150_v24, %v10112_v55  ;;  %v10249_v55 = vadd.f32 1.0, %v13300_v21  ;;  %v13302_v47 = vpop.eup %13301  ;;  %v10342_v1 = vsub.f32 1.0, %v10254_v18 }
0x1f4c   :  { %v10095_v43 = vpop.permute.xlu0 %10094  ;;  %v10247_v52 = vadd.f32 1.0, %v13302_v47  ;;  %v13304_v59 = vpop.eup %13303  ;;  %v10256_v45 = vmul.f32 0.5, %v10248_v60  ;;  %v10418_v47 = vmul.f32 %v16950_v12, %v10254_v18 }
0x1f4d   :  { %v10114_v57 = vmul.f32 %v10095_v43, %v10074_v46  ;;  %v10442_v10 = vrot.slane %v10158_v8, 6  ;;  %v10443_v46 = vrot.slane %v10159_v19, 5  ;;  %v10257_v21 = vmul.f32 0.5, %v10249_v55  ;;  %v13306_v19 = vpop.eup %13305 }
0x1f4e   :  { %v10245_v54 = vadd.f32 1.0, %v13304_v59  ;;  %v10344_v60 = vsub.f32 1.0, %v10256_v45  ;;  %v13308_v55 = vpop.eup %13307 }
0x1f4f   :  { %v10160_v35 = vadd.f32 %v10152_v58, %v10114_v57  ;;  %v10155_v57 = vmul.f32 %v16963_v4, %v16870_v5  ;;  %v10444_v43 = vsel %vm6644_vm5, %v10443_v46, %v10442_v10  ;;  %v10250_v10 = vadd.f32 1.0, %v13306_v19 }
0x1f50   :  { %v10097_v53 = vpop.permute.xlu0 %10096  ;;  %v10345_v29 = vsub.f32 1.0, %v10257_v21 }
0x1f51   :  { %v10115_v40 = vmul.f32 %v10097_v53, %v10075_v13  ;;  %v10445_v24 = vrot.slane %v10160_v35, 4 }
0x1f52   :  { %v10101_v16 = vpop.permute.xlu1 %10100 }
0x1f53   :  { %v10161_v20 = vadd.f32 %v10153_v17, %v10115_v40  ;;  %v10117_v36 = vmul.f32 %v10101_v16, %v10077_v30  ;;  %v10446_v58 = vsel %vm6647_vm6, %v10445_v24, %v10444_v43  ;;  %v10255_v30 = vmul.f32 0.5, %v10247_v52  ;;  %v13310_v16 = vpop.eup %13309 }
0x1f54   :  { %v17006_v33 = vpop.permute.xlu0 %10088  ;;  %v10244_v52 = vadd.f32 1.0, %v13308_v55 }
0x1f55   :  { %v10447_v37 = vrot.slane %v10161_v20, 3  ;;  %v10163_v0 = vadd.f32 %v10155_v57, %v10117_v36  ;;  %v10253_v20 = vmul.f32 0.5, %v10245_v54  ;;  %v10420_v36 = vmul.f32 %v16952_v51, %v10256_v45 }
0x1f56   :  { %v10359_v8 = vpop.permute.xlu1 %10358  ;;  %v10343_v43 = vsub.f32 1.0, %v10255_v30  ;;  %v10252_v12 = vmul.f32 0.5, %v10244_v52 }
0x1f57   :  { %v10448_v5 = vsel %vm6650_vm7, %v10447_v37, %v10446_v58  ;;  %v10451_v4 = vrot.slane %v10163_v0, 1  ;;  %v10421_v37 = vmul.f32 %v16954_v61, %v10257_v21  ;;  %v10258_v0 = vmul.f32 0.5, %v10250_v10 }
0x1f58   :  { %v10361_v35 = vpop.permute.xlu0 %10360  ;;  %v10450_v13 = vsel %vm6653_vm8, %v10449_v31, %v10448_v5  ;;  %v10419_v5 = vmul.f32 %v16958_v23, %v10255_v30  ;;  %v10417_v30 = vmul.f32 %v16978_v42, %v10253_v20  ;;  %v10149_v42 = vmul.f32 %v16968_v41, %v16861_v28 }
0x1f59   :  { %v10452_v53 = vsel %vm6656_vm9, %v10451_v4, %v10450_v13  ;;  %v10382_v40 = vmul.f32 %v10361_v35, %v10342_v1  ;;  %v10251_v35 = vadd.f32 1.0, %v13310_v16  ;;  %v10341_v13 = vsub.f32 1.0, %v10253_v20 }
0x1f5a   :  { %10455 = vrot.lane.b32.xlu1 %v10452_v53, %s13761_s11  ;;  %v10367_v17 = vpop.permute.xlu1 %10366  ;;  %v10346_v53 = vsub.f32 1.0, %v10258_v0  ;;  %v10422_v51 = vmul.f32 %v16956_v25, %v10258_v0  ;;  %v10416_v25 = vmul.f32 %v16976_v27, %v10252_v12 }
0x1f5b   :  { %v10385_v57 = vmul.f32 %v10367_v17, %v10345_v29  ;;  %v10426_v31 = vadd.f32 %v10418_v47, %v10382_v40  ;;  %v10381_v61 = vmul.f32 %v10359_v8, %v10341_v13  ;;  %v10259_v40 = vmul.f32 0.5, %v10251_v35 }
0x1f5c   :  { %v10365_v24 = vpop.permute.xlu0 %10364 }
0x1f5d   :  { %v10384_v46 = vmul.f32 %v10365_v24, %v10344_v60  ;;  %v10429_v4 = vadd.f32 %v10421_v37, %v10385_v57  ;;  %v10470_v18 = vrot.slane %v10426_v31, 1  ;;  %v10340_v60 = vsub.f32 1.0, %v10252_v12 }
0x1f5e   :  { %v10071_v24 = vsub.f32 1.0, %v16861_v28  ;;  %v10425_v47 = vadd.f32 %v10417_v30, %v10381_v61  ;;  %v10423_v0 = vmul.f32 %v16985_v3, %v10259_v40 }
0x1f5f   :  { %v10428_v58 = vadd.f32 %v10420_v36, %v10384_v46  ;;  %v10474_v21 = vrot.slane %v10429_v4, 6  ;;  %v10070_v4 = vsub.f32 1.0, %v16881_v14 }
0x1f60   :  { %v10363_v59 = vpop.permute.xlu0 %10362  ;;  %v10111_v46 = vmul.f32 %v17006_v33, %v10071_v24  ;;  %v10468_v52 = vrot.slane %v10425_v47, 2 }
0x1f61   :  { %v10383_v19 = vmul.f32 %v10363_v59, %v10343_v43  ;;  %v10472_v45 = vrot.slane %v10428_v58, 7  ;;  %v10347_v43 = vsub.f32 1.0, %v10259_v40  ;;  %v10125_v59 = vpop.permute.xlu1 %10124 }
0x1f62   :  { %v10157_v27 = vadd.f32 %v10149_v42, %v10111_v46  ;;  %v10148_v35 = vmul.f32 %v10125_v59, %v16881_v14 }
0x1f63   :  { %v10427_v1 = vadd.f32 %v10419_v5, %v10383_v19 }
0x1f64   :  { %v10369_v54 = vpop.permute.xlu0 %10368 }
0x1f65   :  { %v10471_v17 = vsel %vm6644_vm5, %v10427_v1, %v10470_v18  ;;  %v10386_v10 = vmul.f32 %v10369_v54, %v10346_v53  ;;  %v10440_v18 = vrot.slane %v10157_v27, 7 }
0x1f66   :  { %v10473_v23 = vsel %vm6647_vm6, %v10472_v45, %v10471_v17 }
0x1f67   :  { %v10430_v29 = vadd.f32 %v10422_v51, %v10386_v10  ;;  %v10475_v55 = vsel %vm6650_vm7, %v10474_v21, %v10473_v23 }
0x1f68   :  { %v10357_v16 = vpop.permute.xlu0 %10356 }
0x1f69   :  { %v10476_v8 = vrot.slane %v10430_v29, 5  ;;  %v10380_v57 = vmul.f32 %v10357_v16, %v10340_v60 }
0x1f6b   :  { %v10424_v36 = vadd.f32 %v10416_v25, %v10380_v57  ;;  %v10477_v37 = vsel %vm6653_vm8, %v10476_v8, %v10475_v55 }
0x1f6c   :  { %v10371_v20 = vpop.permute.xlu0 %10370 }
0x1f6d   :  { %v10467_v31 = vrot.slane %v10424_v36, 3  ;;  %v10387_v58 = vmul.f32 %v10371_v20, %v10347_v43 }
0x1f6f   :  { %v10431_v5 = vadd.f32 %v10423_v0, %v10387_v58  ;;  %v10469_v33 = vsel %vm6662_vm11, %v10468_v52, %v10467_v31 }
0x1f70   :  { %v10087_v19 = vpop.permute.xlu0 %10086 }
0x1f71   :  { %v10478_v13 = vrot.slane %v10431_v5, 4  ;;  %v10110_v12 = vmul.f32 %v10087_v19, %v10070_v4 }
0x1f73   :  { %v10156_v28 = vadd.f32 %v10148_v35, %v10110_v12  ;;  %v10479_v41 = vsel %vm6656_vm9, %v10478_v13, %v10477_v37 }
0x1f74   :  { %10482 = vrot.lane.b32.xlu1 %v10479_v41, %s13757_s2 }
0x1f75   :  { %v10441_v3 = vsel %vm6662_vm11, %v10440_v18, %v10156_v28 }
0x1f76   :  { %10453 = vrot.lane.b32.xlu0 %v10441_v3, %s13761_s11 }
0x1f7a   :  { %10480 = vrot.lane.b32.xlu0 %v10469_v33, %s13757_s2 }
0x1fcc   :  { %v10456_v1 = vpop.permute.xlu1 %10455 }
0x1fe6   :  { %v10483_v53 = vpop.permute.xlu1 %10482 }
0x1fe7   :  { %v17039_v45 = vsel %vm254_vm0, %v10456_v1, %v10483_v53 }
0x1fe8   :  { %v10454_v51 = vpop.permute.xlu0 %10453  ;;  %v10492_v21 = vrot.slane %v17039_v45, 6 }
0x1fec   :  { %v10481_v14 = vpop.permute.xlu0 %10480 }
0x1fed   :  { %v17042_v54 = vsel %vm254_vm0, %v10454_v51, %v10481_v14 }
0x1fee   :  { %v10491_v61 = vrot.slane %v17042_v54, 6 }
0x1ff0   :  { %v10493_v17 = vsel %vm10490_vm3, %v10491_v61, %v10492_v21 }
0x1ff1   :  { %12028 = vmatmul.mubr.msk.f32.vlgmr.msra.gmra.mxu1 %vm6120_vm12, %v10493_v17  ;;  %v17052_v10 = vadd.f32 %v10493_v17, %v16774_v38 }
0x1ff2   :  { %11350 = vmatprep.mubr.f32.mxu1 %v17580_v49 }
0x20b1   :  { %v10564_v40 = vpop.f32.mrf.mxu1 }
0x20b2   :  { %v17056_v23 = vadd.f32 %v10564_v40, %v17612_v32 }
0x20b3   :  { %v10566_v60 = vpop.f32.mrf.mxu1 }
0x20b4   :  { %10639 = vrot.lane.b32.xlu0 %v17056_v23, %s13762_s19  ;;  %v10572_v30 = vrot.slane %v17056_v23, 3  ;;  %v10571_v29 = vrot.slane %v17056_v23, 2  ;;  %v10573_v38 = vrot.slane %v17056_v23, 4  ;;  %v10575_v49 = vrot.slane %v17056_v23, 6 }
0x20b5   :  { %v17068_v32 = vadd.f32 %v10566_v60, %v17613_v6  ;;  %v10574_v55 = vrot.slane %v17056_v23, 5  ;;  %v10576_v24 = vrot.slane %v17056_v23, 7  ;;  %v10570_v36 = vrot.slane %v17056_v23, 1 }
0x20b6   :  { %10629 = vrot.lane.b32.xlu1 %v10572_v30, %s13762_s19  ;;  %v10592_v43 = vadd.f32 %v17056_v23, %v17620_v15  ;;  %v10587_v37 = vadd.f32 %v10572_v30, %v17616_v34  ;;  %v10586_v20 = vadd.f32 %v10571_v29, %v17615_v62  ;;  %v10588_v52 = vadd.f32 %v10573_v38, %v17621_v50 }
0x20b7   :  { %v10843_v16 = vrot.slane %v17068_v32, 4  ;;  %v10841_v25 = vrot.slane %v17068_v32, 2  ;;  %v10844_v6 = vrot.slane %v17068_v32, 5  ;;  %v10842_v47 = vrot.slane %v17068_v32, 3 }
0x20b8   :  { %10627 = vrot.lane.b32.xlu0 %v10571_v29, %s13762_s19  ;;  %v10845_v8 = vrot.slane %v17068_v32, 6  ;;  %v10840_v57 = vrot.slane %v17068_v32, 1  ;;  %v10846_v46 = vrot.slane %v17068_v32, 7  ;;  %v10600_v42 = vmul.f32 0.5, %v10592_v43 }
0x20b9   :  { %v10595_v0 = vmul.f32 0.5, %v10587_v37  ;;  %v10594_v31 = vmul.f32 0.5, %v10586_v20  ;;  %v10590_v58 = vadd.f32 %v10575_v49, %v17617_v26  ;;  %v10596_v59 = vmul.f32 0.5, %v10588_v52 }
0x20ba   :  { %10631 = vrot.lane.b32.xlu1 %v10573_v38, %s13762_s19  ;;  %13311 = vtanh.f32 %v10600_v42  ;;  %v10589_v27 = vadd.f32 %v10574_v55, %v17614_v9  ;;  %v10591_v4 = vadd.f32 %v10576_v24, %v17619_v7  ;;  %v10803_v19 = vadd.f32 %v10573_v38, %v17614_v9 }
0x20bb   :  { %13313 = vtanh.f32 %v10595_v0  ;;  %v10598_v5 = vmul.f32 0.5, %v10590_v58  ;;  %v10801_v13 = vadd.f32 %v10571_v29, %v17616_v34  ;;  %v10804_v18 = vadd.f32 %v10574_v55, %v17617_v26 }
0x20bc   :  { %10635 = vrot.lane.b32.xlu0 %v10575_v49, %s13762_s19  ;;  %13315 = vtanh.f32 %v10594_v31  ;;  %v10597_v33 = vmul.f32 0.5, %v10589_v27  ;;  %v10599_v35 = vmul.f32 0.5, %v10591_v4  ;;  %v10811_v12 = vmul.f32 0.5, %v10803_v19 }
0x20bd   :  { %13317 = vtanh.f32 %v10596_v59  ;;  %v10809_v28 = vmul.f32 0.5, %v10801_v13  ;;  %v10802_v41 = vadd.f32 %v10572_v30, %v17621_v50  ;;  %v10812_v1 = vmul.f32 0.5, %v10804_v18 }
0x20be   :  { %10633 = vrot.lane.b32.xlu1 %v10574_v55, %s13762_s19  ;;  %13319 = vtanh.f32 %v10598_v5  ;;  %v10805_v53 = vadd.f32 %v10575_v49, %v17619_v7  ;;  %v10800_v40 = vadd.f32 %v10570_v36, %v17615_v62  ;;  %v10806_v38 = vadd.f32 %v10576_v24, %v17620_v15 }
0x20bf   :  { %13321 = vtanh.f32 %v10597_v33  ;;  %v10810_v17 = vmul.f32 0.5, %v10802_v41  ;;  %v10799_v30 = vadd.f32 %v17056_v23, %v17618_v2  ;;  %v10585_v31 = vadd.f32 %v10570_v36, %v17618_v2 }
0x20c0   :  { %10637 = vrot.lane.b32.xlu0 %v10576_v24, %s13762_s19  ;;  %13323 = vtanh.f32 %v10599_v35  ;;  %v10813_v55 = vmul.f32 0.5, %v10805_v53  ;;  %v10808_v49 = vmul.f32 0.5, %v10800_v40  ;;  %v10814_v52 = vmul.f32 0.5, %v10806_v38 }
0x20c1   :  { %13325 = vtanh.f32 %v10811_v12  ;;  %v10807_v4 = vmul.f32 0.5, %v10799_v30 }
0x20c2   :  { %10903 = vrot.lane.b32.xlu1 %v10843_v16, %s13762_s19  ;;  %13327 = vtanh.f32 %v10809_v28 }
0x20c3   :  { %13329 = vtanh.f32 %v10812_v1 }
0x20c4   :  { %10899 = vrot.lane.b32.xlu0 %v10841_v25, %s13762_s19  ;;  %13331 = vtanh.f32 %v10810_v17 }
0x20c5   :  { %13333 = vtanh.f32 %v10813_v55 }
0x20c6   :  { %10905 = vrot.lane.b32.xlu1 %v10844_v6, %s13762_s19  ;;  %13335 = vtanh.f32 %v10808_v49 }
0x20c7   :  { %v13312_v3 = vpop.eup %13311  ;;  %13337 = vtanh.f32 %v10814_v52 }
0x20c8   :  { %10901 = vrot.lane.b32.xlu0 %v10842_v47, %s13762_s19  ;;  %v13314_v51 = vpop.eup %13313  ;;  %v10616_v14 = vadd.f32 1.0, %v13312_v3  ;;  %13339 = vtanh.f32 %v10807_v4 }
0x20c9   :  { %v13316_v29 = vpop.eup %13315  ;;  %v10611_v60 = vadd.f32 1.0, %v13314_v51 }
0x20ca   :  { %10907 = vrot.lane.b32.xlu1 %v10845_v8, %s13762_s19  ;;  %v13318_v43 = vpop.eup %13317  ;;  %v17124_v37 = vmul.f32 0.5, %v10616_v14  ;;  %v10610_v42 = vadd.f32 1.0, %v13316_v29 }
0x20cb   :  { %v13320_v20 = vpop.eup %13319  ;;  %v17128_v24 = vmul.f32 0.5, %v10611_v60  ;;  %v10612_v59 = vadd.f32 1.0, %v13318_v43 }
0x20cc   :  { %10897 = vrot.lane.b32.xlu0 %v10840_v57, %s13762_s19  ;;  %v13322_v27 = vpop.eup %13321  ;;  %v17132_v33 = vmul.f32 0.5, %v10610_v42  ;;  %v10614_v19 = vadd.f32 1.0, %v13320_v20 }
0x20cd   :  { %v13324_v35 = vpop.eup %13323  ;;  %v17136_v18 = vmul.f32 0.5, %v10612_v59  ;;  %v10613_v28 = vadd.f32 1.0, %v13322_v27 }
0x20ce   :  { %10909 = vrot.lane.b32.xlu1 %v10846_v46, %s13762_s19  ;;  %v13326_v41 = vpop.eup %13325  ;;  %v17140_v53 = vmul.f32 0.5, %v10614_v19  ;;  %v10615_v51 = vadd.f32 1.0, %v13324_v35 }
0x20cf   :  { %v13328_v14 = vpop.eup %13327  ;;  %v17144_v29 = vmul.f32 0.5, %v10613_v28  ;;  %v10827_v38 = vadd.f32 1.0, %v13326_v41 }
0x20d0   :  { %10895 = vrot.lane.b32.xlu0 %v17068_v32, %s13762_s19  ;;  %v13330_v60 = vpop.eup %13329  ;;  %v17148_v30 = vmul.f32 0.5, %v10615_v51  ;;  %v10825_v42 = vadd.f32 1.0, %v13328_v14 }
0x20d1   :  { %v13332_v49 = vpop.eup %13331  ;;  %v10835_v52 = vmul.f32 0.5, %v10827_v38 }
0x20d2   :  { %10625 = vrot.lane.b32.xlu1 %v10570_v36, %s13762_s19  ;;  %v10593_v36 = vmul.f32 0.5, %v10585_v31  ;;  %v10828_v31 = vadd.f32 1.0, %v13330_v60  ;;  %v10826_v4 = vadd.f32 1.0, %v13332_v49 }
0x20d4   :  { %13341 = vtanh.f32 %v10593_v36 }
0x2126   :  { %v10640_v0 = vpop.permute.xlu0 %10639 }
0x2127   :  { %v10656_v58 = vmul.f32 %v10640_v0, %v17124_v37 }
0x2128   :  { %v10630_v5 = vpop.permute.xlu1 %10629 }
0x2129   :  { %v10651_v23 = vmul.f32 %v10630_v5, %v17128_v24  ;;  %10679 = vrot.lane.b32.xlu0 %v10656_v58, %s13762_s19  ;;  %v13334_v58 = vpop.eup %13333  ;;  %v10833_v5 = vmul.f32 0.5, %v10825_v42 }
0x212a   :  { %v10628_v13 = vpop.permute.xlu0 %10627  ;;  %v10829_v36 = vadd.f32 1.0, %v13334_v58 }
0x212b   :  { %v10650_v12 = vmul.f32 %v10628_v13, %v17132_v33  ;;  %10669 = vrot.lane.b32.xlu1 %v10651_v23, %s13762_s19  ;;  %v13336_v23 = vpop.eup %13335  ;;  %v10836_v13 = vmul.f32 0.5, %v10828_v31 }
0x212c   :  { %v10632_v3 = vpop.permute.xlu1 %10631 }
0x212d   :  { %v10652_v1 = vmul.f32 %v10632_v3, %v17136_v18  ;;  %10667 = vrot.lane.b32.xlu0 %v10650_v12, %s13762_s19  ;;  %v13338_v12 = vpop.eup %13337  ;;  %v10834_v3 = vmul.f32 0.5, %v10826_v4 }
0x212e   :  { %v10636_v17 = vpop.permute.xlu0 %10635  ;;  %v13340_v51 = vpop.eup %13339  ;;  %v10830_v38 = vadd.f32 1.0, %v13338_v12  ;;  %v10755_v12 = vrot.slane %v17039_v45, 2 }
0x212f   :  { %v10654_v40 = vmul.f32 %v10636_v17, %v17140_v53  ;;  %10671 = vrot.lane.b32.xlu1 %v10652_v1, %s13762_s19  ;;  %v10824_v1 = vadd.f32 1.0, %v13336_v23  ;;  %v13342_v60 = vpop.eup %13341  ;;  %v10823_v49 = vadd.f32 1.0, %v13340_v51 }
0x2130   :  { %v10634_v55 = vpop.permute.xlu1 %10633  ;;  %v10609_v31 = vadd.f32 1.0, %v13342_v60 }
0x2131   :  { %v10653_v43 = vmul.f32 %v10634_v55, %v17144_v29  ;;  %10675 = vrot.lane.b32.xlu0 %v10654_v40, %s13762_s19  ;;  %v10837_v40 = vmul.f32 0.5, %v10829_v36  ;;  %v10832_v42 = vmul.f32 0.5, %v10824_v1  ;;  %v10753_v36 = vrot.slane %v17042_v54, 7 }
0x2132   :  { %v10638_v20 = vpop.permute.xlu0 %10637  ;;  %v17160_v23 = vmul.f32 0.5, %v10609_v31 }
0x2133   :  { %v10655_v0 = vmul.f32 %v10638_v20, %v17148_v30  ;;  %10673 = vrot.lane.b32.xlu1 %v10653_v43, %s13762_s19 }
0x2134   :  { %v10904_v59 = vpop.permute.xlu1 %10903 }
0x2135   :  { %v10923_v27 = vmul.f32 %v10904_v59, %v10835_v52  ;;  %10677 = vrot.lane.b32.xlu0 %v10655_v0, %s13762_s19  ;;  %v10838_v52 = vmul.f32 0.5, %v10830_v38 }
0x2136   :  { %v10900_v19 = vpop.permute.xlu0 %10899 }
0x2137   :  { %v10921_v35 = vmul.f32 %v10900_v19, %v10833_v5  ;;  %10943 = vrot.lane.b32.xlu1 %v10923_v27, %s13762_s19  ;;  %v10831_v27 = vmul.f32 0.5, %v10823_v49 }
0x2138   :  { %v10906_v28 = vpop.permute.xlu1 %10905 }
0x2139   :  { %v10924_v41 = vmul.f32 %v10906_v28, %v10836_v13  ;;  %10939 = vrot.lane.b32.xlu0 %v10921_v35, %s13762_s19  ;;  %v10754_v13 = vrot.slane %v17039_v45, 1  ;;  %v10756_v28 = vrot.slane %v17039_v45, 3 }
0x213a   :  { %v10902_v14 = vpop.permute.xlu0 %10901 }
0x213b   :  { %v10922_v17 = vmul.f32 %v10902_v14, %v10834_v3  ;;  %10945 = vrot.lane.b32.xlu1 %v10924_v41, %s13762_s19  ;;  %v10757_v41 = vrot.slane %v17039_v45, 4  ;;  %v10758_v3 = vrot.slane %v17039_v45, 5 }
0x213c   :  { %v10908_v55 = vpop.permute.xlu1 %10907 }
0x213d   :  { %v10925_v43 = vmul.f32 %v10908_v55, %v10837_v40  ;;  %10941 = vrot.lane.b32.xlu0 %v10922_v17, %s13762_s19 }
0x213e   :  { %v10898_v20 = vpop.permute.xlu0 %10897 }
0x213f   :  { %v10920_v0 = vmul.f32 %v10898_v20, %v10832_v42  ;;  %10947 = vrot.lane.b32.xlu1 %v10925_v43, %s13762_s19 }
0x2140   :  { %v10910_v58 = vpop.permute.xlu1 %10909 }
0x2141   :  { %v10926_v59 = vmul.f32 %v10910_v58, %v10838_v52  ;;  %10937 = vrot.lane.b32.xlu0 %v10920_v0, %s13762_s19 }
0x2142   :  { %v10896_v5 = vpop.permute.xlu0 %10895 }
0x2143   :  { %v10919_v4 = vmul.f32 %v10896_v5, %v10831_v27  ;;  %10949 = vrot.lane.b32.xlu1 %v10926_v59, %s13762_s19 }
0x2144   :  { %v10626_v19 = vpop.permute.xlu1 %10625 }
0x2145   :  { %v10649_v35 = vmul.f32 %v10626_v19, %v17160_v23  ;;  %10935 = vrot.lane.b32.xlu0 %v10919_v4, %s13762_s19 }
0x2147   :  { %10665 = vrot.lane.b32.xlu1 %v10649_v35, %s13762_s19 }
0x2149   :  { %10761 = vrot.lane.b32.xlu0 %v17042_v54, %s13757_s2  ;;  %v17634_v54 = vld [vmem:[#allocation51_spill] sm:$0xff] }
0x214b   :  { %10763 = vrot.lane.b32.xlu1 %v10754_v13, %s13757_s2 }
0x214d   :  { %11025 = vrot.lane.b32.xlu0 %v10753_v36, %s13761_s11 }
0x214f   :  { %11027 = vrot.lane.b32.xlu1 %v17039_v45, %s13761_s11  ;;  %v10857_v45 = vadd.f32 %v10841_v25, %v17627_v22 }
0x2151   :  { %v10865_v49 = vmul.f32 0.5, %v10857_v45 }
0x2153   :  { %10765 = vrot.lane.b32.xlu1 %v10755_v12, %s13757_s2 }
0x2157   :  { %11029 = vrot.lane.b32.xlu1 %v10754_v13, %s13761_s11 }
0x215b   :  { %10767 = vrot.lane.b32.xlu1 %v10756_v28, %s13757_s2 }
0x215f   :  { %11031 = vrot.lane.b32.xlu1 %v10755_v12, %s13761_s11 }
0x2163   :  { %10769 = vrot.lane.b32.xlu1 %v10757_v41, %s13757_s2 }
0x2167   :  { %11033 = vrot.lane.b32.xlu1 %v10756_v28, %s13761_s11 }
0x216b   :  { %10771 = vrot.lane.b32.xlu1 %v10758_v3, %s13757_s2 }
0x216f   :  { %11035 = vrot.lane.b32.xlu1 %v10757_v41, %s13761_s11 }
0x2173   :  { %10773 = vrot.lane.b32.xlu1 %v10492_v21, %s13757_s2 }
0x2177   :  { %11037 = vrot.lane.b32.xlu1 %v10758_v3, %s13761_s11 }
0x219b   :  { %v10680_v1 = vpop.permute.xlu0 %10679 }
0x219c   :  { %v10696_v51 = vadd.f32 %v10680_v1, %v17620_v15 }
0x219d   :  { %v10670_v14 = vpop.permute.xlu1 %10669 }
0x219e   :  { %13343 = vtanh.f32 %v10696_v51  ;;  %v10691_v17 = vadd.f32 %v10670_v14, %v17616_v34 }
0x219f   :  { %v10668_v40 = vpop.permute.xlu0 %10667 }
0x21a0   :  { %13345 = vtanh.f32 %v10691_v17  ;;  %v10690_v38 = vadd.f32 %v10668_v40, %v17615_v62 }
0x21a1   :  { %v10672_v60 = vpop.permute.xlu1 %10671 }
0x21a2   :  { %13347 = vtanh.f32 %v10690_v38  ;;  %v10692_v55 = vadd.f32 %v10672_v60, %v17621_v50  ;;  %v10858_v50 = vadd.f32 %v10842_v47, %v17625_v44 }
0x21a3   :  { %v10676_v43 = vpop.permute.xlu0 %10675 }
0x21a4   :  { %13349 = vtanh.f32 %v10692_v55  ;;  %v10694_v20 = vadd.f32 %v10676_v43, %v17617_v26  ;;  %v10866_v59 = vmul.f32 0.5, %v10858_v50 }
0x21a5   :  { %v10674_v21 = vpop.permute.xlu1 %10673 }
0x21a6   :  { %v10693_v15 = vadd.f32 %v10674_v21, %v17614_v9 }
0x21a7   :  { %v10678_v42 = vpop.permute.xlu0 %10677 }
0x21a8   :  { %13351 = vtanh.f32 %v10693_v15  ;;  %v10695_v31 = vadd.f32 %v10678_v42, %v17619_v7 }
0x21a9   :  { %v10944_v34 = vpop.permute.xlu1 %10943  ;;  %13353 = vtanh.f32 %v10865_v49 }
0x21aa   :  { %v10963_v62 = vadd.f32 %v10944_v34, %v15182_v48 }
0x21ab   :  { %v13344_v0 = vpop.eup %13343  ;;  %v10940_v52 = vpop.permute.xlu0 %10939 }
0x21ac   :  { %13355 = vtanh.f32 %v10963_v62  ;;  %10735 = vrot.lane.b32.xlu0 %v13344_v0, %s13761_s11  ;;  %v10961_v41 = vadd.f32 %v10940_v52, %v17627_v22 }
0x21ad   :  { %v13346_v25 = vpop.eup %13345  ;;  %v10946_v9 = vpop.permute.xlu1 %10945  ;;  %13357 = vtanh.f32 %v10694_v20 }
0x21ae   :  { %10725 = vrot.lane.b32.xlu1 %v13346_v25, %s13761_s11  ;;  %13359 = vtanh.f32 %v10695_v31 }
0x21af   :  { %v13348_v26 = vpop.eup %13347  ;;  %v10942_v58 = vpop.permute.xlu0 %10941  ;;  %13361 = vtanh.f32 %v10866_v59 }
0x21b0   :  { %10723 = vrot.lane.b32.xlu0 %v13348_v26, %s13761_s11  ;;  %v10962_v14 = vadd.f32 %v10942_v58, %v17625_v44 }
0x21b1   :  { %v10948_v27 = vpop.permute.xlu1 %10947  ;;  %v13350_v5 = vpop.eup %13349 }
0x21b2   :  { %v10965_v42 = vadd.f32 %v10948_v27, %v17630_v11 }
0x21b3   :  { %v10938_v4 = vpop.permute.xlu0 %10937 }
0x21b4   :  { %10727 = vrot.lane.b32.xlu0 %v13350_v5, %s13761_s11  ;;  %v10960_v60 = vadd.f32 %v10938_v4, %v17629_v63 }
0x21b5   :  { %v10950_v47 = vpop.permute.xlu1 %10949  ;;  %v13352_v19 = vpop.eup %13351 }
0x21b6   :  { %v13354_v13 = vpop.eup %13353 }
0x21b7   :  { %v10936_v35 = vpop.permute.xlu0 %10935  ;;  %v10881_v1 = vadd.f32 1.0, %v13354_v13 }
0x21b8   :  { %v10959_v7 = vadd.f32 %v10936_v35, %v17632_v56  ;;  %10729 = vrot.lane.b32.xlu0 %v13352_v19, %s13761_s11  ;;  %v10859_v35 = vadd.f32 %v10843_v16, %v15182_v48  ;;  %v10707_v48 = vsub.f32 1.0, %v17128_v24 }
0x21b9   :  { %v13356_v12 = vpop.eup %13355  ;;  %v10666_v28 = vpop.permute.xlu1 %10665  ;;  %v17221_v22 = vmul.f32 0.5, %v10881_v1 }
0x21ba   :  { %13363 = vtanh.f32 %v10959_v7  ;;  %10999 = vrot.lane.b32.xlu1 %v13356_v12, %s13761_s11  ;;  %v13358_v3 = vpop.eup %13357  ;;  %v10689_v62 = vadd.f32 %v10666_v28, %v17618_v2  ;;  %v10856_v7 = vadd.f32 %v10840_v57, %v17629_v63  ;;  %v10867_v28 = vmul.f32 0.5, %v10859_v35 }
0x21bb   :  { %13365 = vtanh.f32 %v10961_v41  ;;  %v13360_v17 = vpop.eup %13359  ;;  %v10762_v27 = vpop.permute.xlu0 %10761  ;;  %v10709_v63 = vsub.f32 1.0, %v17144_v29 }
0x21bc   :  { %10731 = vrot.lane.b32.xlu0 %v13358_v3, %s13761_s11  ;;  %v13362_v40 = vpop.eup %13361  ;;  %13367 = vtanh.f32 %v10962_v14  ;;  %v10706_v3 = vsub.f32 1.0, %v17132_v33  ;;  %v10864_v1 = vmul.f32 0.5, %v10856_v7  ;;  %v10860_v14 = vadd.f32 %v10844_v6, %v17631_v39 }
0x21bd   :  { %v17214_v51 = vpop.permute.xlu1 %10763  ;;  %v10882_v44 = vadd.f32 1.0, %v13362_v40  ;;  %13369 = vtanh.f32 %v10960_v60  ;;  %v10708_v40 = vsub.f32 1.0, %v17136_v18  ;;  %v10784_v60 = vmul.f32 %v10762_v27, %v17132_v33 }
0x21be   :  { %11023 = vrot.lane.b32.xlu1 %v10491_v61, %s13761_s11  ;;  %v10964_v61 = vadd.f32 %v10946_v9, %v17631_v39  ;;  %v10861_v39 = vadd.f32 %v10845_v8, %v17630_v11  ;;  %v10785_v6 = vmul.f32 %v17214_v51, %v17128_v24  ;;  %v10712_v33 = vsub.f32 1.0, %v17124_v37 }
0x21bf   :  { %v17232_v21 = vmul.f32 0.5, %v10882_v44  ;;  %v17253_v4 = vpop.permute.xlu0 %11025  ;;  %v10862_v11 = vadd.f32 %v10846_v46, %v17634_v54  ;;  %v10711_v51 = vsub.f32 1.0, %v17148_v30 }
0x21c0   :  { %10733 = vrot.lane.b32.xlu0 %v13360_v17, %s13761_s11  ;;  %13371 = vtanh.f32 %v10964_v61 }
0x21c1   :  { %v11028_v38 = vpop.permute.xlu1 %11027  ;;  %13373 = vtanh.f32 %v10965_v42  ;;  %v10870_v7 = vmul.f32 0.5, %v10862_v11 }
0x21c2   :  { %v17225_v55 = vmul.f32 %v11028_v38, %v17221_v22  ;;  %10759 = vrot.lane.b32.xlu1 %v10753_v36, %s13757_s2  ;;  %v10966_v36 = vadd.f32 %v10950_v47, %v17634_v54 }
0x21c4   :  { %13375 = vtanh.f32 %v10966_v36  ;;  %v10710_v36 = vsub.f32 1.0, %v17140_v53 }
0x21c5   :  { %v10766_v43 = vpop.permute.xlu1 %10765  ;;  %13377 = vtanh.f32 %v10689_v62 }
0x21c6   :  { %13379 = vtanh.f32 %v10867_v28 }
0x21c7   :  { %v13364_v45 = vpop.eup %13363  ;;  %13381 = vtanh.f32 %v10864_v1 }
0x21c8   :  { %10991 = vrot.lane.b32.xlu0 %v13364_v45, %s13761_s11  ;;  %v13366_v34 = vpop.eup %13365  ;;  %v10786_v45 = vmul.f32 %v10766_v43, %v17136_v18 }
0x21c9   :  { %v11030_v15 = vpop.permute.xlu1 %11029  ;;  %v13368_v20 = vpop.eup %13367 }
0x21ca   :  { %v17236_v49 = vmul.f32 %v11030_v15, %v17232_v21  ;;  %v13370_v0 = vpop.eup %13369  ;;  %v10868_v15 = vmul.f32 0.5, %v10860_v14 }
0x21cc   :  { %10995 = vrot.lane.b32.xlu0 %v13366_v34, %s13761_s11  ;;  %13383 = vtanh.f32 %v10868_v15 }
0x21cd   :  { %v13372_v52 = vpop.eup %13371  ;;  %v10768_v31 = vpop.permute.xlu1 %10767 }
0x21ce   :  { %v13374_v50 = vpop.eup %13373  ;;  %v10787_v42 = vmul.f32 %v10768_v31, %v17144_v29 }
0x21d0   :  { %10997 = vrot.lane.b32.xlu0 %v13368_v20, %s13761_s11 }
0x21d1   :  { %v13376_v25 = vpop.eup %13375  ;;  %v17247_v26 = vpop.permute.xlu1 %11031 }
0x21d2   :  { %v13378_v9 = vpop.eup %13377 }
0x21d4   :  { %10993 = vrot.lane.b32.xlu0 %v13370_v0, %s13761_s11 }
0x21d5   :  { %v10770_v2 = vpop.permute.xlu1 %10769 }
0x21d6   :  { %v10788_v0 = vmul.f32 %v10770_v2, %v17140_v53  ;;  %v10855_v53 = vadd.f32 %v17068_v32, %v17632_v56 }
0x21d8   :  { %11001 = vrot.lane.b32.xlu0 %v13372_v52, %s13761_s11 }
0x21d9   :  { %v17249_v58 = vpop.permute.xlu1 %11033 }
0x21dc   :  { %11003 = vrot.lane.b32.xlu0 %v13374_v50, %s13761_s11  ;;  %v10869_v50 = vmul.f32 0.5, %v10861_v39 }
0x21dd   :  { %v10772_v59 = vpop.permute.xlu1 %10771 }
0x21de   :  { %v10789_v2 = vmul.f32 %v10772_v59, %v17148_v30  ;;  %13385 = vtanh.f32 %v10869_v50 }
0x21df   :  { %13387 = vtanh.f32 %v10870_v7 }
0x21e0   :  { %11005 = vrot.lane.b32.xlu0 %v13376_v25, %s13761_s11 }
0x21e1   :  { %v17251_v5 = vpop.permute.xlu1 %11035 }
0x21e4   :  { %10721 = vrot.lane.b32.xlu0 %v13378_v9, %s13761_s11 }
0x21e5   :  { %v10774_v47 = vpop.permute.xlu1 %10773 }
0x21e6   :  { %v10790_v25 = vmul.f32 %v10774_v47, %v17124_v37  ;;  %v10863_v47 = vmul.f32 0.5, %v10855_v53 }
0x21e8   :  { %13389 = vtanh.f32 %v10863_v47 }
0x21e9   :  { %v17261_v12 = vpop.permute.xlu1 %11037 }
0x221e   :  { %v10736_v19 = vpop.permute.xlu0 %10735 }
0x221f   :  { %v10752_v8 = vmul.f32 %v10736_v19, %v10712_v33 }
0x2220   :  { %v10726_v17 = vpop.permute.xlu1 %10725 }
0x2221   :  { %v10747_v44 = vmul.f32 %v10726_v17, %v10707_v48  ;;  %v10798_v46 = vadd.f32 %v10790_v25, %v10752_v8 }
0x2222   :  { %v10724_v13 = vpop.permute.xlu0 %10723 }
0x2223   :  { %v10746_v16 = vmul.f32 %v10724_v13, %v10706_v3  ;;  %v10793_v18 = vadd.f32 %v10785_v6, %v10747_v44  ;;  %v11082_v32 = vrot.slane %v10798_v46, 1  ;;  %v10978_v6 = vsub.f32 1.0, %v17232_v21 }
0x2225   :  { %v10792_v34 = vadd.f32 %v10784_v60, %v10746_v16  ;;  %v11072_v27 = vrot.slane %v10793_v18, 6 }
0x2226   :  { %v10728_v41 = vpop.permute.xlu0 %10727 }
0x2227   :  { %v10748_v57 = vmul.f32 %v10728_v41, %v10708_v40  ;;  %v11071_v24 = vrot.slane %v10792_v34, 7  ;;  %v13380_v41 = vpop.eup %13379 }
0x2228   :  { %v13382_v59 = vpop.eup %13381  ;;  %v10883_v1 = vadd.f32 1.0, %v13380_v41 }
0x2229   :  { %v10794_v20 = vadd.f32 %v10786_v45, %v10748_v57  ;;  %v11073_v19 = vsel %vm6644_vm5, %v11072_v27, %v11071_v24  ;;  %v10880_v48 = vadd.f32 1.0, %v13382_v59  ;;  %v13384_v57 = vpop.eup %13383 }
0x222a   :  { %v10730_v38 = vpop.permute.xlu0 %10729  ;;  %v10891_v16 = vmul.f32 0.5, %v10883_v1  ;;  %v10884_v45 = vadd.f32 1.0, %v13384_v57 }
0x222b   :  { %v10749_v61 = vmul.f32 %v10730_v38, %v10709_v63  ;;  %v11074_v9 = vrot.slane %v10794_v20, 5  ;;  %v10977_v63 = vsub.f32 1.0, %v17221_v22  ;;  %v10888_v44 = vmul.f32 0.5, %v10880_v48 }
0x222c   :  { %v10979_v15 = vsub.f32 1.0, %v10891_v16  ;;  %v10892_v22 = vmul.f32 0.5, %v10884_v45 }
0x222d   :  { %v10795_v43 = vadd.f32 %v10787_v42, %v10749_v61  ;;  %v11075_v37 = vsel %vm6647_vm6, %v11074_v9, %v11073_v19  ;;  %v11000_v61 = vpop.permute.xlu1 %10999  ;;  %v13386_v42 = vpop.eup %13385  ;;  %v10976_v20 = vsub.f32 1.0, %v10888_v44  ;;  %v11048_v11 = vmul.f32 %v17253_v4, %v10888_v44 }
0x222e   :  { %v10732_v62 = vpop.permute.xlu0 %10731  ;;  %v10885_v18 = vadd.f32 1.0, %v13386_v42  ;;  %v10980_v25 = vsub.f32 1.0, %v10892_v22 }
0x222f   :  { %v10750_v52 = vmul.f32 %v10732_v62, %v10710_v36  ;;  %v11076_v35 = vrot.slane %v10795_v43, 4  ;;  %v11019_v36 = vmul.f32 %v11000_v61, %v10979_v15  ;;  %v13388_v62 = vpop.eup %13387 }
0x2230   :  { %v13390_v50 = vpop.eup %13389  ;;  %v10886_v24 = vadd.f32 1.0, %v13388_v62  ;;  %v10893_v21 = vmul.f32 0.5, %v10885_v18 }
0x2231   :  { %v10796_v29 = vadd.f32 %v10788_v0, %v10750_v52  ;;  %v11077_v3 = vsel %vm6650_vm7, %v11076_v35, %v11075_v37  ;;  %v11051_v0 = vmul.f32 %v17247_v26, %v10891_v16  ;;  %v10879_v9 = vadd.f32 1.0, %v13390_v50 }
0x2232   :  { %v10734_v31 = vpop.permute.xlu0 %10733  ;;  %v11052_v26 = vmul.f32 %v17249_v58, %v10892_v22  ;;  %v10981_v7 = vsub.f32 1.0, %v10893_v21 }
0x2233   :  { %v10751_v13 = vmul.f32 %v10734_v31, %v10711_v51  ;;  %v11078_v54 = vrot.slane %v10796_v29, 3  ;;  %v11059_v8 = vadd.f32 %v11051_v0, %v11019_v36  ;;  %v10887_v41 = vmul.f32 0.5, %v10879_v9  ;;  %v11184_v9 = vld [vmem:[#allocation19 + $0xd0] sm:$0xff] }
0x2235   :  { %v10797_v28 = vadd.f32 %v10789_v2, %v10751_v13  ;;  %v11079_v30 = vsel %vm6653_vm8, %v11078_v54, %v11077_v3  ;;  %v11103_v2 = vrot.slane %v11059_v8, 5  ;;  %v10894_v13 = vmul.f32 0.5, %v10886_v24  ;;  %v11024_v54 = vpop.permute.xlu1 %11023  ;;  %v11189_v24 = vld [vmem:[#allocation19 + $0xf8] sm:$0xff] }
0x2236   :  { %v10975_v59 = vsub.f32 1.0, %v10887_v41  ;;  %11302 = vmatprep.subr.mxu1 %v11189_v24 }
0x2237   :  { %v11080_v56 = vrot.slane %v10797_v28, 2  ;;  %v11053_v28 = vmul.f32 %v17251_v5, %v10893_v21  ;;  %v10982_v58 = vsub.f32 1.0, %v10894_v13  ;;  %v11186_v21 = vld [vmem:[#allocation19 + $0xe0] sm:$0xff] }
0x2239   :  { %v11081_v14 = vsel %vm6656_vm9, %v11080_v56, %v11079_v30  ;;  %v11054_v30 = vmul.f32 %v17261_v12, %v10894_v13  ;;  %v11176_v13 = vld [vmem:[#allocation19 + $0x90] sm:$0xff] }
0x223a   :  { %v10992_v17 = vpop.permute.xlu0 %10991  ;;  %v11083_v40 = vsel %vm6659_vm10, %v11082_v32, %v11081_v14 }
0x223b   :  { %11086 = vrot.lane.b32.xlu1 %v11083_v40, %s13761_s11  ;;  %v10760_v40 = vpop.permute.xlu1 %10759  ;;  %v11015_v48 = vmul.f32 %v10992_v17, %v10975_v59  ;;  %v11158_v59 = vld [vmem:[#allocation19] sm:$0xff] }
0x223e   :  { %v10996_v38 = vpop.permute.xlu0 %10995 }
0x223f   :  { %v11017_v60 = vmul.f32 %v10996_v38, %v10977_v63  ;;  %v10705_v63 = vsub.f32 1.0, %v17160_v23  ;;  %v11047_v38 = vmul.f32 %v11024_v54, %v10887_v41  ;;  %v11172_v54 = vld [vmem:[#allocation19 + $0x70] sm:$0xff]  ;;  %v11166_v41 = vld [vmem:[#allocation19 + $0x40] sm:$0xff] }
0x2241   :  { %v11057_v39 = vadd.f32 %v17225_v55, %v11017_v60  ;;  %v10783_v60 = vmul.f32 %v10760_v40, %v17160_v23  ;;  %v11055_v45 = vadd.f32 %v11047_v38, %v11015_v48 }
0x2242   :  { %v10998_v34 = vpop.permute.xlu0 %10997 }
0x2243   :  { %v11018_v33 = vmul.f32 %v10998_v34, %v10978_v6  ;;  %v11099_v29 = vrot.slane %v11057_v39, 7  ;;  %v11098_v17 = vrot.slane %v11055_v45, 1 }
0x2245   :  { %v11058_v43 = vadd.f32 %v17236_v49, %v11018_v33 }
0x2246   :  { %v10994_v52 = vpop.permute.xlu0 %10993 }
0x2247   :  { %v11016_v55 = vmul.f32 %v10994_v52, %v10976_v20  ;;  %v11101_v53 = vrot.slane %v11058_v43, 6 }
0x2249   :  { %v11056_v51 = vadd.f32 %v11048_v11, %v11016_v55  ;;  %v11187_v55 = vld [vmem:[#allocation19 + $0xe8] sm:$0xff] }
0x224a   :  { %v11002_v31 = vpop.permute.xlu0 %11001  ;;  %11231 = vmatprep.subr.mxu0 %v11187_v55 }
0x224b   :  { %v11100_v27 = vsel %vm6644_vm5, %v11099_v29, %v11056_v51  ;;  %v11020_v49 = vmul.f32 %v11002_v31, %v10980_v25  ;;  %v11183_v29 = vld [vmem:[#allocation19 + $0xc8] sm:$0xff]  ;;  %v11185_v51 = vld [vmem:[#allocation19 + $0xd8] sm:$0xff]  ;;  %11232 = vmatpush1.msra.mxu0 %v11186_v21  ;;  %v11182_v25 = vld [vmem:[#allocation19 + $0xc0] sm:$0xff] }
0x224c   :  { %v11102_v35 = vsel %vm6647_vm6, %v11101_v53, %v11100_v27  ;;  %v11179_v53 = vld [vmem:[#allocation19 + $0xa8] sm:$0xff]  ;;  %11233 = vmatprep.subr.mxu0 %v11183_v29  ;;  %v11181_v31 = vld [vmem:[#allocation19 + $0xb8] sm:$0xff]  ;;  %v11470_v29 = vld [vmem:[#allocation20 + $0xf0] sm:$0xff] }
0x224d   :  { %v11060_v4 = vadd.f32 %v11052_v26, %v11020_v49  ;;  %v11104_v46 = vsel %vm6650_vm7, %v11103_v2, %v11102_v35  ;;  %v11178_v26 = vld [vmem:[#allocation19 + $0xa0] sm:$0xff]  ;;  %v11180_v2 = vld [vmem:[#allocation19 + $0xb0] sm:$0xff]  ;;  %11234 = vmatpush1.msra.mxu0 %v11182_v25  ;;  %v11175_v27 = vld [vmem:[#allocation19 + $0x88] sm:$0xff] }
0x224e   :  { %v11004_v19 = vpop.permute.xlu0 %11003  ;;  %v11177_v49 = vld [vmem:[#allocation19 + $0x98] sm:$0xff]  ;;  %11235 = vmatprep.subr.mxu0 %v11179_v53  ;;  %v11174_v35 = vld [vmem:[#allocation19 + $0x80] sm:$0xff]  ;;  %v11469_v25 = vld [vmem:[#allocation20 + $0xe8] sm:$0xff] }
0x224f   :  { %v11105_v37 = vrot.slane %v11060_v4, 4  ;;  %v11021_v47 = vmul.f32 %v11004_v19, %v10981_v7  ;;  %11236 = vmatpush1.msra.mxu0 %v11178_v26  ;;  %v11171_v4 = vld [vmem:[#allocation19 + $0x68] sm:$0xff]  ;;  %v11173_v7 = vld [vmem:[#allocation19 + $0x78] sm:$0xff]  ;;  %v11468_v53 = vld [vmem:[#allocation20 + $0xe0] sm:$0xff] }
0x2250   :  { %11237 = vmatprep.subr.mxu0 %v11175_v27  ;;  %v11167_v19 = vld [vmem:[#allocation19 + $0x48] sm:$0xff]  ;;  %v11471_v21 = vld [vmem:[#allocation20 + $0xf8] sm:$0xff]  ;;  %v11466_v27 = vld [vmem:[#allocation20 + $0xd0] sm:$0xff] }
0x2251   :  { %v11061_v3 = vadd.f32 %v11053_v28, %v11021_v47  ;;  %v11106_v56 = vsel %vm6653_vm8, %v11105_v37, %v11104_v46  ;;  %v11170_v46 = vld [vmem:[#allocation19 + $0x60] sm:$0xff]  ;;  %11238 = vmatpush1.msra.mxu0 %v11174_v35  ;;  %v11169_v28 = vld [vmem:[#allocation19 + $0x58] sm:$0xff]  ;;  %v11168_v37 = vld [vmem:[#allocation19 + $0x50] sm:$0xff] }
0x2252   :  { %v11006_v32 = vpop.permute.xlu0 %11005  ;;  %11239 = vmatprep.subr.mxu0 %v11171_v4  ;;  %v11163_v47 = vld [vmem:[#allocation19 + $0x28] sm:$0xff]  ;;  %v11467_v26 = vld [vmem:[#allocation20 + $0xd8] sm:$0xff]  ;;  %v11464_v4 = vld [vmem:[#allocation20 + $0xc0] sm:$0xff] }
0x2253   :  { %v11107_v1 = vrot.slane %v11061_v3, 3  ;;  %v11022_v14 = vmul.f32 %v11006_v32, %v10982_v58  ;;  %11240 = vmatpush1.msra.mxu0 %v11170_v46  ;;  %v11165_v3 = vld [vmem:[#allocation19 + $0x38] sm:$0xff]  ;;  %v11162_v58 = vld [vmem:[#allocation19 + $0x20] sm:$0xff]  ;;  %v11159_v32 = vld [vmem:[#allocation19 + $0x8] sm:$0xff] }
0x2254   :  { %11241 = vmatprep.subr.mxu0 %v11167_v19  ;;  %v11465_v35 = vld [vmem:[#allocation20 + $0xc8] sm:$0xff]  ;;  %v11463_v46 = vld [vmem:[#allocation20 + $0xb8] sm:$0xff]  ;;  %v11462_v19 = vld [vmem:[#allocation20 + $0xb0] sm:$0xff] }
0x2255   :  { %v11062_v16 = vadd.f32 %v11054_v30, %v11022_v14  ;;  %v11108_v5 = vsel %vm6656_vm9, %v11107_v1, %v11106_v56  ;;  %v11164_v56 = vld [vmem:[#allocation19 + $0x30] sm:$0xff]  ;;  %11242 = vmatpush1.msra.mxu0 %v11166_v41  ;;  %v11161_v30 = vld [vmem:[#allocation19 + $0x18] sm:$0xff]  ;;  %v11461_v41 = vld [vmem:[#allocation20 + $0xa8] sm:$0xff] }
0x2256   :  { %v10722_v57 = vpop.permute.xlu0 %10721  ;;  %11243 = vmatprep.subr.mxu0 %v11163_v47  ;;  %v11160_v1 = vld [vmem:[#allocation19 + $0x10] sm:$0xff]  ;;  %v11460_v47 = vld [vmem:[#allocation20 + $0xa0] sm:$0xff] }
0x2257   :  { %v11109_v44 = vrot.slane %v11062_v16, 2  ;;  %v10745_v61 = vmul.f32 %v10722_v57, %v10705_v63  ;;  %11244 = vmatpush1.msra.mxu0 %v11162_v58  ;;  %v12029_v63 = vld [vmem:[#allocation16] ss:$0 sm:$0xff]  ;;  %v12030_v57 = vld [vmem:[#allocation17] ss:$0 sm:$0xff] }
0x2258   :  { %11245 = vmatprep.subr.mxu0 %v11159_v32  ;;  %v11459_v58 = vld [vmem:[#allocation20 + $0x98] sm:$0xff]  ;;  %v11458_v32 = vld [vmem:[#allocation20 + $0x90] sm:$0xff] }
0x2259   :  { %v10791_v15 = vadd.f32 %v10783_v60, %v10745_v61  ;;  %v11110_v12 = vsel %vm6659_vm10, %v11109_v44, %v11108_v5  ;;  %11246 = vmatpush1.msra.mxu0 %v11158_v59  ;;  %v11190_v44 = vld [vmem:[%s17446_s12] sm:$0xf]  ;;  %v17635_v61 = vld [vmem:[#allocation32_spill] sm:$0xff] }
0x225a   :  { %11113 = vrot.lane.b32.xlu1 %v11110_v12, %s13757_s2  ;;  %v17332_v45 = vsub.s32 2, %v17635_v61  ;;  %11580 = vmatprep.subr.mxu0 %v11471_v21  ;;  %v11457_v59 = vld [vmem:[#allocation20 + $0x88] sm:$0xff] }
0x225b   :  { %11084 = vrot.lane.b32.xlu0 %v10791_v15, %s13761_s11  ;;  %v17636_v15 = vld [vmem:[#allocation33_spill] sm:$0xff]  ;;  %v11445_v21 = vld [vmem:[#allocation20 + $0x28] sm:$0xff]  ;;  %s11885_s11 = sshll.u32 %s13773_s30, 4  ;;  %s11886_s11 = int_to_ptr.vmem [resolvable:$true] %s11885_s11 }
0x225c   :  { %v11195_v12 = vrot.slane %v11190_v44, %v17636_v15  ;;  %s13704_s19 = scalar_lea.vmem %s11886_s11, 128  ;;  %p13709_p10 = scmp.lt.s32.totalorder %s11886_s11, %s11886_s11 }
0x225d   :  { %p13705_p9 = scmp.ne.s32.totalorder %s11886_s11, %s13704_s19  ;;  %p13710_p11 = scmp.lt.s32.totalorder %s13704_s19, %s13704_s19 }
0x225f   :  { %11111 = vrot.lane.b32.xlu0 %v11098_v17, %s13757_s2  ;;  %v17336_v17 = vsub.s32 3, %v17635_v61  ;;  %v11451_v61 = vld [vmem:[#allocation20 + $0x58] sm:$0xff]  ;;  %p13711_p12 = por %p13710_p11, %p13709_p10 }
0x2261   :  { %p13712_p13 = pnand %p13711_p12, %p13705_p9 }
0x22ad   :  { %v11087_v39 = vpop.permute.xlu1 %11086 }
0x22cc   :  { %v11114_v6 = vpop.permute.xlu1 %11113 }
0x22cd   :  { %v11085_v42 = vpop.permute.xlu0 %11084  ;;  %v11118_v34 = vsel %vm254_vm0, %v11087_v39, %v11114_v6  ;;  %v11203_v39 = vrot.slane %v11190_v44, %v17332_v45  ;;  %v17637_v6 = vld [vmem:[#allocation34_spill] sm:$0xff] }
0x22ce   :  { %v11123_v33 = vrot.slane %v11118_v34, 7 }
0x22d1   :  { %v11112_v36 = vpop.permute.xlu0 %11111 }
0x22d2   :  { %v11117_v23 = vsel %vm254_vm0, %v11085_v42, %v11112_v36  ;;  %v11199_v42 = vrot.slane %v11190_v44, %v17637_v6 }
0x22d3   :  { %v11122_v20 = vrot.slane %v11117_v23, 7 }
0x22d5   :  { %v11124_v62 = vsel %vm11121_vm4, %v11122_v20, %v11123_v33  ;;  %v11207_v33 = vrot.slane %v11190_v44, %v17336_v17  ;;  %v11516_v44 = vld [vmem:[#allocation20 + $0x260] sm:$0xff] }
0x22d6   :  { %v11126_v0 = vadd.f32 %v11124_v62, %v17052_v10  ;;  %v11188_v10 = vld [vmem:[#allocation19 + $0xf0] sm:$0xff] }
0x22d7   :  { %11303 = vmatpush1.msra.mxu1 %v11188_v10  ;;  %v11535_v10 = vld [vmem:[#allocation20 + $0x2f8] sm:$0xff] }
0x22d8   :  { %v11127_v22 = vmul.f32 0.125, %v11126_v0  ;;  %11304 = vmatprep.subr.mxu1 %v11185_v51  ;;  %v11534_v51 = vld [vmem:[#allocation20 + $0x2f0] sm:$0xff] }
0x22d9   :  { %11305 = vmatpush1.msra.mxu1 %v11184_v9  ;;  %v11533_v9 = vld [vmem:[#allocation20 + $0x2e8] sm:$0xff] }
0x22da   :  { %v11128_v18 = vsel %vm6120_vm12, %v11127_v22, 0.0  ;;  %11306 = vmatprep.subr.mxu1 %v11181_v31  ;;  %v11532_v31 = vld [vmem:[#allocation20 + $0x2e0] sm:$0xff] }
0x22db   :  { %11129 = vadd.xlane.f32.xlu0 %v11128_v18  ;;  %11307 = vmatpush1.msra.mxu1 %v11180_v2  ;;  %v11531_v2 = vld [vmem:[#allocation20 + $0x2d8] sm:$0xff] }
0x22dc   :  { %11308 = vmatprep.subr.mxu1 %v11177_v49  ;;  %v11530_v49 = vld [vmem:[#allocation20 + $0x2d0] sm:$0xff] }
0x22dd   :  { %11309 = vmatpush1.msra.mxu1 %v11176_v13  ;;  %v11529_v13 = vld [vmem:[#allocation20 + $0x2c8] sm:$0xff] }
0x22de   :  { %11310 = vmatprep.subr.mxu1 %v11173_v7  ;;  %v11528_v7 = vld [vmem:[#allocation20 + $0x2c0] sm:$0xff] }
0x22df   :  { %11311 = vmatpush1.msra.mxu1 %v11172_v54  ;;  %v11527_v54 = vld [vmem:[#allocation20 + $0x2b8] sm:$0xff] }
0x22e0   :  { %11312 = vmatprep.subr.mxu1 %v11169_v28  ;;  %v11526_v28 = vld [vmem:[#allocation20 + $0x2b0] sm:$0xff] }
0x22e1   :  { %11313 = vmatpush1.msra.mxu1 %v11168_v37  ;;  %v11525_v37 = vld [vmem:[#allocation20 + $0x2a8] sm:$0xff] }
0x22e2   :  { %11314 = vmatprep.subr.mxu1 %v11165_v3  ;;  %v11524_v3 = vld [vmem:[#allocation20 + $0x2a0] sm:$0xff] }
0x22e3   :  { %11315 = vmatpush1.msra.mxu1 %v11164_v56  ;;  %v11523_v56 = vld [vmem:[#allocation20 + $0x298] sm:$0xff] }
0x22e4   :  { %11316 = vmatprep.subr.mxu1 %v11161_v30  ;;  %v11522_v30 = vld [vmem:[#allocation20 + $0x290] sm:$0xff] }
0x22e5   :  { %11317 = vmatpush1.msra.mxu1 %v11160_v1  ;;  %v11521_v1 = vld [vmem:[#allocation20 + $0x288] sm:$0xff] }
0x22e6   :  { %11651 = vmatprep.subr.mxu1 %v11535_v10  ;;  %v11509_v10 = vld [vmem:[#allocation20 + $0x228] sm:$0xff] }
0x2364   :  { %v11130_v43 = vpop.xlane.xlu0 %11129 }
0x2365   :  { %v11132_v52 = vmul.f32 0.015625, %v11130_v43 }
0x2367   :  { %v17320_v50 = vsub.f32 %v11127_v22, %v11132_v52 }
0x2369   :  { %v11134_v11 = vmul.f32 %v17320_v50, %v17320_v50 }
0x236b   :  { %v11135_v8 = vsel %vm6120_vm12, %v11134_v11, 0.0 }
0x236c   :  { %11136 = vadd.xlane.f32.xlu1 %v11135_v8 }
0x23f5   :  { %v11137_v14 = vpop.xlane.xlu1 %11136 }
0x23f6   :  { %v11138_v40 = vmul.f32 0.015625, %v11137_v14  ;;  %v11456_v14 = vld [vmem:[#allocation20 + $0x80] sm:$0xff] }
0x23f8   :  { %v11139_v48 = vadd.f32 1e-05, %v11138_v40  ;;  %v11520_v40 = vld [vmem:[#allocation20 + $0x280] sm:$0xff] }
0x23fa   :  { %13391 = vrsqrt.f32 %v11139_v48  ;;  %v11455_v48 = vld [vmem:[#allocation20 + $0x78] sm:$0xff] }
0x2407   :  { %v13392_v16 = vpop.eup %13391 }
0x2408   :  { %v11141_v5 = vmul.f32 %v13392_v16, %v17320_v50  ;;  %v11519_v16 = vld [vmem:[#allocation20 + $0x278] sm:$0xff] }
0x240a   :  { %v11149_v38 = vmul.f32 %v12029_v63, %v11141_v5  ;;  %v11454_v63 = vld [vmem:[#allocation20 + $0x70] sm:$0xff] }
0x240b   :  { %v11518_v5 = vld [vmem:[#allocation20 + $0x270] sm:$0xff] }
0x240c   :  { %v11157_v60 = vadd.f32 %v12030_v57, %v11149_v38  ;;  %v11453_v57 = vld [vmem:[#allocation20 + $0x68] sm:$0xff] }
0x240d   :  { %v11517_v38 = vld [vmem:[#allocation20 + $0x268] sm:$0xff] }
0x240e   :  { %12031 = vmatmul.mubr.msk.f32.vlgmr.msra.gmra.mxu0 %vm6120_vm12, %v11157_v60  ;;  %12032 = vmatmul.mubr.msk.f32.vlgmr.msra.gmra.mxu1 %vm6120_vm12, %v11157_v60  ;;  %v11452_v60 = vld [vmem:[#allocation20 + $0x60] sm:$0xff] }
0x240f   :  { %11581 = vmatpush1.msra.mxu0 %v11470_v29  ;;  %11652 = vmatpush1.msra.mxu1 %v11534_v51  ;;  %v11444_v29 = vld [vmem:[#allocation20 + $0x20] sm:$0xff] }
0x2410   :  { %11582 = vmatprep.subr.mxu0 %v11469_v25  ;;  %11653 = vmatprep.subr.mxu1 %v11533_v9  ;;  %v11508_v51 = vld [vmem:[#allocation20 + $0x220] sm:$0xff]  ;;  %v11443_v25 = vld [vmem:[#allocation20 + $0x18] sm:$0xff] }
0x2411   :  { %11583 = vmatpush1.msra.mxu0 %v11468_v53  ;;  %11654 = vmatpush1.msra.mxu1 %v11532_v31  ;;  %v11507_v9 = vld [vmem:[#allocation20 + $0x218] sm:$0xff]  ;;  %v11442_v53 = vld [vmem:[#allocation20 + $0x10] sm:$0xff] }
0x2412   :  { %11584 = vmatprep.subr.mxu0 %v11467_v26  ;;  %11655 = vmatprep.subr.mxu1 %v11531_v2  ;;  %v11506_v31 = vld [vmem:[#allocation20 + $0x210] sm:$0xff]  ;;  %v11441_v26 = vld [vmem:[#allocation20 + $0x8] sm:$0xff] }
0x2413   :  { %11585 = vmatpush1.msra.mxu0 %v11466_v27  ;;  %11656 = vmatpush1.msra.mxu1 %v11530_v49  ;;  %v11505_v2 = vld [vmem:[#allocation20 + $0x208] sm:$0xff]  ;;  %v11440_v27 = vld [vmem:[#allocation20] sm:$0xff] }
0x2414   :  { %11586 = vmatprep.subr.mxu0 %v11465_v35  ;;  %11657 = vmatprep.subr.mxu1 %v11529_v13  ;;  %v11504_v49 = vld [vmem:[#allocation20 + $0x200] sm:$0xff]  ;;  %v11503_v35 = vld [vmem:[#allocation20 + $0x1f8] sm:$0xff] }
0x2415   :  { %11587 = vmatpush1.msra.mxu0 %v11464_v4  ;;  %11658 = vmatpush1.msra.mxu1 %v11528_v7  ;;  %v11567_v13 = vld [vmem:[#allocation20 + $0x3f8] sm:$0xff]  ;;  %v11502_v4 = vld [vmem:[#allocation20 + $0x1f0] sm:$0xff] }
0x2416   :  { %11588 = vmatprep.subr.mxu0 %v11463_v46  ;;  %11659 = vmatprep.subr.mxu1 %v11527_v54  ;;  %v11566_v7 = vld [vmem:[#allocation20 + $0x3f0] sm:$0xff]  ;;  %v11501_v46 = vld [vmem:[#allocation20 + $0x1e8] sm:$0xff] }
0x2417   :  { %11589 = vmatpush1.msra.mxu0 %v11462_v19  ;;  %11660 = vmatpush1.msra.mxu1 %v11526_v28  ;;  %v11565_v54 = vld [vmem:[#allocation20 + $0x3e8] sm:$0xff]  ;;  %v11500_v19 = vld [vmem:[#allocation20 + $0x1e0] sm:$0xff] }
0x2418   :  { %11590 = vmatprep.subr.mxu0 %v11461_v41  ;;  %11661 = vmatprep.subr.mxu1 %v11525_v37  ;;  %v11564_v28 = vld [vmem:[#allocation20 + $0x3e0] sm:$0xff]  ;;  %v11499_v41 = vld [vmem:[#allocation20 + $0x1d8] sm:$0xff] }
0x2419   :  { %11591 = vmatpush1.msra.mxu0 %v11460_v47  ;;  %11662 = vmatpush1.msra.mxu1 %v11524_v3  ;;  %v11563_v37 = vld [vmem:[#allocation20 + $0x3d8] sm:$0xff]  ;;  %v11498_v47 = vld [vmem:[#allocation20 + $0x1d0] sm:$0xff] }
0x241a   :  { %11592 = vmatprep.subr.mxu0 %v11459_v58  ;;  %11663 = vmatprep.subr.mxu1 %v11523_v56  ;;  %v11562_v3 = vld [vmem:[#allocation20 + $0x3d0] sm:$0xff]  ;;  %v11497_v58 = vld [vmem:[#allocation20 + $0x1c8] sm:$0xff] }
0x241b   :  { %11593 = vmatpush1.msra.mxu0 %v11458_v32  ;;  %11664 = vmatpush1.msra.mxu1 %v11522_v30  ;;  %v11561_v56 = vld [vmem:[#allocation20 + $0x3c8] sm:$0xff] }
0x241c   :  { %11594 = vmatprep.subr.mxu0 %v11457_v59  ;;  %11665 = vmatprep.subr.mxu1 %v11521_v1 }
0x241d   :  { %11595 = vmatpush1.msra.mxu0 %v11456_v14  ;;  %11666 = vmatpush1.msra.mxu1 %v11520_v40 }
0x241e   :  { %11596 = vmatprep.subr.mxu0 %v11455_v48  ;;  %11667 = vmatprep.subr.mxu1 %v11519_v16  ;;  %v11496_v16 = vld [vmem:[#allocation20 + $0x1c0] sm:$0xff] }
0x241f   :  { %11597 = vmatpush1.msra.mxu0 %v11454_v63  ;;  %11668 = vmatpush1.msra.mxu1 %v11518_v5  ;;  %v11559_v63 = vld [vmem:[#allocation20 + $0x3b8] sm:$0xff]  ;;  %v11494_v5 = vld [vmem:[#allocation20 + $0x1b0] sm:$0xff] }
0x2420   :  { %11598 = vmatprep.subr.mxu0 %v11453_v57  ;;  %11669 = vmatprep.subr.mxu1 %v11517_v38  ;;  %v11558_v57 = vld [vmem:[#allocation20 + $0x3b0] sm:$0xff]  ;;  %v11493_v38 = vld [vmem:[#allocation20 + $0x1a8] sm:$0xff] }
0x2421   :  { %11599 = vmatpush1.msra.mxu0 %v11452_v60  ;;  %11670 = vmatpush1.msra.mxu1 %v11516_v44  ;;  %v11557_v60 = vld [vmem:[#allocation20 + $0x3a8] sm:$0xff]  ;;  %v11492_v44 = vld [vmem:[#allocation20 + $0x1a0] sm:$0xff] }
0x2422   :  { %11600 = vmatprep.subr.mxu0 %v11451_v61  ;;  %v11556_v61 = vld [vmem:[#allocation20 + $0x3a0] sm:$0xff] }
0x24ce   :  { %v11281_v34 = vpop.f32.mrf.mxu0  ;;  %v11352_v36 = vpop.f32.mrf.mxu1 }
0x24cf   :  { %v17340_v23 = vadd.f32 %v11281_v34, %v11195_v12  ;;  %v17343_v0 = vadd.f32 %v11352_v36, %v11203_v39  ;;  %v11515_v12 = vld [vmem:[#allocation20 + $0x258] sm:$0xff]  ;;  %v11450_v39 = vld [vmem:[#allocation20 + $0x50] sm:$0xff]  ;;  %v11449_v34 = vld [vmem:[#allocation20 + $0x48] sm:$0xff] }
0x24d0   :  { %v11283_v20 = vpop.f32.mrf.mxu0  ;;  %v11354_v62 = vpop.f32.mrf.mxu1  ;;  %v11513_v36 = vld [vmem:[#allocation20 + $0x248] sm:$0xff]  ;;  %11671 = vmatprep.subr.mxu1 %v11515_v12  ;;  %11601 = vmatpush1.msra.mxu0 %v11450_v39  ;;  %v11491_v12 = vld [vmem:[#allocation20 + $0x198] sm:$0xff] }
0x24d1   :  { %v17345_v22 = vadd.f32 %v11283_v20, %v11199_v42  ;;  %v11357_v18 = vmax.f32 %v17340_v23, 0.0  ;;  %v17349_v52 = vadd.f32 %v11354_v62, %v11207_v33  ;;  %v11359_v50 = vmax.f32 %v17343_v0, 0.0  ;;  %v11514_v42 = vld [vmem:[#allocation20 + $0x250] sm:$0xff]  ;;  %v11448_v33 = vld [vmem:[#allocation20 + $0x40] sm:$0xff]  ;;  %v11447_v62 = vld [vmem:[#allocation20 + $0x38] sm:$0xff]  ;;  %11602 = vmatprep.subr.mxu0 %v11449_v34 }
0x24d2   :  { %v11512_v20 = vld [vmem:[#allocation20 + $0x240] sm:$0xff]  ;;  %11672 = vmatpush1.msra.mxu1 %v11514_v42  ;;  %11603 = vmatpush1.msra.mxu0 %v11448_v33  ;;  %v11555_v39 = vld [vmem:[#allocation20 + $0x398] sm:$0xff]  ;;  %v11490_v42 = vld [vmem:[#allocation20 + $0x190] sm:$0xff] }
0x24d3   :  { %v11358_v43 = vmax.f32 %v17345_v22, 0.0  ;;  %v11360_v8 = vmax.f32 %v17349_v52, 0.0  ;;  %11673 = vmatprep.subr.mxu1 %v11513_v36  ;;  %11604 = vmatprep.subr.mxu0 %v11447_v62  ;;  %v11560_v52 = vld [vmem:[#allocation20 + $0x3c0] sm:$0xff]  ;;  %v11554_v34 = vld [vmem:[#allocation20 + $0x390] sm:$0xff]  ;;  %v11489_v36 = vld [vmem:[#allocation20 + $0x188] sm:$0xff] }
0x24d4   :  { %11674 = vmatpush1.msra.mxu1 %v11512_v20  ;;  %v11553_v33 = vld [vmem:[#allocation20 + $0x388] sm:$0xff]  ;;  %v11488_v20 = vld [vmem:[#allocation20 + $0x180] sm:$0xff] }
0x24d5   :  { %v11361_v11 = vadd.f32 %v11358_v43, %v11357_v18  ;;  %v11552_v62 = vld [vmem:[#allocation20 + $0x380] sm:$0xff] }
0x24d7   :  { %v11362_v55 = vadd.f32 %v11361_v11, %v11359_v50  ;;  %v11511_v11 = vld [vmem:[#allocation20 + $0x238] sm:$0xff] }
0x24d8   :  { %11675 = vmatprep.subr.mxu1 %v11511_v11  ;;  %v11487_v11 = vld [vmem:[#allocation20 + $0x178] sm:$0xff] }
0x24d9   :  { %v11363_v24 = vadd.f32 %v11362_v55, %v11360_v8  ;;  %v11446_v55 = vld [vmem:[#allocation20 + $0x30] sm:$0xff] }
0x24da   :  { %11605 = vmatpush1.msra.mxu0 %v11446_v55  ;;  %v11551_v55 = vld [vmem:[#allocation20 + $0x378] sm:$0xff] }
0x24db   :  { %11364 = vadd.xlane.f32.xlu0 %v11363_v24  ;;  %v11510_v24 = vld [vmem:[#allocation20 + $0x230] sm:$0xff]  ;;  %11606 = vmatprep.subr.mxu0 %v11445_v21 }
0x24dc   :  { %11676 = vmatpush1.msra.mxu1 %v11510_v24  ;;  %11607 = vmatpush1.msra.mxu0 %v11444_v29  ;;  %v11486_v24 = vld [vmem:[#allocation20 + $0x170] sm:$0xff]  ;;  %v11549_v29 = vld [vmem:[#allocation20 + $0x368] sm:$0xff] }
0x24dd   :  { %11677 = vmatprep.subr.mxu1 %v11509_v10  ;;  %11608 = vmatprep.subr.mxu0 %v11443_v25  ;;  %v11550_v21 = vld [vmem:[#allocation20 + $0x370] sm:$0xff]  ;;  %v11485_v10 = vld [vmem:[#allocation20 + $0x168] sm:$0xff]  ;;  %v11548_v25 = vld [vmem:[#allocation20 + $0x360] sm:$0xff] }
0x24de   :  { %11678 = vmatpush1.msra.mxu1 %v11508_v51  ;;  %11609 = vmatpush1.msra.mxu0 %v11442_v53  ;;  %v11484_v51 = vld [vmem:[#allocation20 + $0x160] sm:$0xff]  ;;  %v11547_v53 = vld [vmem:[#allocation20 + $0x358] sm:$0xff] }
0x24df   :  { %11679 = vmatprep.subr.mxu1 %v11507_v9  ;;  %11610 = vmatprep.subr.mxu0 %v11441_v26  ;;  %v11483_v9 = vld [vmem:[#allocation20 + $0x158] sm:$0xff]  ;;  %v11546_v26 = vld [vmem:[#allocation20 + $0x350] sm:$0xff] }
0x24e0   :  { %11680 = vmatpush1.msra.mxu1 %v11506_v31  ;;  %11611 = vmatpush1.msra.mxu0 %v11440_v27  ;;  %v11482_v31 = vld [vmem:[#allocation20 + $0x150] sm:$0xff]  ;;  %v11545_v27 = vld [vmem:[#allocation20 + $0x348] sm:$0xff] }
0x24e1   :  { %11681 = vmatprep.subr.mxu1 %v11505_v2  ;;  %11612 = vmatprep.subr.mxu0 %v11503_v35  ;;  %v11481_v2 = vld [vmem:[#allocation20 + $0x148] sm:$0xff]  ;;  %v11544_v35 = vld [vmem:[#allocation20 + $0x340] sm:$0xff] }
0x24e2   :  { %11682 = vmatpush1.msra.mxu1 %v11504_v49  ;;  %11613 = vmatpush2.msra.mxu0 %v11502_v4  ;;  %v11480_v49 = vld [vmem:[#allocation20 + $0x140] sm:$0xff]  ;;  %v11543_v4 = vld [vmem:[#allocation20 + $0x338] sm:$0xff] }
0x24e3   :  { %11683 = vmatprep.subr.mxu1 %v11567_v13  ;;  %11614 = vmatprep.subr.mxu0 %v11501_v46  ;;  %v11479_v13 = vld [vmem:[#allocation20 + $0x138] sm:$0xff]  ;;  %v11542_v46 = vld [vmem:[#allocation20 + $0x330] sm:$0xff] }
0x24e4   :  { %11684 = vmatpush2.msra.mxu1 %v11566_v7  ;;  %11615 = vmatpush2.msra.mxu0 %v11500_v19  ;;  %v11478_v7 = vld [vmem:[#allocation20 + $0x130] sm:$0xff]  ;;  %v11541_v19 = vld [vmem:[#allocation20 + $0x328] sm:$0xff] }
0x24e5   :  { %11685 = vmatprep.subr.mxu1 %v11565_v54  ;;  %11616 = vmatprep.subr.mxu0 %v11499_v41  ;;  %v11477_v54 = vld [vmem:[#allocation20 + $0x128] sm:$0xff]  ;;  %v11540_v41 = vld [vmem:[#allocation20 + $0x320] sm:$0xff] }
0x24e6   :  { %11686 = vmatpush2.msra.mxu1 %v11564_v28  ;;  %11617 = vmatpush2.msra.mxu0 %v11498_v47  ;;  %v11476_v28 = vld [vmem:[#allocation20 + $0x120] sm:$0xff]  ;;  %v11539_v47 = vld [vmem:[#allocation20 + $0x318] sm:$0xff] }
0x24e7   :  { %11687 = vmatprep.subr.mxu1 %v11563_v37  ;;  %11618 = vmatprep.subr.mxu0 %v11497_v58  ;;  %v11475_v37 = vld [vmem:[#allocation20 + $0x118] sm:$0xff]  ;;  %v11538_v58 = vld [vmem:[#allocation20 + $0x310] sm:$0xff] }
0x24e8   :  { %11688 = vmatpush2.msra.mxu1 %v11562_v3  ;;  %11619 = vmatpush2.msra.mxu0 %v11496_v16  ;;  %v11474_v3 = vld [vmem:[#allocation20 + $0x110] sm:$0xff] }
0x24e9   :  { %11689 = vmatprep.subr.mxu1 %v11561_v56  ;;  %v11473_v56 = vld [vmem:[#allocation20 + $0x108] sm:$0xff] }
0x24ea   :  { %11690 = vmatpush2.msra.mxu1 %v11560_v52 }
0x24eb   :  { %11691 = vmatprep.subr.mxu1 %v11559_v63 }
0x24ec   :  { %11692 = vmatpush2.msra.mxu1 %v11558_v57 }
0x24ed   :  { %11693 = vmatprep.subr.mxu1 %v11557_v60 }
0x24ee   :  { %11694 = vmatpush2.msra.mxu1 %v11556_v61 }
0x24ef   :  { %11695 = vmatprep.subr.mxu1 %v11555_v39 }
0x24f0   :  { %11696 = vmatpush2.msra.mxu1 %v11554_v34 }
0x24f1   :  { %11697 = vmatprep.subr.mxu1 %v11553_v33 }
0x24f2   :  { %11698 = vmatpush2.msra.mxu1 %v11552_v62 }
0x24f3   :  { %11699 = vmatprep.subr.mxu1 %v11551_v55 }
0x24f4   :  { %11700 = vmatpush2.msra.mxu1 %v11550_v21 }
0x24f5   :  { %11701 = vmatprep.subr.mxu1 %v11549_v29 }
0x24f6   :  { %11702 = vmatpush2.msra.mxu1 %v11548_v25 }
0x24f7   :  { %11703 = vmatprep.subr.mxu1 %v11547_v53 }
0x24f8   :  { %11704 = vmatpush2.msra.mxu1 %v11546_v26  ;;  %v11784_v26 = vld [vmem:[#allocation22 + $0x78] sm:$0xff] }
0x24f9   :  { %11705 = vmatprep.subr.mxu1 %v11545_v27  ;;  %v11783_v27 = vld [vmem:[#allocation22 + $0x70] sm:$0xff] }
0x24fa   :  { %11706 = vmatpush2.msra.mxu1 %v11544_v35  ;;  %v11782_v35 = vld [vmem:[#allocation22 + $0x68] sm:$0xff] }
0x24fb   :  { %11707 = vmatprep.subr.mxu1 %v11543_v4 }
0x24fc   :  { %11708 = vmatpush2.msra.mxu1 %v11542_v46 }
0x24fd   :  { %11709 = vmatprep.subr.mxu1 %v11541_v19 }
0x24fe   :  { %11710 = vmatpush2.msra.mxu1 %v11540_v41 }
0x24ff   :  { %11711 = vmatprep.subr.mxu1 %v11539_v47  ;;  %v11796_v47 = vld [vmem:[#allocation22 + $0xd8] sm:$0xff] }
0x2500   :  { %11712 = vmatpush2.msra.mxu1 %v11538_v58  ;;  %v11795_v58 = vld [vmem:[#allocation22 + $0xd0] sm:$0xff] }
0x2564   :  { %v11365_v32 = vpop.xlane.xlu0 %11364 }
0x2565   :  { %v11367_v30 = vmul.f32 0.001953125, %v11365_v32  ;;  %v11537_v32 = vld [vmem:[#allocation20 + $0x308] sm:$0xff] }
0x2566   :  { %11713 = vmatprep.subr.mxu1 %v11537_v32  ;;  %v11794_v32 = vld [vmem:[#allocation22 + $0xc8] sm:$0xff] }
0x2567   :  { %v17363_v59 = vsub.f32 %v11357_v18, %v11367_v30  ;;  %v17367_v1 = vsub.f32 %v11358_v43, %v11367_v30  ;;  %v17371_v14 = vsub.f32 %v11359_v50, %v11367_v30  ;;  %v17375_v40 = vsub.f32 %v11360_v8, %v11367_v30  ;;  %v11495_v8 = vld [vmem:[#allocation20 + $0x1b8] sm:$0xff]  ;;  %v11472_v30 = vld [vmem:[#allocation20 + $0x100] sm:$0xff] }
0x2568   :  { %11620 = vmatprep.subr.mxu0 %v11495_v8 }
0x2569   :  { %v11372_v48 = vmul.f32 %v17363_v59, %v17363_v59  ;;  %v11373_v23 = vmul.f32 %v17367_v1, %v17367_v1  ;;  %v11374_v18 = vmul.f32 %v17371_v14, %v17371_v14  ;;  %v11375_v43 = vmul.f32 %v17375_v40, %v17375_v40  ;;  %11621 = vmatpush2.msra.mxu0 %v11494_v5 }
0x256a   :  { %11622 = vmatprep.subr.mxu0 %v11493_v38 }
0x256b   :  { %v11376_v22 = vadd.f32 %v11373_v23, %v11372_v48  ;;  %11623 = vmatpush2.msra.mxu0 %v11492_v44  ;;  %v11536_v48 = vld [vmem:[#allocation20 + $0x300] sm:$0xff] }
0x256c   :  { %11624 = vmatprep.subr.mxu0 %v11491_v12  ;;  %11714 = vmatpush2.msra.mxu1 %v11536_v48  ;;  %v11793_v48 = vld [vmem:[#allocation22 + $0xc0] sm:$0xff] }
0x256d   :  { %v11377_v0 = vadd.f32 %v11376_v22, %v11374_v18  ;;  %11625 = vmatpush2.msra.mxu0 %v11490_v42 }
0x256e   :  { %11626 = vmatprep.subr.mxu0 %v11489_v36 }
0x256f   :  { %v11378_v50 = vadd.f32 %v11377_v0, %v11375_v43  ;;  %11627 = vmatpush2.msra.mxu0 %v11488_v20  ;;  %v11388_v43 = vld [vmem:[%s17447_s13] sm:$0xf] }
0x2570   :  { %11628 = vmatprep.subr.mxu0 %v11487_v11  ;;  %v11414_v0 = vld [vmem:[%s17448_s14] sm:$0xf]  ;;  %v11405_v16 = vrot.slane %v11388_v43, %v17336_v17  ;;  %v11393_v52 = vrot.slane %v11388_v43, %v17636_v15  ;;  %v11401_v8 = vrot.slane %v11388_v43, %v17332_v45 }
0x2571   :  { %11379 = vadd.xlane.f32.xlu0 %v11378_v50  ;;  %11629 = vmatpush2.msra.mxu0 %v11486_v24  ;;  %v11397_v50 = vrot.slane %v11388_v43, %v17637_v6  ;;  %v11423_v5 = vrot.slane %v11414_v0, %v17637_v6  ;;  %v11431_v57 = vrot.slane %v11414_v0, %v17336_v17  ;;  %v11791_v43 = vld [vmem:[#allocation22 + $0xb0] sm:$0xff] }
0x2572   :  { %11630 = vmatprep.subr.mxu0 %v11485_v10  ;;  %v11419_v38 = vrot.slane %v11414_v0, %v17636_v15  ;;  %v11427_v60 = vrot.slane %v11414_v0, %v17332_v45  ;;  %v11568_v45 = vld [vmem:[%s17450_s16] sm:$0x3] }
0x2573   :  { %11631 = vmatpush2.msra.mxu0 %v11484_v51  ;;  %v11775_v0 = vld [vmem:[#allocation22 + $0x30] sm:$0xff] }
0x2574   :  { %11632 = vmatprep.subr.mxu0 %v11483_v9 }
0x2575   :  { %11633 = vmatpush2.msra.mxu0 %v11482_v31  ;;  %v11800_v31 = vld [vmem:[#allocation22 + $0xf8] sm:$0xff] }
0x2576   :  { %11634 = vmatprep.subr.mxu0 %v11481_v2  ;;  %v11799_v2 = vld [vmem:[#allocation22 + $0xf0] sm:$0xff] }
0x2577   :  { %11635 = vmatpush2.msra.mxu0 %v11480_v49  ;;  %v11798_v49 = vld [vmem:[#allocation22 + $0xe8] sm:$0xff] }
0x2578   :  { %11636 = vmatprep.subr.mxu0 %v11479_v13  ;;  %v11797_v13 = vld [vmem:[#allocation22 + $0xe0] sm:$0xff] }
0x2579   :  { %11637 = vmatpush2.msra.mxu0 %v11478_v7 }
0x257a   :  { %11638 = vmatprep.subr.mxu0 %v11477_v54 }
0x257b   :  { %11639 = vmatpush2.msra.mxu0 %v11476_v28 }
0x257c   :  { %11640 = vmatprep.subr.mxu0 %v11475_v37  ;;  %v11781_v37 = vld [vmem:[#allocation22 + $0x60] sm:$0xff] }
0x257d   :  { %11641 = vmatpush2.msra.mxu0 %v11474_v3  ;;  %v11780_v3 = vld [vmem:[#allocation22 + $0x58] sm:$0xff] }
0x257e   :  { %11642 = vmatprep.subr.mxu0 %v11473_v56  ;;  %v11779_v56 = vld [vmem:[#allocation22 + $0x50] sm:$0xff] }
0x257f   :  { %11643 = vmatpush2.msra.mxu0 %v11472_v30  ;;  %v11778_v30 = vld [vmem:[#allocation22 + $0x48] sm:$0xff] }
0x2580   :  { %12186 = vmatprep.subr.mxu0 %v11800_v31 }
0x25fa   :  { %v11380_v23 = vpop.xlane.xlu0 %11379 }
0x25fb   :  { %v11381_v18 = vmul.f32 0.001953125, %v11380_v23  ;;  %v11777_v23 = vld [vmem:[#allocation22 + $0x40] sm:$0xff] }
0x25fd   :  { %v11382_v22 = vadd.f32 1e-05, %v11381_v18  ;;  %v11792_v18 = vld [vmem:[#allocation22 + $0xb8] sm:$0xff] }
0x25ff   :  { %13393 = vrsqrt.f32 %v11382_v22  ;;  %v11776_v22 = vld [vmem:[#allocation22 + $0x38] sm:$0xff] }
0x260c   :  { %v13394_v63 = vpop.eup %13393 }
0x260d   :  { %v11385_v44 = vmul.f32 %v13394_v63, %v17367_v1  ;;  %v11387_v61 = vmul.f32 %v13394_v63, %v17375_v40  ;;  %v11384_v12 = vmul.f32 %v13394_v63, %v17363_v59  ;;  %v11386_v39 = vmul.f32 %v13394_v63, %v17371_v14  ;;  %v11788_v63 = vld [vmem:[#allocation22 + $0x98] sm:$0xff] }
0x260e   :  { %v11573_v59 = vrot.slane %v11568_v45, %v17636_v15  ;;  %v11577_v1 = vrot.slane %v11568_v45, %v17637_v6 }
0x260f   :  { %v11411_v42 = vmul.f32 %v11397_v50, %v11385_v44  ;;  %v11413_v34 = vmul.f32 %v11405_v16, %v11387_v61  ;;  %v11410_v36 = vmul.f32 %v11393_v52, %v11384_v12  ;;  %v11412_v33 = vmul.f32 %v11401_v8, %v11386_v39  ;;  %v11790_v50 = vld [vmem:[#allocation22 + $0xa8] sm:$0xff]  ;;  %v11789_v52 = vld [vmem:[#allocation22 + $0xa0] sm:$0xff] }
0x2610   :  { %v11774_v16 = vld [vmem:[#allocation22 + $0x28] sm:$0xff]  ;;  %v11773_v8 = vld [vmem:[#allocation22 + $0x20] sm:$0xff] }
0x2611   :  { %v11437_v20 = vadd.f32 %v11423_v5, %v11411_v42  ;;  %v11439_v62 = vadd.f32 %v11431_v57, %v11413_v34  ;;  %v11436_v11 = vadd.f32 %v11419_v38, %v11410_v36  ;;  %v11438_v17 = vadd.f32 %v11427_v60, %v11412_v33  ;;  %v11772_v5 = vld [vmem:[#allocation22 + $0x18] sm:$0xff]  ;;  %v11787_v57 = vld [vmem:[#allocation22 + $0x90] sm:$0xff]  ;;  %v11786_v60 = vld [vmem:[#allocation22 + $0x88] sm:$0xff] }
0x2612   :  { %v11771_v38 = vld [vmem:[#allocation22 + $0x10] sm:$0xff]  ;;  %v11770_v44 = vld [vmem:[#allocation22 + $0x8] sm:$0xff]  ;;  %v11785_v61 = vld [vmem:[#allocation22 + $0x80] sm:$0xff] }
0x2613   :  { %11644 = vmatprep.mubr.f32.mxu0 %v11437_v20  ;;  %11715 = vmatprep.mubr.f32.mxu1 %v11439_v62  ;;  %v11769_v12 = vld [vmem:[#allocation22] sm:$0xff]  ;;  %v11741_v36 = vld [vmem:[%s17451_s17] sm:$0x3] }
0x2614   :  { %11645 = vmatmul.mubr.f32.vlgmr.msra.gmra.mxu0 %v11436_v11  ;;  %11716 = vmatmul.mubr.f32.vlgmr.msra.gmra.mxu1 %v11438_v17  ;;  %v11755_v33 = vld [vmem:[%s17452_s18] sm:$0x3]  ;;  %v11746_v20 = vrot.slane %v11741_v36, %v17636_v15  ;;  %v11750_v62 = vrot.slane %v11741_v36, %v17637_v6 }
0x2615   :  { %12187 = vmatpush3.msra.mxu0 %v11784_v26  ;;  %v11760_v45 = vrot.slane %v11755_v33, %v17636_v15 }
0x2616   :  { %12188 = vmatprep.subr.mxu0 %v11799_v2 }
0x2617   :  { %12189 = vmatpush3.msra.mxu0 %v11783_v27 }
0x2618   :  { %12190 = vmatprep.subr.mxu0 %v11798_v49 }
0x2619   :  { %12191 = vmatpush3.msra.mxu0 %v11782_v35 }
0x261a   :  { %12192 = vmatprep.subr.mxu0 %v11797_v13 }
0x261b   :  { %12193 = vmatpush3.msra.mxu0 %v11781_v37 }
0x261c   :  { %12194 = vmatprep.subr.mxu0 %v11796_v47 }
0x261d   :  { %12195 = vmatpush3.msra.mxu0 %v11780_v3 }
0x261e   :  { %12196 = vmatprep.subr.mxu0 %v11795_v58 }
0x261f   :  { %12197 = vmatpush3.msra.mxu0 %v11779_v56 }
0x2620   :  { %12198 = vmatprep.subr.mxu0 %v11794_v32 }
0x2621   :  { %12199 = vmatpush3.msra.mxu0 %v11778_v30 }
0x2622   :  { %12200 = vmatprep.subr.mxu0 %v11793_v48 }
0x2623   :  { %12201 = vmatpush3.msra.mxu0 %v11777_v23 }
0x2624   :  { %12202 = vmatprep.subr.mxu0 %v11792_v18 }
0x2625   :  { %12203 = vmatpush3.msra.mxu0 %v11776_v22 }
0x2626   :  { %12204 = vmatprep.subr.mxu0 %v11791_v43 }
0x2627   :  { %12205 = vmatpush3.msra.mxu0 %v11775_v0 }
0x2628   :  { %12206 = vmatprep.subr.mxu0 %v11790_v50 }
0x2629   :  { %12207 = vmatpush3.msra.mxu0 %v11774_v16 }
0x262a   :  { %12208 = vmatprep.subr.mxu0 %v11789_v52 }
0x262b   :  { %12209 = vmatpush3.msra.mxu0 %v11773_v8 }
0x262c   :  { %12210 = vmatprep.subr.mxu0 %v11788_v63 }
0x262d   :  { %12211 = vmatpush3.msra.mxu0 %v11772_v5 }
0x262e   :  { %12212 = vmatprep.subr.mxu0 %v11787_v57 }
0x262f   :  { %12213 = vmatpush3.msra.mxu0 %v11771_v38 }
0x2630   :  { %12214 = vmatprep.subr.mxu0 %v11786_v60 }
0x2631   :  { %12215 = vmatpush3.msra.mxu0 %v11770_v44 }
0x2632   :  { %12216 = vmatprep.subr.mxu0 %v11785_v61 }
0x2633   :  { %12217 = vmatpush3.msra.mxu0 %v11769_v12 }
0x26d4   :  { %v11646_v14 = vpop.f32.mrf.mxu0  ;;  %v11717_v40 = vpop.f32.mrf.mxu1 }
0x26d5   :  { %v11647_v55 = vadd.f32 %v11646_v14, %v11573_v59  ;;  %v11764_v59 = vrot.slane %v11755_v33, %v17637_v6 }
0x26d6   :  { %v11648_v24 = vpop.f32.mrf.mxu0  ;;  %v11719_v29 = vpop.f32.mrf.mxu1 }
0x26d7   :  { %v11718_v21 = vadd.f32 %v11717_v40, %v11647_v55  ;;  %v11649_v10 = vadd.f32 %v11648_v24, %v11577_v1 }
0x26d9   :  { %v11720_v51 = vadd.f32 %v11719_v29, %v11649_v10  ;;  %v11722_v25 = vmax.f32 %v11718_v21, 0.0  ;;  %v12033_v10 = vld [vmem:[%s17454_s20] ss:$0 sm:$0xff] }
0x26db   :  { %v11723_v9 = vmax.f32 %v11720_v51, 0.0 }
0x26dd   :  { %v11724_v53 = vadd.f32 %v11723_v9, %v11722_v25 }
0x26df   :  { %11725 = vadd.xlane.f32.xlu1 %v11724_v53 }
0x2768   :  { %v11726_v4 = vpop.xlane.xlu1 %11725 }
0x2769   :  { %v11728_v7 = vmul.f32 0.00390625, %v11726_v4 }
0x276b   :  { %v17408_v46 = vsub.f32 %v11722_v25, %v11728_v7  ;;  %v17410_v54 = vsub.f32 %v11723_v9, %v11728_v7 }
0x276d   :  { %v11731_v19 = vmul.f32 %v17408_v46, %v17408_v46  ;;  %v11732_v28 = vmul.f32 %v17410_v54, %v17410_v54 }
0x276f   :  { %v11733_v41 = vadd.f32 %v11732_v28, %v11731_v19 }
0x2771   :  { %11734 = vadd.xlane.f32.xlu0 %v11733_v41 }
0x27fa   :  { %v11735_v39 = vpop.xlane.xlu0 %11734 }
0x27fb   :  { %v11736_v42 = vmul.f32 0.00390625, %v11735_v39 }
0x27fd   :  { %v11737_v34 = vadd.f32 1e-05, %v11736_v42 }
0x27ff   :  { %13395 = vrsqrt.f32 %v11737_v34 }
0x280c   :  { %v13396_v11 = vpop.eup %13395 }
0x280d   :  { %v11740_v17 = vmul.f32 %v13396_v11, %v17410_v54  ;;  %v11739_v1 = vmul.f32 %v13396_v11, %v17408_v46 }
0x280f   :  { %v11754_v14 = vmul.f32 %v11750_v62, %v11740_v17  ;;  %v11753_v40 = vmul.f32 %v11746_v20, %v11739_v1 }
0x2811   :  { %v11768_v55 = vadd.f32 %v11764_v59, %v11754_v14  ;;  %v11767_v24 = vadd.f32 %v11760_v45, %v11753_v40 }
0x2813   :  { %11872 = vmatprep.mubr.f32.mxu0 %v11768_v55 }
0x2814   :  { %11873 = vmatmul.mubr.f32.vlgmr.msra.gmra.mxu0 %v11767_v24 }
0x28d4   :  { %v12218_v21 = vpop.f32.mrf.mxu0 }
0x28d6   :  { %v12219_v29 = vpop.f32.mrf.mxu0 }
0x28d7   :  { %v12220_v51 = vadd.f32 %v12219_v29, %v12218_v21 }
0x28d9   :  { %v11875_v15 = vadd.f32 %v12220_v51, %v12033_v10 }
0x28db   :  { %11878 = vst [vmem:[#allocation23] sm:$0xff] %v11875_v15 }
0x28dc   :  { %13715 = shalt.err (!%p13712_p13)
}
0x28dd   :  { %11888 = dma.vmem_to_hbm [thread:$0]  %s11886_s11, 128, %s17455_s21, [#allocation4]  }
0x28de   :  { %13738 = dma.done.wait [#allocation4], 128  }
0x28df   :  { %13739 = vsyncadd [#allocation4], 4294967168 }
0x28e0   :  { %11892 = vsyncpa [#allocation3], 1 }
0x28e1   :  { %11893 = vsyncpa [#allocation6], 1 }
0x28e2   :  { %11894 = vsyncpa [#allocation9], 1 }
0x28e3   :  { %11895 = vsyncpa [#allocation12], 1 }
0x28e4   :  { %11896 = vsyncpa [#allocation15], 1 }
0x28e5   :  { %11897 = vsyncpa [#allocation18], 1 }
0x28e6   :  { %11898 = vsyncpa [#allocation21], 1 }
0x28e7   :  { %11899 = vsyncpa [#allocation4], 1 }

</bundles_post_ra>
